<compile_context>
chip_gen: v6e
topology: v6e:2x2x1
jax: 0.10.0
libtpu: 0.0.40
codegen_flags: <defaults>
</compile_context>

<pallas_src>
import functools

import jax
import jax.numpy as jnp
from jax.experimental import pallas as pl
from jax.experimental.pallas import tpu as pltpu

NEG_SLOPE = 0.2        # LeakyReLU slope used by dgllife GAT layers
MASK_VAL = -1e9        # additive mask value for non-edges (bf16-safe)


def _elu(x):
    return jnp.where(x > 0, x, jnp.exp(jnp.minimum(x, 0.0)) - 1.0)


# ---------------------------------------------------------------------------
# In-kernel GAT building block (traced inline inside the fused kernels).
# ---------------------------------------------------------------------------
def _attention(wh, eler, mask3, H, Fh, Gb, N):
    """All-head masked attention aggregation, vectorized over heads.

    wh:    (Gb*N, H*Fh) projected node features (f32)
    eler:  (Gb*N, 2*H)  folded attention logits [el || er] (f32)
    mask3: (Gb, N, N) or (1, N, N) additive mask (0 edge / -1e9 non-edge, f32)
    returns (Gb, H, N, Fh) per-head aggregations (f32).
    """
    HF = H * Fh
    eler3 = eler.reshape(Gb, N, 2 * H)
    # per-head layout (Gb, H, N) built from cheap lane slices (H is tiny)
    el_t = jnp.stack([eler3[:, :, k] for k in range(H)], axis=1)       # source
    er_t = jnp.stack([eler3[:, :, H + k] for k in range(H)], axis=1)   # dest

    # single softmax pipeline for all heads: (Gb, H, dst, src)
    e = er_t[:, :, :, None] + el_t[:, :, None, :]
    e = jnp.where(e > 0, e, NEG_SLOPE * e)                 # LeakyReLU (once)
    e = e + mask3[:, None, :, :]                           # additive edge mask
    e = e - jnp.max(e, axis=-1, keepdims=True)
    p = jnp.exp(e)
    alpha = p / jnp.sum(p, axis=-1, keepdims=True)         # exact softmax

    wh3 = wh.reshape(Gb, N, HF)
    v = jnp.stack([wh3[:, :, k * Fh:(k + 1) * Fh] for k in range(H)],
                  axis=1)                                  # (Gb, H, N, Fh)
    agg = jnp.einsum('bij,bjf->bif',
                     alpha.reshape(Gb * H, N, N).astype(jnp.bfloat16),
                     v.reshape(Gb * H, N, Fh).astype(jnp.bfloat16),
                     preferred_element_type=jnp.float32)   # (Gb*H, N, Fh)
    return agg.reshape(Gb, H, N, Fh)


def _gat_flatten_res_elu(x, mask3, w_full, bias, H, Fh):
    """GAT layer: flatten agg, dense residual (folded into w_full), bias, ELU."""
    Gb, N, Fin = x.shape
    HF = H * Fh
    proj = jnp.dot(x.reshape(Gb * N, Fin).astype(jnp.bfloat16), w_full,
                   preferred_element_type=jnp.float32)     # (Gb*N, 2HF + 2H)
    wh, res, eler = proj[:, :HF], proj[:, HF:2 * HF], proj[:, 2 * HF:]
    agg = _attention(wh, eler, mask3, H, Fh, Gb, N)        # (Gb, H, N, Fh)
    agg_flat = jnp.concatenate([agg[:, k] for k in range(H)], axis=-1)
    return _elu(agg_flat + res.reshape(Gb, N, HF) + bias)


def _gat_mean_idres(x, mask3, w_full, bias_mean, H, Fh):
    """GAT layer: mean agg, identity residual (no res matmul), mean bias."""
    Gb, N, HF = x.shape
    proj = jnp.dot(x.reshape(Gb * N, HF).astype(jnp.bfloat16), w_full,
                   preferred_element_type=jnp.float32)     # (Gb*N, HF + 2H)
    wh, eler = proj[:, :HF], proj[:, HF:]
    agg = _attention(wh, eler, mask3, H, Fh, Gb, N)        # (Gb, H, N, Fh)
    agg_mean = jnp.mean(agg, axis=1)                       # (Gb, N, Fh)
    res_mean = sum(x[:, :, k * Fh:(k + 1) * Fh] for k in range(H)) * (1.0 / H)
    return agg_mean + res_mean + bias_mean                 # (Gb, N, Fh)


# ---------------------------------------------------------------------------
# Fused stage-1 kernel: gnn0 -> gnn1 -> WeightedSumAndMax (Gb graphs / step)
# ---------------------------------------------------------------------------
def stage1_kernel(h_ref, mask_ref, w0_ref, b0_ref, w1_ref, b1m_ref,
                  rw_ref, rb_ref, gf_ref, *, num_heads, head_dim):
    H, Fh = num_heads, head_dim
    Gb, N, _ = h_ref.shape
    mask3 = mask_ref[...].astype(jnp.float32)              # (Gb, N, N)

    h1 = _gat_flatten_res_elu(h_ref[...], mask3, w0_ref[...], b0_ref[...],
                              H, Fh)                        # (Gb, N, HF)
    h2 = _gat_mean_idres(h1, mask3, w1_ref[...], b1m_ref[...], H, Fh)

    # WeightedSumAndMax readout (exact sigmoid)
    logit = jnp.dot(h2.reshape(Gb * N, Fh), rw_ref[...],
                    preferred_element_type=jnp.float32) + rb_ref[...]
    wgt = (1.0 / (1.0 + jnp.exp(-logit))).reshape(Gb, N, 1)
    h_sum = jnp.sum(wgt * h2, axis=1)                       # (Gb, Fh)
    h_max = jnp.max(h2, axis=1)                             # (Gb, Fh)
    gf_ref[...] = jnp.concatenate([h_sum, h_max], axis=-1).astype(gf_ref.dtype)


# ---------------------------------------------------------------------------
# Fused stage-2 kernel: gat1_0 -> gat1_1 -> node-sum  (predict head in XLA)
# ---------------------------------------------------------------------------
def stage2_kernel(f_ref, wa_ref, ba_ref, wb_ref, bbm_ref, g_ref,
                  *, num_heads, head_dim):
    H, Fh = num_heads, head_dim
    Bb, M, _ = f_ref.shape

    # complete "reaction" graph (no self loops) as an additive mask, in-kernel
    row = jax.lax.broadcasted_iota(jnp.int32, (M, M), 0)
    col = jax.lax.broadcasted_iota(jnp.int32, (M, M), 1)
    mask3 = jnp.where(row == col, MASK_VAL, 0.0).reshape(1, M, M)

    h1 = _gat_flatten_res_elu(f_ref[...], mask3, wa_ref[...], ba_ref[...],
                              H, Fh)                        # (Bb, M, HF)
    h2 = _gat_mean_idres(h1, mask3, wb_ref[...], bbm_ref[...], H, Fh)
    g_ref[...] = jnp.sum(h2, axis=1).astype(g_ref.dtype)    # (Bb, Fh)


# ---------------------------------------------------------------------------
# Wrappers
# ---------------------------------------------------------------------------
def _grid_blocks(G, N, rows_per_core=256):
    """Chip-aware graphs-per-block.

    Single grid step on single-TC chips (v5e/v6e: per-step overhead dominates,
    'parallel' buys nothing); 2 balanced steps on v7x, but only when each step
    still presents >= rows_per_core matmul rows and keeps output blocks aligned.
    """
    cores = 1
    try:
        if "v7" in jax.devices()[0].device_kind.lower():
            cores = 2
    except Exception:
        cores = 1
    if (cores >= 2 and G % 2 == 0 and (G // 2) % 8 == 0
            and (G // 2) * N >= rows_per_core):
        return G // 2
    return G


def stage1_forward(h, adj_mask, p, H, Fh):
    G, N, Fin = h.shape
    HF = H * Fh
    Gb = _grid_blocks(G, N)
    kern = functools.partial(stage1_kernel, num_heads=H, head_dim=Fh)
    return pl.pallas_call(
        kern,
        out_shape=jax.ShapeDtypeStruct((G, 2 * Fh), jnp.float32),
        grid=(G // Gb,),
        in_specs=[
            pl.BlockSpec((Gb, N, Fin), lambda g: (g, 0, 0)),         # node feats
            pl.BlockSpec((Gb, N, N), lambda g: (g, 0, 0)),           # bf16 mask
            pl.BlockSpec((Fin, 2 * HF + 2 * H), lambda g: (0, 0)),   # W0|res|W0@a
            pl.BlockSpec((1, HF), lambda g: (0, 0)),                 # bias0
            pl.BlockSpec((HF, HF + 2 * H), lambda g: (0, 0)),        # W1|W1@a
            pl.BlockSpec((1, Fh), lambda g: (0, 0)),                 # bias1 mean
            pl.BlockSpec((Fh, 1), lambda g: (0, 0)),                 # readout W
            pl.BlockSpec((1, 1), lambda g: (0, 0)),                  # readout b
        ],
        out_specs=pl.BlockSpec((Gb, 2 * Fh), lambda g: (g, 0)),      # dense slab
        compiler_params=pltpu.CompilerParams(dimension_semantics=("parallel",)),
    )(h, adj_mask, p["w0_full"], p["b0"], p["w1_full"], p["b1_mean"],
      p["readout_w"], p["readout_b"])


def stage2_forward(feats, p, H, Fh):
    B, M, Fin = feats.shape
    HF = H * Fh
    Bb = _grid_blocks(B, M)
    kern = functools.partial(stage2_kernel, num_heads=H, head_dim=Fh)
    g_feats = pl.pallas_call(
        kern,
        out_shape=jax.ShapeDtypeStruct((B, Fh), jnp.float32),
        grid=(B // Bb,),
        in_specs=[
            pl.BlockSpec((Bb, M, Fin), lambda b: (b, 0, 0)),
            pl.BlockSpec((Fin, 2 * HF + 2 * H), lambda b: (0, 0)),   # Wa|res|Wa@a
            pl.BlockSpec((1, HF), lambda b: (0, 0)),
            pl.BlockSpec((HF, HF + 2 * H), lambda b: (0, 0)),        # Wb|Wb@a
            pl.BlockSpec((1, Fh), lambda b: (0, 0)),
        ],
        out_specs=pl.BlockSpec((Bb, Fh), lambda b: (b, 0)),
        compiler_params=pltpu.CompilerParams(dimension_semantics=("parallel",)),
    )(feats, p["wa_full"], p["ba"], p["wb_full"], p["bb_mean"])
    # TODO(synk): Linear(out_dim, 1) predict head kept in XLA on the tiny
    # (B, Fh) features — avoids a 1-lane masked-store output in the kernel.
    pred = jnp.dot(g_feats, p["pred_w"]) + p["pred_b"]
    return pred, g_feats


@functools.partial(jax.jit, static_argnames=("batch_size",))
def deepreac_forward(prep, hs, adj_masks, mask_fail_mol, batch_size):
    g_num, B, N, Fin = hs.shape
    HF = prep["b0"].shape[1]
    Fh = prep["b1_mean"].shape[1]
    H = HF // Fh

    # stage 1: shared molecular GAT + WeightedSumAndMax readout, one fused call
    h = hs.reshape(g_num * B, N, Fin)
    m = adj_masks.reshape(g_num * B, N, N)
    graph_feat = stage1_forward(h, m, prep, H, Fh)           # (g_num*B, 2*Fh)

    # one vectorized scatter into the (batch, g_num, 2*Fh) reaction-node slab
    # TODO(synk): out-of-range indices in mask_fail_mol are silently dropped
    #             (JAX semantics), unlike PyTorch scatter which would error.
    dest = (mask_fail_mol.astype(jnp.int32) * g_num
            + jnp.arange(g_num, dtype=jnp.int32)[:, None]).reshape(-1)
    feats = jnp.zeros((batch_size * g_num, 2 * Fh), jnp.float32)
    feats = feats.at[dest].set(graph_feat).reshape(batch_size, g_num, 2 * Fh)

    # stage 2: reaction-graph GAT + node-sum (fused) ; predict head in XLA
    pred, g_feats = stage2_forward(feats, prep, H, Fh)
    return pred, g_feats


# ---------------------------------------------------------------------------
# Parameter init / packing
# ---------------------------------------------------------------------------
def init_gat_layer_params(key, fin, heads, fh):
    kw, kl, kr, kres = jax.random.split(key, 4)
    p = {
        "W": 0.1 * jax.random.normal(kw, (fin, heads * fh), jnp.float32),
        "attn_l": 0.1 * jax.random.normal(kl, (heads, fh), jnp.float32),
        "attn_r": 0.1 * jax.random.normal(kr, (heads, fh), jnp.float32),
        "bias": jnp.zeros((1, heads * fh), jnp.float32),
    }
    if fin == heads * fh:
        p["res_W"] = jnp.eye(fin, dtype=jnp.float32)     # identity residual
    else:
        p["res_W"] = 0.1 * jax.random.normal(kres, (fin, heads * fh), jnp.float32)
    return p


def prepare_params(raw, H, Fh):
    """Pack raw GAT params into the fused kernel layout (bf16 matmul weights)."""
    HF = H * Fh

    def attn_bd(al, ar):
        bd = jnp.zeros((HF, 2 * H), jnp.float32)
        for k in range(H):
            bd = bd.at[k * Fh:(k + 1) * Fh, k].set(al[k])
            bd = bd.at[k * Fh:(k + 1) * Fh, H + k].set(ar[k])
        return bd

    def pack_flatten(g):
        # [W | res_W | W @ attn_bd]: attention logits folded into the projection.
        a = attn_bd(g["attn_l"], g["attn_r"])
        return jnp.concatenate([g["W"], g["res_W"], g["W"] @ a],
                               axis=1).astype(jnp.bfloat16)

    def pack_mean(g):
        # identity residual handled in-kernel; only [W | W @ attn_bd] needed.
        a = attn_bd(g["attn_l"], g["attn_r"])
        return jnp.concatenate([g["W"], g["W"] @ a], axis=1).astype(jnp.bfloat16)

    def bias_mean(b):
        return jnp.mean(b.reshape(H, Fh), axis=0, keepdims=True)    # (1, Fh)

    g0, g1 = raw["gnn0"], raw["gnn1"]
    ga, gb = raw["gat1_0"], raw["gat1_1"]
    return {
        # stage 1
        "w0_full": pack_flatten(g0), "b0": g0["bias"],
        "w1_full": pack_mean(g1), "b1_mean": bias_mean(g1["bias"]),
        "readout_w": raw["readout_w"], "readout_b": raw["readout_b"],
        # stage 2
        "wa_full": pack_flatten(ga), "ba": ga["bias"],
        "wb_full": pack_mean(gb), "bb_mean": bias_mean(gb["bias"]),
        "pred_w": raw["pred_w"], "pred_b": raw["pred_b"],
    }


if __name__ == "__main__":
    key = jax.random.PRNGKey(0)
    g_num, B, N, Fin = 3, 2, 8, 16          # 3 reactant graphs, batch 2, 8 atoms
    H, Fh = 4, 32                            # num_heads, hidden per head
    keys = jax.random.split(key, 10)

    # per-reactant dense molecular graphs (symmetric + self loops)
    hs = jax.random.normal(keys[0], (g_num, B, N, Fin), jnp.float32)
    rand_a = (jax.random.uniform(keys[1], (g_num, B, N, N)) < 0.4).astype(jnp.float32)
    adjs = jnp.clip(rand_a + jnp.swapaxes(rand_a, -1, -2)
                    + jnp.eye(N, dtype=jnp.float32), 0.0, 1.0)
    # precomputed additive attention mask shipped in bf16
    adj_masks = jnp.where(adjs > 0, 0.0, MASK_VAL).astype(jnp.bfloat16)
    # no failed molecules -> identity scatter indices
    mask_fail_mol = jnp.tile(jnp.arange(B, dtype=jnp.int32)[None], (g_num, 1))

    raw_params = {
        "gnn0": init_gat_layer_params(keys[2], Fin, H, Fh),
        "gnn1": init_gat_layer_params(keys[3], H * Fh, H, Fh),
        "readout_w": 0.1 * jax.random.normal(keys[4], (Fh, 1), jnp.float32),
        "readout_b": jnp.zeros((1, 1), jnp.float32),
        "gat1_0": init_gat_layer_params(keys[5], 2 * Fh, H, Fh),
        "gat1_1": init_gat_layer_params(keys[6], H * Fh, H, Fh),
        "pred_w": 0.1 * jax.random.normal(keys[7], (Fh, 1), jnp.float32),
        "pred_b": jnp.zeros((1, 1), jnp.float32),
    }
    prep = prepare_params(raw_params, H, Fh)

    pred, g_feats = deepreac_forward(prep, hs, adj_masks, mask_fail_mol,
                                     batch_size=B)
    jax.block_until_ready((pred, g_feats))
    assert pred.shape == (B, 1) and g_feats.shape == (B, Fh)
    assert bool(jnp.all(jnp.isfinite(pred))) and bool(jnp.all(jnp.isfinite(g_feats)))
    print("KERNEL_OK")
</pallas_src>

<mosaic_0001>
module attributes {stable_mosaic.version = 11 : i64} {
  func.func @stage1_kernel(%arg0: i32, %arg1: memref<6x8x16xf32, #tpu.memory_space<vmem>>, %arg2: memref<6x8x8xbf16, #tpu.memory_space<vmem>>, %arg3: memref<16x264xbf16, #tpu.memory_space<vmem>>, %arg4: memref<1x128xf32, #tpu.memory_space<vmem>>, %arg5: memref<128x136xbf16, #tpu.memory_space<vmem>>, %arg6: memref<1x32xf32, #tpu.memory_space<vmem>>, %arg7: memref<32x1xf32, #tpu.memory_space<vmem>>, %arg8: memref<1x1xf32, #tpu.memory_space<vmem>>, %arg9: memref<6x64xf32, #tpu.memory_space<vmem>>) attributes {dimension_semantics = [#tpu.dimension_semantics<parallel>], iteration_bounds = array<i64: 1>, scalar_prefetch = 0 : i64, scratch_operands = 0 : i64, tpu.core_type = #tpu.core_type<tc>, window_params = [{transform_indices = @transform_0, window_bounds = array<i64: 6, 8, 16>}, {transform_indices = @transform_1, window_bounds = array<i64: 6, 8, 8>}, {pipeline_mode = #tpu.pipeline_mode<synchronous>, transform_indices = @transform_2, window_bounds = array<i64: 16, 264>}, {pipeline_mode = #tpu.pipeline_mode<synchronous>, transform_indices = @transform_3, window_bounds = array<i64: 1, 128>}, {pipeline_mode = #tpu.pipeline_mode<synchronous>, transform_indices = @transform_4, window_bounds = array<i64: 128, 136>}, {pipeline_mode = #tpu.pipeline_mode<synchronous>, transform_indices = @transform_5, window_bounds = array<i64: 1, 32>}, {pipeline_mode = #tpu.pipeline_mode<synchronous>, transform_indices = @transform_6, window_bounds = array<i64: 32, 1>}, {pipeline_mode = #tpu.pipeline_mode<synchronous>, transform_indices = @transform_7, window_bounds = array<i64: 1, 1>}, {transform_indices = @transform_8, window_bounds = array<i64: 6, 64>}]} {
    %c0 = arith.constant 0 : index
    %c0_0 = arith.constant 0 : index
    %c0_1 = arith.constant 0 : index
    %0 = vector.load %arg2[%c0, %c0_0, %c0_1] : memref<6x8x8xbf16, #tpu.memory_space<vmem>>, vector<6x8x8xbf16>
    %1 = arith.extf %0 : vector<6x8x8xbf16> to vector<6x8x8xf32>
    %c0_2 = arith.constant 0 : index
    %c0_3 = arith.constant 0 : index
    %c0_4 = arith.constant 0 : index
    %2 = vector.load %arg1[%c0_2, %c0_3, %c0_4] : memref<6x8x16xf32, #tpu.memory_space<vmem>>, vector<6x8x16xf32>
    %c0_5 = arith.constant 0 : index
    %c0_6 = arith.constant 0 : index
    %3 = vector.load %arg3[%c0_5, %c0_6] : memref<16x264xbf16, #tpu.memory_space<vmem>>, vector<16x264xbf16>
    %c0_7 = arith.constant 0 : index
    %c0_8 = arith.constant 0 : index
    %4 = vector.load %arg4[%c0_7, %c0_8] : memref<1x128xf32, #tpu.memory_space<vmem>>, vector<1x128xf32>
    %5 = vector.shape_cast %2 : vector<6x8x16xf32> to vector<48x16xf32>
    %6 = arith.truncf %5 : vector<48x16xf32> to vector<48x16xbf16>
    %cst = arith.constant dense<0.000000e+00> : vector<48x264xf32>
    %7 = tpu.matmul %6, %3, %cst {dimension_numbers = #tpu.dot_dimension_numbers<[1], [0], [0], [1], [0, 0, 1, 1], [], []>} : vector<48x16xbf16>, vector<16x264xbf16>, vector<48x264xf32> -> vector<48x264xf32>
    %8 = vector.extract_strided_slice %7 {offsets = [0, 0], sizes = [48, 128], strides = [1, 1]} : vector<48x264xf32> to vector<48x128xf32>
    %9 = vector.extract_strided_slice %7 {offsets = [0, 128], sizes = [48, 128], strides = [1, 1]} : vector<48x264xf32> to vector<48x128xf32>
    %10 = vector.extract_strided_slice %7 {offsets = [0, 256], sizes = [48, 8], strides = [1, 1]} : vector<48x264xf32> to vector<48x8xf32>
    %11 = vector.shape_cast %10 : vector<48x8xf32> to vector<6x8x8xf32>
    %12 = vector.extract_strided_slice %11 {offsets = [0, 0, 0], sizes = [6, 8, 1], strides = [1, 1, 1]} : vector<6x8x8xf32> to vector<6x8x1xf32>
    %13 = vector.shape_cast %12 : vector<6x8x1xf32> to vector<6x8xf32>
    %14 = vector.extract_strided_slice %11 {offsets = [0, 0, 1], sizes = [6, 8, 1], strides = [1, 1, 1]} : vector<6x8x8xf32> to vector<6x8x1xf32>
    %15 = vector.shape_cast %14 : vector<6x8x1xf32> to vector<6x8xf32>
    %16 = vector.extract_strided_slice %11 {offsets = [0, 0, 2], sizes = [6, 8, 1], strides = [1, 1, 1]} : vector<6x8x8xf32> to vector<6x8x1xf32>
    %17 = vector.shape_cast %16 : vector<6x8x1xf32> to vector<6x8xf32>
    %18 = vector.extract_strided_slice %11 {offsets = [0, 0, 3], sizes = [6, 8, 1], strides = [1, 1, 1]} : vector<6x8x8xf32> to vector<6x8x1xf32>
    %19 = vector.shape_cast %18 : vector<6x8x1xf32> to vector<6x8xf32>
    %20 = vector.shape_cast %13 : vector<6x8xf32> to vector<6x1x8xf32>
    %21 = vector.shape_cast %15 : vector<6x8xf32> to vector<6x1x8xf32>
    %22 = vector.shape_cast %17 : vector<6x8xf32> to vector<6x1x8xf32>
    %23 = vector.shape_cast %19 : vector<6x8xf32> to vector<6x1x8xf32>
    %24 = tpu.concatenate %20, %21, %22, %23 in 1 : vector<6x1x8xf32>, vector<6x1x8xf32>, vector<6x1x8xf32>, vector<6x1x8xf32> -> vector<6x4x8xf32>
    %25 = vector.extract_strided_slice %11 {offsets = [0, 0, 4], sizes = [6, 8, 1], strides = [1, 1, 1]} : vector<6x8x8xf32> to vector<6x8x1xf32>
    %26 = vector.shape_cast %25 : vector<6x8x1xf32> to vector<6x8xf32>
    %27 = vector.extract_strided_slice %11 {offsets = [0, 0, 5], sizes = [6, 8, 1], strides = [1, 1, 1]} : vector<6x8x8xf32> to vector<6x8x1xf32>
    %28 = vector.shape_cast %27 : vector<6x8x1xf32> to vector<6x8xf32>
    %29 = vector.extract_strided_slice %11 {offsets = [0, 0, 6], sizes = [6, 8, 1], strides = [1, 1, 1]} : vector<6x8x8xf32> to vector<6x8x1xf32>
    %30 = vector.shape_cast %29 : vector<6x8x1xf32> to vector<6x8xf32>
    %31 = vector.extract_strided_slice %11 {offsets = [0, 0, 7], sizes = [6, 8, 1], strides = [1, 1, 1]} : vector<6x8x8xf32> to vector<6x8x1xf32>
    %32 = vector.shape_cast %31 : vector<6x8x1xf32> to vector<6x8xf32>
    %33 = vector.shape_cast %26 : vector<6x8xf32> to vector<6x1x8xf32>
    %34 = vector.shape_cast %28 : vector<6x8xf32> to vector<6x1x8xf32>
    %35 = vector.shape_cast %30 : vector<6x8xf32> to vector<6x1x8xf32>
    %36 = vector.shape_cast %32 : vector<6x8xf32> to vector<6x1x8xf32>
    %37 = tpu.concatenate %33, %34, %35, %36 in 1 : vector<6x1x8xf32>, vector<6x1x8xf32>, vector<6x1x8xf32>, vector<6x1x8xf32> -> vector<6x4x8xf32>
    %38 = vector.shape_cast %37 : vector<6x4x8xf32> to vector<6x4x8x1xf32>
    %39 = vector.shape_cast %24 : vector<6x4x8xf32> to vector<6x4x1x8xf32>
    %40 = vector.broadcast %38 : vector<6x4x8x1xf32> to vector<6x4x8x8xf32>
    %41 = vector.broadcast %39 : vector<6x4x1x8xf32> to vector<6x4x8x8xf32>
    %42 = arith.addf %40, %41 : vector<6x4x8x8xf32>
    %cst_9 = arith.constant 0.000000e+00 : f32
    %43 = vector.broadcast %cst_9 : f32 to vector<6x4x8x8xf32>
    %44 = arith.cmpf ogt, %42, %43 : vector<6x4x8x8xf32>
    %cst_10 = arith.constant 2.000000e-01 : f32
    %45 = vector.broadcast %cst_10 : f32 to vector<6x4x8x8xf32>
    %46 = arith.mulf %45, %42 : vector<6x4x8x8xf32>
    %47 = arith.select %44, %42, %46 : vector<6x4x8x8xi1>, vector<6x4x8x8xf32>
    %48 = vector.shape_cast %1 : vector<6x8x8xf32> to vector<6x1x8x8xf32>
    %49 = vector.broadcast %48 : vector<6x1x8x8xf32> to vector<6x4x8x8xf32>
    %50 = arith.addf %47, %49 : vector<6x4x8x8xf32>
    %cst_11 = arith.constant dense<0xFF800000> : vector<6x4x8xf32>
    %51 = vector.multi_reduction <maximumf>, %50, %cst_11 [3] : vector<6x4x8x8xf32> to vector<6x4x8xf32>
    %52 = vector.shape_cast %51 : vector<6x4x8xf32> to vector<6x4x8x1xf32>
    %53 = vector.broadcast %52 : vector<6x4x8x1xf32> to vector<6x4x8x8xf32>
    %54 = arith.subf %50, %53 : vector<6x4x8x8xf32>
    %55 = math.exp %54 : vector<6x4x8x8xf32>
    %cst_12 = arith.constant dense<0.000000e+00> : vector<6x4x8xf32>
    %56 = vector.multi_reduction <add>, %55, %cst_12 [3] : vector<6x4x8x8xf32> to vector<6x4x8xf32>
    %57 = vector.shape_cast %56 : vector<6x4x8xf32> to vector<6x4x8x1xf32>
    %58 = vector.broadcast %57 : vector<6x4x8x1xf32> to vector<6x4x8x8xf32>
    %59 = arith.divf %55, %58 : vector<6x4x8x8xf32>
    %60 = vector.shape_cast %8 : vector<48x128xf32> to vector<6x8x128xf32>
    %61 = vector.extract_strided_slice %60 {offsets = [0, 0, 0], sizes = [6, 8, 32], strides = [1, 1, 1]} : vector<6x8x128xf32> to vector<6x8x32xf32>
    %62 = vector.extract_strided_slice %60 {offsets = [0, 0, 32], sizes = [6, 8, 32], strides = [1, 1, 1]} : vector<6x8x128xf32> to vector<6x8x32xf32>
    %63 = vector.extract_strided_slice %60 {offsets = [0, 0, 64], sizes = [6, 8, 32], strides = [1, 1, 1]} : vector<6x8x128xf32> to vector<6x8x32xf32>
    %64 = vector.extract_strided_slice %60 {offsets = [0, 0, 96], sizes = [6, 8, 32], strides = [1, 1, 1]} : vector<6x8x128xf32> to vector<6x8x32xf32>
    %65 = vector.shape_cast %61 : vector<6x8x32xf32> to vector<6x1x8x32xf32>
    %66 = vector.shape_cast %62 : vector<6x8x32xf32> to vector<6x1x8x32xf32>
    %67 = vector.shape_cast %63 : vector<6x8x32xf32> to vector<6x1x8x32xf32>
    %68 = vector.shape_cast %64 : vector<6x8x32xf32> to vector<6x1x8x32xf32>
    %69 = tpu.concatenate %65, %66, %67, %68 in 1 : vector<6x1x8x32xf32>, vector<6x1x8x32xf32>, vector<6x1x8x32xf32>, vector<6x1x8x32xf32> -> vector<6x4x8x32xf32>
    %70 = vector.shape_cast %59 : vector<6x4x8x8xf32> to vector<24x8x8xf32>
    %71 = arith.truncf %70 : vector<24x8x8xf32> to vector<24x8x8xbf16>
    %72 = vector.shape_cast %69 : vector<6x4x8x32xf32> to vector<24x8x32xf32>
    %73 = arith.truncf %72 : vector<24x8x32xf32> to vector<24x8x32xbf16>
    "tpu.trace_start"() <{level = 10 : i32, message = "bij,bjf->bif"}> : () -> ()
    %cst_13 = arith.constant dense<0.000000e+00> : vector<24x8x32xf32>
    %74 = tpu.matmul %71, %73, %cst_13 {dimension_numbers = #tpu.dot_dimension_numbers<[2], [1], [1], [2], [0, 0, 0, 1, 1, 2], [0], [0]>} : vector<24x8x8xbf16>, vector<24x8x32xbf16>, vector<24x8x32xf32> -> vector<24x8x32xf32>
    "tpu.trace_stop"() : () -> ()
    %75 = vector.shape_cast %74 : vector<24x8x32xf32> to vector<6x4x8x32xf32>
    %76 = vector.extract_strided_slice %75 {offsets = [0, 0, 0, 0], sizes = [6, 1, 8, 32], strides = [1, 1, 1, 1]} : vector<6x4x8x32xf32> to vector<6x1x8x32xf32>
    %77 = vector.shape_cast %76 : vector<6x1x8x32xf32> to vector<6x8x32xf32>
    %78 = vector.extract_strided_slice %75 {offsets = [0, 1, 0, 0], sizes = [6, 1, 8, 32], strides = [1, 1, 1, 1]} : vector<6x4x8x32xf32> to vector<6x1x8x32xf32>
    %79 = vector.shape_cast %78 : vector<6x1x8x32xf32> to vector<6x8x32xf32>
    %80 = vector.extract_strided_slice %75 {offsets = [0, 2, 0, 0], sizes = [6, 1, 8, 32], strides = [1, 1, 1, 1]} : vector<6x4x8x32xf32> to vector<6x1x8x32xf32>
    %81 = vector.shape_cast %80 : vector<6x1x8x32xf32> to vector<6x8x32xf32>
    %82 = vector.extract_strided_slice %75 {offsets = [0, 3, 0, 0], sizes = [6, 1, 8, 32], strides = [1, 1, 1, 1]} : vector<6x4x8x32xf32> to vector<6x1x8x32xf32>
    %83 = vector.shape_cast %82 : vector<6x1x8x32xf32> to vector<6x8x32xf32>
    %84 = tpu.concatenate %77, %79, %81, %83 in 2 : vector<6x8x32xf32>, vector<6x8x32xf32>, vector<6x8x32xf32>, vector<6x8x32xf32> -> vector<6x8x128xf32>
    %85 = vector.shape_cast %9 : vector<48x128xf32> to vector<6x8x128xf32>
    %86 = arith.addf %84, %85 : vector<6x8x128xf32>
    %87 = vector.shape_cast %4 : vector<1x128xf32> to vector<1x1x128xf32>
    %88 = vector.broadcast %87 : vector<1x1x128xf32> to vector<6x8x128xf32>
    %89 = arith.addf %86, %88 : vector<6x8x128xf32>
    %cst_14 = arith.constant 0.000000e+00 : f32
    %90 = vector.broadcast %cst_14 : f32 to vector<6x8x128xf32>
    %91 = arith.cmpf ogt, %89, %90 : vector<6x8x128xf32>
    %cst_15 = arith.constant 0.000000e+00 : f32
    %92 = vector.broadcast %cst_15 : f32 to vector<6x8x128xf32>
    %93 = arith.minimumf %89, %92 : vector<6x8x128xf32>
    %94 = math.exp %93 : vector<6x8x128xf32>
    %cst_16 = arith.constant 1.000000e+00 : f32
    %95 = vector.broadcast %cst_16 : f32 to vector<6x8x128xf32>
    %96 = arith.subf %94, %95 : vector<6x8x128xf32>
    %97 = arith.select %91, %89, %96 : vector<6x8x128xi1>, vector<6x8x128xf32>
    %c0_17 = arith.constant 0 : index
    %c0_18 = arith.constant 0 : index
    %98 = vector.load %arg5[%c0_17, %c0_18] : memref<128x136xbf16, #tpu.memory_space<vmem>>, vector<128x136xbf16>
    %c0_19 = arith.constant 0 : index
    %c0_20 = arith.constant 0 : index
    %99 = vector.load %arg6[%c0_19, %c0_20] : memref<1x32xf32, #tpu.memory_space<vmem>>, vector<1x32xf32>
    %100 = vector.shape_cast %97 : vector<6x8x128xf32> to vector<48x128xf32>
    %101 = arith.truncf %100 : vector<48x128xf32> to vector<48x128xbf16>
    %cst_21 = arith.constant dense<0.000000e+00> : vector<48x136xf32>
    %102 = tpu.matmul %101, %98, %cst_21 {dimension_numbers = #tpu.dot_dimension_numbers<[1], [0], [0], [1], [0, 0, 1, 1], [], []>} : vector<48x128xbf16>, vector<128x136xbf16>, vector<48x136xf32> -> vector<48x136xf32>
    %103 = vector.extract_strided_slice %102 {offsets = [0, 0], sizes = [48, 128], strides = [1, 1]} : vector<48x136xf32> to vector<48x128xf32>
    %104 = vector.extract_strided_slice %102 {offsets = [0, 128], sizes = [48, 8], strides = [1, 1]} : vector<48x136xf32> to vector<48x8xf32>
    %105 = vector.shape_cast %104 : vector<48x8xf32> to vector<6x8x8xf32>
    %106 = vector.extract_strided_slice %105 {offsets = [0, 0, 0], sizes = [6, 8, 1], strides = [1, 1, 1]} : vector<6x8x8xf32> to vector<6x8x1xf32>
    %107 = vector.shape_cast %106 : vector<6x8x1xf32> to vector<6x8xf32>
    %108 = vector.extract_strided_slice %105 {offsets = [0, 0, 1], sizes = [6, 8, 1], strides = [1, 1, 1]} : vector<6x8x8xf32> to vector<6x8x1xf32>
    %109 = vector.shape_cast %108 : vector<6x8x1xf32> to vector<6x8xf32>
    %110 = vector.extract_strided_slice %105 {offsets = [0, 0, 2], sizes = [6, 8, 1], strides = [1, 1, 1]} : vector<6x8x8xf32> to vector<6x8x1xf32>
    %111 = vector.shape_cast %110 : vector<6x8x1xf32> to vector<6x8xf32>
    %112 = vector.extract_strided_slice %105 {offsets = [0, 0, 3], sizes = [6, 8, 1], strides = [1, 1, 1]} : vector<6x8x8xf32> to vector<6x8x1xf32>
    %113 = vector.shape_cast %112 : vector<6x8x1xf32> to vector<6x8xf32>
    %114 = vector.shape_cast %107 : vector<6x8xf32> to vector<6x1x8xf32>
    %115 = vector.shape_cast %109 : vector<6x8xf32> to vector<6x1x8xf32>
    %116 = vector.shape_cast %111 : vector<6x8xf32> to vector<6x1x8xf32>
    %117 = vector.shape_cast %113 : vector<6x8xf32> to vector<6x1x8xf32>
    %118 = tpu.concatenate %114, %115, %116, %117 in 1 : vector<6x1x8xf32>, vector<6x1x8xf32>, vector<6x1x8xf32>, vector<6x1x8xf32> -> vector<6x4x8xf32>
    %119 = vector.extract_strided_slice %105 {offsets = [0, 0, 4], sizes = [6, 8, 1], strides = [1, 1, 1]} : vector<6x8x8xf32> to vector<6x8x1xf32>
    %120 = vector.shape_cast %119 : vector<6x8x1xf32> to vector<6x8xf32>
    %121 = vector.extract_strided_slice %105 {offsets = [0, 0, 5], sizes = [6, 8, 1], strides = [1, 1, 1]} : vector<6x8x8xf32> to vector<6x8x1xf32>
    %122 = vector.shape_cast %121 : vector<6x8x1xf32> to vector<6x8xf32>
    %123 = vector.extract_strided_slice %105 {offsets = [0, 0, 6], sizes = [6, 8, 1], strides = [1, 1, 1]} : vector<6x8x8xf32> to vector<6x8x1xf32>
    %124 = vector.shape_cast %123 : vector<6x8x1xf32> to vector<6x8xf32>
    %125 = vector.extract_strided_slice %105 {offsets = [0, 0, 7], sizes = [6, 8, 1], strides = [1, 1, 1]} : vector<6x8x8xf32> to vector<6x8x1xf32>
    %126 = vector.shape_cast %125 : vector<6x8x1xf32> to vector<6x8xf32>
    %127 = vector.shape_cast %120 : vector<6x8xf32> to vector<6x1x8xf32>
    %128 = vector.shape_cast %122 : vector<6x8xf32> to vector<6x1x8xf32>
    %129 = vector.shape_cast %124 : vector<6x8xf32> to vector<6x1x8xf32>
    %130 = vector.shape_cast %126 : vector<6x8xf32> to vector<6x1x8xf32>
    %131 = tpu.concatenate %127, %128, %129, %130 in 1 : vector<6x1x8xf32>, vector<6x1x8xf32>, vector<6x1x8xf32>, vector<6x1x8xf32> -> vector<6x4x8xf32>
    %132 = vector.shape_cast %131 : vector<6x4x8xf32> to vector<6x4x8x1xf32>
    %133 = vector.shape_cast %118 : vector<6x4x8xf32> to vector<6x4x1x8xf32>
    %134 = vector.broadcast %132 : vector<6x4x8x1xf32> to vector<6x4x8x8xf32>
    %135 = vector.broadcast %133 : vector<6x4x1x8xf32> to vector<6x4x8x8xf32>
    %136 = arith.addf %134, %135 : vector<6x4x8x8xf32>
    %cst_22 = arith.constant 0.000000e+00 : f32
    %137 = vector.broadcast %cst_22 : f32 to vector<6x4x8x8xf32>
    %138 = arith.cmpf ogt, %136, %137 : vector<6x4x8x8xf32>
    %cst_23 = arith.constant 2.000000e-01 : f32
    %139 = vector.broadcast %cst_23 : f32 to vector<6x4x8x8xf32>
    %140 = arith.mulf %139, %136 : vector<6x4x8x8xf32>
    %141 = arith.select %138, %136, %140 : vector<6x4x8x8xi1>, vector<6x4x8x8xf32>
    %142 = vector.shape_cast %1 : vector<6x8x8xf32> to vector<6x1x8x8xf32>
    %143 = vector.broadcast %142 : vector<6x1x8x8xf32> to vector<6x4x8x8xf32>
    %144 = arith.addf %141, %143 : vector<6x4x8x8xf32>
    %cst_24 = arith.constant dense<0xFF800000> : vector<6x4x8xf32>
    %145 = vector.multi_reduction <maximumf>, %144, %cst_24 [3] : vector<6x4x8x8xf32> to vector<6x4x8xf32>
    %146 = vector.shape_cast %145 : vector<6x4x8xf32> to vector<6x4x8x1xf32>
    %147 = vector.broadcast %146 : vector<6x4x8x1xf32> to vector<6x4x8x8xf32>
    %148 = arith.subf %144, %147 : vector<6x4x8x8xf32>
    %149 = math.exp %148 : vector<6x4x8x8xf32>
    %cst_25 = arith.constant dense<0.000000e+00> : vector<6x4x8xf32>
    %150 = vector.multi_reduction <add>, %149, %cst_25 [3] : vector<6x4x8x8xf32> to vector<6x4x8xf32>
    %151 = vector.shape_cast %150 : vector<6x4x8xf32> to vector<6x4x8x1xf32>
    %152 = vector.broadcast %151 : vector<6x4x8x1xf32> to vector<6x4x8x8xf32>
    %153 = arith.divf %149, %152 : vector<6x4x8x8xf32>
    %154 = vector.shape_cast %103 : vector<48x128xf32> to vector<6x8x128xf32>
    %155 = vector.extract_strided_slice %154 {offsets = [0, 0, 0], sizes = [6, 8, 32], strides = [1, 1, 1]} : vector<6x8x128xf32> to vector<6x8x32xf32>
    %156 = vector.extract_strided_slice %154 {offsets = [0, 0, 32], sizes = [6, 8, 32], strides = [1, 1, 1]} : vector<6x8x128xf32> to vector<6x8x32xf32>
    %157 = vector.extract_strided_slice %154 {offsets = [0, 0, 64], sizes = [6, 8, 32], strides = [1, 1, 1]} : vector<6x8x128xf32> to vector<6x8x32xf32>
    %158 = vector.extract_strided_slice %154 {offsets = [0, 0, 96], sizes = [6, 8, 32], strides = [1, 1, 1]} : vector<6x8x128xf32> to vector<6x8x32xf32>
    %159 = vector.shape_cast %155 : vector<6x8x32xf32> to vector<6x1x8x32xf32>
    %160 = vector.shape_cast %156 : vector<6x8x32xf32> to vector<6x1x8x32xf32>
    %161 = vector.shape_cast %157 : vector<6x8x32xf32> to vector<6x1x8x32xf32>
    %162 = vector.shape_cast %158 : vector<6x8x32xf32> to vector<6x1x8x32xf32>
    %163 = tpu.concatenate %159, %160, %161, %162 in 1 : vector<6x1x8x32xf32>, vector<6x1x8x32xf32>, vector<6x1x8x32xf32>, vector<6x1x8x32xf32> -> vector<6x4x8x32xf32>
    %164 = vector.shape_cast %153 : vector<6x4x8x8xf32> to vector<24x8x8xf32>
    %165 = arith.truncf %164 : vector<24x8x8xf32> to vector<24x8x8xbf16>
    %166 = vector.shape_cast %163 : vector<6x4x8x32xf32> to vector<24x8x32xf32>
    %167 = arith.truncf %166 : vector<24x8x32xf32> to vector<24x8x32xbf16>
    "tpu.trace_start"() <{level = 10 : i32, message = "bij,bjf->bif"}> : () -> ()
    %cst_26 = arith.constant dense<0.000000e+00> : vector<24x8x32xf32>
    %168 = tpu.matmul %165, %167, %cst_26 {dimension_numbers = #tpu.dot_dimension_numbers<[2], [1], [1], [2], [0, 0, 0, 1, 1, 2], [0], [0]>} : vector<24x8x8xbf16>, vector<24x8x32xbf16>, vector<24x8x32xf32> -> vector<24x8x32xf32>
    "tpu.trace_stop"() : () -> ()
    %169 = vector.shape_cast %168 : vector<24x8x32xf32> to vector<6x4x8x32xf32>
    %cst_27 = arith.constant dense<0.000000e+00> : vector<6x8x32xf32>
    %170 = vector.multi_reduction <add>, %169, %cst_27 [1] : vector<6x4x8x32xf32> to vector<6x8x32xf32>
    %cst_28 = arith.constant 4.000000e+00 : f32
    %171 = vector.broadcast %cst_28 : f32 to vector<6x8x32xf32>
    %172 = arith.divf %170, %171 : vector<6x8x32xf32>
    %173 = vector.extract_strided_slice %97 {offsets = [0, 0, 0], sizes = [6, 8, 32], strides = [1, 1, 1]} : vector<6x8x128xf32> to vector<6x8x32xf32>
    %cst_29 = arith.constant 0.000000e+00 : f32
    %174 = vector.broadcast %cst_29 : f32 to vector<6x8x32xf32>
    %175 = arith.addf %174, %173 : vector<6x8x32xf32>
    %176 = vector.extract_strided_slice %97 {offsets = [0, 0, 32], sizes = [6, 8, 32], strides = [1, 1, 1]} : vector<6x8x128xf32> to vector<6x8x32xf32>
    %177 = arith.addf %175, %176 : vector<6x8x32xf32>
    %178 = vector.extract_strided_slice %97 {offsets = [0, 0, 64], sizes = [6, 8, 32], strides = [1, 1, 1]} : vector<6x8x128xf32> to vector<6x8x32xf32>
    %179 = arith.addf %177, %178 : vector<6x8x32xf32>
    %180 = vector.extract_strided_slice %97 {offsets = [0, 0, 96], sizes = [6, 8, 32], strides = [1, 1, 1]} : vector<6x8x128xf32> to vector<6x8x32xf32>
    %181 = arith.addf %179, %180 : vector<6x8x32xf32>
    %cst_30 = arith.constant 2.500000e-01 : f32
    %182 = vector.broadcast %cst_30 : f32 to vector<6x8x32xf32>
    %183 = arith.mulf %181, %182 : vector<6x8x32xf32>
    %184 = arith.addf %172, %183 : vector<6x8x32xf32>
    %185 = vector.shape_cast %99 : vector<1x32xf32> to vector<1x1x32xf32>
    %186 = vector.broadcast %185 : vector<1x1x32xf32> to vector<6x8x32xf32>
    %187 = arith.addf %184, %186 : vector<6x8x32xf32>
    %188 = vector.shape_cast %187 : vector<6x8x32xf32> to vector<48x32xf32>
    %c0_31 = arith.constant 0 : index
    %c0_32 = arith.constant 0 : index
    %189 = vector.load %arg7[%c0_31, %c0_32] : memref<32x1xf32, #tpu.memory_space<vmem>>, vector<32x1xf32>
    %cst_33 = arith.constant dense<0.000000e+00> : vector<48x1xf32>
    %190 = tpu.matmul %188, %189, %cst_33 {dimension_numbers = #tpu.dot_dimension_numbers<[1], [0], [0], [1], [0, 0, 1, 1], [], []>} : vector<48x32xf32>, vector<32x1xf32>, vector<48x1xf32> -> vector<48x1xf32>
    %c0_34 = arith.constant 0 : index
    %c0_35 = arith.constant 0 : index
    %191 = vector.load %arg8[%c0_34, %c0_35] : memref<1x1xf32, #tpu.memory_space<vmem>>, vector<1x1xf32>
    %192 = vector.broadcast %191 : vector<1x1xf32> to vector<48x1xf32>
    %193 = arith.addf %190, %192 : vector<48x1xf32>
    %cst_36 = arith.constant 0.000000e+00 : f32
    %194 = vector.broadcast %cst_36 : f32 to vector<48x1xf32>
    %195 = arith.subf %194, %193 : vector<48x1xf32>
    %196 = math.exp %195 : vector<48x1xf32>
    %cst_37 = arith.constant 1.000000e+00 : f32
    %197 = vector.broadcast %cst_37 : f32 to vector<48x1xf32>
    %198 = arith.addf %197, %196 : vector<48x1xf32>
    %cst_38 = arith.constant 1.000000e+00 : f32
    %199 = vector.broadcast %cst_38 : f32 to vector<48x1xf32>
    %200 = arith.divf %199, %198 : vector<48x1xf32>
    %201 = vector.shape_cast %200 : vector<48x1xf32> to vector<6x8x1xf32>
    %202 = vector.broadcast %201 : vector<6x8x1xf32> to vector<6x8x32xf32>
    %203 = arith.mulf %202, %187 : vector<6x8x32xf32>
    %cst_39 = arith.constant dense<0.000000e+00> : vector<6x32xf32>
    %204 = vector.multi_reduction <add>, %203, %cst_39 [1] : vector<6x8x32xf32> to vector<6x32xf32>
    %cst_40 = arith.constant dense<0xFF800000> : vector<6x32xf32>
    %205 = vector.multi_reduction <maximumf>, %187, %cst_40 [1] : vector<6x8x32xf32> to vector<6x32xf32>
    %206 = tpu.concatenate %204, %205 in 1 : vector<6x32xf32>, vector<6x32xf32> -> vector<6x64xf32>
    %c0_41 = arith.constant 0 : index
    %c0_42 = arith.constant 0 : index
    %207 = vector.load %arg9[%c0_41, %c0_42] : memref<6x64xf32, #tpu.memory_space<vmem>>, vector<6x64xf32>
    tpu.vector_store %arg9[%c0_41, %c0_42], %206 {strides = array<i32>} : memref<6x64xf32, #tpu.memory_space<vmem>>, vector<6x64xf32>,
    return
  }
  func.func @transform_0(%arg0: i32) -> (i32, i32, i32) {
    %c0_i32 = arith.constant 0 : i32
    %c0_i32_0 = arith.constant 0 : i32
    %c0_i32_1 = arith.constant 0 : i32
    return %arg0, %c0_i32, %c0_i32_0 : i32, i32, i32
  }
  func.func @transform_1(%arg0: i32) -> (i32, i32, i32) {
    %c0_i32 = arith.constant 0 : i32
    %c0_i32_0 = arith.constant 0 : i32
    %c0_i32_1 = arith.constant 0 : i32
    return %arg0, %c0_i32, %c0_i32_0 : i32, i32, i32
  }
  func.func @transform_2(%arg0: i32) -> (i32, i32) {
    %c0_i32 = arith.constant 0 : i32
    %c0_i32_0 = arith.constant 0 : i32
    %c0_i32_1 = arith.constant 0 : i32
    return %c0_i32, %c0_i32_0 : i32, i32
  }
  func.func @transform_3(%arg0: i32) -> (i32, i32) {
    %c0_i32 = arith.constant 0 : i32
    %c0_i32_0 = arith.constant 0 : i32
    %c0_i32_1 = arith.constant 0 : i32
    return %c0_i32, %c0_i32_0 : i32, i32
  }
  func.func @transform_4(%arg0: i32) -> (i32, i32) {
    %c0_i32 = arith.constant 0 : i32
    %c0_i32_0 = arith.constant 0 : i32
    %c0_i32_1 = arith.constant 0 : i32
    return %c0_i32, %c0_i32_0 : i32, i32
  }
  func.func @transform_5(%arg0: i32) -> (i32, i32) {
    %c0_i32 = arith.constant 0 : i32
    %c0_i32_0 = arith.constant 0 : i32
    %c0_i32_1 = arith.constant 0 : i32
    return %c0_i32, %c0_i32_0 : i32, i32
  }
  func.func @transform_6(%arg0: i32) -> (i32, i32) {
    %c0_i32 = arith.constant 0 : i32
    %c0_i32_0 = arith.constant 0 : i32
    %c0_i32_1 = arith.constant 0 : i32
    return %c0_i32, %c0_i32_0 : i32, i32
  }
  func.func @transform_7(%arg0: i32) -> (i32, i32) {
    %c0_i32 = arith.constant 0 : i32
    %c0_i32_0 = arith.constant 0 : i32
    %c0_i32_1 = arith.constant 0 : i32
    return %c0_i32, %c0_i32_0 : i32, i32
  }
  func.func @transform_8(%arg0: i32) -> (i32, i32) {
    %c0_i32 = arith.constant 0 : i32
    %c0_i32_0 = arith.constant 0 : i32
    return %arg0, %c0_i32 : i32, i32
  }
}

module attributes {stable_mosaic.version = 11 : i64} {
  func.func @stage2_kernel(%arg0: i32, %arg1: memref<2x3x64xf32, #tpu.memory_space<vmem>>, %arg2: memref<64x264xbf16, #tpu.memory_space<vmem>>, %arg3: memref<1x128xf32, #tpu.memory_space<vmem>>, %arg4: memref<128x136xbf16, #tpu.memory_space<vmem>>, %arg5: memref<1x32xf32, #tpu.memory_space<vmem>>, %arg6: memref<2x32xf32, #tpu.memory_space<vmem>>) attributes {dimension_semantics = [#tpu.dimension_semantics<parallel>], iteration_bounds = array<i64: 1>, scalar_prefetch = 0 : i64, scratch_operands = 0 : i64, tpu.core_type = #tpu.core_type<tc>, window_params = [{transform_indices = @transform_0, window_bounds = array<i64: 2, 3, 64>}, {pipeline_mode = #tpu.pipeline_mode<synchronous>, transform_indices = @transform_1, window_bounds = array<i64: 64, 264>}, {pipeline_mode = #tpu.pipeline_mode<synchronous>, transform_indices = @transform_2, window_bounds = array<i64: 1, 128>}, {pipeline_mode = #tpu.pipeline_mode<synchronous>, transform_indices = @transform_3, window_bounds = array<i64: 128, 136>}, {pipeline_mode = #tpu.pipeline_mode<synchronous>, transform_indices = @transform_4, window_bounds = array<i64: 1, 32>}, {transform_indices = @transform_5, window_bounds = array<i64: 2, 32>}]} {
    %0 = tpu.iota {dimensions = array<i32: 0>} : vector<3x3xi32>
    %1 = tpu.iota {dimensions = array<i32: 1>} : vector<3x3xi32>
    %2 = arith.cmpi eq, %0, %1 : vector<3x3xi32>
    %cst = arith.constant -1.000000e+09 : f32
    %cst_0 = arith.constant 0.000000e+00 : f32
    %3 = vector.broadcast %cst : f32 to vector<3x3xf32>
    %4 = vector.broadcast %cst_0 : f32 to vector<3x3xf32>
    %5 = arith.select %2, %3, %4 : vector<3x3xi1>, vector<3x3xf32>
    %6 = vector.shape_cast %5 : vector<3x3xf32> to vector<1x3x3xf32>
    %c0 = arith.constant 0 : index
    %c0_1 = arith.constant 0 : index
    %c0_2 = arith.constant 0 : index
    %7 = vector.load %arg1[%c0, %c0_1, %c0_2] : memref<2x3x64xf32, #tpu.memory_space<vmem>>, vector<2x3x64xf32>
    %c0_3 = arith.constant 0 : index
    %c0_4 = arith.constant 0 : index
    %8 = vector.load %arg2[%c0_3, %c0_4] : memref<64x264xbf16, #tpu.memory_space<vmem>>, vector<64x264xbf16>
    %c0_5 = arith.constant 0 : index
    %c0_6 = arith.constant 0 : index
    %9 = vector.load %arg3[%c0_5, %c0_6] : memref<1x128xf32, #tpu.memory_space<vmem>>, vector<1x128xf32>
    %10 = vector.shape_cast %7 : vector<2x3x64xf32> to vector<6x64xf32>
    %11 = arith.truncf %10 : vector<6x64xf32> to vector<6x64xbf16>
    %cst_7 = arith.constant dense<0.000000e+00> : vector<6x264xf32>
    %12 = tpu.matmul %11, %8, %cst_7 {dimension_numbers = #tpu.dot_dimension_numbers<[1], [0], [0], [1], [0, 0, 1, 1], [], []>} : vector<6x64xbf16>, vector<64x264xbf16>, vector<6x264xf32> -> vector<6x264xf32>
    %13 = vector.extract_strided_slice %12 {offsets = [0, 0], sizes = [6, 128], strides = [1, 1]} : vector<6x264xf32> to vector<6x128xf32>
    %14 = vector.extract_strided_slice %12 {offsets = [0, 128], sizes = [6, 128], strides = [1, 1]} : vector<6x264xf32> to vector<6x128xf32>
    %15 = vector.extract_strided_slice %12 {offsets = [0, 256], sizes = [6, 8], strides = [1, 1]} : vector<6x264xf32> to vector<6x8xf32>
    %16 = vector.shape_cast %15 : vector<6x8xf32> to vector<2x3x8xf32>
    %17 = vector.extract_strided_slice %16 {offsets = [0, 0, 0], sizes = [2, 3, 1], strides = [1, 1, 1]} : vector<2x3x8xf32> to vector<2x3x1xf32>
    %18 = vector.shape_cast %17 : vector<2x3x1xf32> to vector<2x3xf32>
    %19 = vector.extract_strided_slice %16 {offsets = [0, 0, 1], sizes = [2, 3, 1], strides = [1, 1, 1]} : vector<2x3x8xf32> to vector<2x3x1xf32>
    %20 = vector.shape_cast %19 : vector<2x3x1xf32> to vector<2x3xf32>
    %21 = vector.extract_strided_slice %16 {offsets = [0, 0, 2], sizes = [2, 3, 1], strides = [1, 1, 1]} : vector<2x3x8xf32> to vector<2x3x1xf32>
    %22 = vector.shape_cast %21 : vector<2x3x1xf32> to vector<2x3xf32>
    %23 = vector.extract_strided_slice %16 {offsets = [0, 0, 3], sizes = [2, 3, 1], strides = [1, 1, 1]} : vector<2x3x8xf32> to vector<2x3x1xf32>
    %24 = vector.shape_cast %23 : vector<2x3x1xf32> to vector<2x3xf32>
    %25 = vector.shape_cast %18 : vector<2x3xf32> to vector<2x1x3xf32>
    %26 = vector.shape_cast %20 : vector<2x3xf32> to vector<2x1x3xf32>
    %27 = vector.shape_cast %22 : vector<2x3xf32> to vector<2x1x3xf32>
    %28 = vector.shape_cast %24 : vector<2x3xf32> to vector<2x1x3xf32>
    %29 = tpu.concatenate %25, %26, %27, %28 in 1 : vector<2x1x3xf32>, vector<2x1x3xf32>, vector<2x1x3xf32>, vector<2x1x3xf32> -> vector<2x4x3xf32>
    %30 = vector.extract_strided_slice %16 {offsets = [0, 0, 4], sizes = [2, 3, 1], strides = [1, 1, 1]} : vector<2x3x8xf32> to vector<2x3x1xf32>
    %31 = vector.shape_cast %30 : vector<2x3x1xf32> to vector<2x3xf32>
    %32 = vector.extract_strided_slice %16 {offsets = [0, 0, 5], sizes = [2, 3, 1], strides = [1, 1, 1]} : vector<2x3x8xf32> to vector<2x3x1xf32>
    %33 = vector.shape_cast %32 : vector<2x3x1xf32> to vector<2x3xf32>
    %34 = vector.extract_strided_slice %16 {offsets = [0, 0, 6], sizes = [2, 3, 1], strides = [1, 1, 1]} : vector<2x3x8xf32> to vector<2x3x1xf32>
    %35 = vector.shape_cast %34 : vector<2x3x1xf32> to vector<2x3xf32>
    %36 = vector.extract_strided_slice %16 {offsets = [0, 0, 7], sizes = [2, 3, 1], strides = [1, 1, 1]} : vector<2x3x8xf32> to vector<2x3x1xf32>
    %37 = vector.shape_cast %36 : vector<2x3x1xf32> to vector<2x3xf32>
    %38 = vector.shape_cast %31 : vector<2x3xf32> to vector<2x1x3xf32>
    %39 = vector.shape_cast %33 : vector<2x3xf32> to vector<2x1x3xf32>
    %40 = vector.shape_cast %35 : vector<2x3xf32> to vector<2x1x3xf32>
    %41 = vector.shape_cast %37 : vector<2x3xf32> to vector<2x1x3xf32>
    %42 = tpu.concatenate %38, %39, %40, %41 in 1 : vector<2x1x3xf32>, vector<2x1x3xf32>, vector<2x1x3xf32>, vector<2x1x3xf32> -> vector<2x4x3xf32>
    %43 = vector.shape_cast %42 : vector<2x4x3xf32> to vector<2x4x3x1xf32>
    %44 = vector.shape_cast %29 : vector<2x4x3xf32> to vector<2x4x1x3xf32>
    %45 = vector.broadcast %43 : vector<2x4x3x1xf32> to vector<2x4x3x3xf32>
    %46 = vector.broadcast %44 : vector<2x4x1x3xf32> to vector<2x4x3x3xf32>
    %47 = arith.addf %45, %46 : vector<2x4x3x3xf32>
    %cst_8 = arith.constant 0.000000e+00 : f32
    %48 = vector.broadcast %cst_8 : f32 to vector<2x4x3x3xf32>
    %49 = arith.cmpf ogt, %47, %48 : vector<2x4x3x3xf32>
    %cst_9 = arith.constant 2.000000e-01 : f32
    %50 = vector.broadcast %cst_9 : f32 to vector<2x4x3x3xf32>
    %51 = arith.mulf %50, %47 : vector<2x4x3x3xf32>
    %52 = arith.select %49, %47, %51 : vector<2x4x3x3xi1>, vector<2x4x3x3xf32>
    %53 = vector.shape_cast %6 : vector<1x3x3xf32> to vector<1x1x3x3xf32>
    %54 = vector.broadcast %53 : vector<1x1x3x3xf32> to vector<2x4x3x3xf32>
    %55 = arith.addf %52, %54 : vector<2x4x3x3xf32>
    %cst_10 = arith.constant dense<0xFF800000> : vector<2x4x3xf32>
    %56 = vector.multi_reduction <maximumf>, %55, %cst_10 [3] : vector<2x4x3x3xf32> to vector<2x4x3xf32>
    %57 = vector.shape_cast %56 : vector<2x4x3xf32> to vector<2x4x3x1xf32>
    %58 = vector.broadcast %57 : vector<2x4x3x1xf32> to vector<2x4x3x3xf32>
    %59 = arith.subf %55, %58 : vector<2x4x3x3xf32>
    %60 = math.exp %59 : vector<2x4x3x3xf32>
    %cst_11 = arith.constant dense<0.000000e+00> : vector<2x4x3xf32>
    %61 = vector.multi_reduction <add>, %60, %cst_11 [3] : vector<2x4x3x3xf32> to vector<2x4x3xf32>
    %62 = vector.shape_cast %61 : vector<2x4x3xf32> to vector<2x4x3x1xf32>
    %63 = vector.broadcast %62 : vector<2x4x3x1xf32> to vector<2x4x3x3xf32>
    %64 = arith.divf %60, %63 : vector<2x4x3x3xf32>
    %65 = vector.shape_cast %13 : vector<6x128xf32> to vector<2x3x128xf32>
    %66 = vector.extract_strided_slice %65 {offsets = [0, 0, 0], sizes = [2, 3, 32], strides = [1, 1, 1]} : vector<2x3x128xf32> to vector<2x3x32xf32>
    %67 = vector.extract_strided_slice %65 {offsets = [0, 0, 32], sizes = [2, 3, 32], strides = [1, 1, 1]} : vector<2x3x128xf32> to vector<2x3x32xf32>
    %68 = vector.extract_strided_slice %65 {offsets = [0, 0, 64], sizes = [2, 3, 32], strides = [1, 1, 1]} : vector<2x3x128xf32> to vector<2x3x32xf32>
    %69 = vector.extract_strided_slice %65 {offsets = [0, 0, 96], sizes = [2, 3, 32], strides = [1, 1, 1]} : vector<2x3x128xf32> to vector<2x3x32xf32>
    %70 = vector.shape_cast %66 : vector<2x3x32xf32> to vector<2x1x3x32xf32>
    %71 = vector.shape_cast %67 : vector<2x3x32xf32> to vector<2x1x3x32xf32>
    %72 = vector.shape_cast %68 : vector<2x3x32xf32> to vector<2x1x3x32xf32>
    %73 = vector.shape_cast %69 : vector<2x3x32xf32> to vector<2x1x3x32xf32>
    %74 = tpu.concatenate %70, %71, %72, %73 in 1 : vector<2x1x3x32xf32>, vector<2x1x3x32xf32>, vector<2x1x3x32xf32>, vector<2x1x3x32xf32> -> vector<2x4x3x32xf32>
    %75 = vector.shape_cast %64 : vector<2x4x3x3xf32> to vector<8x3x3xf32>
    %76 = arith.truncf %75 : vector<8x3x3xf32> to vector<8x3x3xbf16>
    %77 = vector.shape_cast %74 : vector<2x4x3x32xf32> to vector<8x3x32xf32>
    %78 = arith.truncf %77 : vector<8x3x32xf32> to vector<8x3x32xbf16>
    "tpu.trace_start"() <{level = 10 : i32, message = "bij,bjf->bif"}> : () -> ()
    %cst_12 = arith.constant dense<0.000000e+00> : vector<8x3x32xf32>
    %79 = tpu.matmul %76, %78, %cst_12 {dimension_numbers = #tpu.dot_dimension_numbers<[2], [1], [1], [2], [0, 0, 0, 1, 1, 2], [0], [0]>} : vector<8x3x3xbf16>, vector<8x3x32xbf16>, vector<8x3x32xf32> -> vector<8x3x32xf32>
    "tpu.trace_stop"() : () -> ()
    %80 = vector.shape_cast %79 : vector<8x3x32xf32> to vector<2x4x3x32xf32>
    %81 = vector.extract_strided_slice %80 {offsets = [0, 0, 0, 0], sizes = [2, 1, 3, 32], strides = [1, 1, 1, 1]} : vector<2x4x3x32xf32> to vector<2x1x3x32xf32>
    %82 = vector.shape_cast %81 : vector<2x1x3x32xf32> to vector<2x3x32xf32>
    %83 = vector.extract_strided_slice %80 {offsets = [0, 1, 0, 0], sizes = [2, 1, 3, 32], strides = [1, 1, 1, 1]} : vector<2x4x3x32xf32> to vector<2x1x3x32xf32>
    %84 = vector.shape_cast %83 : vector<2x1x3x32xf32> to vector<2x3x32xf32>
    %85 = vector.extract_strided_slice %80 {offsets = [0, 2, 0, 0], sizes = [2, 1, 3, 32], strides = [1, 1, 1, 1]} : vector<2x4x3x32xf32> to vector<2x1x3x32xf32>
    %86 = vector.shape_cast %85 : vector<2x1x3x32xf32> to vector<2x3x32xf32>
    %87 = vector.extract_strided_slice %80 {offsets = [0, 3, 0, 0], sizes = [2, 1, 3, 32], strides = [1, 1, 1, 1]} : vector<2x4x3x32xf32> to vector<2x1x3x32xf32>
    %88 = vector.shape_cast %87 : vector<2x1x3x32xf32> to vector<2x3x32xf32>
    %89 = tpu.concatenate %82, %84, %86, %88 in 2 : vector<2x3x32xf32>, vector<2x3x32xf32>, vector<2x3x32xf32>, vector<2x3x32xf32> -> vector<2x3x128xf32>
    %90 = vector.shape_cast %14 : vector<6x128xf32> to vector<2x3x128xf32>
    %91 = arith.addf %89, %90 : vector<2x3x128xf32>
    %92 = vector.shape_cast %9 : vector<1x128xf32> to vector<1x1x128xf32>
    %93 = vector.broadcast %92 : vector<1x1x128xf32> to vector<2x3x128xf32>
    %94 = arith.addf %91, %93 : vector<2x3x128xf32>
    %cst_13 = arith.constant 0.000000e+00 : f32
    %95 = vector.broadcast %cst_13 : f32 to vector<2x3x128xf32>
    %96 = arith.cmpf ogt, %94, %95 : vector<2x3x128xf32>
    %cst_14 = arith.constant 0.000000e+00 : f32
    %97 = vector.broadcast %cst_14 : f32 to vector<2x3x128xf32>
    %98 = arith.minimumf %94, %97 : vector<2x3x128xf32>
    %99 = math.exp %98 : vector<2x3x128xf32>
    %cst_15 = arith.constant 1.000000e+00 : f32
    %100 = vector.broadcast %cst_15 : f32 to vector<2x3x128xf32>
    %101 = arith.subf %99, %100 : vector<2x3x128xf32>
    %102 = arith.select %96, %94, %101 : vector<2x3x128xi1>, vector<2x3x128xf32>
    %c0_16 = arith.constant 0 : index
    %c0_17 = arith.constant 0 : index
    %103 = vector.load %arg4[%c0_16, %c0_17] : memref<128x136xbf16, #tpu.memory_space<vmem>>, vector<128x136xbf16>
    %c0_18 = arith.constant 0 : index
    %c0_19 = arith.constant 0 : index
    %104 = vector.load %arg5[%c0_18, %c0_19] : memref<1x32xf32, #tpu.memory_space<vmem>>, vector<1x32xf32>
    %105 = vector.shape_cast %102 : vector<2x3x128xf32> to vector<6x128xf32>
    %106 = arith.truncf %105 : vector<6x128xf32> to vector<6x128xbf16>
    %cst_20 = arith.constant dense<0.000000e+00> : vector<6x136xf32>
    %107 = tpu.matmul %106, %103, %cst_20 {dimension_numbers = #tpu.dot_dimension_numbers<[1], [0], [0], [1], [0, 0, 1, 1], [], []>} : vector<6x128xbf16>, vector<128x136xbf16>, vector<6x136xf32> -> vector<6x136xf32>
    %108 = vector.extract_strided_slice %107 {offsets = [0, 0], sizes = [6, 128], strides = [1, 1]} : vector<6x136xf32> to vector<6x128xf32>
    %109 = vector.extract_strided_slice %107 {offsets = [0, 128], sizes = [6, 8], strides = [1, 1]} : vector<6x136xf32> to vector<6x8xf32>
    %110 = vector.shape_cast %109 : vector<6x8xf32> to vector<2x3x8xf32>
    %111 = vector.extract_strided_slice %110 {offsets = [0, 0, 0], sizes = [2, 3, 1], strides = [1, 1, 1]} : vector<2x3x8xf32> to vector<2x3x1xf32>
    %112 = vector.shape_cast %111 : vector<2x3x1xf32> to vector<2x3xf32>
    %113 = vector.extract_strided_slice %110 {offsets = [0, 0, 1], sizes = [2, 3, 1], strides = [1, 1, 1]} : vector<2x3x8xf32> to vector<2x3x1xf32>
    %114 = vector.shape_cast %113 : vector<2x3x1xf32> to vector<2x3xf32>
    %115 = vector.extract_strided_slice %110 {offsets = [0, 0, 2], sizes = [2, 3, 1], strides = [1, 1, 1]} : vector<2x3x8xf32> to vector<2x3x1xf32>
    %116 = vector.shape_cast %115 : vector<2x3x1xf32> to vector<2x3xf32>
    %117 = vector.extract_strided_slice %110 {offsets = [0, 0, 3], sizes = [2, 3, 1], strides = [1, 1, 1]} : vector<2x3x8xf32> to vector<2x3x1xf32>
    %118 = vector.shape_cast %117 : vector<2x3x1xf32> to vector<2x3xf32>
    %119 = vector.shape_cast %112 : vector<2x3xf32> to vector<2x1x3xf32>
    %120 = vector.shape_cast %114 : vector<2x3xf32> to vector<2x1x3xf32>
    %121 = vector.shape_cast %116 : vector<2x3xf32> to vector<2x1x3xf32>
    %122 = vector.shape_cast %118 : vector<2x3xf32> to vector<2x1x3xf32>
    %123 = tpu.concatenate %119, %120, %121, %122 in 1 : vector<2x1x3xf32>, vector<2x1x3xf32>, vector<2x1x3xf32>, vector<2x1x3xf32> -> vector<2x4x3xf32>
    %124 = vector.extract_strided_slice %110 {offsets = [0, 0, 4], sizes = [2, 3, 1], strides = [1, 1, 1]} : vector<2x3x8xf32> to vector<2x3x1xf32>
    %125 = vector.shape_cast %124 : vector<2x3x1xf32> to vector<2x3xf32>
    %126 = vector.extract_strided_slice %110 {offsets = [0, 0, 5], sizes = [2, 3, 1], strides = [1, 1, 1]} : vector<2x3x8xf32> to vector<2x3x1xf32>
    %127 = vector.shape_cast %126 : vector<2x3x1xf32> to vector<2x3xf32>
    %128 = vector.extract_strided_slice %110 {offsets = [0, 0, 6], sizes = [2, 3, 1], strides = [1, 1, 1]} : vector<2x3x8xf32> to vector<2x3x1xf32>
    %129 = vector.shape_cast %128 : vector<2x3x1xf32> to vector<2x3xf32>
    %130 = vector.extract_strided_slice %110 {offsets = [0, 0, 7], sizes = [2, 3, 1], strides = [1, 1, 1]} : vector<2x3x8xf32> to vector<2x3x1xf32>
    %131 = vector.shape_cast %130 : vector<2x3x1xf32> to vector<2x3xf32>
    %132 = vector.shape_cast %125 : vector<2x3xf32> to vector<2x1x3xf32>
    %133 = vector.shape_cast %127 : vector<2x3xf32> to vector<2x1x3xf32>
    %134 = vector.shape_cast %129 : vector<2x3xf32> to vector<2x1x3xf32>
    %135 = vector.shape_cast %131 : vector<2x3xf32> to vector<2x1x3xf32>
    %136 = tpu.concatenate %132, %133, %134, %135 in 1 : vector<2x1x3xf32>, vector<2x1x3xf32>, vector<2x1x3xf32>, vector<2x1x3xf32> -> vector<2x4x3xf32>
    %137 = vector.shape_cast %136 : vector<2x4x3xf32> to vector<2x4x3x1xf32>
    %138 = vector.shape_cast %123 : vector<2x4x3xf32> to vector<2x4x1x3xf32>
    %139 = vector.broadcast %137 : vector<2x4x3x1xf32> to vector<2x4x3x3xf32>
    %140 = vector.broadcast %138 : vector<2x4x1x3xf32> to vector<2x4x3x3xf32>
    %141 = arith.addf %139, %140 : vector<2x4x3x3xf32>
    %cst_21 = arith.constant 0.000000e+00 : f32
    %142 = vector.broadcast %cst_21 : f32 to vector<2x4x3x3xf32>
    %143 = arith.cmpf ogt, %141, %142 : vector<2x4x3x3xf32>
    %cst_22 = arith.constant 2.000000e-01 : f32
    %144 = vector.broadcast %cst_22 : f32 to vector<2x4x3x3xf32>
    %145 = arith.mulf %144, %141 : vector<2x4x3x3xf32>
    %146 = arith.select %143, %141, %145 : vector<2x4x3x3xi1>, vector<2x4x3x3xf32>
    %147 = vector.shape_cast %6 : vector<1x3x3xf32> to vector<1x1x3x3xf32>
    %148 = vector.broadcast %147 : vector<1x1x3x3xf32> to vector<2x4x3x3xf32>
    %149 = arith.addf %146, %148 : vector<2x4x3x3xf32>
    %cst_23 = arith.constant dense<0xFF800000> : vector<2x4x3xf32>
    %150 = vector.multi_reduction <maximumf>, %149, %cst_23 [3] : vector<2x4x3x3xf32> to vector<2x4x3xf32>
    %151 = vector.shape_cast %150 : vector<2x4x3xf32> to vector<2x4x3x1xf32>
    %152 = vector.broadcast %151 : vector<2x4x3x1xf32> to vector<2x4x3x3xf32>
    %153 = arith.subf %149, %152 : vector<2x4x3x3xf32>
    %154 = math.exp %153 : vector<2x4x3x3xf32>
    %cst_24 = arith.constant dense<0.000000e+00> : vector<2x4x3xf32>
    %155 = vector.multi_reduction <add>, %154, %cst_24 [3] : vector<2x4x3x3xf32> to vector<2x4x3xf32>
    %156 = vector.shape_cast %155 : vector<2x4x3xf32> to vector<2x4x3x1xf32>
    %157 = vector.broadcast %156 : vector<2x4x3x1xf32> to vector<2x4x3x3xf32>
    %158 = arith.divf %154, %157 : vector<2x4x3x3xf32>
    %159 = vector.shape_cast %108 : vector<6x128xf32> to vector<2x3x128xf32>
    %160 = vector.extract_strided_slice %159 {offsets = [0, 0, 0], sizes = [2, 3, 32], strides = [1, 1, 1]} : vector<2x3x128xf32> to vector<2x3x32xf32>
    %161 = vector.extract_strided_slice %159 {offsets = [0, 0, 32], sizes = [2, 3, 32], strides = [1, 1, 1]} : vector<2x3x128xf32> to vector<2x3x32xf32>
    %162 = vector.extract_strided_slice %159 {offsets = [0, 0, 64], sizes = [2, 3, 32], strides = [1, 1, 1]} : vector<2x3x128xf32> to vector<2x3x32xf32>
    %163 = vector.extract_strided_slice %159 {offsets = [0, 0, 96], sizes = [2, 3, 32], strides = [1, 1, 1]} : vector<2x3x128xf32> to vector<2x3x32xf32>
    %164 = vector.shape_cast %160 : vector<2x3x32xf32> to vector<2x1x3x32xf32>
    %165 = vector.shape_cast %161 : vector<2x3x32xf32> to vector<2x1x3x32xf32>
    %166 = vector.shape_cast %162 : vector<2x3x32xf32> to vector<2x1x3x32xf32>
    %167 = vector.shape_cast %163 : vector<2x3x32xf32> to vector<2x1x3x32xf32>
    %168 = tpu.concatenate %164, %165, %166, %167 in 1 : vector<2x1x3x32xf32>, vector<2x1x3x32xf32>, vector<2x1x3x32xf32>, vector<2x1x3x32xf32> -> vector<2x4x3x32xf32>
    %169 = vector.shape_cast %158 : vector<2x4x3x3xf32> to vector<8x3x3xf32>
    %170 = arith.truncf %169 : vector<8x3x3xf32> to vector<8x3x3xbf16>
    %171 = vector.shape_cast %168 : vector<2x4x3x32xf32> to vector<8x3x32xf32>
    %172 = arith.truncf %171 : vector<8x3x32xf32> to vector<8x3x32xbf16>
    "tpu.trace_start"() <{level = 10 : i32, message = "bij,bjf->bif"}> : () -> ()
    %cst_25 = arith.constant dense<0.000000e+00> : vector<8x3x32xf32>
    %173 = tpu.matmul %170, %172, %cst_25 {dimension_numbers = #tpu.dot_dimension_numbers<[2], [1], [1], [2], [0, 0, 0, 1, 1, 2], [0], [0]>} : vector<8x3x3xbf16>, vector<8x3x32xbf16>, vector<8x3x32xf32> -> vector<8x3x32xf32>
    "tpu.trace_stop"() : () -> ()
    %174 = vector.shape_cast %173 : vector<8x3x32xf32> to vector<2x4x3x32xf32>
    %cst_26 = arith.constant dense<0.000000e+00> : vector<2x3x32xf32>
    %175 = vector.multi_reduction <add>, %174, %cst_26 [1] : vector<2x4x3x32xf32> to vector<2x3x32xf32>
    %cst_27 = arith.constant 4.000000e+00 : f32
    %176 = vector.broadcast %cst_27 : f32 to vector<2x3x32xf32>
    %177 = arith.divf %175, %176 : vector<2x3x32xf32>
    %178 = vector.extract_strided_slice %102 {offsets = [0, 0, 0], sizes = [2, 3, 32], strides = [1, 1, 1]} : vector<2x3x128xf32> to vector<2x3x32xf32>
    %cst_28 = arith.constant 0.000000e+00 : f32
    %179 = vector.broadcast %cst_28 : f32 to vector<2x3x32xf32>
    %180 = arith.addf %179, %178 : vector<2x3x32xf32>
    %181 = vector.extract_strided_slice %102 {offsets = [0, 0, 32], sizes = [2, 3, 32], strides = [1, 1, 1]} : vector<2x3x128xf32> to vector<2x3x32xf32>
    %182 = arith.addf %180, %181 : vector<2x3x32xf32>
    %183 = vector.extract_strided_slice %102 {offsets = [0, 0, 64], sizes = [2, 3, 32], strides = [1, 1, 1]} : vector<2x3x128xf32> to vector<2x3x32xf32>
    %184 = arith.addf %182, %183 : vector<2x3x32xf32>
    %185 = vector.extract_strided_slice %102 {offsets = [0, 0, 96], sizes = [2, 3, 32], strides = [1, 1, 1]} : vector<2x3x128xf32> to vector<2x3x32xf32>
    %186 = arith.addf %184, %185 : vector<2x3x32xf32>
    %cst_29 = arith.constant 2.500000e-01 : f32
    %187 = vector.broadcast %cst_29 : f32 to vector<2x3x32xf32>
    %188 = arith.mulf %186, %187 : vector<2x3x32xf32>
    %189 = arith.addf %177, %188 : vector<2x3x32xf32>
    %190 = vector.shape_cast %104 : vector<1x32xf32> to vector<1x1x32xf32>
    %191 = vector.broadcast %190 : vector<1x1x32xf32> to vector<2x3x32xf32>
    %192 = arith.addf %189, %191 : vector<2x3x32xf32>
    %cst_30 = arith.constant dense<0.000000e+00> : vector<2x32xf32>
    %193 = vector.multi_reduction <add>, %192, %cst_30 [1] : vector<2x3x32xf32> to vector<2x32xf32>
    %c0_31 = arith.constant 0 : index
    %c0_32 = arith.constant 0 : index
    %194 = vector.load %arg6[%c0_31, %c0_32] : memref<2x32xf32, #tpu.memory_space<vmem>>, vector<2x32xf32>
    tpu.vector_store %arg6[%c0_31, %c0_32], %193 {strides = array<i32>} : memref<2x32xf32, #tpu.memory_space<vmem>>, vector<2x32xf32>,
    return
  }
  func.func @transform_0(%arg0: i32) -> (i32, i32, i32) {
    %c0_i32 = arith.constant 0 : i32
    %c0_i32_0 = arith.constant 0 : i32
    %c0_i32_1 = arith.constant 0 : i32
    return %arg0, %c0_i32, %c0_i32_0 : i32, i32, i32
  }
  func.func @transform_1(%arg0: i32) -> (i32, i32) {
    %c0_i32 = arith.constant 0 : i32
    %c0_i32_0 = arith.constant 0 : i32
    %c0_i32_1 = arith.constant 0 : i32
    return %c0_i32, %c0_i32_0 : i32, i32
  }
  func.func @transform_2(%arg0: i32) -> (i32, i32) {
    %c0_i32 = arith.constant 0 : i32
    %c0_i32_0 = arith.constant 0 : i32
    %c0_i32_1 = arith.constant 0 : i32
    return %c0_i32, %c0_i32_0 : i32, i32
  }
  func.func @transform_3(%arg0: i32) -> (i32, i32) {
    %c0_i32 = arith.constant 0 : i32
    %c0_i32_0 = arith.constant 0 : i32
    %c0_i32_1 = arith.constant 0 : i32
    return %c0_i32, %c0_i32_0 : i32, i32
  }
  func.func @transform_4(%arg0: i32) -> (i32, i32) {
    %c0_i32 = arith.constant 0 : i32
    %c0_i32_0 = arith.constant 0 : i32
    %c0_i32_1 = arith.constant 0 : i32
    return %c0_i32, %c0_i32_0 : i32, i32
  }
  func.func @transform_5(%arg0: i32) -> (i32, i32) {
    %c0_i32 = arith.constant 0 : i32
    %c0_i32_0 = arith.constant 0 : i32
    return %arg0, %c0_i32 : i32, i32
  }
}

</mosaic_0001>

<bundles_post_ra>
// kernel: deepreac_forward.3
= control target key start
LH: loop header
LB: loop body
LE: loop exit
PB: predicated region body
PF: predicated region fallthrough
CT: control target
= control target key end

     0   :  { %v3688_v0 = vmov 0.0   ;;  %vm3689_vm0 = vmmov 0   ;;  %v21_v2 = vlaneseq  ;;  %v3690_v3 = vmov 1966171168   ;;  %s3701_s20 = smov 32   ;;  %s3702_s21 = smov 64   ;;  %s4613_s1 = inlined_call_operand.vmem [shape: bf16[64,264], index: 1, kind: input, shape index: {}]   ;;  %s4614_s0 = inlined_call_operand.vmem [shape: f32[2,3,64], index: 0, kind: input, shape index: {}]   ;;  %s4615_s3 = inlined_call_operand.vmem [shape: bf16[128,136], index: 3, kind: input, shape index: {}]   ;;  %s4616_s2 = inlined_call_operand.vmem [shape: f32[1,128], index: 2, kind: input, shape index: {}]   ;;  %s4617_s4 = inlined_call_operand.vmem [shape: f32[1,32], index: 4, kind: input, shape index: {}]   ;;  %s4618_s5 = inlined_call_operand.vmem [shape: f32[2,32], index: 5, kind: output, shape index: {}]  }
   0x1   :  { %3425 = vmatprep.subr.bf16.mxu1 %v3688_v0  ;;  %v3580_v1 = vld [vmem:[%s4613_s1 + $0x50] ss:$12 sps:$4 sm:$0xff]   ;;  %3433 = vmatprep.mubr.msk.bf16.mxu1 %vm3689_vm0, %v3688_v0  ;;  %v57_v4 = vunpack.c.l.s4 %v3690_v3  ;;  %v3581_v5 = vld [vmem:[%s4613_s1 + $0x38] ss:$12 sps:$4 sm:$0xff]   ;;  %v3582_v7 = vld [vmem:[%s4613_s1 + $0x20] ss:$12 sps:$4 sm:$0xff]  }
   0x2   :  { %3426 = vmatpush3.bf16.msra.mxu1 %v3580_v1  ;;  %v3747_v8 = vshrl.u32 %v21_v2, 7  ;;  %v3334_v9 = vld.sshfl [vmem:[%s4614_s0] sm:$0x13 pattern:$0x75316420]  ;;  %vm200_vm1 = vcmask 523264  }
   0x3   :  { %v58_v6 = vunpack.c.0.s8 %v57_v4  ;;  %3427 = vmatprep.subr.bf16.mxu1 %v3688_v0  ;;  %v3335_v10 = vld.sshfl [vmem:[%s4614_s0 + $0x4] sm:$0x13 pattern:$0x75316420]  ;;  %v55_v11 = vcombine.high %v3334_v9, %v3334_v9  ;;  %v3583_v18 = vld [vmem:[%s4613_s1 + $0x8] ss:$12 sps:$4 sm:$0xff]  }
   0x4   :  { %v78_v13 = vcombine.high %v3335_v10, %v3335_v10  ;;  %v3691_v32 = vmov 4   ;;  %v3692_v33 = vmov 6   ;;  %v3693_v34 = vmov 0   ;;  %v3584_v35 = vld [vmem:[%s4613_s1 + $0x4c] ss:$12 sps:$4 sm:$0xff]  }
   0x5   :  { %v3756_v12 = vsub.s32 %v58_v6, %v3747_v8  ;;  %3548 = vset.pattern.permute.xlu0 %v3691_v32  ;;  %3550 = vset.pattern.permute.xlu1 %v3692_v33  ;;  %v3586_v36 = vld [vmem:[%s4613_s1 + $0x48] ss:$12 sps:$4 sm:$0xff]   ;;  %v3589_v38 = vld [vmem:[%s4613_s1 + $0x30] ss:$12 sps:$4 sm:$0xff]   ;;  %v3592_v40 = vld [vmem:[%s4613_s1 + $0x18] ss:$12 sps:$4 sm:$0xff]  }
   0x6   :  { %3428 = vmatpush3.bf16.msra.mxu1 %v3581_v5  ;;  %236 = vmatprep.mubr.bf16.mxu0 %v3693_v34  ;;  %v3587_v37 = vld [vmem:[%s4613_s1 + $0x34] ss:$12 sps:$4 sm:$0xff]   ;;  %v3590_v39 = vld [vmem:[%s4613_s1 + $0x1c] ss:$12 sps:$4 sm:$0xff]   ;;  %v3593_v41 = vld [vmem:[%s4613_s1 + $0x4] ss:$12 sps:$4 sm:$0xff]  }
   0x7   :  { %3429 = vmatprep.subr.bf16.mxu1 %v3688_v0  ;;  %v62_v14 = vrot.slane %v3334_v9, %v3756_v12  ;;  %v69_v15 = vrot.slane %v55_v11, %v3756_v12  ;;  %v85_v16 = vrot.slane %v3335_v10, %v3756_v12  ;;  %v92_v17 = vrot.slane %v78_v13, %v3756_v12  ;;  %v3595_v42 = vld [vmem:[%s4613_s1] ss:$12 sps:$4 sm:$0xff]   ;;  %s3700_s1 = smov 96  }
   0x8   :  { %212 = vmatprep.subr.bf16.mxu0 %v3584_v35  ;;  %vm558_vm2 = vcmask 1040384   ;;  %vm561_vm3 = vcmask 1041408   ;;  %vm564_vm4 = vcmask 1042432   ;;  %vm835_vm8 = vcmask 18432  }
   0x9   :  { %v70_v19 = vcombine.high %v62_v14, %v62_v14  ;;  %v93_v20 = vcombine.high %v85_v16, %v85_v16  ;;  %v94_v21 = vcombine.low %v62_v14, %v69_v15  ;;  %213 = vmatpush1.bf16.msra.mxu0 %v3586_v36  ;;  %vm1216_vm15 = vcmask 23552  }
   0xa   :  { %3430 = vmatpush3.bf16.msra.mxu1 %v3582_v7  ;;  %214 = vmatprep.subr.bf16.mxu0 %v3587_v37 }
   0xb   :  { %3431 = vmatprep.subr.bf16.mxu1 %v3688_v0  ;;  %v95_v22 = vcombine.low %v70_v19, %v85_v16  ;;  %v96_v23 = vcombine.low %v92_v17, %v93_v20  ;;  %v103_v24 = vrot.slane %v94_v21, %v3756_v12 }
   0xd   :  { %v110_v25 = vrot.slane %v95_v22, %v3756_v12  ;;  %v117_v26 = vrot.slane %v96_v23, %v3756_v12  ;;  %215 = vmatpush1.bf16.msra.mxu0 %v3589_v38  ;;  %v3694_v22 = vmov 5  }
   0xe   :  { %3432 = vmatpush3.bf16.msra.mxu1 %v3583_v18  ;;  %216 = vmatprep.subr.bf16.mxu0 %v3590_v39 }
   0xf   :  { %3443 = vmatprep.subr.bf16.mxu1 %v3688_v0  ;;  %v118_v27 = vcombine.low %v103_v24, %v110_v25  ;;  %v132_v28 = vrot.slane %v117_v26, %v3756_v12  ;;  %v3695_v26 = vmov 7  }
  0x11   :  { %v125_v29 = vrot.slane %v118_v27, %v3756_v12  ;;  %217 = vmatpush1.bf16.msra.mxu0 %v3592_v40  ;;  %v3696_v40 = vmov 2  }
  0x12   :  { %218 = vmatprep.subr.bf16.mxu0 %v3593_v41  ;;  %v3697_v41 = vmov 1  }
  0x13   :  { %v133_v30 = vcombine.low %v125_v29, %v132_v28 }
  0x15   :  { %v135_v31 = vpack.c.bf16 %v133_v30, %v133_v30  ;;  %219 = vmatpush1.bf16.msra.mxu0 %v3595_v42  ;;  %v3698_v42 = vmov 3  }
  0x16   :  { %3437 = vmatprep.subr.bf16.mxu0 %v3688_v0 }
  0x17   :  { %3434 = vmatmul.mubr.msk.bf16.vlgmr.msra.gmra.mxu1 %vm200_vm1, %v135_v31 }
  0x18   :  { %3445 = vmatprep.mubr.msk.bf16.mxu1 %vm3689_vm0, %v3688_v0  ;;  %3348 = vmatmul.mubr.msk.bf16.vlgmr.msra.gmra.mxu0 %vm200_vm1, %v135_v31 }
  0x19   :  { %3439 = vmatprep.mubr.msk.bf16.mxu0 %vm3689_vm0, %v3688_v0 }
  0xd7   :  { %v279_v43 = vpop.f32.mrf.mxu1 }
  0xd8   :  { %v286_v44 = vcombine.high %v279_v43, %v279_v43  ;;  %v293_v45 = vrot.slane %v279_v43, %v3756_v12  ;;  %v3849_v43 = vand.u32 127, %v21_v2 }
  0xd9   :  { %v3435_v46 = vpop.f32.mrf.mxu1 }
  0xda   :  { %v300_v47 = vrot.slane %v286_v44, %v3756_v12  ;;  %v301_v48 = vcombine.high %v293_v45, %v293_v45  ;;  %v309_v49 = vrot.slane %v293_v45, %v3756_v12  ;;  %v573_v44 = vadd.s32 4294967292, %v3849_v43 }
  0xdb   :  { %v282_v50 = vpop.f32.mrf.mxu1  ;;  %v590_v45 = vadd.s32 4294967293, %v3849_v43  ;;  %v607_v46 = vadd.s32 4294967294, %v3849_v43  ;;  %vm25_vm5 = vcmp.eq.s32.totalorder %v3747_v8, %v3849_v43 }
  0xdc   :  { %v302_v51 = vcombine.high %v300_v47, %v300_v47  ;;  %v323_v52 = vrot.slane %v301_v48, %v3756_v12  ;;  %v395_v53 = vcombine.low %v309_v49, %v309_v49  ;;  %v331_v55 = vcombine.high %v309_v49, %v309_v49 }
  0xdd   :  { %v3436_v54 = vpop.f32.mrf.mxu1  ;;  %v316_v58 = vrot.slane %v300_v47, %v3756_v12  ;;  %v624_v48 = vadd.s32 4294967295, %v3849_v43 }
  0xde   :  { %v330_v56 = vrot.slane %v302_v51, %v3756_v12  ;;  %v333_v57 = vcombine.low %v309_v49, %v323_v52  ;;  %v396_v59 = vcombine.low %v323_v52, %v331_v55  ;;  %v403_v60 = vrot.slane %v395_v53, %v3756_v12 }
  0xdf   :  { %v332_v61 = vcombine.high %v323_v52, %v323_v52  ;;  %v347_v63 = vrot.slane %v331_v55, %v3756_v12  ;;  %v3856_v49 = vsub.s32 %v573_v44, %v3747_v8  ;;  %v3859_v51 = vsub.s32 %v590_v45, %v3747_v8 }
  0xe0   :  { %v340_v62 = vrot.slane %v333_v57, %v3756_v12  ;;  %v420_v1 = vcombine.low %v316_v58, %v330_v56  ;;  %v410_v3 = vrot.slane %v396_v59, %v3756_v12  ;;  %v509_v6 = vcombine.low %v403_v60, %v403_v60 }
  0xe1   :  { %v356_v7 = vcombine.low %v332_v61, %v316_v58  ;;  %v474_v11 = vrot.slane %v347_v63, %v3756_v12  ;;  %v427_v16 = vrot.slane %v332_v61, %v3756_v12  ;;  %v370_v23 = vrot.slane %v330_v56, %v3756_v12 }
  0xe2   :  { %v348_v4 = vcombine.low %v340_v62, %v347_v63  ;;  %v460_v5 = vcombine.low %v340_v62, %v340_v62  ;;  %v411_v13 = vcombine.low %v403_v60, %v410_v3  ;;  %v434_v14 = vrot.slane %v420_v1, %v3756_v12 }
  0xe3   :  { %v516_v17 = vrot.slane %v509_v6, %v3756_v12  ;;  %v523_v18 = vrot.slane %v410_v3, %v3756_v12  ;;  %v363_v19 = vrot.slane %v356_v7, %v3756_v12  ;;  %v525_v24 = vcombine.low %v427_v16, %v427_v16 }
  0xe4   :  { %v355_v9 = vrot.slane %v348_v4, %v3756_v12  ;;  %v467_v10 = vrot.slane %v460_v5, %v3756_v12  ;;  %v418_v20 = vrot.slane %v411_v13, %v3756_v12  ;;  %v435_v21 = vcombine.low %v427_v16, %v434_v14 }
  0xe5   :  { %v524_v25 = vcombine.low %v516_v17, %v523_v18  ;;  %v371_v27 = vcombine.low %v363_v19, %v370_v23  ;;  %v476_v29 = vcombine.low %v363_v19, %v363_v19  ;;  %v532_v30 = vrot.slane %v525_v24, %v3756_v12 }
  0xe6   :  { %568 = vperm.xlu0 %3548, %v355_v9   ;;  %v475_v15 = vcombine.low %v467_v10, %v474_v11  ;;  %v442_v28 = vrot.slane %v435_v21, %v3756_v12  ;;  %v539_v31 = vrot.slane %v434_v14, %v3756_v12  ;;  %v490_v38 = vrot.slane %v370_v23, %v3756_v12 }
  0xe7   :  { %v378_v35 = vrot.slane %v371_v27, %v3756_v12  ;;  %v483_v36 = vrot.slane %v476_v29, %v3756_v12  ;;  %v3862_v52 = vsub.s32 %v607_v46, %v3747_v8  ;;  %v3865_v2 = vsub.s32 %v624_v48, %v3747_v8  ;;  %v3901_v27 = vpop.f32.mrf.mxu0 }
  0xe8   :  { %602 = vperm.xlu1 %3550, %v475_v15   ;;  %v540_v37 = vcombine.low %v532_v30, %v539_v31  ;;  %v3871_v58 = vsub.s32 3, %v3747_v8  ;;  %v3874_v59 = vsub.s32 0, %v3747_v8  ;;  %v3883_v5 = vsub.s32 1, %v3747_v8 }
  0xe9   :  { %v491_v39 = vcombine.low %v483_v36, %v490_v38  ;;  %v3888_v10 = vsub.s32 2, %v3747_v8  ;;  %v932_v30 = vrot.slane %v3901_v27, %v3756_v12  ;;  %v449_v45 = vadd.s32 1, %v3849_v43 }
  0xea   :  { %3549 = vset.pattern.permute.xlu0 %v3694_v22 }
  0xeb   :  { %585 = vperm.xlu0 %3549, %v418_v20   ;;  %v3908_v36 = vrot.slane %v932_v30, %v3756_v12 }
  0xec   :  { %3551 = vset.pattern.permute.xlu1 %v3695_v26 }
  0xed   :  { %619 = vperm.xlu1 %3551, %v524_v25  }
  0xef   :  { %588 = vperm.xlu0 %3549, %v442_v28  }
  0xf1   :  { %3552 = vset.pattern.permute.xlu1 %v3691_v32 }
  0xf2   :  { %571 = vperm.xlu1 %3552, %v378_v35  }
  0xf3   :  { %3554 = vset.pattern.permute.xlu0 %v3695_v26 }
  0xf4   :  { %622 = vperm.xlu0 %3554, %v540_v37  }
  0xf6   :  { %3553 = vset.pattern.permute.xlu1 %v3692_v33 }
  0xf7   :  { %605 = vperm.xlu1 %3553, %v491_v39  }
  0xf8   :  { %3557 = vset.pattern.permute.xlu0 %v3696_v40 }
  0xf9   :  { %493 = vperm.xlu0 %3557, %v475_v15  }
  0xfb   :  { %3555 = vset.pattern.permute.xlu1 %v3693_v34 }
  0xfc   :  { %380 = vperm.xlu1 %3555, %v355_v9  }
  0xfd   :  { %3560 = vset.pattern.permute.xlu0 %v3697_v41 }
  0xfe   :  { %447 = vperm.xlu0 %3560, %v442_v28   ;;  %v3903_v28 = vpop.f32.mrf.mxu0 }
 0x100   :  { %3556 = vset.pattern.permute.xlu1 %v3697_v41  ;;  %v242_v29 = vpop.f32.mrf.mxu0 }
 0x101   :  { %444 = vperm.xlu1 %3556, %v418_v20  }
 0x102   :  { %3561 = vset.pattern.permute.xlu0 %v3698_v42  ;;  %v243_v31 = vpop.f32.mrf.mxu0 }
 0x103   :  { %545 = vperm.xlu0 %3561, %v540_v37  }
 0x105   :  { %3558 = vset.pattern.permute.xlu1 %v3698_v42 }
 0x106   :  { %542 = vperm.xlu1 %3558, %v524_v25  }
 0x107   :  { %3563 = vset.pattern.permute.xlu0 %v3691_v32 }
 0x10a   :  { %3559 = vset.pattern.permute.xlu1 %v3693_v34 }
 0x10b   :  { %383 = vperm.xlu1 %3559, %v378_v35   ;;  %v940_v35 = vcombine.high %v932_v30, %v932_v30 }
 0x10d   :  { %v3911_v38 = vrot.slane %v940_v35, %v3756_v12 }
 0x10f   :  { %3562 = vset.pattern.permute.xlu1 %v3696_v40  ;;  %v1016_v44 = vcombine.low %v3908_v36, %v3911_v38 }
 0x110   :  { %496 = vperm.xlu1 %3562, %v491_v39   ;;  %v3915_v39 = vcombine.high %v3908_v36, %v3908_v36 }
 0x111   :  { %v1023_v46 = vrot.slane %v1016_v44, %v3756_v12 }
 0x114   :  { %3564 = vset.pattern.permute.xlu1 %v3694_v22 }
 0x161   :  { %v569_v47 = vpop.permute.xlu0 %568 }
 0x162   :  { %v577_v54 = vrot.slane %v569_v47, %v3856_v49  ;;  %v1030_v47 = vrot.slane %v3915_v39, %v3756_v12 }
 0x163   :  { %v603_v50 = vpop.permute.xlu1 %602 }
 0x164   :  { %v611_v56 = vrot.slane %v603_v50, %v3862_v52  ;;  %v1031_v50 = vcombine.low %v1023_v46, %v1030_v47 }
 0x166   :  { %v586_v53 = vpop.permute.xlu0 %585 }
 0x167   :  { %v594_v55 = vrot.slane %v586_v53, %v3859_v51  ;;  %v3699_v53 = vmov 65535  }
 0x168   :  { %v620_v57 = vpop.permute.xlu1 %619 }
 0x169   :  { %v635_v60 = vsel %vm558_vm2, %v577_v54, %v594_v55  ;;  %v628_v61 = vrot.slane %v620_v57, %v3865_v2  ;;  %v1220_v54 = vsel %vm558_vm2, 4294967295, %v3699_v53  ;;  %v498_v55 = vadd.s32 2, %v3849_v43 }
 0x16a   :  { %v637_v62 = vsel %vm561_vm3, %v635_v60, %v611_v56  ;;  %v589_v63 = vpop.permute.xlu0 %588  ;;  %v3927_v56 = vsub.s32 %v3849_v43, %v3747_v8  ;;  %v3930_v57 = vsub.s32 %v449_v45, %v3747_v8  ;;  %v547_v60 = vadd.s32 3, %v3849_v43 }
 0x16b   :  { %v639_v1 = vsel %vm564_vm4, %v637_v62, %v628_v61  ;;  %v598_v13 = vrot.slane %v589_v63, %v3859_v51  ;;  %v1038_v61 = vrot.slane %v1031_v50, %v3756_v12  ;;  %v3935_v62 = vsel %vm561_vm3, %v1220_v54, 0 }
 0x16c   :  { %v668_v3 = vrot.slane %v639_v1, %v3871_v58  ;;  %v644_v4 = vrot.slane %v639_v1, %v3874_v59  ;;  %v652_v9 = vrot.slane %v639_v1, %v3883_v5  ;;  %v660_v18 = vrot.slane %v639_v1, %v3888_v10 }
 0x16d   :  { %v572_v6 = vpop.permute.xlu1 %571  ;;  %v1208_v1 = vpack.c.bf16 %v1038_v61, %v1038_v61 }
 0x16e   :  { %671 = vbcast.lane.b32.xlu0 %v668_v3, 260  ;;  %647 = vbcast.lane.b32.xlu1 %v644_v4, 260  ;;  %v581_v7 = vrot.slane %v572_v6, %v3856_v49  ;;  %v3939_v3 = vsub.s32 %v498_v55, %v3747_v8 }
 0x16f   :  { %v623_v11 = vpop.permute.xlu0 %622 }
 0x170   :  { %v636_v16 = vsel %vm558_vm2, %v581_v7, %v598_v13  ;;  %v632_v17 = vrot.slane %v623_v11, %v3865_v2  ;;  %v1223_v11 = vand.u32 %v3935_v62, %v1208_v1 }
 0x172   :  { %655 = vbcast.lane.b32.xlu1 %v652_v9, 260  ;;  %v606_v14 = vpop.permute.xlu1 %605  ;;  %v3943_v9 = vsub.s32 %v547_v60, %v3747_v8  ;;  %3438 = vmatpush3.bf16.msra.mxu0 %v1223_v11 }
 0x173   :  { %v615_v15 = vrot.slane %v606_v14, %v3862_v52  ;;  %3449 = vmatprep.subr.bf16.mxu0 %v3688_v0 }
 0x174   :  { %v494_v6 = vpop.permute.xlu0 %493 }
 0x175   :  { %v638_v19 = vsel %vm561_vm3, %v636_v16, %v615_v15  ;;  %v502_v15 = vrot.slane %v494_v6, %v3939_v3 }
 0x176   :  { %663 = vbcast.lane.b32.xlu1 %v660_v18, 260  ;;  %v640_v20 = vsel %vm564_vm4, %v638_v19, %v632_v17 }
 0x177   :  { %v684_v21 = vrot.slane %v640_v20, %v3883_v5  ;;  %v676_v23 = vrot.slane %v640_v20, %v3874_v59  ;;  %v700_v24 = vrot.slane %v640_v20, %v3871_v58  ;;  %v692_v25 = vrot.slane %v640_v20, %v3888_v10  ;;  %v381_v37 = vpop.permute.xlu1 %380 }
 0x178   :  { %v388_v7 = vrot.slane %v381_v37, %v3927_v56 }
 0x179   :  { %687 = vbcast.lane.b32.xlu0 %v684_v21, 260  ;;  %v448_v20 = vpop.permute.xlu0 %447 }
 0x17a   :  { %679 = vbcast.lane.b32.xlu1 %v676_v23, 260  ;;  %v457_v29 = vrot.slane %v448_v20, %v3930_v57 }
 0x17c   :  { %v445_v48 = vpop.permute.xlu1 %444 }
 0x17d   :  { %703 = vbcast.lane.b32.xlu0 %v700_v24, 260  ;;  %v453_v63 = vrot.slane %v445_v48, %v3930_v57 }
 0x17e   :  { %695 = vbcast.lane.b32.xlu1 %v692_v25, 260  ;;  %v546_v30 = vpop.permute.xlu0 %545 }
 0x17f   :  { %v559_v13 = vsel %vm558_vm2, %v388_v7, %v453_v63  ;;  %v555_v44 = vrot.slane %v546_v30, %v3943_v9 }
 0x180   :  { %v562_v16 = vsel %vm561_vm3, %v559_v13, %v502_v15 }
 0x181   :  { %v543_v4 = vpop.permute.xlu1 %542 }
 0x182   :  { %v551_v14 = vrot.slane %v543_v4, %v3943_v9  ;;  %v3969_v4 = vsel %vm25_vm5, -1e+09, %v3688_v0  ;;  %vm1611_vm5 = vcmask 261120  }
 0x184   :  { %v565_v18 = vsel %vm564_vm4, %v562_v16, %v551_v14 }
 0x185   :  { %v713_v19 = vrot.slane %v565_v18, %v3756_v12 }
 0x186   :  { %v384_v17 = vpop.permute.xlu1 %383 }
 0x187   :  { %v714_v23 = vcombine.high %v713_v19, %v713_v19  ;;  %v392_v24 = vrot.slane %v384_v17, %v3927_v56  ;;  %v721_v47 = vrot.slane %v713_v19, %v3756_v12 }
 0x189   :  { %v560_v31 = vsel %vm558_vm2, %v392_v24, %v457_v29  ;;  %v728_v35 = vrot.slane %v714_v23, %v3756_v12  ;;  %v758_v53 = vrot.slane %v721_v47, %v3874_v59  ;;  %v729_v1 = vcombine.high %v721_v47, %v721_v47 }
 0x18b   :  { %v497_v21 = vpop.permute.xlu1 %496  ;;  %v730_v46 = vcombine.high %v728_v35, %v728_v35  ;;  %v762_v63 = vrot.slane %v728_v35, %v3874_v59  ;;  %v766_v18 = vrot.slane %v729_v1, %v3874_v59 }
 0x18c   :  { %v506_v25 = vrot.slane %v497_v21, %v3939_v3 }
 0x18d   :  { %v770_v50 = vrot.slane %v730_v46, %v3874_v59 }
 0x18e   :  { %v563_v37 = vsel %vm561_vm3, %v560_v31, %v506_v25 }
 0x18f   :  { %v566_v45 = vsel %vm564_vm4, %v563_v37, %v555_v44 }
 0x190   :  { %v737_v48 = vrot.slane %v566_v45, %v3756_v12 }
 0x192   :  { %v738_v6 = vcombine.high %v737_v48, %v737_v48  ;;  %v745_v19 = vrot.slane %v737_v48, %v3756_v12 }
 0x194   :  { %v752_v16 = vrot.slane %v738_v6, %v3756_v12  ;;  %v774_v44 = vrot.slane %v745_v19, %v3874_v59  ;;  %v753_v45 = vcombine.high %v745_v19, %v745_v19 }
 0x196   :  { %v778_v29 = vrot.slane %v752_v16, %v3874_v59  ;;  %v754_v31 = vcombine.high %v752_v16, %v752_v16  ;;  %v782_v6 = vrot.slane %v753_v45, %v3874_v59  ;;  %v925_v45 = vcombine.high %v3901_v27, %v3901_v27 }
 0x1e0   :  { %v672_v54 = vpop.permute.xlu0 %671  ;;  %v648_v55 = vpop.permute.xlu1 %647 }
 0x1e1   :  { %v798_v60 = vadd.f32 %v770_v50, %v672_v54  ;;  %v795_v61 = vadd.f32 %v758_v53, %v648_v55 }
 0x1e3   :  { %v814_v7 = vmul.f32 0.2, %v798_v60  ;;  %vm803_vm6 = vcmp.gt.f32.partialorder %v795_v61, 0.0  ;;  %v811_v11 = vmul.f32 0.2, %v795_v61  ;;  %vm806_vm7 = vcmp.gt.f32.partialorder %v798_v60, 0.0 }
 0x1e4   :  { %v656_v13 = vpop.permute.xlu1 %655 }
 0x1e5   :  { %v796_v14 = vadd.f32 %v762_v63, %v656_v13  ;;  %v819_v15 = vsel %vm803_vm6, %v795_v61, %v811_v11  ;;  %v822_v8 = vsel %vm806_vm7, %v798_v60, %v814_v7  ;;  %v786_v60 = vrot.slane %v754_v31, %v3874_v59 }
 0x1e6   :  { %v3972_v43 = vadd.f32 %v819_v15, %v3969_v4  ;;  %v3980_v23 = vadd.f32 %v822_v8, %v3969_v4  ;;  %vm1616_vm6 = vcmask 785408  }
 0x1e7   :  { %vm804_vm9 = vcmp.gt.f32.partialorder %v796_v14, 0.0  ;;  %v812_v17 = vmul.f32 0.2, %v796_v14 }
 0x1e8   :  { %v664_v20 = vpop.permute.xlu1 %663  ;;  %v836_v21 = vsel %vm835_vm8, %v3972_v43, -inf  ;;  %v845_v48 = vsel %vm835_vm8, %v3980_v23, -inf }
 0x1e9   :  { %v797_v24 = vadd.f32 %v766_v18, %v664_v20  ;;  %837 = vmax.xlane.f32.xlu1 %v836_v21  ;;  %v820_v25 = vsel %vm804_vm9, %v796_v14, %v812_v17 }
 0x1ea   :  { %v3984_v30 = vadd.f32 %v820_v25, %v3969_v4 }
 0x1eb   :  { %vm805_vm10 = vcmp.gt.f32.partialorder %v797_v24, 0.0  ;;  %v813_v35 = vmul.f32 0.2, %v797_v24  ;;  %v688_v37 = vpop.permute.xlu0 %687 }
 0x1ec   :  { %v800_v46 = vadd.f32 %v778_v29, %v688_v37  ;;  %v680_v47 = vpop.permute.xlu1 %679  ;;  %v839_v50 = vsel %vm835_vm8, %v3984_v30, -inf }
 0x1ed   :  { %v799_v53 = vadd.f32 %v774_v44, %v680_v47  ;;  %846 = vmax.xlane.f32.xlu1 %v845_v48  ;;  %840 = vmax.xlane.f32.xlu0 %v839_v50  ;;  %v821_v54 = vsel %vm805_vm10, %v797_v24, %v813_v35  ;;  %v4017_v44 = vcombine.high %v3911_v38, %v3911_v38 }
 0x1ee   :  { %v816_v55 = vmul.f32 0.2, %v800_v46  ;;  %v3993_v61 = vadd.f32 %v821_v54, %v3969_v4  ;;  %vm808_vm11 = vcmp.gt.f32.partialorder %v800_v46, 0.0 }
 0x1ef   :  { %vm807_vm12 = vcmp.gt.f32.partialorder %v799_v53, 0.0  ;;  %v815_v63 = vmul.f32 0.2, %v799_v53  ;;  %v704_v1 = vpop.permute.xlu0 %703 }
 0x1f0   :  { %v802_v7 = vadd.f32 %v786_v60, %v704_v1  ;;  %v696_v11 = vpop.permute.xlu1 %695  ;;  %v842_v13 = vsel %vm835_vm8, %v3993_v61, -inf  ;;  %v824_v14 = vsel %vm808_vm11, %v800_v46, %v816_v55  ;;  %v939_v46 = vrot.slane %v925_v45, %v3756_v12 }
 0x1f1   :  { %v801_v15 = vadd.f32 %v782_v6, %v696_v11  ;;  %843 = vmax.xlane.f32.xlu0 %v842_v13  ;;  %v3999_v8 = vadd.f32 %v824_v14, %v3969_v4  ;;  %v823_v16 = vsel %vm807_vm12, %v799_v53, %v815_v63 }
 0x1f2   :  { %v818_v17 = vmul.f32 0.2, %v802_v7  ;;  %v831_v18 = vadd.f32 %v823_v16, %v3969_v4  ;;  %vm810_vm13 = vcmp.gt.f32.partialorder %v802_v7, 0.0  ;;  %v941_v47 = vcombine.high %v939_v46, %v939_v46 }
 0x1f3   :  { %vm809_vm14 = vcmp.gt.f32.partialorder %v801_v15, 0.0  ;;  %v817_v19 = vmul.f32 0.2, %v801_v15  ;;  %v851_v20 = vsel %vm835_vm8, %v3999_v8, -inf }
 0x1f4   :  { %852 = vmax.xlane.f32.xlu1 %v851_v20  ;;  %v848_v21 = vsel %vm835_vm8, %v831_v18, -inf  ;;  %v826_v24 = vsel %vm810_vm13, %v802_v7, %v818_v17  ;;  %v4044_v27 = vrot.slane %v941_v47, %v3756_v12 }
 0x1f5   :  { %849 = vmax.xlane.f32.xlu0 %v848_v21  ;;  %v834_v25 = vadd.f32 %v826_v24, %v3969_v4  ;;  %v825_v29 = vsel %vm809_vm14, %v801_v15, %v817_v19  ;;  %vm3328_vm14 = vcmask 254976  }
 0x1f6   :  { %v833_v31 = vadd.f32 %v825_v29, %v3969_v4 }
 0x1f7   :  { %v857_v35 = vsel %vm835_vm8, %v834_v25, -inf }
 0x1f8   :  { %858 = vmax.xlane.f32.xlu1 %v857_v35  ;;  %v854_v37 = vsel %vm835_vm8, %v833_v31, -inf }
 0x1f9   :  { %855 = vmax.xlane.f32.xlu0 %v854_v37 }
 0x209   :  { %972 = vrot.lane.b32.xlu1 %v3908_v36, %s3700_s1 }
 0x20d   :  { %996 = vrot.lane.b32.xlu1 %v3908_v36, %s3701_s20 }
 0x20f   :  { %974 = vrot.lane.b32.xlu0 %v3911_v38, %s3700_s1 }
 0x211   :  { %990 = vrot.lane.b32.xlu1 %v4017_v44, %s3702_s21 }
 0x213   :  { %976 = vrot.lane.b32.xlu0 %v3915_v39, %s3700_s1 }
 0x217   :  { %984 = vrot.lane.b32.xlu0 %v3908_v36, %s3702_s21  ;;  %v4037_v36 = vrot.slane %v939_v46, %v3756_v12 }
 0x21b   :  { %986 = vrot.lane.b32.xlu0 %v3911_v38, %s3702_s21 }
 0x21f   :  { %998 = vrot.lane.b32.xlu0 %v3911_v38, %s3701_s20 }
 0x223   :  { %988 = vrot.lane.b32.xlu0 %v3915_v39, %s3702_s21 }
 0x227   :  { %1000 = vrot.lane.b32.xlu0 %v3915_v39, %s3701_s20 }
 0x22b   :  { %978 = vrot.lane.b32.xlu0 %v4017_v44, %s3700_s1 }
 0x22f   :  { %980 = vrot.lane.b32.xlu0 %v4037_v36, %s3700_s1 }
 0x233   :  { %982 = vrot.lane.b32.xlu0 %v4044_v27, %s3700_s1 }
 0x237   :  { %992 = vrot.lane.b32.xlu0 %v4037_v36, %s3702_s21 }
 0x23b   :  { %1002 = vrot.lane.b32.xlu0 %v4017_v44, %s3701_s20 }
 0x23f   :  { %1004 = vrot.lane.b32.xlu0 %v4037_v36, %s3701_s20 }
 0x272   :  { %v838_v38 = vpop.xlane.xlu1 %837 }
 0x273   :  { %v860_v39 = vsub.f32 %v3972_v43, %v838_v38 }
 0x275   :  { %v868_v48 = vmul.f32 1.442695, %v860_v39 }
 0x276   :  { %v841_v50 = vpop.xlane.xlu0 %840  ;;  %v847_v53 = vpop.xlane.xlu1 %846 }
 0x277   :  { %3620 = vpow2.f32 %v868_v48  ;;  %v861_v54 = vsub.f32 %v3984_v30, %v841_v50  ;;  %v863_v55 = vsub.f32 %v3980_v23, %v847_v53 }
 0x279   :  { %v870_v60 = vmul.f32 1.442695, %v861_v54  ;;  %v874_v63 = vmul.f32 1.442695, %v863_v55 }
 0x27a   :  { %v844_v1 = vpop.xlane.xlu0 %843 }
 0x27b   :  { %3622 = vpow2.f32 %v870_v60  ;;  %v862_v6 = vsub.f32 %v3993_v61, %v844_v1 }
 0x27c   :  { %3624 = vpow2.f32 %v874_v63 }
 0x27d   :  { %v872_v7 = vmul.f32 1.442695, %v862_v6  ;;  %v853_v11 = vpop.xlane.xlu1 %852 }
 0x27e   :  { %v865_v13 = vsub.f32 %v3999_v8, %v853_v11  ;;  %v850_v43 = vpop.xlane.xlu0 %849 }
 0x27f   :  { %3626 = vpow2.f32 %v872_v7  ;;  %v864_v14 = vsub.f32 %v831_v18, %v850_v43 }
 0x280   :  { %v878_v15 = vmul.f32 1.442695, %v865_v13 }
 0x281   :  { %v876_v16 = vmul.f32 1.442695, %v864_v14  ;;  %v859_v17 = vpop.xlane.xlu1 %858 }
 0x282   :  { %3628 = vpow2.f32 %v878_v15  ;;  %v867_v30 = vsub.f32 %v834_v25, %v859_v17  ;;  %v856_v23 = vpop.xlane.xlu0 %855 }
 0x283   :  { %3630 = vpow2.f32 %v876_v16  ;;  %v866_v19 = vsub.f32 %v833_v31, %v856_v23 }
 0x284   :  { %v4059_v20 = vpop.eup %3620  ;;  %v882_v21 = vmul.f32 1.442695, %v867_v30 }
 0x285   :  { %v880_v61 = vmul.f32 1.442695, %v866_v19  ;;  %v884_v24 = vsel %vm835_vm8, %v4059_v20, 0.0  ;;  %v973_v29 = vpop.permute.xlu1 %972 }
 0x286   :  { %3632 = vpow2.f32 %v882_v21  ;;  %v975_v8 = vpop.permute.xlu0 %974  ;;  %885 = vadd.xlane.f32.xlu0 %v884_v24 }
 0x287   :  { %3634 = vpow2.f32 %v880_v61  ;;  %v1039_v18 = vcombine.low %v973_v29, %v975_v8 }
 0x288   :  { %v4063_v35 = vpop.eup %3622 }
 0x289   :  { %v887_v25 = vsel %vm835_vm8, %v4063_v35, 0.0  ;;  %v1046_v31 = vrot.slane %v1039_v18, %v3756_v12  ;;  %v4068_v37 = vpop.eup %3624  ;;  %v997_v24 = vpop.permute.xlu1 %996 }
 0x28a   :  { %v977_v45 = vpop.permute.xlu0 %976  ;;  %888 = vadd.xlane.f32.xlu1 %v887_v25  ;;  %v893_v38 = vsel %vm835_vm8, %v4068_v37, 0.0 }
 0x28b   :  { %v1053_v46 = vrot.slane %v977_v45, %v3756_v12 }
 0x28c   :  { %v4071_v47 = vpop.eup %3626 }
 0x28d   :  { %v890_v39 = vsel %vm835_vm8, %v4071_v47, 0.0  ;;  %v1054_v48 = vcombine.low %v1046_v31, %v1053_v46  ;;  %v991_v18 = vpop.permute.xlu1 %990 }
 0x28e   :  { %894 = vadd.xlane.f32.xlu1 %v893_v38  ;;  %891 = vadd.xlane.f32.xlu0 %v890_v39  ;;  %v985_v43 = vpop.permute.xlu0 %984 }
 0x28f   :  { %v4077_v50 = vpop.eup %3628  ;;  %v1061_v53 = vrot.slane %v1054_v48, %v3756_v12 }
 0x290   :  { %v4080_v54 = vpop.eup %3630  ;;  %v899_v55 = vsel %vm835_vm8, %v4077_v50, 0.0 }
 0x291   :  { %v896_v60 = vsel %vm835_vm8, %v4080_v54, 0.0  ;;  %v1209_v63 = vpack.c.bf16 %v1061_v53, %v1061_v53 }
 0x292   :  { %900 = vadd.xlane.f32.xlu1 %v899_v55  ;;  %897 = vadd.xlane.f32.xlu0 %v896_v60  ;;  %v987_v14 = vpop.permute.xlu0 %986  ;;  %v1108_v55 = vcombine.low %v4017_v44, %v4037_v36 }
 0x293   :  { %v4086_v1 = vpop.eup %3632  ;;  %v1269_v6 = vand.u32 %v3935_v62, %v1209_v63  ;;  %v1062_v29 = vcombine.low %v985_v43, %v987_v14  ;;  %v1122_v14 = vrot.slane %v4044_v27, %v3756_v12 }
 0x294   :  { %v4089_v7 = vpop.eup %3634  ;;  %v905_v11 = vsel %vm835_vm8, %v4086_v1, 0.0  ;;  %v1115_v43 = vrot.slane %v1108_v55, %v3756_v12 }
 0x295   :  { %v902_v13 = vsel %vm835_vm8, %v4089_v7, 0.0  ;;  %3444 = vmatpush3.bf16.msra.mxu1 %v1269_v6  ;;  %v1069_v31 = vrot.slane %v1062_v29, %v3756_v12 }
 0x296   :  { %906 = vadd.xlane.f32.xlu1 %v905_v11  ;;  %903 = vadd.xlane.f32.xlu0 %v902_v13  ;;  %v999_v15 = vpop.permute.xlu0 %998 }
 0x297   :  { %3455 = vmatprep.subr.bf16.mxu1 %v3688_v0  ;;  %v1085_v46 = vcombine.low %v997_v24, %v999_v15 }
 0x299   :  { %v1092_v53 = vrot.slane %v1085_v46, %v3756_v12 }
 0x29a   :  { %v989_v16 = vpop.permute.xlu0 %988 }
 0x29b   :  { %v1076_v45 = vrot.slane %v989_v16, %v3756_v12 }
 0x29d   :  { %v1077_v39 = vcombine.low %v1069_v31, %v1076_v45 }
 0x29e   :  { %v1001_v17 = vpop.permute.xlu0 %1000 }
 0x29f   :  { %v1099_v48 = vrot.slane %v1001_v17, %v3756_v12  ;;  %v1084_v6 = vrot.slane %v1077_v39, %v3756_v12 }
 0x2a1   :  { %v1100_v13 = vcombine.low %v1092_v53, %v1099_v48  ;;  %v1210_v17 = vpack.c.bf16 %v1084_v6, %v1084_v6 }
 0x2a2   :  { %v979_v30 = vpop.permute.xlu0 %978 }
 0x2a3   :  { %v1107_v44 = vrot.slane %v1100_v13, %v3756_v12  ;;  %v1315_v48 = vand.u32 %v3935_v62, %v1210_v17 }
 0x2a6   :  { %v981_v23 = vpop.permute.xlu0 %980 }
 0x2a7   :  { %1006 = vrot.lane.b32.xlu1 %v4044_v27, %s3701_s20  ;;  %v1131_v11 = vcombine.low %v979_v30, %v981_v23  ;;  %v1123_v23 = vcombine.low %v1115_v43, %v1122_v14 }
 0x2a9   :  { %v1138_v29 = vrot.slane %v1131_v11, %v3756_v12 }
 0x2aa   :  { %v983_v19 = vpop.permute.xlu0 %982 }
 0x2ab   :  { %v1145_v36 = vrot.slane %v983_v19, %v3756_v12  ;;  %v1130_v19 = vrot.slane %v1123_v23, %v3756_v12 }
 0x2ac   :  { %994 = vrot.lane.b32.xlu0 %v4044_v27, %s3702_s21 }
 0x2ad   :  { %v1146_v39 = vcombine.low %v1138_v29, %v1145_v36  ;;  %v1212_v43 = vpack.c.bf16 %v1130_v19, %v1130_v19 }
 0x2ae   :  { %v993_v21 = vpop.permute.xlu0 %992 }
 0x2af   :  { %v1154_v45 = vcombine.low %v991_v18, %v993_v21 }
 0x2b1   :  { %v1161_v21 = vrot.slane %v1154_v45, %v3756_v12 }
 0x2b2   :  { %v4100_v61 = vpop.permute.xlu0 %1002 }
 0x2b6   :  { %v4102_v8 = vpop.permute.xlu0 %1004 }
 0x30f   :  { %v886_v25 = vpop.xlane.xlu0 %885 }
 0x310   :  { %3636 = vrcp.f32 %v886_v25 }
 0x313   :  { %v889_v38 = vpop.xlane.xlu1 %888 }
 0x314   :  { %3638 = vrcp.f32 %v889_v38  ;;  %v1211_v38 = vpack.c.bf16 %v1107_v44, %v1107_v44 }
 0x317   :  { %v895_v60 = vpop.xlane.xlu1 %894  ;;  %v892_v63 = vpop.xlane.xlu0 %891 }
 0x318   :  { %3640 = vrcp.f32 %v895_v60 }
 0x319   :  { %3642 = vrcp.f32 %v892_v63 }
 0x31b   :  { %v901_v15 = vpop.xlane.xlu1 %900  ;;  %v898_v16 = vpop.xlane.xlu0 %897 }
 0x31c   :  { %3644 = vrcp.f32 %v898_v16 }
 0x31d   :  { %v3637_v24 = vpop.eup %3636  ;;  %3646 = vrcp.f32 %v901_v15 }
 0x31e   :  { %v909_v30 = vmul.f32 %v3637_v24, %v4059_v20  ;;  %v1177_v20 = vcombine.low %v4100_v61, %v4102_v8  ;;  %v1361_v61 = vand.u32 %v3935_v62, %v1211_v38 }
 0x31f   :  { %v907_v25 = vpop.xlane.xlu1 %906  ;;  %v904_v31 = vpop.xlane.xlu0 %903 }
 0x320   :  { %v1008_v27 = vpack.c.bf16 %v909_v30, %v909_v30  ;;  %3648 = vrcp.f32 %v904_v31  ;;  %v1184_v14 = vrot.slane %v1177_v20, %v3756_v12  ;;  %v1407_v30 = vand.u32 %v3935_v62, %v1212_v43 }
 0x321   :  { %v3639_v46 = vpop.eup %3638  ;;  %3650 = vrcp.f32 %v907_v25 }
 0x322   :  { %3440 = vmatmul.mubr.msk.bf16.vlgmr.msra.gmra.mxu0 %vm1216_vm15, %v1008_v27  ;;  %v911_v53 = vmul.f32 %v3639_v46, %v4063_v35  ;;  %v1153_v35 = vrot.slane %v1146_v39, %v3756_v12 }
 0x323   :  { %3450 = vmatpush3.bf16.msra.mxu0 %v1315_v48  ;;  %v1007_v55 = vpop.permute.xlu1 %1006  ;;  %v995_v60 = vpop.permute.xlu0 %994  ;;  %3451 = vmatprep.mubr.msk.bf16.mxu0 %vm3689_vm0, %v3688_v0 }
 0x324   :  { %v1168_v18 = vrot.slane %v995_v60, %v3756_v12  ;;  %v1009_v63 = vpack.c.bf16 %v911_v53, %v911_v53  ;;  %3461 = vmatprep.subr.bf16.mxu0 %v3688_v0  ;;  %v1191_v11 = vrot.slane %v1007_v55, %v3756_v12  ;;  %v1213_v17 = vpack.c.bf16 %v1153_v35, %v1153_v35 }
 0x325   :  { %v3641_v6 = vpop.eup %3640 }
 0x326   :  { %v3643_v8 = vpop.eup %3642  ;;  %v1169_v13 = vcombine.low %v1161_v21, %v1168_v18  ;;  %3446 = vmatmul.mubr.msk.bf16.vlgmr.msra.gmra.mxu1 %vm1216_vm15, %v1009_v63  ;;  %v915_v16 = vmul.f32 %v3641_v6, %v4068_v37  ;;  %v1192_v24 = vcombine.low %v1184_v14, %v1191_v11  ;;  %v1453_v25 = vand.u32 %v3935_v62, %v1213_v17 }
 0x327   :  { %3456 = vmatpush3.bf16.msra.mxu1 %v1361_v61  ;;  %v913_v15 = vmul.f32 %v3643_v8, %v4071_v47  ;;  %3457 = vmatprep.mubr.msk.bf16.mxu1 %vm3689_vm0, %v3688_v0 }
 0x328   :  { %3467 = vmatprep.subr.bf16.mxu1 %v3688_v0  ;;  %v1176_v36 = vrot.slane %v1169_v13, %v3756_v12  ;;  %v1011_v47 = vpack.c.bf16 %v915_v16, %v915_v16  ;;  %v1199_v37 = vrot.slane %v1192_v24, %v3756_v12 }
 0x329   :  { %v1010_v29 = vpack.c.bf16 %v913_v15, %v913_v15  ;;  %v3645_v44 = vpop.eup %3644 }
 0x32a   :  { %v3647_v23 = vpop.eup %3646  ;;  %v917_v31 = vmul.f32 %v3645_v44, %v4080_v54  ;;  %v1214_v45 = vpack.c.bf16 %v1176_v36, %v1176_v36  ;;  %v1215_v46 = vpack.c.bf16 %v1199_v37, %v1199_v37 }
 0x32b   :  { %3452 = vmatmul.mubr.msk.bf16.vlgmr.msra.gmra.mxu0 %vm1216_vm15, %v1010_v29  ;;  %v919_v27 = vmul.f32 %v3647_v23, %v4077_v50 }
 0x32c   :  { %3462 = vmatpush3.bf16.msra.mxu0 %v1407_v30  ;;  %3463 = vmatprep.mubr.msk.bf16.mxu0 %vm3689_vm0, %v3688_v0  ;;  %v1012_v38 = vpack.c.bf16 %v917_v31, %v917_v31  ;;  %v1499_v48 = vand.u32 %v3935_v62, %v1214_v45  ;;  %v1545_v19 = vand.u32 %v3935_v62, %v1215_v46 }
 0x32d   :  { %3473 = vmatprep.subr.bf16.mxu0 %v3688_v0  ;;  %v3649_v39 = vpop.eup %3648  ;;  %v1013_v54 = vpack.c.bf16 %v919_v27, %v919_v27  ;;  %v3598_v27 = vld [vmem:[%s4615_s3 + $0x74] ss:$8 sps:$4 sm:$0xff]  }
 0x32e   :  { %3458 = vmatmul.mubr.msk.bf16.vlgmr.msra.gmra.mxu1 %vm1216_vm15, %v1011_v47  ;;  %v3651_v53 = vpop.eup %3650  ;;  %v921_v20 = vmul.f32 %v3649_v39, %v4089_v7 }
 0x32f   :  { %3468 = vmatpush3.bf16.msra.mxu1 %v1453_v25  ;;  %3469 = vmatprep.mubr.msk.bf16.mxu1 %vm3689_vm0, %v3688_v0  ;;  %v923_v50 = vmul.f32 %v3651_v53, %v4086_v1  ;;  %v3601_v53 = vld [vmem:[%s4615_s3 + $0x64] ss:$8 sps:$4 sm:$0xff]  }
 0x330   :  { %3479 = vmatprep.subr.bf16.mxu1 %v3688_v0  ;;  %v1014_v55 = vpack.c.bf16 %v921_v20, %v921_v20 }
 0x331   :  { %v1015_v60 = vpack.c.bf16 %v923_v50, %v923_v50  ;;  %v3604_v50 = vld [vmem:[%s4615_s3 + $0x54] ss:$8 sps:$4 sm:$0xff]  }
 0x333   :  { %3464 = vmatmul.mubr.msk.bf16.vlgmr.msra.gmra.mxu0 %vm1216_vm15, %v1012_v38  ;;  %v3596_v38 = vld [vmem:[%s4615_s3 + $0x70] ss:$8 sps:$4 sm:$0xff]  }
 0x334   :  { %3474 = vmatpush3.bf16.msra.mxu0 %v1499_v48  ;;  %3475 = vmatprep.mubr.msk.bf16.mxu0 %vm3689_vm0, %v3688_v0 }
 0x335   :  { %1924 = vmatprep.subr.bf16.mxu0 %v3598_v27 }
 0x336   :  { %3470 = vmatmul.mubr.msk.bf16.vlgmr.msra.gmra.mxu1 %vm1216_vm15, %v1013_v54 }
 0x337   :  { %3480 = vmatpush3.bf16.msra.mxu1 %v1545_v19  ;;  %3481 = vmatprep.mubr.msk.bf16.mxu1 %vm3689_vm0, %v3688_v0  ;;  %v3599_v19 = vld [vmem:[%s4615_s3 + $0x60] ss:$8 sps:$4 sm:$0xff]  }
 0x338   :  { %3485 = vmatprep.subr.bf16.mxu1 %v3688_v0 }
 0x33b   :  { %3476 = vmatmul.mubr.msk.bf16.vlgmr.msra.gmra.mxu0 %vm1216_vm15, %v1014_v55  ;;  %v3602_v55 = vld [vmem:[%s4615_s3 + $0x50] ss:$8 sps:$4 sm:$0xff]  }
 0x33c   :  { %1956 = vmatprep.mubr.bf16.mxu0 %v3693_v34  ;;  %1925 = vmatpush1.bf16.msra.mxu0 %v3596_v38 }
 0x33d   :  { %1926 = vmatprep.subr.bf16.mxu0 %v3601_v53 }
 0x33e   :  { %3482 = vmatmul.mubr.msk.bf16.vlgmr.msra.gmra.mxu1 %vm1216_vm15, %v1015_v60  ;;  %v3607_v60 = vld [vmem:[%s4615_s3 + $0x44] ss:$8 sps:$4 sm:$0xff]  }
 0x33f   :  { %3487 = vmatprep.mubr.msk.bf16.mxu1 %vm3689_vm0, %v3688_v0 }
 0x340   :  { %1927 = vmatpush1.bf16.msra.mxu0 %v3599_v19 }
 0x341   :  { %1928 = vmatprep.subr.bf16.mxu0 %v3604_v50 }
 0x344   :  { %1929 = vmatpush1.bf16.msra.mxu0 %v3602_v55 }
 0x345   :  { %1930 = vmatprep.subr.bf16.mxu0 %v3607_v60 }
 0x3e2   :  { %v4169_v7 = vpop.f32.mrf.mxu0 }
 0x3e4   :  { %v3441_v21 = vpop.f32.mrf.mxu0 }
 0x3e5   :  { %v3605_v21 = vld [vmem:[%s4615_s3 + $0x40] ss:$8 sps:$4 sm:$0xff]  }
 0x3e6   :  { %v1262_v18 = vpop.f32.mrf.mxu0  ;;  %v1305_v63 = vpop.f32.mrf.mxu1  ;;  %1931 = vmatpush1.bf16.msra.mxu0 %v3605_v21 }
 0x3e7   :  { %1589 = vrot.lane.b32.xlu0 %v1305_v63, %s3701_s20  ;;  %v3608_v18 = vld [vmem:[%s4615_s3 + $0x30] ss:$8 sps:$4 sm:$0xff]   ;;  %v3610_v63 = vld [vmem:[%s4615_s3 + $0x34] ss:$8 sps:$4 sm:$0xff]  }
 0x3e8   :  { %v3442_v1 = vpop.f32.mrf.mxu0  ;;  %v3447_v6 = vpop.f32.mrf.mxu1  ;;  %1932 = vmatprep.subr.bf16.mxu0 %v3610_v63 }
 0x3e9   :  { %v3613_v1 = vld [vmem:[%s4615_s3 + $0x24] ss:$8 sps:$4 sm:$0xff]   ;;  %v3611_v6 = vld [vmem:[%s4615_s3 + $0x20] ss:$8 sps:$4 sm:$0xff]  }
 0x3ea   :  { %v1308_v35 = vpop.f32.mrf.mxu1  ;;  %1933 = vmatpush1.bf16.msra.mxu0 %v3608_v18 }
 0x3eb   :  { %v1351_v11 = vpop.f32.mrf.mxu0  ;;  %1934 = vmatprep.subr.bf16.mxu0 %v3613_v1  ;;  %v3616_v35 = vld [vmem:[%s4615_s3 + $0x14] ss:$8 sps:$4 sm:$0xff]  }
 0x3ec   :  { %1597 = vrot.lane.b32.xlu1 %v1351_v11, %s3702_s21  ;;  %v3448_v61 = vpop.f32.mrf.mxu1  ;;  %v3614_v11 = vld [vmem:[%s4615_s3 + $0x10] ss:$8 sps:$4 sm:$0xff]  }
 0x3ed   :  { %v3453_v8 = vpop.f32.mrf.mxu0  ;;  %v3619_v61 = vld [vmem:[%s4615_s3 + $0x4] ss:$8 sps:$4 sm:$0xff]  }
 0x3ee   :  { %v1397_v13 = vpop.f32.mrf.mxu1  ;;  %1935 = vmatpush1.bf16.msra.mxu0 %v3611_v6  ;;  %v3617_v8 = vld [vmem:[%s4615_s3] ss:$8 sps:$4 sm:$0xff]  }
 0x3ef   :  { %v1354_v43 = vpop.f32.mrf.mxu0  ;;  %1936 = vmatprep.subr.bf16.mxu0 %v3616_v35 }
 0x3f0   :  { %1605 = vrot.lane.b32.xlu1 %v1397_v13, %s3700_s1  ;;  %v3459_v14 = vpop.f32.mrf.mxu1  ;;  %v1627_v13 = vrot.slane %v3903_v28, %v3756_v12 }
 0x3f1   :  { %v3454_v15 = vpop.f32.mrf.mxu0 }
 0x3f2   :  { %v1400_v16 = vpop.f32.mrf.mxu1  ;;  %1937 = vmatpush1.bf16.msra.mxu0 %v3614_v11  ;;  %v1635_v43 = vcombine.high %v1627_v13, %v1627_v13  ;;  %v1643_v14 = vrot.slane %v1627_v13, %v3756_v12 }
 0x3f3   :  { %v4174_v17 = vpop.f32.mrf.mxu0  ;;  %1938 = vmatprep.subr.bf16.mxu0 %v3619_v61 }
 0x3f4   :  { %v3460_v24 = vpop.f32.mrf.mxu1  ;;  %v1657_v15 = vrot.slane %v1635_v43, %v3756_v12  ;;  %v1665_v16 = vcombine.high %v1643_v14, %v1643_v14 }
 0x3f5   :  { %v3465_v29 = vpop.f32.mrf.mxu0 }
 0x3f6   :  { %v1489_v44 = vpop.f32.mrf.mxu1  ;;  %1939 = vmatpush1.bf16.msra.mxu0 %v3617_v8  ;;  %v1667_v24 = vcombine.low %v1643_v14, %v1657_v15  ;;  %v1620_v29 = vcombine.high %v3903_v28, %v3903_v28 }
 0x3f7   :  { %v1446_v36 = vpop.f32.mrf.mxu0  ;;  %1591 = vrot.lane.b32.xlu0 %v1489_v44, %s3701_s20  ;;  %3509 = vmatprep.subr.bf16.mxu0 %v3688_v0 }
 0x3f8   :  { %v3471_v30 = vpop.f32.mrf.mxu1  ;;  %v1674_v44 = vrot.slane %v1667_v24, %v3756_v12  ;;  %v1681_v36 = vrot.slane %v1665_v16, %v3756_v12 }
 0x3f9   :  { %v3466_v47 = vpop.f32.mrf.mxu0  ;;  %v1634_v30 = vrot.slane %v1620_v29, %v3756_v12 }
 0x3fa   :  { %v1492_v23 = vpop.f32.mrf.mxu1 }
 0x3fb   :  { %v1535_v25 = vpop.f32.mrf.mxu0 }
 0x3fc   :  { %1599 = vrot.lane.b32.xlu0 %v1535_v25, %s3702_s21  ;;  %v3472_v37 = vpop.f32.mrf.mxu1  ;;  %v1682_v25 = vcombine.low %v1674_v44, %v1681_v36 }
 0x3fd   :  { %v3477_v31 = vpop.f32.mrf.mxu0  ;;  %v1636_v37 = vcombine.high %v1634_v30, %v1634_v30 }
 0x3fe   :  { %v1581_v45 = vpop.f32.mrf.mxu1  ;;  %v1650_v31 = vrot.slane %v1634_v30, %v3756_v12 }
 0x3ff   :  { %v1538_v46 = vpop.f32.mrf.mxu0  ;;  %1607 = vrot.lane.b32.xlu1 %v1581_v45, %s3700_s1  ;;  %v1666_v45 = vcombine.high %v1657_v15, %v1657_v15  ;;  %v1664_v53 = vrot.slane %v1636_v37, %v3756_v12 }
 0x400   :  { %v3483_v39 = vpop.f32.mrf.mxu1  ;;  %v1689_v46 = vrot.slane %v1682_v25, %v3756_v12 }
 0x401   :  { %v3478_v48 = vpop.f32.mrf.mxu0  ;;  %v3359_v39 = vld [vmem:[%s4616_s2] ss:$0 sm:$0xff]  ;;  %v1690_v19 = vcombine.low %v1666_v45, %v1650_v31  ;;  %v1704_v60 = vrot.slane %v1664_v53, %v3756_v12 }
 0x402   :  { %v1584_v54 = vpop.f32.mrf.mxu1 }
 0x404   :  { %v3484_v20 = vpop.f32.mrf.mxu1 }
 0x459   :  { %v1590_v47 = vpop.permute.xlu0 %1589 }
 0x45a   :  { %v1612_v27 = vsel %vm1611_vm5, %v4169_v7, %v1590_v47  ;;  %v1697_v7 = vrot.slane %v1690_v19, %v3756_v12 }
 0x45c   :  { %v1705_v18 = vcombine.low %v1697_v7, %v1704_v60 }
 0x45e   :  { %v1598_v23 = vpop.permute.xlu1 %1597  ;;  %v1712_v35 = vrot.slane %v1705_v18, %v3756_v12 }
 0x45f   :  { %v1614_v28 = vsel %vm200_vm1, %v1612_v27, %v1598_v23 }
 0x462   :  { %v1606_v38 = vpop.permute.xlu1 %1605 }
 0x463   :  { %v1617_v48 = vsel %vm1616_vm6, %v1614_v28, %v1606_v38 }
 0x464   :  { %v1715_v54 = vadd.f32 %v1689_v46, %v1617_v48 }
 0x466   :  { %v1723_v20 = vadd.f32 %v3359_v39, %v1715_v54 }
 0x468   :  { %v1727_v50 = vmin.f32 %v1723_v20, 0.0  ;;  %vm1725_vm7 = vcmp.gt.f32.partialorder %v1723_v20, 0.0 }
 0x469   :  { %v1592_v55 = vpop.permute.xlu0 %1591 }
 0x46a   :  { %v1729_v21 = vmul.f32 1.442695, %v1727_v50  ;;  %v1613_v1 = vsel %vm1611_vm5, %v4174_v17, %v1592_v55 }
 0x46c   :  { %3652 = vpow2.f32 %v1729_v21 }
 0x46e   :  { %v1600_v63 = vpop.permute.xlu0 %1599 }
 0x46f   :  { %v1615_v6 = vsel %vm200_vm1, %v1613_v1, %v1600_v63 }
 0x471   :  { %v1608_v11 = vpop.permute.xlu1 %1607 }
 0x472   :  { %v1618_v61 = vsel %vm1616_vm6, %v1615_v6, %v1608_v11 }
 0x473   :  { %v1716_v8 = vadd.f32 %v1712_v35, %v1618_v61 }
 0x475   :  { %v1724_v13 = vadd.f32 %v3359_v39, %v1716_v8 }
 0x477   :  { %v1728_v43 = vmin.f32 %v1724_v13, 0.0  ;;  %vm1726_vm1 = vcmp.gt.f32.partialorder %v1724_v13, 0.0 }
 0x479   :  { %v3653_v14 = vpop.eup %3652  ;;  %v1731_v15 = vmul.f32 1.442695, %v1728_v43 }
 0x47a   :  { %v3360_v16 = vadd.f32 -1.0, %v3653_v14 }
 0x47b   :  { %3654 = vpow2.f32 %v1731_v15 }
 0x47c   :  { %v4254_v24 = vsel %vm1725_vm7, %v1723_v20, %v3360_v16 }
 0x47d   :  { %v1762_v17 = vrot.slane %v4254_v24, %v3756_v12 }
 0x47f   :  { %v1763_v29 = vcombine.high %v1762_v17, %v1762_v17  ;;  %v1770_v30 = vrot.slane %v1762_v17, %v3756_v12 }
 0x481   :  { %v1777_v47 = vrot.slane %v1763_v29, %v3756_v12  ;;  %v1778_v45 = vcombine.high %v1770_v30, %v1770_v30 }
 0x483   :  { %v1802_v27 = vcombine.low %v1770_v30, %v1777_v47 }
 0x485   :  { %v1811_v48 = vrot.slane %v1802_v27, %v3756_v12 }
 0x488   :  { %v3655_v44 = vpop.eup %3654 }
 0x489   :  { %v3361_v36 = vadd.f32 -1.0, %v3655_v44 }
 0x48b   :  { %v4260_v23 = vsel %vm1726_vm1, %v1724_v13, %v3361_v36 }
 0x48c   :  { %v1785_v25 = vrot.slane %v4260_v23, %v3756_v12 }
 0x48e   :  { %v1786_v37 = vcombine.high %v1785_v25, %v1785_v25  ;;  %v1793_v31 = vrot.slane %v1785_v25, %v3756_v12 }
 0x490   :  { %v1800_v28 = vrot.slane %v1786_v37, %v3756_v12  ;;  %v1801_v46 = vcombine.high %v1793_v31, %v1793_v31  ;;  %v1803_v38 = vcombine.low %v1778_v45, %v1793_v31 }
 0x492   :  { %v1804_v39 = vcombine.low %v1800_v28, %v1801_v46  ;;  %v1818_v54 = vrot.slane %v1803_v38, %v3756_v12 }
 0x494   :  { %v1825_v53 = vrot.slane %v1804_v39, %v3756_v12  ;;  %v1826_v19 = vcombine.low %v1811_v48, %v1818_v54 }
 0x496   :  { %v1833_v20 = vrot.slane %v1826_v19, %v3756_v12  ;;  %v1840_v50 = vrot.slane %v1825_v53, %v3756_v12 }
 0x498   :  { %v1841_v55 = vcombine.low %v1833_v20, %v1840_v50 }
 0x49a   :  { %v1843_v7 = vpack.c.bf16 %v1841_v55, %v1841_v55 }
 0x49c   :  { %1957 = vmatmul.mubr.bf16.vlgmr.msra.gmra.mxu0 %v1843_v7 }
 0x49d   :  { %3511 = vmatprep.mubr.msk.bf16.mxu0 %vm3689_vm0, %v3688_v0 }
 0x55c   :  { %v1958_v60 = vpop.f32.mrf.mxu0 }
 0x55d   :  { %v2594_v21 = vcombine.high %v1958_v60, %v1958_v60  ;;  %v2601_v18 = vrot.slane %v1958_v60, %v3756_v12 }
 0x55e   :  { %v1960_v63 = vpop.f32.mrf.mxu0 }
 0x55f   :  { %v2608_v1 = vrot.slane %v2594_v21, %v3756_v12  ;;  %v2609_v6 = vcombine.high %v2601_v18, %v2601_v18  ;;  %v4276_v35 = vrot.slane %v2601_v18, %v3756_v12  ;;  %v1966_v11 = vcombine.high %v1960_v63, %v1960_v63 }
 0x560   :  { %v1973_v61 = vrot.slane %v1960_v63, %v3756_v12  ;;  %v1962_v8 = vpop.f32.mrf.mxu0 }
 0x561   :  { %v2610_v13 = vcombine.high %v2608_v1, %v2608_v1  ;;  %v4280_v43 = vrot.slane %v2609_v6, %v3756_v12  ;;  %v4284_v14 = vcombine.high %v4276_v35, %v4276_v35  ;;  %v1980_v15 = vrot.slane %v1966_v11, %v3756_v12 }
 0x562   :  { %v1981_v16 = vcombine.high %v1973_v61, %v1973_v61  ;;  %v1989_v17 = vrot.slane %v1973_v61, %v3756_v12  ;;  %v1963_v29 = vpop.f32.mrf.mxu0  ;;  %v4289_v44 = vrot.slane %v2608_v1, %v3756_v12 }
 0x563   :  { %v4292_v36 = vrot.slane %v2610_v13, %v3756_v12  ;;  %v4296_v30 = vcombine.high %v4280_v43, %v4280_v43  ;;  %v2685_v47 = vcombine.low %v4276_v35, %v4280_v43  ;;  %v2699_v28 = vrot.slane %v4284_v14, %v3756_v12 }
 0x564   :  { %v2003_v25 = vrot.slane %v1981_v16, %v3756_v12  ;;  %v2011_v37 = vcombine.high %v1989_v17, %v1989_v17  ;;  %v2075_v45 = vcombine.low %v1989_v17, %v1989_v17  ;;  %v1982_v46 = vcombine.high %v1980_v15, %v1980_v15 }
 0x565   :  { %v2777_v31 = vcombine.low %v4296_v30, %v4289_v44  ;;  %v2692_v27 = vrot.slane %v2685_v47, %v3756_v12  ;;  %v2791_v20 = vrot.slane %v4292_v36, %v3756_v12  ;;  %v1996_v50 = vrot.slane %v1980_v15, %v3756_v12 }
 0x566   :  { %v2012_v38 = vcombine.high %v2003_v25, %v2003_v25  ;;  %v2013_v39 = vcombine.low %v1989_v17, %v2003_v25  ;;  %v2076_v48 = vcombine.low %v2003_v25, %v2011_v37  ;;  %v2083_v54 = vrot.slane %v2075_v45, %v3756_v12 }
 0x567   :  { %v2700_v53 = vcombine.low %v2692_v27, %v2699_v28  ;;  %v2784_v19 = vrot.slane %v2777_v31, %v3756_v12  ;;  %v2027_v60 = vrot.slane %v2011_v37, %v3756_v12  ;;  %v2010_v8 = vrot.slane %v1982_v46, %v3756_v12 }
 0x568   :  { %v2090_v55 = vrot.slane %v2076_v48, %v3756_v12  ;;  %v2020_v7 = vrot.slane %v2013_v39, %v3756_v12  ;;  %v2187_v63 = vcombine.low %v2083_v54, %v2083_v54  ;;  %v2036_v1 = vcombine.low %v2012_v38, %v1996_v50 }
 0x569   :  { %v2707_v21 = vrot.slane %v2700_v53, %v3756_v12  ;;  %v2792_v18 = vcombine.low %v2784_v19, %v2791_v20  ;;  %v2100_v27 = vcombine.low %v1996_v50, %v2010_v8  ;;  %v2153_v46 = vrot.slane %v2027_v60, %v3756_v12 }
 0x56a   :  { %v2091_v6 = vcombine.low %v2083_v54, %v2090_v55  ;;  %v2028_v11 = vcombine.low %v2020_v7, %v2027_v60  ;;  %v2139_v61 = vcombine.low %v2020_v7, %v2020_v7  ;;  %v2201_v29 = vrot.slane %v2090_v55, %v3756_v12 }
 0x56b   :  { %v2877_v13 = vpack.c.bf16 %v2707_v21, %v2707_v21  ;;  %v2799_v16 = vrot.slane %v2792_v18, %v3756_v12  ;;  %v2194_v31 = vrot.slane %v2187_v63, %v3756_v12  ;;  %v2043_v45 = vrot.slane %v2036_v1, %v3756_v12 }
 0x56c   :  { %v2098_v15 = vrot.slane %v2091_v6, %v3756_v12  ;;  %v2035_v17 = vrot.slane %v2028_v11, %v3756_v12  ;;  %v2146_v37 = vrot.slane %v2139_v61, %v3756_v12  ;;  %v2050_v39 = vrot.slane %v2010_v8, %v3756_v12 }
 0x56d   :  { %v2889_v47 = vand.u32 %v2877_v13, %v3935_v62  ;;  %v2881_v25 = vpack.c.bf16 %v2799_v16, %v2799_v16  ;;  %v2202_v54 = vcombine.low %v2194_v31, %v2201_v29  ;;  %v2114_v19 = vrot.slane %v2100_v27, %v3756_v12 }
 0x56e   :  { %2258 = vperm.xlu1 %3564, %v2098_v15   ;;  %2242 = vperm.xlu0 %3563, %v2035_v17   ;;  %v2154_v48 = vcombine.low %v2146_v37, %v2153_v46  ;;  %v2051_v53 = vcombine.low %v2043_v45, %v2050_v39  ;;  %v2107_v20 = vrot.slane %v2012_v38, %v3756_v12 }
 0x56f   :  { %3486 = vmatpush3.bf16.msra.mxu1 %v2889_v47  ;;  %v3073_v28 = vand.u32 %v2881_v25, %v3935_v62  ;;  %v2155_v7 = vcombine.low %v2043_v45, %v2043_v45  ;;  %v2217_v63 = vrot.slane %v2114_v19, %v3756_v12 }
 0x570   :  { %3491 = vmatprep.subr.bf16.mxu1 %v3688_v0  ;;  %v2058_v50 = vrot.slane %v2051_v53, %v3756_v12  ;;  %v2115_v55 = vcombine.low %v2107_v20, %v2114_v19  ;;  %v2203_v60 = vcombine.low %v2107_v20, %v2107_v20 }
 0x571   :  { %3510 = vmatpush3.bf16.msra.mxu0 %v3073_v28  ;;  %v2162_v38 = vrot.slane %v2155_v7, %v3756_v12 }
 0x572   :  { %3565 = vset.pattern.permute.xlu1 %v3692_v33  ;;  %3566 = vset.pattern.permute.xlu0 %v3695_v26  ;;  %v2122_v21 = vrot.slane %v2115_v55, %v3756_v12  ;;  %v2210_v18 = vrot.slane %v2203_v60, %v3756_v12 }
 0x573   :  { %2274 = vperm.xlu1 %3565, %v2154_v48   ;;  %2290 = vperm.xlu0 %3566, %v2202_v54  }
 0x574   :  { %3521 = vmatprep.subr.bf16.mxu0 %v3688_v0  ;;  %v2218_v6 = vcombine.low %v2210_v18, %v2217_v63 }
 0x577   :  { %3567 = vset.pattern.permute.xlu1 %v3691_v32  ;;  %3571 = vset.pattern.permute.xlu0 %v3697_v41  ;;  %v2169_v32 = vrot.slane %v2050_v39, %v3756_v12 }
 0x578   :  { %2124 = vperm.xlu0 %3571, %v2098_v15   ;;  %2245 = vperm.xlu1 %3567, %v2058_v50  }
 0x579   :  { %v2170_v1 = vcombine.low %v2162_v38, %v2169_v32 }
 0x57c   :  { %3574 = vset.pattern.permute.xlu0 %v3693_v34  ;;  %3568 = vset.pattern.permute.xlu1 %v3694_v22 }
 0x57d   :  { %2063 = vperm.xlu0 %3574, %v2058_v50   ;;  %2261 = vperm.xlu1 %3568, %v2122_v21  }
 0x581   :  { %3576 = vset.pattern.permute.xlu0 %v3692_v33  ;;  %3569 = vset.pattern.permute.xlu1 %v3695_v26 }
 0x582   :  { %2277 = vperm.xlu0 %3576, %v2170_v1   ;;  %2293 = vperm.xlu1 %3569, %v2218_v6  }
 0x586   :  { %3570 = vset.pattern.permute.xlu1 %v3693_v34  ;;  %3578 = vset.pattern.permute.xlu0 %v3698_v42 }
 0x587   :  { %2060 = vperm.xlu1 %3570, %v2035_v17  }
 0x58b   :  { %3572 = vset.pattern.permute.xlu1 %v3696_v40 }
 0x58c   :  { %2172 = vperm.xlu1 %3572, %v2154_v48  }
 0x590   :  { %3573 = vset.pattern.permute.xlu1 %v3698_v42 }
 0x591   :  { %2220 = vperm.xlu1 %3573, %v2202_v54  }
 0x595   :  { %3575 = vset.pattern.permute.xlu1 %v3697_v41 }
 0x596   :  { %2127 = vperm.xlu1 %3575, %v2122_v21  }
 0x59a   :  { %3577 = vset.pattern.permute.xlu1 %v3696_v40 }
 0x5e9   :  { %v2259_v33 = vpop.permute.xlu1 %2258  ;;  %v2243_v22 = vpop.permute.xlu0 %2242 }
 0x5ea   :  { %v2266_v11 = vrot.slane %v2259_v33, %v3859_v51  ;;  %v2250_v34 = vrot.slane %v2243_v22, %v3856_v49 }
 0x5ec   :  { %v2305_v42 = vsel %vm558_vm2, %v2250_v34, %v2266_v11 }
 0x5ee   :  { %v2275_v61 = vpop.permute.xlu1 %2274  ;;  %v2291_v8 = vpop.permute.xlu0 %2290 }
 0x5ef   :  { %v2282_v13 = vrot.slane %v2275_v61, %v3862_v52  ;;  %v2298_v16 = vrot.slane %v2291_v8, %v3865_v2 }
 0x5f1   :  { %v2307_v15 = vsel %vm561_vm3, %v2305_v42, %v2282_v13 }
 0x5f2   :  { %v2309_v41 = vsel %vm564_vm4, %v2307_v15, %v2298_v16 }
 0x5f3   :  { %v2125_v17 = vpop.permute.xlu0 %2124  ;;  %v2246_v40 = vpop.permute.xlu1 %2245  ;;  %v2314_v29 = vrot.slane %v2309_v41, %v3874_v59  ;;  %v2322_v47 = vrot.slane %v2309_v41, %v3883_v5  ;;  %v2330_v45 = vrot.slane %v2309_v41, %v3888_v10 }
 0x5f4   :  { %v2254_v27 = vrot.slane %v2246_v40, %v3856_v49  ;;  %v2132_v21 = vrot.slane %v2125_v17, %v3930_v57 }
 0x5f5   :  { %2317 = vbcast.lane.b32.xlu0 %v2314_v29, 260  ;;  %2325 = vbcast.lane.b32.xlu1 %v2322_v47, 260 }
 0x5f8   :  { %v4360_v25 = vpop.permute.xlu0 %2063  ;;  %v2262_v37 = vpop.permute.xlu1 %2261 }
 0x5f9   :  { %2223 = vperm.xlu0 %3578, %v2218_v6   ;;  %2175 = vperm.xlu1 %3577, %v2170_v1   ;;  %v2270_v31 = vrot.slane %v2262_v37, %v3859_v51 }
 0x5fb   :  { %v2306_v54 = vsel %vm558_vm2, %v2254_v27, %v2270_v31  ;;  %v2072_v31 = vrot.slane %v4360_v25, %v3927_v56 }
 0x5fd   :  { %2641 = vrot.lane.b32.xlu0 %v4276_v35, %s3700_s1  ;;  %v2278_v28 = vpop.permute.xlu0 %2277  ;;  %2333 = vbcast.lane.b32.xlu1 %v2330_v45, 260  ;;  %v2294_v46 = vpop.permute.xlu1 %2293 }
 0x5fe   :  { %v2286_v39 = vrot.slane %v2278_v28, %v3862_v52  ;;  %v2302_v48 = vrot.slane %v2294_v46, %v3865_v2  ;;  %3579 = vset.pattern.permute.xlu0 %v3695_v26  ;;  %v2338_v52 = vrot.slane %v2309_v41, %v3871_v58 }
 0x600   :  { %v2308_v51 = vsel %vm561_vm3, %v2306_v54, %v2286_v39 }
 0x601   :  { %v2310_v53 = vsel %vm564_vm4, %v2308_v51, %v2302_v48  ;;  %2645 = vrot.lane.b32.xlu0 %v4284_v14, %s3700_s1  ;;  %2643 = vrot.lane.b32.xlu1 %v4280_v43, %s3700_s1 }
 0x602   :  { %v2346_v49 = vrot.slane %v2310_v53, %v3874_v59  ;;  %v2354_v26 = vrot.slane %v2310_v53, %v3883_v5  ;;  %v2362_v2 = vrot.slane %v2310_v53, %v3888_v10  ;;  %v2370_v19 = vrot.slane %v2310_v53, %v3871_v58  ;;  %v2061_v20 = vpop.permute.xlu1 %2060 }
 0x603   :  { %v2068_v7 = vrot.slane %v2061_v20, %v3927_v56 }
 0x605   :  { %2341 = vbcast.lane.b32.xlu1 %v2338_v52, 260  ;;  %2349 = vbcast.lane.b32.xlu0 %v2346_v49, 260  ;;  %v2235_v5 = vsel %vm558_vm2, %v2068_v7, %v2132_v21 }
 0x607   :  { %v2173_v50 = vpop.permute.xlu1 %2172 }
 0x608   :  { %v2180_v60 = vrot.slane %v2173_v50, %v3939_v3 }
 0x609   :  { %2357 = vbcast.lane.b32.xlu1 %v2354_v26, 260  ;;  %2365 = vbcast.lane.b32.xlu0 %v2362_v2, 260 }
 0x60a   :  { %v2237_v10 = vsel %vm561_vm3, %v2235_v5, %v2180_v60 }
 0x60c   :  { %v2221_v55 = vpop.permute.xlu1 %2220 }
 0x60d   :  { %2373 = vbcast.lane.b32.xlu1 %v2370_v19, 260  ;;  %v2228_v38 = vrot.slane %v2221_v55, %v3943_v9 }
 0x60f   :  { %v2239_v18 = vsel %vm564_vm4, %v2237_v10, %v2228_v38 }
 0x610   :  { %v2383_v58 = vrot.slane %v2239_v18, %v3756_v12 }
 0x611   :  { %v2128_v6 = vpop.permute.xlu1 %2127 }
 0x612   :  { %v2384_v63 = vcombine.high %v2383_v58, %v2383_v58  ;;  %v2391_v32 = vrot.slane %v2383_v58, %v3756_v12  ;;  %v2136_v47 = vrot.slane %v2128_v6, %v3930_v57 }
 0x614   :  { %v2398_v1 = vrot.slane %v2384_v63, %v3756_v12  ;;  %v2428_v33 = vrot.slane %v2391_v32, %v3874_v59  ;;  %v2399_v37 = vcombine.high %v2391_v32, %v2391_v32  ;;  %v2236_v39 = vsel %vm558_vm2, %v2072_v31, %v2136_v47 }
 0x616   :  { %v2432_v22 = vrot.slane %v2398_v1, %v3874_v59  ;;  %v2436_v54 = vrot.slane %v2399_v37, %v3874_v59  ;;  %v2400_v56 = vcombine.high %v2398_v1, %v2398_v1 }
 0x618   :  { %v2440_v50 = vrot.slane %v2400_v56, %v3874_v59 }
 0x667   :  { %v2318_v11 = vpop.permute.xlu0 %2317  ;;  %v2326_v34 = vpop.permute.xlu1 %2325 }
 0x668   :  { %v2465_v61 = vadd.f32 %v2428_v33, %v2318_v11  ;;  %v2466_v8 = vadd.f32 %v2432_v22, %v2326_v34 }
 0x66a   :  { %vm2473_vm9 = vcmp.gt.f32.partialorder %v2465_v61, 0.0  ;;  %v2481_v13 = vmul.f32 0.2, %v2465_v61  ;;  %vm2474_vm10 = vcmp.gt.f32.partialorder %v2466_v8, 0.0  ;;  %v2482_v16 = vmul.f32 0.2, %v2466_v8 }
 0x66c   :  { %v2489_v42 = vsel %vm2473_vm9, %v2465_v61, %v2481_v13  ;;  %v2490_v15 = vsel %vm2474_vm10, %v2466_v8, %v2482_v16 }
 0x66d   :  { %v4395_v41 = vadd.f32 %v2489_v42, %v3969_v4  ;;  %v4398_v17 = vadd.f32 %v2490_v15, %v3969_v4 }
 0x66f   :  { %v2505_v40 = vsel %vm835_vm8, %v4395_v41, -inf  ;;  %v2508_v29 = vsel %vm835_vm8, %v4398_v17, -inf }
 0x670   :  { %2506 = vmax.xlane.f32.xlu0 %v2505_v40  ;;  %2509 = vmax.xlane.f32.xlu1 %v2508_v29 }
 0x674   :  { %v2224_v45 = vpop.permute.xlu0 %2223  ;;  %v2176_v27 = vpop.permute.xlu1 %2175 }
 0x675   :  { %v2232_v28 = vrot.slane %v2224_v45, %v3943_v9  ;;  %v2184_v46 = vrot.slane %v2176_v27, %v3939_v3 }
 0x677   :  { %v2238_v48 = vsel %vm561_vm3, %v2236_v39, %v2184_v46 }
 0x678   :  { %v2240_v51 = vsel %vm564_vm4, %v2238_v48, %v2232_v28  ;;  %v2642_v53 = vpop.permute.xlu0 %2641  ;;  %v2334_v57 = vpop.permute.xlu1 %2333 }
 0x679   :  { %v2467_v49 = vadd.f32 %v2436_v54, %v2334_v57  ;;  %v2407_v52 = vrot.slane %v2240_v51, %v3756_v12 }
 0x67b   :  { %vm2475_vm11 = vcmp.gt.f32.partialorder %v2467_v49, 0.0  ;;  %v2483_v25 = vmul.f32 0.2, %v2467_v49  ;;  %v2415_v9 = vrot.slane %v2407_v52, %v3756_v12  ;;  %v2408_v26 = vcombine.high %v2407_v52, %v2407_v52 }
 0x67c   :  { %v2646_v3 = vpop.permute.xlu0 %2645  ;;  %v2644_v2 = vpop.permute.xlu1 %2643 }
 0x67d   :  { %v2708_v19 = vcombine.low %v2642_v53, %v2644_v2  ;;  %v2491_v20 = vsel %vm2475_vm11, %v2467_v49, %v2483_v25  ;;  %v2423_v7 = vcombine.high %v2415_v9, %v2415_v9  ;;  %v2722_v60 = vrot.slane %v2646_v3, %v3756_v12 }
 0x67e   :  { %v4417_v55 = vadd.f32 %v2491_v20, %v3969_v4  ;;  %v2444_v38 = vrot.slane %v2415_v9, %v3874_v59  ;;  %v2422_v5 = vrot.slane %v2408_v26, %v3756_v12 }
 0x67f   :  { %v2715_v21 = vrot.slane %v2708_v19, %v3756_v12  ;;  %v2452_v6 = vrot.slane %v2423_v7, %v3874_v59 }
 0x680   :  { %v2350_v10 = vpop.permute.xlu0 %2349  ;;  %v2342_v18 = vpop.permute.xlu1 %2341  ;;  %v2511_v58 = vsel %vm835_vm8, %v4417_v55, -inf  ;;  %v2448_v22 = vrot.slane %v2422_v5, %v3874_v59  ;;  %v2424_v54 = vcombine.high %v2422_v5, %v2422_v5 }
 0x681   :  { %v4425_v63 = vcombine.low %v2715_v21, %v2722_v60  ;;  %v2469_v32 = vadd.f32 %v2444_v38, %v2350_v10  ;;  %v2468_v1 = vadd.f32 %v2440_v50, %v2342_v18  ;;  %2512 = vmax.xlane.f32.xlu0 %v2511_v58 }
 0x682   :  { %v2456_v53 = vrot.slane %v2424_v54, %v3874_v59 }
 0x683   :  { %vm2477_vm2 = vcmp.gt.f32.partialorder %v2469_v32, 0.0  ;;  %v2485_v33 = vmul.f32 0.2, %v2469_v32  ;;  %vm2476_vm3 = vcmp.gt.f32.partialorder %v2468_v1, 0.0  ;;  %v2484_v11 = vmul.f32 0.2, %v2468_v1 }
 0x684   :  { %v2366_v34 = vpop.permute.xlu0 %2365  ;;  %v2358_v61 = vpop.permute.xlu1 %2357 }
 0x685   :  { %v2471_v8 = vadd.f32 %v2452_v6, %v2366_v34  ;;  %v2470_v13 = vadd.f32 %v2448_v22, %v2358_v61  ;;  %v2493_v16 = vsel %vm2477_vm2, %v2469_v32, %v2485_v33  ;;  %v2492_v15 = vsel %vm2476_vm3, %v2468_v1, %v2484_v11 }
 0x686   :  { %v4430_v42 = vadd.f32 %v2493_v16, %v3969_v4  ;;  %v4435_v37 = vadd.f32 %v2492_v15, %v3969_v4 }
 0x687   :  { %vm2479_vm4 = vcmp.gt.f32.partialorder %v2471_v8, 0.0  ;;  %v2487_v40 = vmul.f32 0.2, %v2471_v8  ;;  %vm2478_vm12 = vcmp.gt.f32.partialorder %v2470_v13, 0.0  ;;  %v2486_v29 = vmul.f32 0.2, %v2470_v13 }
 0x688   :  { %v2517_v47 = vsel %vm835_vm8, %v4430_v42, -inf  ;;  %v2514_v27 = vsel %vm835_vm8, %v4435_v37, -inf  ;;  %v2374_v51 = vpop.permute.xlu1 %2373 }
 0x689   :  { %2518 = vmax.xlane.f32.xlu1 %v2517_v47  ;;  %v2495_v31 = vsel %vm2479_vm4, %v2471_v8, %v2487_v40  ;;  %v2494_v45 = vsel %vm2478_vm12, %v2470_v13, %v2486_v29  ;;  %2515 = vmax.xlane.f32.xlu0 %v2514_v27  ;;  %v2472_v57 = vadd.f32 %v2456_v53, %v2374_v51 }
 0x68a   :  { %v4440_v28 = vadd.f32 %v2495_v31, %v3969_v4  ;;  %v4443_v46 = vadd.f32 %v2494_v45, %v3969_v4 }
 0x68b   :  { %v2488_v49 = vmul.f32 0.2, %v2472_v57  ;;  %vm2480_vm13 = vcmp.gt.f32.partialorder %v2472_v57, 0.0 }
 0x68c   :  { %v2523_v39 = vsel %vm835_vm8, %v4440_v28, -inf  ;;  %v2520_v48 = vsel %vm835_vm8, %v4443_v46, -inf }
 0x68d   :  { %2524 = vmax.xlane.f32.xlu1 %v2523_v39  ;;  %2521 = vmax.xlane.f32.xlu0 %v2520_v48  ;;  %v2496_v52 = vsel %vm2480_vm13, %v2472_v57, %v2488_v49 }
 0x68e   :  { %v4457_v56 = vadd.f32 %v2496_v52, %v3969_v4 }
 0x690   :  { %v2526_v25 = vsel %vm835_vm8, %v4457_v56, -inf }
 0x69e   :  { %2653 = vrot.lane.b32.xlu1 %v4276_v35, %s3702_s21 }
 0x6a3   :  { %2655 = vrot.lane.b32.xlu0 %v4280_v43, %s3702_s21 }
 0x6a7   :  { %2657 = vrot.lane.b32.xlu0 %v4284_v14, %s3702_s21 }
 0x6c6   :  { %2527 = vmax.xlane.f32.xlu0 %v2526_v25 }
 0x6dc   :  { %2667 = vrot.lane.b32.xlu0 %v4280_v43, %s3701_s20 }
 0x6e0   :  { %2669 = vrot.lane.b32.xlu0 %v4284_v14, %s3701_s20 }
 0x6e4   :  { %2647 = vrot.lane.b32.xlu0 %v4296_v30, %s3700_s1 }
 0x6e8   :  { %2649 = vrot.lane.b32.xlu0 %v4289_v44, %s3700_s1 }
 0x6ec   :  { %2651 = vrot.lane.b32.xlu0 %v4292_v36, %s3700_s1 }
 0x6f0   :  { %2659 = vrot.lane.b32.xlu0 %v4296_v30, %s3702_s21 }
 0x6f4   :  { %2661 = vrot.lane.b32.xlu0 %v4289_v44, %s3702_s21 }
 0x6f9   :  { %v2507_v59 = vpop.xlane.xlu0 %2506  ;;  %v2510_v4 = vpop.xlane.xlu1 %2509 }
 0x6fa   :  { %v2529_v43 = vsub.f32 %v4395_v41, %v2507_v59  ;;  %v2530_v9 = vsub.f32 %v4398_v17, %v2510_v4 }
 0x6fc   :  { %v2537_v14 = vmul.f32 1.442695, %v2529_v43  ;;  %v2539_v26 = vmul.f32 1.442695, %v2530_v9  ;;  %v2730_v9 = vrot.slane %v4425_v63, %v3756_v12 }
 0x6fe   :  { %3656 = vpow2.f32 %v2537_v14 }
 0x6ff   :  { %3658 = vpow2.f32 %v2539_v26 }
 0x70a   :  { %v2513_v19 = vpop.xlane.xlu0 %2512 }
 0x70b   :  { %v4477_v3 = vpop.eup %3656  ;;  %v2531_v1 = vsub.f32 %v4417_v55, %v2513_v19 }
 0x70c   :  { %v2553_v2 = vsel %vm835_vm8, %v4477_v3, 0.0  ;;  %v4481_v20 = vpop.eup %3658 }
 0x70d   :  { %2554 = vadd.xlane.f32.xlu1 %v2553_v2  ;;  %v2556_v41 = vsel %vm835_vm8, %v4481_v20, 0.0  ;;  %v2541_v6 = vmul.f32 1.442695, %v2531_v1  ;;  %v2878_v2 = vpack.c.bf16 %v2730_v9, %v2730_v9 }
 0x70f   :  { %3660 = vpow2.f32 %v2541_v6 }
 0x712   :  { %v2519_v50 = vpop.xlane.xlu1 %2518  ;;  %v2516_v7 = vpop.xlane.xlu0 %2515 }
 0x713   :  { %2557 = vadd.xlane.f32.xlu0 %v2556_v41  ;;  %v2532_v33 = vsub.f32 %v4435_v37, %v2516_v7  ;;  %v2533_v22 = vsub.f32 %v4430_v42, %v2519_v50  ;;  %v2935_v7 = vand.u32 %v2878_v2, %v3935_v62 }
 0x715   :  { %v2543_v11 = vmul.f32 1.442695, %v2532_v33  ;;  %v2545_v34 = vmul.f32 1.442695, %v2533_v22 }
 0x716   :  { %v2525_v60 = vpop.xlane.xlu1 %2524  ;;  %v2522_v17 = vpop.xlane.xlu0 %2521 }
 0x717   :  { %3662 = vpow2.f32 %v2543_v11  ;;  %v2535_v8 = vsub.f32 %v4440_v28, %v2525_v60 }
 0x718   :  { %3664 = vpow2.f32 %v2545_v34 }
 0x719   :  { %v2549_v55 = vmul.f32 1.442695, %v2535_v8 }
 0x71a   :  { %v2654_v21 = vpop.permute.xlu1 %2653  ;;  %v2656_v38 = vpop.permute.xlu0 %2655 }
 0x71b   :  { %v2731_v5 = vcombine.low %v2654_v21, %v2656_v38 }
 0x71c   :  { %v4498_v13 = vpop.eup %3660 }
 0x71d   :  { %v2738_v18 = vrot.slane %v2731_v5, %v3756_v12  ;;  %v2559_v16 = vsel %vm835_vm8, %v4498_v13, 0.0 }
 0x71e   :  { %2665 = vrot.lane.b32.xlu1 %v4276_v35, %s3701_s20  ;;  %v2658_v10 = vpop.permute.xlu0 %2657  ;;  %v2534_v35 = vsub.f32 %v4443_v46, %v2522_v17 }
 0x71f   :  { %v2745_v58 = vrot.slane %v2658_v10, %v3756_v12 }
 0x720   :  { %v2547_v61 = vmul.f32 1.442695, %v2534_v35 }
 0x721   :  { %v4489_v32 = vcombine.low %v2738_v18, %v2745_v58 }
 0x722   :  { %3666 = vpow2.f32 %v2547_v61 }
 0x723   :  { %3668 = vpow2.f32 %v2549_v55  ;;  %v2753_v50 = vrot.slane %v4489_v32, %v3756_v12 }
 0x724   :  { %v4502_v15 = vpop.eup %3662 }
 0x725   :  { %v4504_v42 = vpop.eup %3664  ;;  %v2562_v40 = vsel %vm835_vm8, %v4502_v15, 0.0  ;;  %v2879_v63 = vpack.c.bf16 %v2753_v50, %v2753_v50 }
 0x726   :  { %v2565_v47 = vsel %vm835_vm8, %v4504_v42, 0.0 }
 0x729   :  { %2663 = vrot.lane.b32.xlu0 %v4292_v36, %s3702_s21 }
 0x72f   :  { %v4508_v29 = vpop.eup %3666 }
 0x730   :  { %v2568_v37 = vsel %vm835_vm8, %v4508_v29, 0.0  ;;  %v4514_v31 = vpop.eup %3668 }
 0x731   :  { %v2571_v45 = vsel %vm835_vm8, %v4514_v31, 0.0 }
 0x742   :  { %2560 = vadd.xlane.f32.xlu1 %v2559_v16 }
 0x746   :  { %2563 = vadd.xlane.f32.xlu1 %v2562_v40 }
 0x748   :  { %2566 = vadd.xlane.f32.xlu0 %v2565_v47 }
 0x74a   :  { %2569 = vadd.xlane.f32.xlu1 %v2568_v37 }
 0x74c   :  { %2572 = vadd.xlane.f32.xlu0 %v2571_v45 }
 0x74f   :  { %v2528_v27 = vpop.xlane.xlu0 %2527 }
 0x750   :  { %v2536_v28 = vsub.f32 %v4457_v56, %v2528_v27 }
 0x752   :  { %v2551_v46 = vmul.f32 1.442695, %v2536_v28 }
 0x753   :  { %v2668_v39 = vpop.permute.xlu0 %2667 }
 0x754   :  { %3670 = vpow2.f32 %v2551_v46 }
 0x757   :  { %v2670_v48 = vpop.permute.xlu0 %2669 }
 0x758   :  { %v2768_v18 = vrot.slane %v2670_v48, %v3756_v12 }
 0x75b   :  { %v2648_v54 = vpop.permute.xlu0 %2647 }
 0x75f   :  { %v2650_v51 = vpop.permute.xlu0 %2649 }
 0x760   :  { %v2800_v53 = vcombine.low %v2648_v54, %v2650_v51 }
 0x761   :  { %v4519_v57 = vpop.eup %3670 }
 0x762   :  { %2673 = vrot.lane.b32.xlu0 %v4289_v44, %s3701_s20  ;;  %v2574_v49 = vsel %vm835_vm8, %v4519_v57, 0.0  ;;  %v2807_v25 = vrot.slane %v2800_v53, %v3756_v12  ;;  %vm3325_vm8 = vcmask 1041409  }
 0x763   :  { %2575 = vadd.xlane.f32.xlu1 %v2574_v49  ;;  %v2652_v52 = vpop.permute.xlu0 %2651 }
 0x764   :  { %v2814_v56 = vrot.slane %v2652_v52, %v3756_v12 }
 0x766   :  { %v2815_v59 = vcombine.low %v2807_v25, %v2814_v56  ;;  %2675 = vrot.lane.b32.xlu0 %v4292_v36, %s3701_s20 }
 0x767   :  { %v2660_v4 = vpop.permute.xlu0 %2659 }
 0x768   :  { %v2822_v47 = vrot.slane %v2815_v59, %v3756_v12 }
 0x76a   :  { %3273 = vrot.lane.b32.xlu0 %v4254_v24, %s3700_s1 }
 0x76b   :  { %v2662_v43 = vpop.permute.xlu0 %2661 }
 0x76c   :  { %v2823_v14 = vcombine.low %v2660_v4, %v2662_v43 }
 0x76e   :  { %3275 = vrot.lane.b32.xlu0 %v4260_v23, %s3700_s1  ;;  %v2830_v11 = vrot.slane %v2823_v14, %v3756_v12 }
 0x772   :  { %3283 = vrot.lane.b32.xlu0 %v4260_v23, %s3702_s21 }
 0x774   :  { %2671 = vrot.lane.b32.xlu1 %v4296_v30, %s3701_s20 }
 0x776   :  { %3291 = vrot.lane.b32.xlu0 %v4260_v23, %s3701_s20 }
 0x778   :  { %3281 = vrot.lane.b32.xlu1 %v4254_v24, %s3702_s21 }
 0x77c   :  { %3289 = vrot.lane.b32.xlu1 %v4254_v24, %s3701_s20 }
 0x796   :  { %v2555_v44 = vpop.xlane.xlu1 %2554 }
 0x797   :  { %3672 = vrcp.f32 %v2555_v44 }
 0x79a   :  { %v2666_v21 = vpop.permute.xlu1 %2665 }
 0x79b   :  { %v2754_v38 = vcombine.low %v2666_v21, %v2668_v39 }
 0x79c   :  { %v2558_v36 = vpop.xlane.xlu0 %2557 }
 0x79d   :  { %3674 = vrcp.f32 %v2558_v36  ;;  %v2761_v10 = vrot.slane %v2754_v38, %v3756_v12 }
 0x79f   :  { %v2769_v32 = vcombine.low %v2761_v10, %v2768_v18 }
 0x7a1   :  { %v2776_v33 = vrot.slane %v2769_v32, %v3756_v12 }
 0x7a3   :  { %v2880_v61 = vpack.c.bf16 %v2776_v33, %v2776_v33 }
 0x7a4   :  { %v3673_v26 = vpop.eup %3672 }
 0x7a5   :  { %v2578_v30 = vmul.f32 %v3673_v26, %v4477_v3  ;;  %v2981_v3 = vand.u32 %v2879_v63, %v3935_v62  ;;  %v3027_v45 = vand.u32 %v2880_v61, %v3935_v62 }
 0x7a7   :  { %v2677_v19 = vpack.c.bf16 %v2578_v30, %v2578_v30 }
 0x7a9   :  { %3488 = vmatmul.mubr.msk.bf16.vlgmr.msra.gmra.mxu1 %vm1216_vm15, %v2677_v19 }
 0x7aa   :  { %3492 = vmatpush3.bf16.msra.mxu1 %v2935_v7  ;;  %3493 = vmatprep.mubr.msk.bf16.mxu1 %vm3689_vm0, %v3688_v0  ;;  %v3675_v41 = vpop.eup %3674 }
 0x7ab   :  { %3497 = vmatprep.subr.bf16.mxu1 %v3688_v0  ;;  %v2580_v60 = vmul.f32 %v3675_v41, %v4481_v20  ;;  %v2664_v20 = vpop.permute.xlu0 %2663 }
 0x7ac   :  { %v2837_v22 = vrot.slane %v2664_v20, %v3756_v12 }
 0x7ad   :  { %v2678_v17 = vpack.c.bf16 %v2580_v60, %v2580_v60 }
 0x7ae   :  { %v2838_v8 = vcombine.low %v2830_v11, %v2837_v22 }
 0x7b0   :  { %v2845_v37 = vrot.slane %v2838_v8, %v3756_v12 }
 0x7b1   :  { %3494 = vmatmul.mubr.msk.bf16.vlgmr.msra.gmra.mxu1 %vm1216_vm15, %v2678_v17 }
 0x7b2   :  { %3498 = vmatpush3.bf16.msra.mxu1 %v2981_v3  ;;  %3499 = vmatprep.mubr.msk.bf16.mxu1 %vm3689_vm0, %v3688_v0  ;;  %v2883_v46 = vpack.c.bf16 %v2845_v37, %v2845_v37 }
 0x7b3   :  { %3503 = vmatprep.subr.bf16.mxu1 %v3688_v0 }
 0x7b4   :  { %v3165_v52 = vand.u32 %v2883_v46, %v3935_v62 }
 0x7cb   :  { %v2561_v5 = vpop.xlane.xlu1 %2560 }
 0x7cc   :  { %3676 = vrcp.f32 %v2561_v5 }
 0x7cf   :  { %v2564_v58 = vpop.xlane.xlu1 %2563 }
 0x7d0   :  { %3678 = vrcp.f32 %v2564_v58 }
 0x7d1   :  { %v2567_v1 = vpop.xlane.xlu0 %2566 }
 0x7d2   :  { %3680 = vrcp.f32 %v2567_v1 }
 0x7d3   :  { %v2570_v6 = vpop.xlane.xlu1 %2569 }
 0x7d4   :  { %3682 = vrcp.f32 %v2570_v6 }
 0x7d5   :  { %v2573_v35 = vpop.xlane.xlu0 %2572 }
 0x7d6   :  { %3684 = vrcp.f32 %v2573_v35 }
 0x7d9   :  { %v3677_v34 = vpop.eup %3676  ;;  %v2674_v25 = vpop.permute.xlu0 %2673 }
 0x7da   :  { %v2582_v55 = vmul.f32 %v3677_v34, %v4498_v13  ;;  %v2882_v13 = vpack.c.bf16 %v2822_v47, %v2822_v47 }
 0x7dc   :  { %v2679_v16 = vpack.c.bf16 %v2582_v55, %v2582_v55  ;;  %v3119_v49 = vand.u32 %v2882_v13, %v3935_v62 }
 0x7dd   :  { %v3679_v40 = vpop.eup %3678 }
 0x7de   :  { %3500 = vmatmul.mubr.msk.bf16.vlgmr.msra.gmra.mxu1 %vm1216_vm15, %v2679_v16  ;;  %v2584_v27 = vmul.f32 %v3679_v40, %v4502_v15 }
 0x7df   :  { %3504 = vmatpush3.bf16.msra.mxu1 %v3027_v45  ;;  %3505 = vmatprep.mubr.msk.bf16.mxu1 %vm3689_vm0, %v3688_v0  ;;  %v3681_v28 = vpop.eup %3680 }
 0x7e0   :  { %3515 = vmatprep.subr.bf16.mxu1 %v3688_v0  ;;  %v2586_v39 = vmul.f32 %v3681_v28, %v4504_v42  ;;  %v2680_v51 = vpack.c.bf16 %v2584_v27, %v2584_v27 }
 0x7e1   :  { %v3683_v48 = vpop.eup %3682 }
 0x7e2   :  { %v2681_v54 = vpack.c.bf16 %v2586_v39, %v2586_v39  ;;  %v2588_v42 = vmul.f32 %v3683_v48, %v4508_v29 }
 0x7e3   :  { %v3685_v53 = vpop.eup %3684 }
 0x7e4   :  { %3512 = vmatmul.mubr.msk.bf16.vlgmr.msra.gmra.mxu0 %vm1216_vm15, %v2681_v54  ;;  %v2590_v15 = vmul.f32 %v3685_v53, %v4514_v31  ;;  %v2682_v59 = vpack.c.bf16 %v2588_v42, %v2588_v42  ;;  %v2676_v31 = vpop.permute.xlu0 %2675 }
 0x7e5   :  { %3522 = vmatpush3.bf16.msra.mxu0 %v3165_v52  ;;  %3523 = vmatprep.mubr.msk.bf16.mxu0 %vm3689_vm0, %v3688_v0  ;;  %v2860_v44 = vrot.slane %v2676_v31, %v3756_v12 }
 0x7e6   :  { %3506 = vmatmul.mubr.msk.bf16.vlgmr.msra.gmra.mxu1 %vm1216_vm15, %v2680_v51  ;;  %v2683_v56 = vpack.c.bf16 %v2590_v15, %v2590_v15 }
 0x7e7   :  { %3516 = vmatpush3.bf16.msra.mxu1 %v3119_v49  ;;  %3517 = vmatprep.mubr.msk.bf16.mxu1 %vm3689_vm0, %v3688_v0 }
 0x7e8   :  { %3527 = vmatprep.subr.bf16.mxu1 %v3688_v0  ;;  %v3274_v11 = vpop.permute.xlu0 %3273 }
 0x7e9   :  { %v3279_v55 = vadd.f32 %v3274_v11, %v4254_v24  ;;  %v3387_v24 = vld [vmem:[%s4617_s4] ss:$0 sm:$0xff] }
 0x7ec   :  { %3524 = vmatmul.mubr.msk.bf16.vlgmr.msra.gmra.mxu0 %vm1216_vm15, %v2683_v56  ;;  %v2576_v4 = vpop.xlane.xlu1 %2575  ;;  %v3276_v54 = vpop.permute.xlu0 %3275 }
 0x7ed   :  { %3686 = vrcp.f32 %v2576_v4  ;;  %v3280_v4 = vadd.f32 %v3276_v54, %v4260_v23 }
 0x7ee   :  { %3518 = vmatmul.mubr.msk.bf16.vlgmr.msra.gmra.mxu1 %vm1216_vm15, %v2682_v59 }
 0x7ef   :  { %3529 = vmatprep.mubr.msk.bf16.mxu1 %vm3689_vm0, %v3688_v0  ;;  %vm3253_vm0 = vcmask 256000  }
 0x7f0   :  { %v2672_v43 = vpop.permute.xlu1 %2671  ;;  %v3284_v42 = vpop.permute.xlu0 %3283 }
 0x7f1   :  { %v2846_v14 = vcombine.low %v2672_v43, %v2674_v25 }
 0x7f3   :  { %v2853_v29 = vrot.slane %v2846_v14, %v3756_v12  ;;  %v3288_v14 = vadd.f32 %v3284_v42, %v3280_v4 }
 0x7f4   :  { %v3282_v6 = vpop.permute.xlu1 %3281  ;;  %v3292_v43 = vpop.permute.xlu0 %3291 }
 0x7f5   :  { %v2861_v36 = vcombine.low %v2853_v29, %v2860_v44  ;;  %v3287_v45 = vadd.f32 %v3282_v6, %v3279_v55 }
 0x7f7   :  { %v2868_v9 = vrot.slane %v2861_v36, %v3756_v12  ;;  %v3296_v36 = vadd.f32 %v3292_v43, %v3288_v14 }
 0x7f8   :  { %v3290_v37 = vpop.permute.xlu1 %3289 }
 0x7f9   :  { %v2884_v26 = vpack.c.bf16 %v2868_v9, %v2868_v9  ;;  %v3295_v46 = vadd.f32 %v3290_v37, %v3287_v45 }
 0x7fa   :  { %v3687_v2 = vpop.eup %3686 }
 0x7fb   :  { %v3211_v30 = vand.u32 %v2884_v26, %v3935_v62  ;;  %v2592_v19 = vmul.f32 %v3687_v2, %v4519_v57  ;;  %v3297_v52 = vmul.f32 0.25, %v3295_v46 }
 0x7fd   :  { %3528 = vmatpush3.bf16.msra.mxu1 %v3211_v30  ;;  %v2684_v50 = vpack.c.bf16 %v2592_v19, %v2592_v19 }
 0x800   :  { %3530 = vmatmul.mubr.msk.bf16.vlgmr.msra.gmra.mxu1 %vm1216_vm15, %v2684_v50 }
 0x869   :  { %v2925_v0 = vpop.f32.mrf.mxu1 }
 0x86a   :  { %v3254_v17 = vsel %vm3253_vm0, %v2925_v0, 0.0  ;;  %v3298_v0 = vmul.f32 0.25, %v3296_v36 }
 0x86b   :  { %v3489_v7 = vpop.f32.mrf.mxu1 }
 0x86d   :  { %v2928_v41 = vpop.f32.mrf.mxu1 }
 0x86f   :  { %v3490_v63 = vpop.f32.mrf.mxu1 }
 0x871   :  { %v2971_v60 = vpop.f32.mrf.mxu1 }
 0x872   :  { %v3255_v12 = vsel %vm3253_vm0, %v2971_v60, 0.0 }
 0x873   :  { %v3256_v3 = vadd.f32 %v3255_v12, %v3254_v17  ;;  %v3495_v21 = vpop.f32.mrf.mxu1 }
 0x875   :  { %v2974_v38 = vpop.f32.mrf.mxu1 }
 0x877   :  { %v3496_v62 = vpop.f32.mrf.mxu1 }
 0x89e   :  { %v3017_v5 = vpop.f32.mrf.mxu1 }
 0x89f   :  { %v3257_v35 = vsel %vm3253_vm0, %v3017_v5, 0.0 }
 0x8a0   :  { %v3501_v57 = vpop.f32.mrf.mxu1  ;;  %v3258_v16 = vadd.f32 %v3257_v35, %v3256_v3 }
 0x8a2   :  { %v3020_v10 = vpop.f32.mrf.mxu1 }
 0x8a4   :  { %v3502_v18 = vpop.f32.mrf.mxu1  ;;  %v3109_v20 = vpop.f32.mrf.mxu0 }
 0x8a5   :  { %v3261_v59 = vsel %vm3253_vm0, %v3109_v20, 0.0 }
 0x8a6   :  { %v3063_v58 = vpop.f32.mrf.mxu1  ;;  %v3513_v32 = vpop.f32.mrf.mxu0 }
 0x8a7   :  { %v3259_v8 = vsel %vm3253_vm0, %v3063_v58, 0.0 }
 0x8a8   :  { %v3507_v1 = vpop.f32.mrf.mxu1  ;;  %v3112_v33 = vpop.f32.mrf.mxu0  ;;  %v3260_v27 = vadd.f32 %v3259_v8, %v3258_v16 }
 0x8aa   :  { %v3066_v22 = vpop.f32.mrf.mxu1  ;;  %v3514_v34 = vpop.f32.mrf.mxu0  ;;  %v3269_v51 = vmul.f32 0.25, %v3260_v27 }
 0x8ac   :  { %v3508_v61 = vpop.f32.mrf.mxu1  ;;  %v3201_v40 = vpop.f32.mrf.mxu0  ;;  %v3299_v15 = vadd.f32 %v3297_v52, %v3269_v51 }
 0x8ad   :  { %v3264_v29 = vsel %vm3253_vm0, %v3201_v40, 0.0 }
 0x8ae   :  { %v3155_v47 = vpop.f32.mrf.mxu1  ;;  %v3525_v28 = vpop.f32.mrf.mxu0  ;;  %v3307_v56 = vadd.f32 %v3387_v24, %v3299_v15 }
 0x8af   :  { %v3262_v25 = vsel %vm3253_vm0, %v3155_v47, 0.0 }
 0x8b0   :  { %v3519_v13 = vpop.f32.mrf.mxu1  ;;  %v3204_v39 = vpop.f32.mrf.mxu0  ;;  %v3263_v31 = vadd.f32 %v3262_v25, %v3261_v59  ;;  %v3309_v44 = vsel %vm3253_vm0, %v3307_v56, 0.0 }
 0x8b1   :  { %v3310_v2 = vrot.slane %v3309_v44, 4 }
 0x8b2   :  { %v3158_v48 = vpop.f32.mrf.mxu1  ;;  %v3526_v53 = vpop.f32.mrf.mxu0  ;;  %v3265_v26 = vadd.f32 %v3264_v29, %v3263_v31 }
 0x8b3   :  { %v3311_v63 = vadd.f32 %v3310_v2, %v3309_v44 }
 0x8b4   :  { %v3520_v49 = vpop.f32.mrf.mxu1 }
 0x8b5   :  { %v3312_v12 = vrot.slane %v3311_v63, 2 }
 0x8b7   :  { %v3313_v38 = vadd.f32 %v3312_v12, %v3311_v63 }
 0x8b9   :  { %v3314_v57 = vrot.slane %v3313_v38, 1 }
 0x8bb   :  { %v3315_v20 = vadd.f32 %v3314_v57, %v3313_v38 }
 0x8c0   :  { %v3247_v9 = vpop.f32.mrf.mxu1 }
 0x8c1   :  { %v3266_v30 = vsel %vm3253_vm0, %v3247_v9, 0.0 }
 0x8c2   :  { %v3267_v19 = vadd.f32 %v3266_v30, %v3265_v26  ;;  %v3531_v50 = vpop.f32.mrf.mxu1 }
 0x8c4   :  { %v3270_v7 = vmul.f32 0.25, %v3267_v19  ;;  %v3250_v41 = vpop.f32.mrf.mxu1 }
 0x8c6   :  { %v3300_v23 = vadd.f32 %v3298_v0, %v3270_v7  ;;  %v3532_v60 = vpop.f32.mrf.mxu1 }
 0x8c8   :  { %v3308_v17 = vadd.f32 %v3387_v24, %v3300_v23 }
 0x8ca   :  { %v3316_v3 = vsel %vm3253_vm0, %v3308_v17, 0.0 }
 0x8cb   :  { %v3317_v21 = vrot.slane %v3316_v3, 4 }
 0x8cd   :  { %v3318_v62 = vadd.f32 %v3317_v21, %v3316_v3 }
 0x8cf   :  { %v3319_v5 = vrot.slane %v3318_v62, 2 }
 0x8d1   :  { %v3320_v10 = vadd.f32 %v3319_v5, %v3318_v62 }
 0x8d3   :  { %v3321_v18 = vrot.slane %v3320_v10, 1 }
 0x8d5   :  { %v3322_v58 = vadd.f32 %v3321_v18, %v3320_v10 }
 0x8d7   :  { %v3326_v32 = vsel %vm3325_vm8, %v3322_v58, %v3315_v20 }
 0x8d8   :  { %3329 = vst.msk [vmem:[%s4618_s5] sm:$0x3] %vm3328_vm14, %v3326_v32 }

// kernel: deepreac_forward.2
= control target key start
LH: loop header
LB: loop body
LE: loop exit
PB: predicated region body
PF: predicated region fallthrough
CT: control target
= control target key end

     0   :  { %v8998_v0 = vmov 0.0   ;;  %vm6940_vm0 = vmmov 0   ;;  %v8996_v4 = vmov 0   ;;  %vm74_vm1 = vcmask 130048   ;;  %s6950_s22 = smov 64   ;;  %s6951_s23 = smov 32   ;;  %s8973_s2 = inlined_call_operand.vmem [shape: bf16[16,264], index: 2, kind: input, shape index: {}]   ;;  %s8974_s0 = inlined_call_operand.vmem [shape: f32[6,8,16], index: 0, kind: input, shape index: {}]   ;;  %s8975_s1 = inlined_call_operand.vmem [shape: bf16[6,8,8], index: 1, kind: input, shape index: {}]   ;;  %s8976_s4 = inlined_call_operand.vmem [shape: bf16[128,136], index: 4, kind: input, shape index: {}]   ;;  %s8977_s3 = inlined_call_operand.vmem [shape: f32[1,128], index: 3, kind: input, shape index: {}]   ;;  %s8978_s6 = inlined_call_operand.vmem [shape: f32[32,1], index: 6, kind: input, shape index: {}]   ;;  %s8979_s5 = inlined_call_operand.vmem [shape: f32[1,32], index: 5, kind: input, shape index: {}]   ;;  %s8980_s7 = inlined_call_operand.<no memory space> [shape: f32[1,1], index: 7, kind: input, shape index: {}]   ;;  %s8981_s8 = inlined_call_operand.vmem [shape: f32[6,64], index: 8, kind: output, shape index: {}]  }
   0x1   :  { %6177 = vmatprep.subr.bf16.mxu1 %v8998_v0  ;;  %v6683_v1 = vld [vmem:[%s8973_s2 + $0x8] ss:$12 sps:$4 sm:$0xff]   ;;  %6179 = vmatprep.mubr.msk.bf16.mxu1 %vm6940_vm0, %v8998_v0  ;;  %v44_v2 = vld [vmem:[%s8974_s0] sm:$0xff]  ;;  %v8994_v8 = vmov 6   ;;  %v8984_v9 = vmov 4   ;;  %v47_v11 = vld [vmem:[%s8974_s0 + $0x18] sm:$0xff]  ;;  %v228_v16 = vlaneseq }
   0x2   :  { %v45_v3 = vld [vmem:[%s8974_s0 + $0x8] sm:$0xff]  ;;  %116 = vmatprep.mubr.bf16.mxu0 %v8996_v4  ;;  %6178 = vmatpush3.bf16.msra.mxu1 %v6683_v1  ;;  %v6684_v6 = vld [vmem:[%s8973_s2 + $0x4] ss:$12 sps:$4 sm:$0xff]   ;;  %vm1594_vm2 = vcmask 1043456   ;;  %v8992_v24 = vmov 7   ;;  %v8982_v25 = vmov 5  }
   0x3   :  { %v55_v5 = vpack.c.bf16 %v45_v3, %v44_v2  ;;  %v6686_v7 = vld [vmem:[%s8973_s2] ss:$12 sps:$4 sm:$0xff]   ;;  %6512 = vset.pattern.permute.xlu1 %v8994_v8  ;;  %6510 = vset.pattern.permute.xlu0 %v8984_v9  ;;  %v46_v10 = vld [vmem:[%s8974_s0 + $0x10] sm:$0xff]  ;;  %v7049_v20 = vand.u32 127, %v228_v16  ;;  %v7051_v21 = vshrl.u32 %v228_v16, 7  ;;  %v8986_v30 = vmov 2  }
   0x4   :  { %6191 = vmatprep.subr.bf16.mxu1 %v8998_v0  ;;  %98 = vmatprep.subr.bf16.mxu0 %v6684_v6  ;;  %v56_v12 = vpack.c.bf16 %v47_v11, %v46_v10  ;;  %v48_v13 = vld [vmem:[%s8974_s0 + $0x20] sm:$0xff]  ;;  %v49_v14 = vld [vmem:[%s8974_s0 + $0x28] sm:$0xff]  ;;  %v8990_v34 = vmov 1   ;;  %v8988_v38 = vmov 3   ;;  %s6949_s0 = smov 96   ;;  %vm404_vm3 = vcmask 1040384  }
   0x5   :  { %6180 = vmatmul.mubr.msk.bf16.vlgmr.msra.gmra.mxu1 %vm74_vm1, %v55_v5  ;;  %99 = vmatpush1.bf16.msra.mxu0 %v6686_v7  ;;  %v57_v15 = vpack.c.bf16 %v49_v14, %v48_v13  ;;  %v7057_v26 = vsub.s32 %v7049_v20, %v7051_v21  ;;  %v443_v43 = vadd.s32 4294967292, %v7049_v20  ;;  %vm411_vm4 = vcmask 1041408  }
   0x6   :  { %6183 = vmatprep.mubr.msk.bf16.mxu1 %vm6940_vm0, %v8998_v0  ;;  %6203 = vmatprep.subr.bf16.mxu0 %v8998_v0  ;;  %vm418_vm5 = vcmask 1042432   ;;  %v7150_v52 = vsub.s32 0, %v7051_v21  ;;  %v7162_v59 = vsub.s32 1, %v7051_v21  ;;  %v7170_v62 = vsub.s32 2, %v7051_v21 }
   0x7   :  { %v7142_v46 = vsub.s32 %v443_v43, %v7051_v21  ;;  %vm1218_vm10 = vcmask 64512  }
   0x8   :  { %5968 = vmatmul.mubr.msk.bf16.vlgmr.msra.gmra.mxu0 %vm74_vm1, %v55_v5 }
   0x9   :  { %126 = vmatprep.mubr.bf16.mxu0 %v8996_v4 }
   0xd   :  { %6184 = vmatmul.mubr.msk.bf16.gmra.mxu1 %vm74_vm1, %v56_v12 }
   0xe   :  { %6187 = vmatprep.mubr.msk.bf16.mxu1 %vm6940_vm0, %v8998_v0 }
  0x10   :  { %5969 = vmatmul.mubr.msk.bf16.gmra.mxu0 %vm74_vm1, %v56_v12 }
  0x11   :  { %136 = vmatprep.mubr.bf16.mxu0 %v8996_v4 }
  0x15   :  { %6188 = vmatmul.mubr.msk.bf16.gmra.mxu1 %vm74_vm1, %v57_v15 }
  0x16   :  { %6193 = vmatprep.mubr.msk.bf16.mxu1 %vm6940_vm0, %v8998_v0 }
  0x18   :  { %5970 = vmatmul.mubr.msk.bf16.gmra.mxu0 %vm74_vm1, %v57_v15  ;;  %v7189_v15 = vsub.s32 3, %v7051_v21 }
  0x19   :  { %6205 = vmatprep.mubr.msk.bf16.mxu0 %vm6940_vm0, %v8998_v0 }
  0xc5   :  { %v181_v17 = vpop.f32.mrf.mxu1 }
  0xc6   :  { %523 = vperm.xlu1 %6512, %v181_v17   ;;  %426 = vperm.xlu0 %6510, %v181_v17  }
  0xc7   :  { %v6181_v18 = vpop.f32.mrf.mxu1 }
  0xc8   :  { %v118_v19 = vpop.f32.mrf.mxu0 }
  0xc9   :  { %v184_v22 = vpop.f32.mrf.mxu1  ;;  %v1567_v23 = vpack.c.bf16 %v118_v19, %v118_v19 }
  0xca   :  { %6513 = vset.pattern.permute.xlu1 %v8992_v24  ;;  %6511 = vset.pattern.permute.xlu0 %v8982_v25  ;;  %v7071_v37 = vpop.f32.mrf.mxu0 }
  0xcb   :  { %571 = vperm.xlu1 %6513, %v181_v17   ;;  %475 = vperm.xlu0 %6511, %v181_v17   ;;  %v6182_v27 = vpop.f32.mrf.mxu1  ;;  %v1596_v28 = vsel %vm1594_vm2, %v1567_v23, 0 }
  0xcc   :  { %6192 = vmatpush3.bf16.msra.mxu1 %v1596_v28  ;;  %v7077_v41 = vpop.f32.mrf.mxu0 }
  0xcd   :  { %v7060_v29 = vpop.f32.mrf.mxu1  ;;  %6197 = vmatprep.subr.bf16.mxu1 %v8998_v0  ;;  %v6526_v42 = vpack.i.bf16 %v7077_v41, %v118_v19 }
  0xcf   :  { %6514 = vset.pattern.permute.xlu1 %v8996_v4  ;;  %6516 = vset.pattern.permute.xlu0 %v8986_v30  ;;  %v6185_v31 = vpop.f32.mrf.mxu1 }
  0xd0   :  { %211 = vperm.xlu1 %6514, %v181_v17   ;;  %309 = vperm.xlu0 %6516, %v181_v17  }
  0xd1   :  { %v7065_v32 = vpop.f32.mrf.mxu1 }
  0xd3   :  { %v6186_v33 = vpop.f32.mrf.mxu1 }
  0xd4   :  { %6515 = vset.pattern.permute.xlu1 %v8990_v34  ;;  %6519 = vset.pattern.permute.xlu0 %v8982_v25 }
  0xd5   :  { %261 = vperm.xlu1 %6515, %v181_v17   ;;  %478 = vperm.xlu0 %6519, %v184_v22   ;;  %v7069_v35 = vpop.f32.mrf.mxu1 }
  0xd7   :  { %v6189_v36 = vpop.f32.mrf.mxu1 }
  0xd9   :  { %6517 = vset.pattern.permute.xlu1 %v8988_v38  ;;  %6521 = vset.pattern.permute.xlu0 %v8992_v24  ;;  %v7075_v39 = vpop.f32.mrf.mxu1 }
  0xda   :  { %357 = vperm.xlu1 %6517, %v181_v17   ;;  %574 = vperm.xlu0 %6521, %v184_v22  }
  0xdb   :  { %v6190_v40 = vpop.f32.mrf.mxu1 }
  0xde   :  { %6518 = vset.pattern.permute.xlu1 %v8984_v9  ;;  %6523 = vset.pattern.permute.xlu0 %v8990_v34 }
  0xdf   :  { %264 = vperm.xlu0 %6523, %v184_v22   ;;  %429 = vperm.xlu1 %6518, %v184_v22  }
  0xe3   :  { %6520 = vset.pattern.permute.xlu1 %v8994_v8  ;;  %6527 = vrot.lane.b32.xlu0 %v6526_v42, %s6949_s0 }
  0xe4   :  { %526 = vperm.xlu1 %6520, %v184_v22   ;;  %6542 = vset.pattern.permute.xlu0 %v8982_v25 }
  0xe7   :  { %481 = vperm.xlu0 %6542, %v7060_v29  }
  0xe8   :  { %6522 = vset.pattern.permute.xlu1 %v8996_v4 }
  0xe9   :  { %214 = vperm.xlu1 %6522, %v184_v22  }
  0xeb   :  { %6547 = vset.pattern.permute.xlu0 %v8986_v30 }
  0xec   :  { %315 = vperm.xlu0 %6547, %v7060_v29  }
  0xed   :  { %6524 = vset.pattern.permute.xlu1 %v8986_v30 }
  0xee   :  { %312 = vperm.xlu1 %6524, %v184_v22  }
  0xf0   :  { %6550 = vset.pattern.permute.xlu0 %v8982_v25 }
  0xf1   :  { %484 = vperm.xlu0 %6550, %v7065_v32  }
  0xf2   :  { %6525 = vset.pattern.permute.xlu1 %v8988_v38 }
  0xf3   :  { %360 = vperm.xlu1 %6525, %v184_v22  }
  0xf5   :  { %6554 = vset.pattern.permute.xlu0 %v8990_v34 }
  0xf6   :  { %270 = vperm.xlu0 %6554, %v7065_v32  }
  0xf7   :  { %6532 = vrot.lane.b32.xlu1 %v6526_v42, %s6950_s22 }
  0xf8   :  { %6541 = vset.pattern.permute.xlu1 %v8984_v9 }
  0xfa   :  { %6556 = vset.pattern.permute.xlu0 %v8988_v38 }
  0xfb   :  { %6537 = vrot.lane.b32.xlu1 %v6526_v42, %s6951_s23  ;;  %366 = vperm.xlu0 %6556, %v7065_v32  }
  0xff   :  { %432 = vperm.xlu1 %6541, %v7060_v29   ;;  %6557 = vset.pattern.permute.xlu0 %v8984_v9 }
 0x100   :  { %438 = vperm.xlu0 %6557, %v7069_v35  }
 0x103   :  { %6543 = vset.pattern.permute.xlu1 %v8994_v8 }
 0x104   :  { %529 = vperm.xlu1 %6543, %v7060_v29   ;;  %6559 = vset.pattern.permute.xlu0 %v8994_v8 }
 0x105   :  { %535 = vperm.xlu0 %6559, %v7069_v35  }
 0x108   :  { %6544 = vset.pattern.permute.xlu1 %v8992_v24 }
 0x109   :  { %577 = vperm.xlu1 %6544, %v7060_v29   ;;  %6562 = vset.pattern.permute.xlu0 %v8990_v34 }
 0x10a   :  { %273 = vperm.xlu0 %6562, %v7069_v35  }
 0x10d   :  { %6545 = vset.pattern.permute.xlu1 %v8996_v4 }
 0x10e   :  { %217 = vperm.xlu1 %6545, %v7060_v29   ;;  %6565 = vset.pattern.permute.xlu0 %v8984_v9 }
 0x10f   :  { %441 = vperm.xlu0 %6565, %v7075_v39  }
 0x112   :  { %6546 = vset.pattern.permute.xlu1 %v8990_v34 }
 0x113   :  { %267 = vperm.xlu1 %6546, %v7060_v29   ;;  %6568 = vset.pattern.permute.xlu0 %v8992_v24 }
 0x114   :  { %586 = vperm.xlu0 %6568, %v7075_v39  }
 0x117   :  { %6548 = vset.pattern.permute.xlu1 %v8988_v38 }
 0x118   :  { %363 = vperm.xlu1 %6548, %v7060_v29   ;;  %6570 = vset.pattern.permute.xlu0 %v8990_v34 }
 0x119   :  { %276 = vperm.xlu0 %6570, %v7075_v39  }
 0x11c   :  { %6549 = vset.pattern.permute.xlu1 %v8984_v9 }
 0x11d   :  { %435 = vperm.xlu1 %6549, %v7065_v32   ;;  %6603 = vset.pattern.permute.xlu0 %v8984_v9 }
 0x121   :  { %6551 = vset.pattern.permute.xlu1 %v8994_v8 }
 0x122   :  { %532 = vperm.xlu1 %6551, %v7065_v32  }
 0x126   :  { %6552 = vset.pattern.permute.xlu1 %v8992_v24 }
 0x127   :  { %580 = vperm.xlu1 %6552, %v7065_v32  }
 0x12b   :  { %6553 = vset.pattern.permute.xlu1 %v8996_v4 }
 0x12c   :  { %220 = vperm.xlu1 %6553, %v7065_v32  }
 0x130   :  { %6555 = vset.pattern.permute.xlu1 %v8986_v30 }
 0x131   :  { %318 = vperm.xlu1 %6555, %v7065_v32  }
 0x135   :  { %6558 = vset.pattern.permute.xlu1 %v8982_v25 }
 0x136   :  { %487 = vperm.xlu1 %6558, %v7069_v35  }
 0x13a   :  { %6560 = vset.pattern.permute.xlu1 %v8992_v24 }
 0x13b   :  { %583 = vperm.xlu1 %6560, %v7069_v35  }
 0x13f   :  { %6561 = vset.pattern.permute.xlu1 %v8996_v4 }
 0x140   :  { %223 = vperm.xlu1 %6561, %v7069_v35  }
 0x141   :  { %v524_v44 = vpop.permute.xlu1 %523  ;;  %v427_v45 = vpop.permute.xlu0 %426 }
 0x142   :  { %v447_v49 = vrot.slane %v427_v45, %v7142_v46  ;;  %v543_v51 = vrot.slane %v524_v44, %v7142_v46 }
 0x144   :  { %6563 = vset.pattern.permute.xlu1 %v8986_v30 }
 0x145   :  { %321 = vperm.xlu1 %6563, %v7069_v35  }
 0x146   :  { %v572_v47 = vpop.permute.xlu1 %571  ;;  %v476_v48 = vpop.permute.xlu0 %475 }
 0x147   :  { %v495_v50 = vrot.slane %v476_v48, %v7142_v46  ;;  %v591_v53 = vrot.slane %v572_v47, %v7142_v46 }
 0x149   :  { %v618_v54 = vsel %vm404_vm3, %v447_v49, %v495_v50  ;;  %6564 = vset.pattern.permute.xlu1 %v8988_v38 }
 0x14a   :  { %369 = vperm.xlu1 %6564, %v7069_v35   ;;  %v624_v55 = vsel %vm411_vm4, %v618_v54, %v543_v51 }
 0x14b   :  { %v7157_v56 = vpop.permute.xlu1 %211  ;;  %v630_v57 = vsel %vm418_vm5, %v624_v55, %v591_v53  ;;  %v7172_v63 = vpop.permute.xlu0 %309 }
 0x14c   :  { %v639_v58 = vrot.slane %v630_v57, %v7150_v52  ;;  %v647_v61 = vrot.slane %v630_v57, %v7162_v59  ;;  %v655_v1 = vrot.slane %v630_v57, %v7170_v62  ;;  %v663_v20 = vrot.slane %v630_v57, %v7189_v15 }
 0x14e   :  { %6566 = vset.pattern.permute.xlu1 %v8982_v25  ;;  %642 = vbcast.lane.b32.xlu0 %v639_v58, 260 }
 0x14f   :  { %490 = vperm.xlu1 %6566, %v7075_v39  }
 0x150   :  { %v7166_v60 = vpop.permute.xlu1 %261  ;;  %v479_v3 = vpop.permute.xlu0 %478 }
 0x151   :  { %v499_v10 = vrot.slane %v479_v3, %v7142_v46 }
 0x152   :  { %650 = vbcast.lane.b32.xlu0 %v647_v61, 260  ;;  %v7229_v61 = vpop.f32.mrf.mxu0 }
 0x153   :  { %6567 = vset.pattern.permute.xlu1 %v8994_v8 }
 0x154   :  { %538 = vperm.xlu1 %6567, %v7075_v39  }
 0x155   :  { %v7177_v2 = vpop.permute.xlu1 %357  ;;  %v575_v7 = vpop.permute.xlu0 %574 }
 0x156   :  { %658 = vbcast.lane.b32.xlu0 %v655_v1, 260  ;;  %v595_v13 = vrot.slane %v575_v7, %v7142_v46 }
 0x158   :  { %6569 = vset.pattern.permute.xlu1 %v8996_v4 }
 0x159   :  { %226 = vperm.xlu1 %6569, %v7075_v39  }
 0x15a   :  { %v430_v5 = vpop.permute.xlu1 %429  ;;  %v7210_v35 = vpop.permute.xlu0 %264 }
 0x15b   :  { %v451_v6 = vrot.slane %v430_v5, %v7142_v46  ;;  %v7233_v5 = vpop.f32.mrf.mxu0 }
 0x15d   :  { %6571 = vset.pattern.permute.xlu1 %v8986_v30  ;;  %v619_v14 = vsel %vm404_vm3, %v451_v6, %v499_v10  ;;  %v7237_v7 = vpop.f32.mrf.mxu0 }
 0x15e   :  { %324 = vperm.xlu1 %6571, %v7075_v39   ;;  %v7216_v40 = vpop.permute.xlu0 %6527 }
 0x15f   :  { %v527_v11 = vpop.permute.xlu1 %526 }
 0x160   :  { %v547_v12 = vrot.slane %v527_v11, %v7142_v46  ;;  %v7241_v11 = vpop.f32.mrf.mxu0 }
 0x162   :  { %v625_v16 = vsel %vm411_vm4, %v619_v14, %v547_v12  ;;  %6572 = vset.pattern.permute.xlu1 %v8988_v38  ;;  %v482_v44 = vpop.permute.xlu0 %481  ;;  %v7245_v12 = vpack.i.bf16 %v7241_v11, %v7233_v5 }
 0x163   :  { %372 = vperm.xlu1 %6572, %v7075_v39   ;;  %v631_v17 = vsel %vm418_vm5, %v625_v16, %v595_v13  ;;  %v503_v45 = vrot.slane %v482_v44, %v7142_v46 }
 0x164   :  { %v7195_v18 = vpop.permute.xlu1 %214  ;;  %v687_v19 = vrot.slane %v631_v17, %v7170_v62  ;;  %v671_v23 = vrot.slane %v631_v17, %v7150_v52  ;;  %v679_v27 = vrot.slane %v631_v17, %v7162_v59  ;;  %v695_v29 = vrot.slane %v631_v17, %v7189_v15 }
 0x166   :  { %690 = vbcast.lane.b32.xlu0 %v687_v19, 260 }
 0x167   :  { %666 = vbcast.lane.b32.xlu1 %v663_v20, 260  ;;  %v7247_v13 = vpop.permute.xlu0 %315 }
 0x168   :  { %6604 = vset.pattern.permute.xlu1 %v8982_v25 }
 0x169   :  { %v7200_v22 = vpop.permute.xlu1 %312 }
 0x16b   :  { %674 = vbcast.lane.b32.xlu1 %v671_v23, 260 }
 0x16c   :  { %v485_v16 = vpop.permute.xlu0 %484 }
 0x16d   :  { %v507_v23 = vrot.slane %v485_v16, %v7142_v46 }
 0x16e   :  { %v7204_v28 = vpop.permute.xlu1 %360 }
 0x16f   :  { %682 = vbcast.lane.b32.xlu1 %v679_v27, 260 }
 0x172   :  { %v7207_v31 = vpop.permute.xlu1 %6532 }
 0x173   :  { %v6534_v32 = vunpack.i.l.bf16 %v7207_v31  ;;  %698 = vbcast.lane.b32.xlu1 %v695_v29, 260  ;;  %v7252_v29 = vpop.permute.xlu0 %270 }
 0x175   :  { %v1569_v33 = vpack.c.bf16 %v6534_v32, %v6534_v32 }
 0x176   :  { %v7212_v36 = vpop.permute.xlu1 %6537 }
 0x177   :  { %v1688_v39 = vsel %vm1594_vm2, %v1569_v33, 0 }
 0x178   :  { %6204 = vmatpush3.bf16.msra.mxu0 %v1688_v39 }
 0x179   :  { %6215 = vmatprep.subr.bf16.mxu0 %v8998_v0 }
 0x17a   :  { %v433_v42 = vpop.permute.xlu1 %432 }
 0x17b   :  { %v455_v47 = vrot.slane %v433_v42, %v7142_v46 }
 0x17d   :  { %v620_v50 = vsel %vm404_vm3, %v455_v47, %v503_v45  ;;  %v7262_v47 = vpop.permute.xlu0 %366 }
 0x17f   :  { %v530_v43 = vpop.permute.xlu1 %529 }
 0x180   :  { %v551_v48 = vrot.slane %v530_v43, %v7142_v46 }
 0x182   :  { %v626_v53 = vsel %vm411_vm4, %v620_v50, %v551_v48  ;;  %v439_v50 = vpop.permute.xlu0 %438 }
 0x184   :  { %v578_v49 = vpop.permute.xlu1 %577 }
 0x185   :  { %v599_v51 = vrot.slane %v578_v49, %v7142_v46 }
 0x187   :  { %v632_v54 = vsel %vm418_vm5, %v626_v53, %v599_v51  ;;  %v463_v53 = vrot.slane %v439_v50, %v7142_v46 }
 0x188   :  { %v719_v55 = vrot.slane %v632_v54, %v7170_v62  ;;  %v703_v57 = vrot.slane %v632_v54, %v7150_v52  ;;  %v727_v1 = vrot.slane %v632_v54, %v7189_v15  ;;  %v711_v3 = vrot.slane %v632_v54, %v7162_v59 }
 0x189   :  { %v7227_v58 = vpop.permute.xlu1 %217 }
 0x18a   :  { %722 = vbcast.lane.b32.xlu0 %v719_v55, 260  ;;  %706 = vbcast.lane.b32.xlu1 %v703_v57, 260  ;;  %v536_v57 = vpop.permute.xlu0 %535 }
 0x18e   :  { %v7235_v6 = vpop.permute.xlu1 %267  ;;  %730 = vbcast.lane.b32.xlu0 %v727_v1, 260  ;;  %714 = vbcast.lane.b32.xlu1 %v711_v3, 260  ;;  %v559_v1 = vrot.slane %v536_v57, %v7142_v46  ;;  %v281_v57 = vrot.slane %v7166_v60, %v7057_v26  ;;  %v377_v60 = vrot.slane %v7177_v2, %v7057_v26 }
 0x193   :  { %v7239_v10 = vpop.permute.xlu1 %363 }
 0x198   :  { %v436_v14 = vpop.permute.xlu1 %435 }
 0x199   :  { %v459_v19 = vrot.slane %v436_v14, %v7142_v46 }
 0x19b   :  { %v621_v32 = vsel %vm404_vm3, %v459_v19, %v507_v23 }
 0x19d   :  { %v533_v17 = vpop.permute.xlu1 %532 }
 0x19e   :  { %v555_v20 = vrot.slane %v533_v17, %v7142_v46 }
 0x1a0   :  { %v627_v39 = vsel %vm411_vm4, %v621_v32, %v555_v20 }
 0x1a2   :  { %v581_v27 = vpop.permute.xlu1 %580 }
 0x1a3   :  { %v603_v33 = vrot.slane %v581_v27, %v7142_v46 }
 0x1a5   :  { %v633_v42 = vsel %vm418_vm5, %v627_v39, %v603_v33 }
 0x1a6   :  { %v759_v43 = vrot.slane %v633_v42, %v7189_v15  ;;  %v735_v44 = vrot.slane %v633_v42, %v7150_v52  ;;  %v743_v48 = vrot.slane %v633_v42, %v7162_v59  ;;  %v751_v51 = vrot.slane %v633_v42, %v7170_v62  ;;  %v7283_v42 = vpop.permute.xlu0 %273 }
 0x1a7   :  { %v7260_v45 = vpop.permute.xlu1 %220 }
 0x1a8   :  { %762 = vbcast.lane.b32.xlu0 %v759_v43, 260  ;;  %738 = vbcast.lane.b32.xlu1 %v735_v44, 260 }
 0x1aa   :  { %v442_v44 = vpop.permute.xlu0 %441 }
 0x1ac   :  { %v7265_v49 = vpop.permute.xlu1 %318  ;;  %746 = vbcast.lane.b32.xlu1 %v743_v48, 260 }
 0x1b0   :  { %754 = vbcast.lane.b32.xlu1 %v751_v51, 260  ;;  %v6952_v51 = vmov 1966171168  }
 0x1b1   :  { %v488_v54 = vpop.permute.xlu1 %487 }
 0x1b2   :  { %v511_v55 = vrot.slane %v488_v54, %v7142_v46  ;;  %v467_v54 = vrot.slane %v442_v44, %v7142_v46 }
 0x1b4   :  { %v622_v3 = vsel %vm404_vm3, %v463_v53, %v511_v55  ;;  %v835_v53 = vunpack.c.l.s4 %v6952_v51 }
 0x1b5   :  { %v628_v17 = vsel %vm411_vm4, %v622_v3, %v559_v1  ;;  %v587_v1 = vpop.permute.xlu0 %586 }
 0x1b6   :  { %v584_v14 = vpop.permute.xlu1 %583 }
 0x1b7   :  { %v607_v16 = vrot.slane %v584_v14, %v7142_v46  ;;  %v611_v14 = vrot.slane %v587_v1, %v7142_v46  ;;  %v285_v1 = vrot.slane %v7210_v35, %v7057_v26 }
 0x1b9   :  { %v634_v19 = vsel %vm418_vm5, %v628_v17, %v607_v16  ;;  %v233_v17 = vrot.slane %v7157_v56, %v7057_v26 }
 0x1ba   :  { %v783_v20 = vrot.slane %v634_v19, %v7170_v62  ;;  %v767_v23 = vrot.slane %v634_v19, %v7150_v52  ;;  %v775_v32 = vrot.slane %v634_v19, %v7162_v59  ;;  %v791_v39 = vrot.slane %v634_v19, %v7189_v15 }
 0x1bb   :  { %v7277_v27 = vpop.permute.xlu1 %223 }
 0x1bc   :  { %786 = vbcast.lane.b32.xlu0 %v783_v20, 260  ;;  %770 = vbcast.lane.b32.xlu1 %v767_v23, 260  ;;  %v836_v20 = vunpack.c.0.s8 %v835_v53 }
 0x1be   :  { %v7308_v56 = vsub.s32 %v836_v20, %v7051_v21  ;;  %v333_v21 = vrot.slane %v7200_v22, %v7057_v26 }
 0x1c0   :  { %v7280_v33 = vpop.permute.xlu1 %321  ;;  %778 = vbcast.lane.b32.xlu1 %v775_v32, 260  ;;  %v405_v32 = vsel %vm404_vm3, %v233_v17, %v281_v57  ;;  %v237_v57 = vrot.slane %v7195_v18, %v7057_v26 }
 0x1c4   :  { %794 = vbcast.lane.b32.xlu1 %v791_v39, 260 }
 0x1c5   :  { %v7285_v43 = vpop.permute.xlu1 %369 }
 0x1ca   :  { %v491_v48 = vpop.permute.xlu1 %490 }
 0x1cb   :  { %v515_v50 = vrot.slane %v491_v48, %v7142_v46 }
 0x1cd   :  { %v623_v16 = vsel %vm404_vm3, %v467_v54, %v515_v50  ;;  %v329_v50 = vrot.slane %v7172_v63, %v7057_v26 }
 0x1cf   :  { %v539_v55 = vpop.permute.xlu1 %538  ;;  %v412_v51 = vsel %vm411_vm4, %v405_v32, %v329_v50 }
 0x1d0   :  { %v563_v3 = vrot.slane %v539_v55, %v7142_v46  ;;  %v419_v53 = vsel %vm418_vm5, %v412_v51, %v377_v60  ;;  %v241_v60 = vrot.slane %v7227_v58, %v7057_v26 }
 0x1d1   :  { %v840_v63 = vrot.slane %v419_v53, %v7308_v56 }
 0x1d2   :  { %v629_v19 = vsel %vm411_vm4, %v623_v16, %v563_v3  ;;  %v381_v3 = vrot.slane %v7204_v28, %v7057_v26  ;;  %v406_v16 = vsel %vm404_vm3, %v237_v57, %v285_v1  ;;  %v289_v28 = vrot.slane %v7235_v6, %v7057_v26 }
 0x1d3   :  { %v635_v23 = vsel %vm418_vm5, %v629_v19, %v611_v14  ;;  %v7325_v14 = vpop.permute.xlu0 %276  ;;  %v413_v18 = vsel %vm411_vm4, %v406_v16, %v333_v21  ;;  %v841_v19 = vcombine.high %v840_v63, %v840_v63  ;;  %v848_v57 = vrot.slane %v840_v63, %v7308_v56 }
 0x1d4   :  { %v7301_v39 = vpop.permute.xlu1 %226  ;;  %v807_v44 = vrot.slane %v635_v23, %v7162_v59  ;;  %v799_v48 = vrot.slane %v635_v23, %v7150_v52  ;;  %v823_v2 = vrot.slane %v635_v23, %v7189_v15  ;;  %v815_v54 = vrot.slane %v635_v23, %v7170_v62 }
 0x1d5   :  { %v420_v20 = vsel %vm418_vm5, %v413_v18, %v381_v3  ;;  %v855_v35 = vrot.slane %v841_v19, %v7308_v56  ;;  %v337_v21 = vrot.slane %v7247_v13, %v7057_v26  ;;  %v981_v18 = vrot.slane %v848_v57, %v7150_v52 }
 0x1d6   :  { %810 = vbcast.lane.b32.xlu0 %v807_v44, 260  ;;  %802 = vbcast.lane.b32.xlu1 %v799_v48, 260  ;;  %v864_v22 = vrot.slane %v420_v20, %v7308_v56  ;;  %v856_v19 = vcombine.high %v848_v57, %v848_v57  ;;  %v253_v30 = vrot.slane %v7301_v39, %v7057_v26 }
 0x1d7   :  { %v643_v23 = vpop.permute.xlu0 %642  ;;  %v985_v50 = vrot.slane %v855_v35, %v7150_v52  ;;  %v857_v51 = vcombine.high %v855_v35, %v855_v35 }
 0x1d8   :  { %v865_v53 = vcombine.high %v864_v22, %v864_v22 }
 0x1d9   :  { %v7314_v55 = vpop.permute.xlu1 %324  ;;  %v993_v58 = vrot.slane %v857_v51, %v7150_v52  ;;  %v989_v51 = vrot.slane %v856_v19, %v7150_v52 }
 0x1da   :  { %826 = vbcast.lane.b32.xlu0 %v823_v2, 260  ;;  %818 = vbcast.lane.b32.xlu1 %v815_v54, 260  ;;  %v407_v2 = vsel %vm404_vm3, %v241_v60, %v289_v28  ;;  %v385_v54 = vrot.slane %v7239_v10, %v7057_v26  ;;  %v879_v3 = vrot.slane %v865_v53, %v7308_v56 }
 0x1db   :  { %v651_v44 = vpop.permute.xlu0 %650  ;;  %v414_v1 = vsel %vm411_vm4, %v407_v2, %v337_v21  ;;  %v1098_v28 = vadd.f32 %v981_v18, %v643_v23  ;;  %v872_v53 = vrot.slane %v864_v22, %v7308_v56 }
 0x1dc   :  { %v1099_v6 = vadd.f32 %v985_v50, %v651_v44  ;;  %v421_v16 = vsel %vm418_vm5, %v414_v1, %v385_v54  ;;  %v1001_v60 = vrot.slane %v879_v3, %v7150_v52  ;;  %v881_v44 = vcombine.high %v879_v3, %v879_v3  ;;  %v6054_v50 = vld [vmem:[%s8975_s1] sm:$0xff]  }
 0x1dd   :  { %v888_v63 = vrot.slane %v421_v16, %v7308_v56  ;;  %v7357_v1 = vunpack.c.l.bf16 %v6054_v50  ;;  %vm1122_vm8 = vcmp.gt.f32.partialorder %v1098_v28, 0.0  ;;  %v880_v16 = vcombine.high %v872_v53, %v872_v53 }
 0x1de   :  { %v7328_v17 = vpop.permute.xlu1 %372  ;;  %v1147_v35 = vmul.f32 0.2, %v1099_v6  ;;  %vm1123_vm6 = vcmp.gt.f32.partialorder %v1099_v6, 0.0  ;;  %v997_v18 = vrot.slane %v872_v53, %v7150_v52 }
 0x1df   :  { %v659_v13 = vpop.permute.xlu0 %658  ;;  %v7361_v3 = vrot.slane %v888_v63, %v7308_v56  ;;  %v889_v25 = vcombine.high %v888_v63, %v888_v63  ;;  %v1005_v9 = vrot.slane %v880_v16, %v7150_v52 }
 0x1e0   :  { %v1171_v57 = vsel %vm1123_vm6, %v1099_v6, %v1147_v35  ;;  %v1100_v23 = vadd.f32 %v989_v51, %v659_v13 }
 0x1e1   :  { %v7365_v22 = vadd.f32 %v7357_v1, %v1171_v57  ;;  %v7382_v16 = vrot.slane %v889_v25, %v7308_v56 }
 0x1e2   :  { %v667_v32 = vpop.permute.xlu1 %666  ;;  %v1148_v35 = vmul.f32 0.2, %v1100_v23  ;;  %vm1124_vm11 = vcmp.gt.f32.partialorder %v1100_v23, 0.0 }
 0x1e3   :  { %v1101_v10 = vadd.f32 %v993_v58, %v667_v32  ;;  %v1146_v32 = vmul.f32 0.2, %v1098_v28  ;;  %v1009_v58 = vrot.slane %v881_v44, %v7150_v52  ;;  %v691_v51 = vpop.permute.xlu0 %690  ;;  %v904_v44 = vcombine.high %v7361_v3, %v7361_v3 }
 0x1e4   :  { %v1222_v53 = vsel %vm1218_vm10, %v7365_v22, -inf  ;;  %v1172_v63 = vsel %vm1124_vm11, %v1100_v23, %v1148_v35 }
 0x1e5   :  { %v1149_v2 = vmul.f32 0.2, %v1101_v10  ;;  %vm1125_vm7 = vcmp.gt.f32.partialorder %v1101_v10, 0.0  ;;  %v7394_v23 = vadd.f32 %v7357_v1, %v1172_v63 }
 0x1e6   :  { %v675_v48 = vpop.permute.xlu1 %674 }
 0x1e7   :  { %v1102_v13 = vadd.f32 %v997_v18, %v675_v48 }
 0x1e9   :  { %vm1126_vm13 = vcmp.gt.f32.partialorder %v1102_v13, 0.0 }
 0x1ea   :  { %v683_v20 = vpop.permute.xlu1 %682 }
 0x1eb   :  { %v1103_v54 = vadd.f32 %v1001_v60, %v683_v20  ;;  %v1173_v20 = vsel %vm1125_vm7, %v1101_v10, %v1149_v2  ;;  %v1170_v60 = vsel %vm1122_vm8, %v1098_v28, %v1146_v32  ;;  %v7378_v28 = vunpack.c.h.bf16 %v6054_v50 }
 0x1ec   :  { %v7373_v57 = vadd.f32 %v7357_v1, %v1173_v20  ;;  %v7376_v48 = vadd.f32 %v7357_v1, %v1170_v60  ;;  %v1104_v32 = vadd.f32 %v1005_v9, %v691_v51  ;;  %v1017_v51 = vrot.slane %v7382_v16, %v7150_v52 }
 0x1ed   :  { %v1151_v19 = vmul.f32 0.2, %v1103_v54  ;;  %vm1127_vm9 = vcmp.gt.f32.partialorder %v1103_v54, 0.0 }
 0x1ee   :  { %v699_v21 = vpop.permute.xlu1 %698  ;;  %v1228_v60 = vsel %vm1218_vm10, %v7373_v57, -inf  ;;  %v1219_v9 = vsel %vm1218_vm10, %v7376_v48, -inf  ;;  %v1152_v25 = vmul.f32 0.2, %v1104_v32  ;;  %vm1128_vm14 = vcmp.gt.f32.partialorder %v1104_v32, 0.0 }
 0x1ef   :  { %v1105_v6 = vadd.f32 %v1009_v58, %v699_v21  ;;  %v1175_v2 = vsel %vm1127_vm9, %v1103_v54, %v1151_v19  ;;  %v1150_v21 = vmul.f32 0.2, %v1102_v13  ;;  %v1021_v58 = vrot.slane %v904_v44, %v7150_v52 }
 0x1f0   :  { %v7389_v50 = vadd.f32 %v7378_v28, %v1175_v2 }
 0x1f1   :  { %v1153_v10 = vmul.f32 0.2, %v1105_v6  ;;  %vm1129_vm12 = vcmp.gt.f32.partialorder %v1105_v6, 0.0  ;;  %v1174_v35 = vsel %vm1126_vm13, %v1102_v13, %v1150_v21  ;;  %v6065_v13 = vld [vmem:[%s8975_s1 + $0x8] sm:$0xff]   ;;  %v1176_v21 = vsel %vm1128_vm14, %v1104_v32, %v1152_v25 }
 0x1f2   :  { %v245_v32 = vrot.slane %v7260_v45, %v7057_v26 }
 0x1f3   :  { %v1177_v19 = vsel %vm1129_vm12, %v1105_v6, %v1153_v10  ;;  %v1225_v6 = vsel %vm1218_vm10, %v7394_v23, -inf  ;;  %v7406_v10 = vadd.f32 %v7378_v28, %v1174_v35 }
 0x1f4   :  { %v7401_v2 = vadd.f32 %v7378_v28, %v1177_v19 }
 0x1f5   :  { %v1231_v19 = vsel %vm1218_vm10, %v7406_v10, -inf }
 0x1f9   :  { %1223 = vmax.xlane.f32.xlu0 %v1222_v53  ;;  %v1234_v53 = vsel %vm1218_vm10, %v7389_v50, -inf }
 0x1fc   :  { %v7384_v18 = vpop.permute.xlu1 %706  ;;  %v723_v20 = vpop.permute.xlu0 %722 }
 0x1fd   :  { %v1108_v54 = vadd.f32 %v1021_v58, %v723_v20  ;;  %1229 = vmax.xlane.f32.xlu0 %v1228_v60  ;;  %v1240_v60 = vsel %vm1218_vm10, %v7401_v2, -inf }
 0x1fe   :  { %1220 = vmax.xlane.f32.xlu1 %v1219_v9  ;;  %v7413_v9 = vunpack.c.l.bf16 %v6065_v13 }
 0x1ff   :  { %v1156_v58 = vmul.f32 0.2, %v1108_v54  ;;  %vm1132_vm15 = vcmp.gt.f32.partialorder %v1108_v54, 0.0 }
 0x200   :  { %v715_v44 = vpop.permute.xlu1 %714  ;;  %9007 = vst [vmem:[#allocation3_spill] sm:$0xff] %v7413_v9 }
 0x201   :  { %v1107_v20 = vadd.f32 %v1017_v51, %v715_v44  ;;  %1235 = vmax.xlane.f32.xlu0 %v1234_v53  ;;  %v7418_v51 = vadd.f32 %v7378_v28, %v1176_v21  ;;  %v1180_v44 = vsel %vm1132_vm15, %v1108_v54, %v1156_v58  ;;  %v341_v53 = vrot.slane %v7265_v49, %v7057_v26 }
 0x202   :  { %1226 = vmax.xlane.f32.xlu1 %v1225_v6  ;;  %v293_v6 = vrot.slane %v7252_v29, %v7057_v26  ;;  %v7432_v21 = vadd.f32 %v7413_v9, %v1180_v44  ;;  %v389_v49 = vrot.slane %v7262_v47, %v7057_v26  ;;  %v345_v44 = vrot.slane %v7280_v33, %v7057_v26 }
 0x203   :  { %v1155_v63 = vmul.f32 0.2, %v1107_v20  ;;  %vm1131_vm1 = vcmp.gt.f32.partialorder %v1107_v20, 0.0  ;;  %v1237_v45 = vsel %vm1218_vm10, %v7418_v51, -inf  ;;  %v297_v47 = vrot.slane %v7283_v42, %v7057_v26 }
 0x204   :  { %v408_v54 = vsel %vm404_vm3, %v245_v32, %v293_v6  ;;  %v1249_v29 = vsel %vm1218_vm10, %v7432_v21, -inf }
 0x205   :  { %1241 = vmax.xlane.f32.xlu0 %v1240_v60  ;;  %v1179_v35 = vsel %vm1131_vm1, %v1107_v20, %v1155_v63  ;;  %v415_v58 = vsel %vm411_vm4, %v408_v54, %v341_v53  ;;  %v393_v53 = vrot.slane %v7285_v43, %v7057_v26  ;;  %v7457_v54 = vunpack.c.h.bf16 %v6065_v13 }
 0x206   :  { %1232 = vmax.xlane.f32.xlu1 %v1231_v19  ;;  %v7423_v25 = vadd.f32 %v7413_v9, %v1179_v35  ;;  %v422_v63 = vsel %vm418_vm5, %v415_v58, %v389_v49  ;;  %v249_v35 = vrot.slane %v7277_v27, %v7057_v26 }
 0x207   :  { %v912_v60 = vrot.slane %v422_v63, %v7308_v56 }
 0x208   :  { %v1246_v20 = vsel %vm1218_vm10, %v7423_v25, -inf }
 0x209   :  { %1247 = vmax.xlane.f32.xlu0 %v1246_v20  ;;  %v920_v19 = vrot.slane %v912_v60, %v7308_v56 }
 0x20a   :  { %1238 = vmax.xlane.f32.xlu1 %v1237_v45  ;;  %v409_v45 = vsel %vm404_vm3, %v249_v35, %v297_v47  ;;  %v731_v47 = vpop.permute.xlu0 %730 }
 0x20b   :  { %v1029_v32 = vrot.slane %v920_v19, %v7150_v52  ;;  %v416_v27 = vsel %vm411_vm4, %v409_v45, %v345_v44  ;;  %v928_v58 = vcombine.high %v920_v19, %v920_v19 }
 0x20c   :  { %v423_v49 = vsel %vm418_vm5, %v416_v27, %v393_v53 }
 0x20d   :  { %1250 = vmax.xlane.f32.xlu0 %v1249_v29  ;;  %v936_v63 = vrot.slane %v423_v49, %v7308_v56  ;;  %v1013_v49 = vrot.slane %v7361_v3, %v7150_v52  ;;  %v349_v3 = vrot.slane %v7314_v55, %v7057_v26  ;;  %v7499_v55 = vld [vmem:[%s8975_s1 + $0x10] sm:$0xff]  }
 0x20f   :  { %v7469_v19 = vrot.slane %v936_v63, %v7308_v56  ;;  %v937_v27 = vcombine.high %v936_v63, %v936_v63 }
 0x211   :  { %v952_v45 = vcombine.high %v7469_v19, %v7469_v19 }
 0x21a   :  { %v739_v6 = vpop.permute.xlu1 %738 }
 0x21b   :  { %v1110_v20 = vadd.f32 %v1029_v32, %v739_v6  ;;  %6574 = vrot.lane.b32.xlu1 %v7245_v12, %s6949_s0  ;;  %v1037_v32 = vrot.slane %v928_v58, %v7150_v52 }
 0x21d   :  { %v1158_v33 = vmul.f32 0.2, %v1110_v20  ;;  %vm1134_vm6 = vcmp.gt.f32.partialorder %v1110_v20, 0.0 }
 0x21e   :  { %v747_v42 = vpop.permute.xlu1 %746 }
 0x21f   :  { %v1182_v29 = vsel %vm1134_vm6, %v1110_v20, %v1158_v33  ;;  %v763_v33 = vpop.permute.xlu0 %762 }
 0x220   :  { %v7462_v43 = vadd.f32 %v7457_v54, %v1182_v29  ;;  %v913_v29 = vcombine.high %v912_v60, %v912_v60 }
 0x222   :  { %v755_v6 = vpop.permute.xlu1 %754  ;;  %v1255_v13 = vsel %vm1218_vm10, %v7462_v43, -inf }
 0x223   :  { %v1112_v35 = vadd.f32 %v1037_v32, %v755_v6  ;;  %1256 = vmax.xlane.f32.xlu0 %v1255_v13  ;;  %v905_v32 = vcombine.high %v7382_v16, %v7382_v16  ;;  %v1053_v6 = vrot.slane %v952_v45, %v7150_v52  ;;  %v951_v13 = vrot.slane %v937_v27, %v7308_v56 }
 0x224   :  { %v301_v45 = vrot.slane %v7325_v14, %v7057_v26 }
 0x225   :  { %v1160_v44 = vmul.f32 0.2, %v1112_v35  ;;  %vm1136_vm7 = vcmp.gt.f32.partialorder %v1112_v35, 0.0  ;;  %v1025_v60 = vrot.slane %v905_v32, %v7150_v52  ;;  %v1049_v16 = vrot.slane %v951_v13, %v7150_v52 }
 0x227   :  { %v1184_v53 = vsel %vm1136_vm7, %v1112_v35, %v1160_v44  ;;  %v1106_v35 = vadd.f32 %v1013_v49, %v7384_v18  ;;  %v397_v18 = vrot.slane %v7328_v17, %v7057_v26 }
 0x228   :  { %v7472_v20 = vadd.f32 %v7457_v54, %v1184_v53 }
 0x229   :  { %v1154_v27 = vmul.f32 0.2, %v1106_v35  ;;  %vm1130_vm8 = vcmp.gt.f32.partialorder %v1106_v35, 0.0 }
 0x22a   :  { %v1261_v58 = vsel %vm1218_vm10, %v7472_v20, -inf }
 0x22b   :  { %1262 = vmax.xlane.f32.xlu0 %v1261_v58  ;;  %v927_v58 = vrot.slane %v913_v29, %v7308_v56  ;;  %v410_v29 = vsel %vm404_vm3, %v253_v30, %v301_v45 }
 0x22c   :  { %v417_v14 = vsel %vm411_vm4, %v410_v29, %v349_v3 }
 0x22d   :  { %v929_v32 = vcombine.high %v927_v58, %v927_v58  ;;  %v1033_v38 = vrot.slane %v927_v58, %v7150_v52  ;;  %v424_v34 = vsel %vm418_vm5, %v417_v14, %v397_v18 }
 0x22e   :  { %v771_v44 = vpop.permute.xlu1 %770  ;;  %v787_v63 = vpop.permute.xlu0 %786  ;;  %v960_v58 = vrot.slane %v424_v34, %v7308_v56 }
 0x22f   :  { %v1116_v53 = vadd.f32 %v1053_v6, %v787_v63  ;;  %v1109_v6 = vadd.f32 %v1025_v60, %v731_v47  ;;  %v7506_v47 = vunpack.c.l.bf16 %v7499_v55  ;;  %v1178_v60 = vsel %vm1130_vm8, %v1106_v35, %v1154_v27 }
 0x230   :  { %v1041_v3 = vrot.slane %v929_v32, %v7150_v52  ;;  %v7519_v35 = vadd.f32 %v7413_v9, %v1178_v60  ;;  %v953_v27 = vcombine.high %v951_v13, %v951_v13 }
 0x231   :  { %v1164_v39 = vmul.f32 0.2, %v1116_v53  ;;  %vm1140_vm9 = vcmp.gt.f32.partialorder %v1116_v53, 0.0  ;;  %9008 = vst [vmem:[#allocation4_spill] sm:$0xff] %v7506_v47  ;;  %vm1133_vm12 = vcmp.gt.f32.partialorder %v1109_v6, 0.0 }
 0x232   :  { %v779_v49 = vpop.permute.xlu1 %778 }
 0x233   :  { %v1115_v63 = vadd.f32 %v1049_v16, %v779_v49  ;;  %v1157_v16 = vmul.f32 0.2, %v1109_v6  ;;  %v1111_v49 = vadd.f32 %v1033_v38, %v747_v42  ;;  %v1188_v8 = vsel %vm1140_vm9, %v1116_v53, %v1164_v39 }
 0x234   :  { %v7516_v18 = vadd.f32 %v7506_v47, %v1188_v8  ;;  %v1113_v38 = vadd.f32 %v1041_v3, %v763_v33  ;;  %v1243_v39 = vsel %vm1218_vm10, %v7519_v35, -inf }
 0x235   :  { %v1163_v17 = vmul.f32 0.2, %v1115_v63  ;;  %vm1139_vm11 = vcmp.gt.f32.partialorder %v1115_v63, 0.0  ;;  %v1159_v42 = vmul.f32 0.2, %v1111_v49  ;;  %v1181_v53 = vsel %vm1133_vm12, %v1109_v6, %v1157_v16 }
 0x236   :  { %vm1135_vm13 = vcmp.gt.f32.partialorder %v1111_v49, 0.0  ;;  %v1273_v34 = vsel %vm1218_vm10, %v7516_v18, -inf  ;;  %v7528_v8 = vadd.f32 %v7413_v9, %v1181_v53  ;;  %v1161_v29 = vmul.f32 0.2, %v1113_v38  ;;  %v795_v32 = vpop.permute.xlu1 %794 }
 0x237   :  { %v1187_v24 = vsel %vm1139_vm11, %v1115_v63, %v1163_v17  ;;  %v961_v63 = vcombine.high %v960_v58, %v960_v58  ;;  %v1183_v6 = vsel %vm1135_vm13, %v1111_v49, %v1159_v42  ;;  %vm1137_vm14 = vcmp.gt.f32.partialorder %v1113_v38, 0.0 }
 0x238   :  { %v7509_v30 = vadd.f32 %v7506_v47, %v1187_v24  ;;  %v1045_v24 = vrot.slane %v7469_v19, %v7150_v52  ;;  %v1057_v19 = vrot.slane %v953_v27, %v7150_v52  ;;  %v1252_v13 = vsel %vm1218_vm10, %v7528_v8, -inf }
 0x239   :  { %v7534_v14 = vadd.f32 %v7457_v54, %v1183_v6  ;;  %v968_v17 = vrot.slane %v960_v58, %v7308_v56  ;;  %v975_v60 = vrot.slane %v961_v63, %v7308_v56  ;;  %v7546_v6 = vunpack.c.h.bf16 %v7499_v55 }
 0x23a   :  { %v1270_v45 = vsel %vm1218_vm10, %v7509_v30, -inf  ;;  %v1114_v33 = vadd.f32 %v1045_v24, %v771_v44  ;;  %v1117_v3 = vadd.f32 %v1057_v19, %v795_v32  ;;  %v1185_v44 = vsel %vm1137_vm14, %v1113_v38, %v1161_v29 }
 0x23b   :  { %1271 = vmax.xlane.f32.xlu0 %v1270_v45  ;;  %v1258_v49 = vsel %vm1218_vm10, %v7534_v14, -inf  ;;  %v7541_v45 = vadd.f32 %v7457_v54, %v1185_v44  ;;  %v976_v42 = vcombine.high %v968_v17, %v968_v17  ;;  %v977_v53 = vcombine.high %v975_v60, %v975_v60  ;;  %9009 = vst [vmem:[#allocation5_spill] sm:$0xff] %v7546_v6 }
 0x23c   :  { %v1162_v16 = vmul.f32 0.2, %v1114_v33  ;;  %vm1138_vm15 = vcmp.gt.f32.partialorder %v1114_v33, 0.0  ;;  %v1165_v24 = vmul.f32 0.2, %v1117_v3  ;;  %v1061_v27 = vrot.slane %v968_v17, %v7150_v52 }
 0x23d   :  { %v1065_v58 = vrot.slane %v975_v60, %v7150_v52  ;;  %vm1141_vm1 = vcmp.gt.f32.partialorder %v1117_v3, 0.0  ;;  %v1264_v32 = vsel %vm1218_vm10, %v7541_v45, -inf  ;;  %v1069_v19 = vrot.slane %v976_v42, %v7150_v52 }
 0x23e   :  { %v6539_v9 = vunpack.i.l.bf16 %v7212_v36  ;;  %vm2768_vm11 = vcmask 261120   ;;  %vm2775_vm12 = vcmask 523264   ;;  %vm2782_vm13 = vcmask 785408  }
 0x23f   :  { %1274 = vmax.xlane.f32.xlu0 %v1273_v34  ;;  %1244 = vmax.xlane.f32.xlu1 %v1243_v39  ;;  %v1186_v34 = vsel %vm1138_vm15, %v1114_v33, %v1162_v16  ;;  %v1189_v16 = vsel %vm1141_vm1, %v1117_v3, %v1165_v24 }
 0x240   :  { %v7553_v17 = vadd.f32 %v7506_v47, %v1186_v34 }
 0x243   :  { %1253 = vmax.xlane.f32.xlu1 %v1252_v13  ;;  %v1073_v13 = vrot.slane %v977_v53, %v7150_v52  ;;  %v7561_v53 = vadd.f32 %v7506_v47, %v1189_v16 }
 0x247   :  { %1259 = vmax.xlane.f32.xlu1 %v1258_v49 }
 0x248   :  { %v803_v39 = vpop.permute.xlu1 %802  ;;  %v811_v63 = vpop.permute.xlu0 %810 }
 0x249   :  { %v1118_v38 = vadd.f32 %v1061_v27, %v803_v39  ;;  %v1119_v29 = vadd.f32 %v1065_v58, %v811_v63  ;;  %v1267_v39 = vsel %vm1218_vm10, %v7553_v17, -inf }
 0x24b   :  { %v1166_v60 = vmul.f32 0.2, %v1118_v38  ;;  %v1167_v33 = vmul.f32 0.2, %v1119_v29  ;;  %1265 = vmax.xlane.f32.xlu1 %v1264_v32  ;;  %vm1142_vm6 = vcmp.gt.f32.partialorder %v1118_v38, 0.0  ;;  %vm1143_vm7 = vcmp.gt.f32.partialorder %v1119_v29, 0.0 }
 0x24c   :  { %v819_v44 = vpop.permute.xlu1 %818  ;;  %v827_v49 = vpop.permute.xlu0 %826  ;;  %v1276_v32 = vsel %vm1218_vm10, %v7561_v53, -inf }
 0x24d   :  { %v1120_v55 = vadd.f32 %v1069_v19, %v819_v44  ;;  %v1121_v27 = vadd.f32 %v1073_v13, %v827_v49  ;;  %v1190_v58 = vsel %vm1142_vm6, %v1118_v38, %v1166_v60  ;;  %v1191_v3 = vsel %vm1143_vm7, %v1119_v29, %v1167_v33 }
 0x24e   :  { %v7558_v42 = vadd.f32 %v7546_v6, %v1190_v58  ;;  %v7571_v13 = vadd.f32 %v7546_v6, %v1191_v3 }
 0x24f   :  { %v1168_v34 = vmul.f32 0.2, %v1120_v55  ;;  %v1169_v63 = vmul.f32 0.2, %v1121_v27  ;;  %1268 = vmax.xlane.f32.xlu1 %v1267_v39  ;;  %vm1144_vm8 = vcmp.gt.f32.partialorder %v1120_v55, 0.0  ;;  %vm1145_vm9 = vcmp.gt.f32.partialorder %v1121_v27, 0.0 }
 0x250   :  { %v1279_v24 = vsel %vm1218_vm10, %v7558_v42, -inf  ;;  %v1282_v33 = vsel %vm1218_vm10, %v7571_v13, -inf }
 0x251   :  { %1280 = vmax.xlane.f32.xlu0 %v1279_v24  ;;  %v1192_v38 = vsel %vm1144_vm8, %v1120_v55, %v1168_v34  ;;  %v1193_v60 = vsel %vm1145_vm9, %v1121_v27, %v1169_v63 }
 0x252   :  { %v7568_v19 = vadd.f32 %v7546_v6, %v1192_v38  ;;  %v7578_v16 = vadd.f32 %v7546_v6, %v1193_v60 }
 0x253   :  { %1277 = vmax.xlane.f32.xlu1 %v1276_v32 }
 0x254   :  { %v1285_v29 = vsel %vm1218_vm10, %v7568_v19, -inf  ;;  %v1288_v44 = vsel %vm1218_vm10, %v7578_v16, -inf }
 0x255   :  { %1286 = vmax.xlane.f32.xlu0 %v1285_v29 }
 0x257   :  { %1283 = vmax.xlane.f32.xlu1 %v1282_v33 }
 0x25b   :  { %1289 = vmax.xlane.f32.xlu1 %v1288_v44 }
 0x26b   :  { %6579 = vrot.lane.b32.xlu0 %v7245_v12, %s6950_s22 }
 0x282   :  { %v1224_v49 = vpop.xlane.xlu0 %1223 }
 0x283   :  { %v1292_v55 = vsub.f32 %v7365_v22, %v1224_v49 }
 0x285   :  { %v1317_v27 = vmul.f32 1.442695, %v1292_v55 }
 0x286   :  { %v1230_v58 = vpop.xlane.xlu0 %1229 }
 0x287   :  { %6711 = vpow2.f32 %v1317_v27  ;;  %v1294_v39 = vsub.f32 %v7373_v57, %v1230_v58  ;;  %v1221_v34 = vpop.xlane.xlu1 %1220 }
 0x288   :  { %v1291_v63 = vsub.f32 %v7376_v48, %v1221_v34 }
 0x289   :  { %v1321_v3 = vmul.f32 1.442695, %v1294_v39 }
 0x28a   :  { %v1315_v24 = vmul.f32 1.442695, %v1291_v63  ;;  %v1236_v38 = vpop.xlane.xlu0 %1235 }
 0x28b   :  { %6713 = vpow2.f32 %v1321_v3  ;;  %v1296_v32 = vsub.f32 %v7389_v50, %v1236_v38  ;;  %v1227_v60 = vpop.xlane.xlu1 %1226 }
 0x28c   :  { %6715 = vpow2.f32 %v1315_v24  ;;  %v1293_v29 = vsub.f32 %v7394_v23, %v1227_v60 }
 0x28d   :  { %v1325_v33 = vmul.f32 1.442695, %v1296_v32 }
 0x28e   :  { %v1319_v22 = vmul.f32 1.442695, %v1293_v29  ;;  %v1242_v44 = vpop.xlane.xlu0 %1241 }
 0x28f   :  { %6717 = vpow2.f32 %v1325_v33  ;;  %v1298_v49 = vsub.f32 %v7401_v2, %v1242_v44  ;;  %v1233_v57 = vpop.xlane.xlu1 %1232 }
 0x290   :  { %6719 = vpow2.f32 %v1319_v22  ;;  %v1295_v48 = vsub.f32 %v7406_v10, %v1233_v57 }
 0x291   :  { %v1329_v55 = vmul.f32 1.442695, %v1298_v49 }
 0x292   :  { %v1323_v27 = vmul.f32 1.442695, %v1295_v48  ;;  %v1248_v58 = vpop.xlane.xlu0 %1247 }
 0x293   :  { %6721 = vpow2.f32 %v1329_v55  ;;  %v1300_v50 = vsub.f32 %v7423_v25, %v1248_v58  ;;  %v1239_v39 = vpop.xlane.xlu1 %1238 }
 0x294   :  { %v7592_v34 = vpop.eup %6711  ;;  %6723 = vpow2.f32 %v1323_v27  ;;  %v1297_v23 = vsub.f32 %v7418_v51, %v1239_v39 }
 0x295   :  { %v1333_v63 = vmul.f32 1.442695, %v1300_v50  ;;  %v1366_v2 = vsel %vm1218_vm10, %v7592_v34, 0.0 }
 0x296   :  { %v1327_v3 = vmul.f32 1.442695, %v1297_v23  ;;  %1367 = vadd.xlane.f32.xlu1 %v1366_v2  ;;  %v1251_v58 = vpop.xlane.xlu0 %1250 }
 0x297   :  { %6725 = vpow2.f32 %v1333_v63 }
 0x298   :  { %v7597_v10 = vpop.eup %6713  ;;  %6727 = vpow2.f32 %v1327_v3 }
 0x299   :  { %v7599_v24 = vpop.eup %6715  ;;  %v1372_v25 = vsel %vm1218_vm10, %v7597_v10, 0.0 }
 0x29a   :  { %1373 = vadd.xlane.f32.xlu1 %v1372_v25  ;;  %v1363_v38 = vsel %vm1218_vm10, %v7599_v24, 0.0 }
 0x29b   :  { %1364 = vadd.xlane.f32.xlu0 %v1363_v38 }
 0x29c   :  { %v7605_v51 = vpop.eup %6717 }
 0x29d   :  { %v7607_v32 = vpop.eup %6719  ;;  %v1378_v60 = vsel %vm1218_vm10, %v7605_v51, 0.0 }
 0x29e   :  { %1379 = vadd.xlane.f32.xlu1 %v1378_v60  ;;  %v1369_v29 = vsel %vm1218_vm10, %v7607_v32, 0.0  ;;  %v7637_v60 = vpop.permute.xlu1 %6574 }
 0x29f   :  { %1370 = vadd.xlane.f32.xlu0 %v1369_v29 }
 0x2a0   :  { %v7613_v33 = vpop.eup %6721 }
 0x2a1   :  { %v7615_v22 = vpop.eup %6723  ;;  %v1384_v44 = vsel %vm1218_vm10, %v7613_v33, 0.0 }
 0x2a2   :  { %1385 = vadd.xlane.f32.xlu1 %v1384_v44  ;;  %v1375_v49 = vsel %vm1218_vm10, %v7615_v22, 0.0 }
 0x2a3   :  { %1376 = vadd.xlane.f32.xlu0 %v1375_v49 }
 0x2a4   :  { %v7621_v57 = vpop.eup %6725 }
 0x2a5   :  { %v7623_v48 = vpop.eup %6727  ;;  %v1390_v55 = vsel %vm1218_vm10, %v7621_v57, 0.0 }
 0x2a6   :  { %1391 = vadd.xlane.f32.xlu1 %v1390_v55  ;;  %v1381_v27 = vsel %vm1218_vm10, %v7623_v48, 0.0  ;;  %v1301_v55 = vsub.f32 %v7432_v21, %v1251_v58 }
 0x2a7   :  { %1382 = vadd.xlane.f32.xlu0 %v1381_v27 }
 0x2ac   :  { %v1257_v50 = vpop.xlane.xlu0 %1256 }
 0x2ad   :  { %v1303_v39 = vsub.f32 %v7462_v43, %v1257_v50 }
 0x2af   :  { %v1339_v23 = vmul.f32 1.442695, %v1303_v39  ;;  %v1335_v39 = vmul.f32 1.442695, %v1301_v55 }
 0x2b1   :  { %6729 = vpow2.f32 %v1339_v23 }
 0x2b4   :  { %v1263_v63 = vpop.xlane.xlu0 %1262 }
 0x2b5   :  { %v1305_v2 = vsub.f32 %v7472_v20, %v1263_v63 }
 0x2b7   :  { %v1343_v3 = vmul.f32 1.442695, %v1305_v2 }
 0x2b9   :  { %6731 = vpow2.f32 %v1343_v3 }
 0x2bd   :  { %6584 = vrot.lane.b32.xlu0 %v7245_v12, %s6951_s23 }
 0x2be   :  { %v7633_v25 = vpop.eup %6729 }
 0x2bf   :  { %v1399_v38 = vsel %vm1218_vm10, %v7633_v25, 0.0 }
 0x2c0   :  { %1400 = vadd.xlane.f32.xlu1 %v1399_v38 }
 0x2c4   :  { %v1272_v29 = vpop.xlane.xlu0 %1271 }
 0x2c5   :  { %v1308_v43 = vsub.f32 %v7509_v30, %v1272_v29 }
 0x2c6   :  { %v7640_v44 = vpop.eup %6731 }
 0x2c7   :  { %v1349_v49 = vmul.f32 1.442695, %v1308_v43  ;;  %v1405_v20 = vsel %vm1218_vm10, %v7640_v44, 0.0 }
 0x2c8   :  { %1406 = vadd.xlane.f32.xlu1 %v1405_v20  ;;  %v1245_v12 = vpop.xlane.xlu1 %1244  ;;  %v1275_v43 = vpop.xlane.xlu0 %1274 }
 0x2c9   :  { %6733 = vpow2.f32 %v1349_v49  ;;  %v1299_v27 = vsub.f32 %v7519_v35, %v1245_v12 }
 0x2cb   :  { %v1331_v50 = vmul.f32 1.442695, %v1299_v27  ;;  %v1309_v27 = vsub.f32 %v7516_v18, %v1275_v43 }
 0x2cc   :  { %v1254_v23 = vpop.xlane.xlu1 %1253 }
 0x2cd   :  { %v1302_v63 = vsub.f32 %v7528_v8, %v1254_v23  ;;  %6735 = vpow2.f32 %v1331_v50 }
 0x2ce   :  { %6737 = vpow2.f32 %v1335_v39 }
 0x2cf   :  { %v1337_v30 = vmul.f32 1.442695, %v1302_v63 }
 0x2d0   :  { %v1260_v2 = vpop.xlane.xlu1 %1259 }
 0x2d1   :  { %v1304_v3 = vsub.f32 %v7534_v14, %v1260_v2  ;;  %6739 = vpow2.f32 %v1337_v30 }
 0x2d3   :  { %v1341_v38 = vmul.f32 1.442695, %v1304_v3  ;;  %v1351_v3 = vmul.f32 1.442695, %v1309_v27 }
 0x2d4   :  { %v1266_v29 = vpop.xlane.xlu1 %1265 }
 0x2d5   :  { %v1306_v21 = vsub.f32 %v7541_v45, %v1266_v29  ;;  %6741 = vpow2.f32 %v1341_v38 }
 0x2d6   :  { %v7649_v58 = vpop.eup %6733 }
 0x2d7   :  { %v1414_v35 = vsel %vm1218_vm10, %v7649_v58, 0.0  ;;  %v1345_v49 = vmul.f32 1.442695, %v1306_v21 }
 0x2d8   :  { %1415 = vadd.xlane.f32.xlu1 %v1414_v35  ;;  %v1269_v8 = vpop.xlane.xlu1 %1268 }
 0x2d9   :  { %v1307_v20 = vsub.f32 %v7553_v17, %v1269_v8  ;;  %6743 = vpow2.f32 %v1345_v49 }
 0x2da   :  { %v1281_v55 = vpop.xlane.xlu0 %1280  ;;  %v7654_v12 = vpop.eup %6735 }
 0x2db   :  { %v1311_v14 = vsub.f32 %v7558_v42, %v1281_v55  ;;  %v1347_v45 = vmul.f32 1.442695, %v1307_v20  ;;  %v1387_v50 = vsel %vm1218_vm10, %v7654_v12, 0.0  ;;  %v7660_v23 = vpop.eup %6737 }
 0x2dc   :  { %v1278_v39 = vpop.xlane.xlu1 %1277  ;;  %1388 = vadd.xlane.f32.xlu0 %v1387_v50  ;;  %v1393_v18 = vsel %vm1218_vm10, %v7660_v23, 0.0 }
 0x2dd   :  { %v1310_v63 = vsub.f32 %v7561_v53, %v1278_v39  ;;  %v1355_v17 = vmul.f32 1.442695, %v1311_v14  ;;  %6745 = vpow2.f32 %v1347_v45 }
 0x2de   :  { %v1287_v30 = vpop.xlane.xlu0 %1286  ;;  %v7666_v29 = vpop.eup %6739 }
 0x2df   :  { %v1353_v2 = vmul.f32 1.442695, %v1310_v63  ;;  %v1313_v42 = vsub.f32 %v7568_v19, %v1287_v30  ;;  %v1396_v35 = vsel %vm1218_vm10, %v7666_v29, 0.0 }
 0x2e0   :  { %v1284_v38 = vpop.xlane.xlu1 %1283  ;;  %1394 = vadd.xlane.f32.xlu0 %v1393_v18 }
 0x2e1   :  { %6747 = vpow2.f32 %v1353_v2  ;;  %v1312_v21 = vsub.f32 %v7571_v13, %v1284_v38  ;;  %v1359_v53 = vmul.f32 1.442695, %v1313_v42  ;;  %v7703_v42 = vpop.f32.mrf.mxu0 }
 0x2e2   :  { %6749 = vpow2.f32 %v1355_v17  ;;  %v7671_v49 = vpop.eup %6741 }
 0x2e3   :  { %v1357_v43 = vmul.f32 1.442695, %v1312_v21  ;;  %6751 = vpow2.f32 %v1351_v3  ;;  %v1402_v19 = vsel %vm1218_vm10, %v7671_v49, 0.0  ;;  %v7705_v18 = vpop.f32.mrf.mxu0 }
 0x2e4   :  { %1397 = vadd.xlane.f32.xlu0 %v1396_v35 }
 0x2e5   :  { %6753 = vpow2.f32 %v1357_v43  ;;  %v7707_v38 = vpop.f32.mrf.mxu0 }
 0x2e6   :  { %6755 = vpow2.f32 %v1359_v53  ;;  %v7675_v8 = vpop.eup %6743  ;;  %v1290_v53 = vpop.xlane.xlu1 %1289 }
 0x2e7   :  { %v1408_v13 = vsel %vm1218_vm10, %v7675_v8, 0.0  ;;  %v7709_v21 = vpop.f32.mrf.mxu0  ;;  %v1314_v35 = vsub.f32 %v7578_v16, %v1290_v53  ;;  %v6529_v16 = vunpack.i.l.bf16 %v7216_v40 }
 0x2e8   :  { %1403 = vadd.xlane.f32.xlu0 %v1402_v19  ;;  %v6593_v43 = vpack.i.bf16 %v7709_v21, %v7705_v18 }
 0x2e9   :  { %v1361_v19 = vmul.f32 1.442695, %v1314_v35 }
 0x2ea   :  { %v7679_v20 = vpop.eup %6745 }
 0x2eb   :  { %v1411_v45 = vsel %vm1218_vm10, %v7679_v20, 0.0  ;;  %6757 = vpow2.f32 %v1361_v19  ;;  %v1568_v19 = vpack.c.bf16 %v6529_v16, %v6529_v16 }
 0x2ec   :  { %1409 = vadd.xlane.f32.xlu0 %v1408_v13  ;;  %v7716_v13 = vpop.permute.xlu0 %6579 }
 0x2ee   :  { %v7681_v55 = vpop.eup %6747 }
 0x2ef   :  { %v1420_v14 = vsel %vm1218_vm10, %v7681_v55, 0.0  ;;  %v7685_v27 = vpop.eup %6749 }
 0x2f0   :  { %1421 = vadd.xlane.f32.xlu1 %v1420_v14  ;;  %v7689_v50 = vpop.eup %6751  ;;  %1412 = vadd.xlane.f32.xlu0 %v1411_v45  ;;  %v1423_v39 = vsel %vm1218_vm10, %v7685_v27, 0.0 }
 0x2f1   :  { %v1417_v30 = vsel %vm1218_vm10, %v7689_v50, 0.0 }
 0x2f2   :  { %v7693_v63 = vpop.eup %6753 }
 0x2f3   :  { %v7697_v17 = vpop.eup %6755  ;;  %v1426_v2 = vsel %vm1218_vm10, %v7693_v63, 0.0 }
 0x2f4   :  { %1424 = vadd.xlane.f32.xlu1 %v1423_v39  ;;  %1418 = vadd.xlane.f32.xlu0 %v1417_v30  ;;  %v1429_v3 = vsel %vm1218_vm10, %v7697_v17, 0.0 }
 0x2f8   :  { %1427 = vadd.xlane.f32.xlu1 %v1426_v2  ;;  %1430 = vadd.xlane.f32.xlu0 %v1429_v3  ;;  %v7718_v30 = vpop.eup %6757 }
 0x2f9   :  { %v1432_v3 = vsel %vm1218_vm10, %v7718_v30, 0.0 }
 0x309   :  { %6594 = vrot.lane.b32.xlu1 %v6593_v43, %s6950_s22 }
 0x30e   :  { %6589 = vrot.lane.b32.xlu0 %v6593_v43, %s6949_s0 }
 0x31f   :  { %v1368_v45 = vpop.xlane.xlu1 %1367 }
 0x323   :  { %v1374_v4 = vpop.xlane.xlu1 %1373 }
 0x324   :  { %v1365_v14 = vpop.xlane.xlu0 %1364 }
 0x325   :  { %6759 = vrcp.f32 %v1365_v14 }
 0x326   :  { %6761 = vrcp.f32 %v1368_v45 }
 0x328   :  { %v1371_v39 = vpop.xlane.xlu0 %1370 }
 0x329   :  { %6763 = vrcp.f32 %v1371_v39  ;;  %v1380_v39 = vpop.xlane.xlu1 %1379 }
 0x32c   :  { %v1377_v2 = vpop.xlane.xlu0 %1376 }
 0x32d   :  { %6765 = vrcp.f32 %v1377_v2  ;;  %1433 = vadd.xlane.f32.xlu1 %v1432_v3  ;;  %v1642_v2 = vsel %vm1594_vm2, %v1568_v19, 0  ;;  %v9010_v3 = vmov 0.0   ;;  %v1386_v19 = vpop.xlane.xlu1 %1385 }
 0x32e   :  { %6767 = vrcp.f32 %v1374_v4  ;;  %v1571_v4 = vpack.c.bf16 %v7077_v41, %v7077_v41 }
 0x330   :  { %v1383_v35 = vpop.xlane.xlu0 %1382 }
 0x331   :  { %6769 = vrcp.f32 %v1383_v35 }
 0x332   :  { %v6760_v53 = vpop.eup %6759  ;;  %6771 = vrcp.f32 %v1380_v39 }
 0x333   :  { %v1436_v14 = vmul.f32 %v6760_v53, %v7599_v24  ;;  %v6762_v45 = vpop.eup %6761  ;;  %6773 = vrcp.f32 %v1386_v19 }
 0x334   :  { %v1438_v16 = vmul.f32 %v6762_v45, %v7592_v34  ;;  %v7776_v19 = vpop.permute.xlu0 %6584 }
 0x335   :  { %v1543_v0 = vpack.c.bf16 %v1436_v14, %v1436_v14 }
 0x336   :  { %v6764_v6 = vpop.eup %6763  ;;  %v1544_v41 = vpack.c.bf16 %v1438_v16, %v1438_v16  ;;  %v6540_v16 = vunpack.i.h.bf16 %v7212_v36 }
 0x337   :  { %v1440_v47 = vmul.f32 %v6764_v6, %v7607_v32  ;;  %6194 = vmatmul.mubr.msk.bf16.vlgmr.msra.gmra.mxu1 %vm1218_vm10, %v1543_v0  ;;  %v6535_v6 = vunpack.i.h.bf16 %v7207_v31  ;;  %v1570_v32 = vpack.c.bf16 %v6539_v9, %v6539_v9  ;;  %v1780_v0 = vsel %vm1594_vm2, %v1571_v4, 0 }
 0x338   :  { %6198 = vmatpush3.bf16.msra.mxu1 %v1642_v2  ;;  %6199 = vmatprep.mubr.msk.bf16.mxu1 %vm6940_vm0, %v9010_v3  ;;  %v6530_v31 = vunpack.i.h.bf16 %v7216_v40 }
 0x339   :  { %v1545_v24 = vpack.c.bf16 %v1440_v47, %v1440_v47  ;;  %6209 = vmatprep.subr.bf16.mxu1 %v9010_v3  ;;  %v1573_v9 = vpack.c.bf16 %v6535_v6, %v6535_v6  ;;  %v1734_v34 = vsel %vm1594_vm2, %v1570_v32, 0  ;;  %v1574_v32 = vpack.c.bf16 %v6540_v16, %v6540_v16 }
 0x33a   :  { %v6766_v53 = vpop.eup %6765  ;;  %v1572_v39 = vpack.c.bf16 %v6530_v31, %v6530_v31 }
 0x33b   :  { %6206 = vmatmul.mubr.msk.bf16.vlgmr.msra.gmra.mxu0 %vm1218_vm10, %v1545_v24  ;;  %v1444_v47 = vmul.f32 %v6766_v53, %v7615_v22  ;;  %v6768_v35 = vpop.eup %6767  ;;  %v1872_v40 = vsel %vm1594_vm2, %v1573_v9, 0  ;;  %v1392_v24 = vpop.xlane.xlu1 %1391  ;;  %v1575_v53 = vpack.c.bf16 %v7233_v5, %v7233_v5 }
 0x33c   :  { %6216 = vmatpush3.bf16.msra.mxu0 %v1780_v0  ;;  %6217 = vmatprep.mubr.msk.bf16.mxu0 %vm6940_vm0, %v9010_v3  ;;  %v1442_v22 = vmul.f32 %v6768_v35, %v7597_v10  ;;  %v1826_v10 = vsel %vm1594_vm2, %v1572_v39, 0  ;;  %6775 = vrcp.f32 %v1392_v24 }
 0x33d   :  { %6227 = vmatprep.subr.bf16.mxu0 %v9010_v3  ;;  %v1547_v14 = vpack.c.bf16 %v1444_v47, %v1444_v47  ;;  %v1964_v36 = vsel %vm1594_vm2, %v1575_v53, 0  ;;  %v1918_v47 = vsel %vm1594_vm2, %v1574_v32, 0 }
 0x33e   :  { %6599 = vrot.lane.b32.xlu1 %v6593_v43, %s6951_s23  ;;  %v6770_v45 = vpop.eup %6769  ;;  %v1546_v43 = vpack.c.bf16 %v1442_v22, %v1442_v22 }
 0x33f   :  { %6200 = vmatmul.mubr.msk.bf16.vlgmr.msra.gmra.mxu1 %vm1218_vm10, %v1544_v41  ;;  %v1448_v2 = vmul.f32 %v6770_v45, %v7623_v48  ;;  %v6772_v4 = vpop.eup %6771  ;;  %v6576_v41 = vunpack.i.l.bf16 %v7637_v60 }
 0x340   :  { %6210 = vmatpush3.bf16.msra.mxu1 %v1734_v34  ;;  %6211 = vmatprep.mubr.msk.bf16.mxu1 %vm6940_vm0, %v9010_v3  ;;  %v1446_v48 = vmul.f32 %v6772_v4, %v7605_v51  ;;  %v6774_v0 = vpop.eup %6773  ;;  %v6586_v34 = vunpack.i.l.bf16 %v7776_v19 }
 0x341   :  { %6221 = vmatprep.subr.bf16.mxu1 %v9010_v3  ;;  %v1549_v6 = vpack.c.bf16 %v1448_v2, %v1448_v2  ;;  %v1450_v51 = vmul.f32 %v6774_v0, %v7613_v33  ;;  %v1576_v35 = vpack.c.bf16 %v6576_v41, %v6576_v41  ;;  %v6577_v0 = vunpack.i.h.bf16 %v7637_v60 }
 0x342   :  { %v1548_v5 = vpack.c.bf16 %v1446_v48, %v1446_v48  ;;  %v1578_v33 = vpack.c.bf16 %v6586_v34, %v6586_v34 }
 0x343   :  { %6218 = vmatmul.mubr.msk.bf16.vlgmr.msra.gmra.mxu0 %vm1218_vm10, %v1547_v14  ;;  %v1550_v31 = vpack.c.bf16 %v1450_v51, %v1450_v51  ;;  %v2010_v14 = vsel %vm1594_vm2, %v1576_v35, 0 }
 0x344   :  { %6228 = vmatpush3.bf16.msra.mxu0 %v1872_v40  ;;  %6229 = vmatprep.mubr.msk.bf16.mxu0 %vm6940_vm0, %v9010_v3  ;;  %v2102_v39 = vsel %vm1594_vm2, %v1578_v33, 0 }
 0x345   :  { %6239 = vmatprep.subr.bf16.mxu0 %v9010_v3 }
 0x347   :  { %6212 = vmatmul.mubr.msk.bf16.vlgmr.msra.gmra.mxu1 %vm1218_vm10, %v1546_v43 }
 0x348   :  { %6222 = vmatpush3.bf16.msra.mxu1 %v1826_v10  ;;  %6223 = vmatprep.mubr.msk.bf16.mxu1 %vm6940_vm0, %v9010_v3 }
 0x349   :  { %6233 = vmatprep.subr.bf16.mxu1 %v9010_v3  ;;  %v6776_v9 = vpop.eup %6775  ;;  %v1401_v4 = vpop.xlane.xlu1 %1400 }
 0x34a   :  { %v1454_v22 = vmul.f32 %v6776_v9, %v7621_v57  ;;  %v6581_v57 = vunpack.i.l.bf16 %v7716_v13  ;;  %v1579_v9 = vpack.c.bf16 %v7241_v11, %v7241_v11 }
 0x34b   :  { %6230 = vmatmul.mubr.msk.bf16.vlgmr.msra.gmra.mxu0 %vm1218_vm10, %v1549_v6 }
 0x34c   :  { %6240 = vmatpush3.bf16.msra.mxu0 %v1964_v36  ;;  %6241 = vmatprep.mubr.msk.bf16.mxu0 %vm6940_vm0, %v9010_v3  ;;  %v1552_v45 = vpack.c.bf16 %v1454_v22, %v1454_v22  ;;  %v1577_v53 = vpack.c.bf16 %v6581_v57, %v6581_v57 }
 0x34d   :  { %6251 = vmatprep.subr.bf16.mxu0 %v9010_v3 }
 0x34e   :  { %v2056_v41 = vsel %vm1594_vm2, %v1577_v53, 0 }
 0x34f   :  { %6224 = vmatmul.mubr.msk.bf16.vlgmr.msra.gmra.mxu1 %vm1218_vm10, %v1548_v5 }
 0x350   :  { %6234 = vmatpush3.bf16.msra.mxu1 %v1918_v47  ;;  %6235 = vmatprep.mubr.msk.bf16.mxu1 %vm6940_vm0, %v9010_v3 }
 0x351   :  { %6245 = vmatprep.subr.bf16.mxu1 %v9010_v3  ;;  %v1407_v10 = vpop.xlane.xlu1 %1406 }
 0x357   :  { %6236 = vmatmul.mubr.msk.bf16.vlgmr.msra.gmra.mxu1 %vm1218_vm10, %v1550_v31  ;;  %v1580_v31 = vpack.c.bf16 %v6577_v0, %v6577_v0  ;;  %v1583_v0 = vpack.c.bf16 %v7705_v18, %v7705_v18 }
 0x358   :  { %6246 = vmatpush3.bf16.msra.mxu1 %v2010_v14  ;;  %6247 = vmatprep.mubr.msk.bf16.mxu1 %vm6940_vm0, %v9010_v3 }
 0x359   :  { %6257 = vmatprep.subr.bf16.mxu1 %v9010_v3 }
 0x35f   :  { %6248 = vmatmul.mubr.msk.bf16.vlgmr.msra.gmra.mxu1 %vm1218_vm10, %v1552_v45 }
 0x360   :  { %6258 = vmatpush3.bf16.msra.mxu1 %v2102_v39  ;;  %6259 = vmatprep.mubr.msk.bf16.mxu1 %vm6940_vm0, %v9010_v3  ;;  %v6582_v39 = vunpack.i.h.bf16 %v7716_v13 }
 0x361   :  { %6269 = vmatprep.subr.bf16.mxu1 %v9010_v3  ;;  %v1416_v5 = vpop.xlane.xlu1 %1415 }
 0x365   :  { %v1389_v40 = vpop.xlane.xlu0 %1388 }
 0x366   :  { %6777 = vrcp.f32 %v1389_v40  ;;  %v6587_v40 = vunpack.i.h.bf16 %v7776_v19 }
 0x369   :  { %v1395_v43 = vpop.xlane.xlu0 %1394 }
 0x36a   :  { %6779 = vrcp.f32 %v1395_v43 }
 0x36d   :  { %v1398_v2 = vpop.xlane.xlu0 %1397 }
 0x36e   :  { %6781 = vrcp.f32 %v1398_v2  ;;  %v1581_v2 = vpack.c.bf16 %v6582_v39, %v6582_v39 }
 0x36f   :  { %6783 = vrcp.f32 %v1401_v4  ;;  %v1582_v4 = vpack.c.bf16 %v6587_v40, %v6587_v40 }
 0x371   :  { %v1404_v24 = vpop.xlane.xlu0 %1403 }
 0x372   :  { %6785 = vrcp.f32 %v1404_v24 }
 0x373   :  { %v6778_v16 = vpop.eup %6777  ;;  %6787 = vrcp.f32 %v1407_v10 }
 0x374   :  { %v1452_v6 = vmul.f32 %v6778_v16, %v7654_v12 }
 0x375   :  { %v1410_v48 = vpop.xlane.xlu0 %1409 }
 0x376   :  { %v1551_v32 = vpack.c.bf16 %v1452_v6, %v1452_v6  ;;  %6789 = vrcp.f32 %v1410_v48 }
 0x377   :  { %v6780_v36 = vpop.eup %6779  ;;  %6791 = vrcp.f32 %v1416_v5 }
 0x378   :  { %6242 = vmatmul.mubr.msk.bf16.vlgmr.msra.gmra.mxu0 %vm1218_vm10, %v1551_v32  ;;  %v1456_v12 = vmul.f32 %v6780_v36, %v7660_v23  ;;  %v2148_v23 = vsel %vm1594_vm2, %v1579_v9, 0 }
 0x379   :  { %6252 = vmatpush3.bf16.msra.mxu0 %v2056_v41  ;;  %v1413_v47 = vpop.xlane.xlu0 %1412  ;;  %6253 = vmatprep.mubr.msk.bf16.mxu0 %vm6940_vm0, %v9010_v3  ;;  %v7799_v35 = vpop.xlane.xlu1 %1421 }
 0x37a   :  { %6263 = vmatprep.subr.bf16.mxu0 %v9010_v3  ;;  %v1553_v22 = vpack.c.bf16 %v1456_v12, %v1456_v12  ;;  %6793 = vrcp.f32 %v1413_v47 }
 0x37b   :  { %v6782_v51 = vpop.eup %6781 }
 0x37c   :  { %v1458_v60 = vmul.f32 %v6782_v51, %v7666_v29  ;;  %v6784_v14 = vpop.eup %6783  ;;  %v2194_v29 = vsel %vm1594_vm2, %v1580_v31, 0 }
 0x37d   :  { %v1419_v34 = vpop.xlane.xlu0 %1418  ;;  %v1425_v43 = vpop.xlane.xlu1 %1424  ;;  %v1460_v13 = vmul.f32 %v6784_v14, %v7633_v25  ;;  %v2240_v25 = vsel %vm1594_vm2, %v1581_v2, 0 }
 0x37e   :  { %v1554_v33 = vpack.c.bf16 %v1458_v60, %v1458_v60  ;;  %6795 = vrcp.f32 %v1419_v34 }
 0x37f   :  { %v6786_v45 = vpop.eup %6785  ;;  %v1555_v16 = vpack.c.bf16 %v1460_v13, %v1460_v13  ;;  %6797 = vrcp.f32 %v1425_v43 }
 0x380   :  { %6254 = vmatmul.mubr.msk.bf16.vlgmr.msra.gmra.mxu0 %vm1218_vm10, %v1553_v22  ;;  %6260 = vmatmul.mubr.msk.bf16.vlgmr.msra.gmra.mxu1 %vm1218_vm10, %v1554_v33  ;;  %v1462_v19 = vmul.f32 %v6786_v45, %v7671_v49  ;;  %v6788_v24 = vpop.eup %6787  ;;  %v2286_v49 = vsel %vm1594_vm2, %v1582_v4, 0  ;;  %v9011_v4 = vmov 0  }
 0x381   :  { %6264 = vmatpush3.bf16.msra.mxu0 %v2148_v23  ;;  %6270 = vmatpush3.bf16.msra.mxu1 %v2194_v29  ;;  %v1431_v11 = vpop.xlane.xlu0 %1430  ;;  %v7820_v6 = vpop.xlane.xlu1 %1427  ;;  %v1464_v32 = vmul.f32 %v6788_v24, %v7640_v44  ;;  %v2332_v44 = vsel %vm1594_vm2, %v1583_v0, 0 }
 0x382   :  { %6265 = vmatprep.mubr.msk.bf16.mxu0 %vm6940_vm0, %v9010_v3  ;;  %6271 = vmatprep.mubr.msk.bf16.mxu1 %vm6940_vm0, %v9010_v3  ;;  %v1556_v10 = vpack.c.bf16 %v1462_v19, %v1462_v19  ;;  %6799 = vrcp.f32 %v1431_v11 }
 0x383   :  { %6275 = vmatprep.subr.bf16.mxu0 %v9010_v3  ;;  %6281 = vmatprep.subr.bf16.mxu1 %v9010_v3  ;;  %v6790_v53 = vpop.eup %6789  ;;  %v1557_v12 = vpack.c.bf16 %v1464_v32, %v1464_v32  ;;  %6801 = vrcp.f32 %v7799_v35 }
 0x384   :  { %v1466_v36 = vmul.f32 %v6790_v53, %v7675_v8  ;;  %v6792_v47 = vpop.eup %6791  ;;  %6803 = vrcp.f32 %v7820_v6 }
 0x385   :  { %v7818_v57 = vpop.permute.xlu0 %6589  ;;  %v6595_v41 = vpop.permute.xlu1 %6594  ;;  %v1470_v9 = vmul.f32 %v6792_v47, %v7649_v58 }
 0x386   :  { %v6591_v48 = vunpack.i.l.bf16 %v7818_v57  ;;  %v1558_v51 = vpack.c.bf16 %v1466_v36, %v1466_v36  ;;  %v6596_v60 = vunpack.i.l.bf16 %v6595_v41  ;;  %v6597_v23 = vunpack.i.h.bf16 %v6595_v41 }
 0x387   :  { %v6794_v31 = vpop.eup %6793  ;;  %v1560_v22 = vpack.c.bf16 %v1470_v9, %v1470_v9 }
 0x388   :  { %6266 = vmatmul.mubr.msk.bf16.vlgmr.msra.gmra.mxu0 %vm1218_vm10, %v1555_v16  ;;  %6272 = vmatmul.mubr.msk.bf16.vlgmr.msra.gmra.mxu1 %vm1218_vm10, %v1556_v10  ;;  %v1584_v5 = vpack.c.bf16 %v6591_v48, %v6591_v48  ;;  %v1468_v18 = vmul.f32 %v6794_v31, %v7679_v20  ;;  %v1585_v34 = vpack.c.bf16 %v6596_v60, %v6596_v60  ;;  %v6592_v10 = vunpack.i.h.bf16 %v7818_v57 }
 0x389   :  { %6276 = vmatpush3.bf16.msra.mxu0 %v2240_v25  ;;  %6282 = vmatpush3.bf16.msra.mxu1 %v2286_v49  ;;  %v1587_v20 = vpack.c.bf16 %v7709_v21, %v7709_v21  ;;  %v1589_v43 = vpack.c.bf16 %v6597_v23, %v6597_v23  ;;  %v6687_v23 = vld [vmem:[%s8976_s4 + $0x70] ss:$8 sps:$4 sm:$0xff]  }
 0x38a   :  { %6277 = vmatprep.mubr.msk.bf16.mxu0 %vm6940_vm0, %v9010_v3  ;;  %6283 = vmatprep.mubr.msk.bf16.mxu1 %vm6940_vm0, %v9010_v3  ;;  %v2378_v8 = vsel %vm1594_vm2, %v1584_v5, 0  ;;  %v1559_v14 = vpack.c.bf16 %v1468_v18, %v1468_v18  ;;  %v2424_v45 = vsel %vm1594_vm2, %v1585_v34, 0 }
 0x38b   :  { %6287 = vmatprep.subr.bf16.mxu0 %v9010_v3  ;;  %6293 = vmatprep.subr.bf16.mxu1 %v9010_v3  ;;  %v6796_v33 = vpop.eup %6795  ;;  %v2516_v29 = vsel %vm1594_vm2, %v1587_v20, 0  ;;  %v2608_v21 = vsel %vm1594_vm2, %v1589_v43, 0 }
 0x38c   :  { %v1472_v58 = vmul.f32 %v6796_v33, %v7689_v50  ;;  %v6798_v40 = vpop.eup %6797 }
 0x38d   :  { %v1476_v50 = vmul.f32 %v6798_v40, %v7685_v27  ;;  %v6689_v40 = vld [vmem:[%s8976_s4 + $0x74] ss:$8 sps:$4 sm:$0xff]  }
 0x38e   :  { %v1561_v39 = vpack.c.bf16 %v1472_v58, %v1472_v58 }
 0x38f   :  { %v1563_v11 = vpack.c.bf16 %v1476_v50, %v1476_v50  ;;  %v6800_v13 = vpop.eup %6799 }
 0x390   :  { %6278 = vmatmul.mubr.msk.bf16.vlgmr.msra.gmra.mxu0 %vm1218_vm10, %v1557_v12  ;;  %6284 = vmatmul.mubr.msk.bf16.vlgmr.msra.gmra.mxu1 %vm1218_vm10, %v1558_v51  ;;  %v1480_v19 = vmul.f32 %v6800_v13, %v7697_v17  ;;  %v6802_v24 = vpop.eup %6801  ;;  %v1588_v17 = vpack.c.bf16 %v6592_v10, %v6592_v10  ;;  %v7896_v51 = vpop.f32.mrf.mxu0  ;;  %v6692_v13 = vld [vmem:[%s8976_s4 + $0x64] ss:$8 sps:$4 sm:$0xff]   ;;  %v6693_v10 = vld [vmem:[%s8976_s4 + $0x50] ss:$8 sps:$4 sm:$0xff]  }
 0x391   :  { %6288 = vmatpush3.bf16.msra.mxu0 %v2332_v44  ;;  %6294 = vmatpush3.bf16.msra.mxu1 %v2378_v8  ;;  %v1474_v25 = vmul.f32 %v6802_v24, %v7681_v55  ;;  %v6804_v32 = vpop.eup %6803 }
 0x392   :  { %6289 = vmatprep.mubr.msk.bf16.mxu0 %vm6940_vm0, %v9010_v3  ;;  %6295 = vmatprep.mubr.msk.bf16.mxu1 %vm6940_vm0, %v9010_v3  ;;  %v1565_v2 = vpack.c.bf16 %v1480_v19, %v1480_v19  ;;  %v2562_v6 = vsel %vm1594_vm2, %v1588_v17, 0  ;;  %v1478_v55 = vmul.f32 %v6804_v32, %v7693_v63  ;;  %v6698_v17 = vld [vmem:[%s8976_s4 + $0x44] ss:$8 sps:$4 sm:$0xff]  }
 0x393   :  { %6299 = vmatprep.subr.bf16.mxu0 %v9010_v3  ;;  %6305 = vmatprep.subr.bf16.mxu1 %v9010_v3  ;;  %v1562_v49 = vpack.c.bf16 %v1474_v25, %v1474_v25 }
 0x394   :  { %v1564_v5 = vpack.c.bf16 %v1478_v55, %v1478_v55 }
 0x398   :  { %6290 = vmatmul.mubr.msk.bf16.vlgmr.msra.gmra.mxu0 %vm1218_vm10, %v1559_v14  ;;  %6296 = vmatmul.mubr.msk.bf16.vlgmr.msra.gmra.mxu1 %vm1218_vm10, %v1560_v22 }
 0x399   :  { %6300 = vmatpush3.bf16.msra.mxu0 %v2424_v45  ;;  %6301 = vmatprep.mubr.msk.bf16.mxu0 %vm6940_vm0, %v9010_v3 }
 0x39a   :  { %6311 = vmatprep.subr.bf16.mxu0 %v9010_v3  ;;  %6307 = vmatprep.mubr.msk.bf16.mxu1 %vm6940_vm0, %v9010_v3 }
 0x3a0   :  { %6302 = vmatmul.mubr.msk.bf16.vlgmr.msra.gmra.mxu0 %vm1218_vm10, %v1561_v39 }
 0x3a1   :  { %6312 = vmatpush3.bf16.msra.mxu0 %v2516_v29  ;;  %6313 = vmatprep.mubr.msk.bf16.mxu0 %vm6940_vm0, %v9010_v3 }
 0x3a2   :  { %6323 = vmatprep.subr.bf16.mxu0 %v9010_v3 }
 0x3a8   :  { %6314 = vmatmul.mubr.msk.bf16.vlgmr.msra.gmra.mxu0 %vm1218_vm10, %v1563_v11 }
 0x3a9   :  { %6324 = vmatpush3.bf16.msra.mxu0 %v2608_v21  ;;  %6325 = vmatprep.mubr.msk.bf16.mxu0 %vm6940_vm0, %v9010_v3  ;;  %v6690_v21 = vld [vmem:[%s8976_s4 + $0x60] ss:$8 sps:$4 sm:$0xff]  }
 0x3aa   :  { %2943 = vmatprep.subr.bf16.mxu0 %v6689_v40 }
 0x3b0   :  { %6326 = vmatmul.mubr.msk.bf16.vlgmr.msra.gmra.mxu0 %vm1218_vm10, %v1565_v2 }
 0x3b1   :  { %2975 = vmatprep.mubr.bf16.mxu0 %v9011_v4  ;;  %2944 = vmatpush1.bf16.msra.mxu0 %v6687_v23 }
 0x3b2   :  { %2945 = vmatprep.subr.bf16.mxu0 %v6692_v13 }
 0x3b5   :  { %2946 = vmatpush1.bf16.msra.mxu0 %v6690_v21 }
 0x3b6   :  { %v1434_v27 = vpop.xlane.xlu1 %1433 }
 0x3b7   :  { %6805 = vrcp.f32 %v1434_v27 }
 0x3ba   :  { %v6600_v16 = vpop.permute.xlu1 %6599 }
 0x3bb   :  { %v6601_v53 = vunpack.i.l.bf16 %v6600_v16  ;;  %v6602_v36 = vunpack.i.h.bf16 %v6600_v16  ;;  %v6695_v16 = vld [vmem:[%s8976_s4 + $0x54] ss:$8 sps:$4 sm:$0xff]  }
 0x3bc   :  { %2947 = vmatprep.subr.bf16.mxu0 %v6695_v16 }
 0x3bd   :  { %v1586_v48 = vpack.c.bf16 %v6601_v53, %v6601_v53  ;;  %v1590_v57 = vpack.c.bf16 %v6602_v36, %v6602_v36  ;;  %2948 = vmatpush1.bf16.msra.mxu0 %v6693_v10  ;;  %v6701_v36 = vld [vmem:[%s8976_s4 + $0x34] ss:$8 sps:$4 sm:$0xff]  }
 0x3be   :  { %2949 = vmatprep.subr.bf16.mxu0 %v6698_v17 }
 0x3bf   :  { %v2470_v35 = vsel %vm1594_vm2, %v1586_v48, 0  ;;  %v2654_v41 = vsel %vm1594_vm2, %v1590_v57, 0 }
 0x3c0   :  { %6306 = vmatpush3.bf16.msra.mxu1 %v2470_v35  ;;  %v6696_v35 = vld [vmem:[%s8976_s4 + $0x40] ss:$8 sps:$4 sm:$0xff]  }
 0x3c1   :  { %6317 = vmatprep.subr.bf16.mxu1 %v9010_v3  ;;  %2950 = vmatpush1.bf16.msra.mxu0 %v6696_v35 }
 0x3c2   :  { %2951 = vmatprep.subr.bf16.mxu0 %v6701_v36 }
 0x3c3   :  { %6308 = vmatmul.mubr.msk.bf16.vlgmr.msra.gmra.mxu1 %vm1218_vm10, %v1562_v49 }
 0x3c4   :  { %6318 = vmatpush3.bf16.msra.mxu1 %v2562_v6  ;;  %6319 = vmatprep.mubr.msk.bf16.mxu1 %vm6940_vm0, %v9010_v3  ;;  %v6806_v0 = vpop.eup %6805  ;;  %v6699_v6 = vld [vmem:[%s8976_s4 + $0x30] ss:$8 sps:$4 sm:$0xff]  }
 0x3c5   :  { %6329 = vmatprep.subr.bf16.mxu1 %v9010_v3  ;;  %v1482_v47 = vmul.f32 %v6806_v0, %v7718_v30  ;;  %2952 = vmatpush1.bf16.msra.mxu0 %v6699_v6  ;;  %v6702_v0 = vld [vmem:[%s8976_s4 + $0x20] ss:$8 sps:$4 sm:$0xff]  }
 0x3c7   :  { %v1566_v12 = vpack.c.bf16 %v1482_v47, %v1482_v47 }
 0x3cb   :  { %6320 = vmatmul.mubr.msk.bf16.vlgmr.msra.gmra.mxu1 %vm1218_vm10, %v1564_v5  ;;  %v6704_v5 = vld [vmem:[%s8976_s4 + $0x24] ss:$8 sps:$4 sm:$0xff]  }
 0x3cc   :  { %6330 = vmatpush3.bf16.msra.mxu1 %v2654_v41  ;;  %6331 = vmatprep.mubr.msk.bf16.mxu1 %vm6940_vm0, %v9010_v3 }
 0x3cd   :  { %6335 = vmatprep.subr.bf16.mxu1 %v9010_v3  ;;  %2953 = vmatprep.subr.bf16.mxu0 %v6704_v5 }
 0x3ce   :  { %2954 = vmatpush1.bf16.msra.mxu0 %v6702_v0 }
 0x3d3   :  { %6332 = vmatmul.mubr.msk.bf16.vlgmr.msra.gmra.mxu1 %vm1218_vm10, %v1566_v12  ;;  %v6707_v12 = vld [vmem:[%s8976_s4 + $0x14] ss:$8 sps:$4 sm:$0xff]  }
 0x3d4   :  { %6337 = vmatprep.mubr.msk.bf16.mxu1 %vm6940_vm0, %v9010_v3  ;;  %2955 = vmatprep.subr.bf16.mxu0 %v6707_v12 }
 0x3f7   :  { %v7894_v63 = vpop.f32.mrf.mxu1 }
 0x3f9   :  { %v6195_v31 = vpop.f32.mrf.mxu1 }
 0x3fa   :  { %v6705_v31 = vld [vmem:[%s8976_s4 + $0x10] ss:$8 sps:$4 sm:$0xff]  }
 0x3fb   :  { %v1635_v60 = vpop.f32.mrf.mxu1  ;;  %v1724_v44 = vpop.f32.mrf.mxu0  ;;  %2956 = vmatpush1.bf16.msra.mxu0 %v6705_v31 }
 0x3fc   :  { %2726 = vrot.lane.b32.xlu0 %v1724_v44, %s6950_s22 }
 0x3fd   :  { %v6196_v8 = vpop.f32.mrf.mxu1  ;;  %v6207_v18 = vpop.f32.mrf.mxu0 }
 0x3fe   :  { %v6710_v8 = vld [vmem:[%s8976_s4 + $0x4] ss:$8 sps:$4 sm:$0xff]   ;;  %v6708_v18 = vld [vmem:[%s8976_s4] ss:$8 sps:$4 sm:$0xff]  }
 0x3ff   :  { %v1678_v30 = vpop.f32.mrf.mxu1  ;;  %v1727_v9 = vpop.f32.mrf.mxu0  ;;  %2957 = vmatprep.subr.bf16.mxu0 %v6710_v8 }
 0x400   :  { %2702 = vrot.lane.b32.xlu0 %v1678_v30, %s6951_s23  ;;  %2958 = vmatpush1.bf16.msra.mxu0 %v6708_v18 }
 0x401   :  { %v6201_v34 = vpop.f32.mrf.mxu1  ;;  %v6208_v14 = vpop.f32.mrf.mxu0  ;;  %6371 = vmatprep.subr.bf16.mxu0 %v9010_v3 }
 0x403   :  { %v1681_v22 = vpop.f32.mrf.mxu1  ;;  %v7900_v33 = vpop.f32.mrf.mxu0 }
 0x405   :  { %v6202_v45 = vpop.f32.mrf.mxu1  ;;  %v6219_v58 = vpop.f32.mrf.mxu0 }
 0x407   :  { %v1770_v20 = vpop.f32.mrf.mxu1  ;;  %v1819_v39 = vpop.f32.mrf.mxu0 }
 0x408   :  { %2750 = vrot.lane.b32.xlu0 %v1770_v20, %s6949_s0 }
 0x409   :  { %v6213_v29 = vpop.f32.mrf.mxu1  ;;  %v6220_v50 = vpop.f32.mrf.mxu0 }
 0x40b   :  { %v1773_v43 = vpop.f32.mrf.mxu1  ;;  %v1908_v11 = vpop.f32.mrf.mxu0 }
 0x40c   :  { %2728 = vrot.lane.b32.xlu1 %v1908_v11, %s6950_s22 }
 0x40d   :  { %v6214_v19 = vpop.f32.mrf.mxu1  ;;  %v6231_v2 = vpop.f32.mrf.mxu0 }
 0x40f   :  { %v1862_v27 = vpop.f32.mrf.mxu1  ;;  %v1911_v24 = vpop.f32.mrf.mxu0 }
 0x410   :  { %2704 = vrot.lane.b32.xlu1 %v1862_v27, %s6951_s23 }
 0x411   :  { %v6225_v53 = vpop.f32.mrf.mxu1  ;;  %v6232_v48 = vpop.f32.mrf.mxu0 }
 0x413   :  { %v1865_v25 = vpop.f32.mrf.mxu1 }
 0x415   :  { %v6226_v49 = vpop.f32.mrf.mxu1 }
 0x417   :  { %v1954_v32 = vpop.f32.mrf.mxu1 }
 0x418   :  { %2752 = vrot.lane.b32.xlu1 %v1954_v32, %s6949_s0 }
 0x419   :  { %v6237_v55 = vpop.f32.mrf.mxu1 }
 0x41b   :  { %v1957_v57 = vpop.f32.mrf.mxu1 }
 0x41d   :  { %v6238_v41 = vpop.f32.mrf.mxu1 }
 0x41f   :  { %v2046_v47 = vpop.f32.mrf.mxu1 }
 0x421   :  { %v6249_v60 = vpop.f32.mrf.mxu1 }
 0x423   :  { %v2049_v44 = vpop.f32.mrf.mxu1 }
 0x425   :  { %v6250_v30 = vpop.f32.mrf.mxu1 }
 0x438   :  { %v7955_v9 = vpop.f32.mrf.mxu0 }
 0x43a   :  { %v6243_v34 = vpop.f32.mrf.mxu0 }
 0x43c   :  { %v2003_v14 = vpop.f32.mrf.mxu0 }
 0x43e   :  { %v6244_v22 = vpop.f32.mrf.mxu0 }
 0x440   :  { %v2092_v45 = vpop.f32.mrf.mxu0  ;;  %v2138_v58 = vpop.f32.mrf.mxu1 }
 0x441   :  { %2730 = vrot.lane.b32.xlu0 %v2092_v45, %s6950_s22 }
 0x442   :  { %v6255_v20 = vpop.f32.mrf.mxu0  ;;  %v6261_v39 = vpop.f32.mrf.mxu1 }
 0x444   :  { %v2095_v40 = vpop.f32.mrf.mxu0  ;;  %v2141_v23 = vpop.f32.mrf.mxu1 }
 0x445   :  { %2706 = vrot.lane.b32.xlu0 %v2046_v47, %s6951_s23 }
 0x446   :  { %v6256_v29 = vpop.f32.mrf.mxu0  ;;  %v6262_v50 = vpop.f32.mrf.mxu1 }
 0x448   :  { %v7959_v43 = vpop.f32.mrf.mxu0  ;;  %v2230_v11 = vpop.f32.mrf.mxu1 }
 0x449   :  { %2754 = vrot.lane.b32.xlu0 %v2138_v58, %s6949_s0 }
 0x44a   :  { %v6267_v13 = vpop.f32.mrf.mxu0  ;;  %v6273_v21 = vpop.f32.mrf.mxu1 }
 0x44b   :  { %v7980_v13 = vld [vmem:[%s8977_s3] ss:$0 sm:$0xff] }
 0x44c   :  { %v2187_v19 = vpop.f32.mrf.mxu0  ;;  %v2233_v2 = vpop.f32.mrf.mxu1 }
 0x44e   :  { %v6268_v27 = vpop.f32.mrf.mxu0  ;;  %v6274_v24 = vpop.f32.mrf.mxu1 }
 0x450   :  { %v2276_v16 = vpop.f32.mrf.mxu0  ;;  %v2322_v10 = vpop.f32.mrf.mxu1 }
 0x451   :  { %2732 = vrot.lane.b32.xlu1 %v2276_v16, %s6950_s22 }
 0x452   :  { %v6279_v53 = vpop.f32.mrf.mxu0  ;;  %v6285_v48 = vpop.f32.mrf.mxu1 }
 0x454   :  { %v2279_v25 = vpop.f32.mrf.mxu0  ;;  %v2325_v17 = vpop.f32.mrf.mxu1 }
 0x455   :  { %2708 = vrot.lane.b32.xlu1 %v2230_v11, %s6951_s23 }
 0x456   :  { %v6280_v35 = vpop.f32.mrf.mxu0  ;;  %v6286_v49 = vpop.f32.mrf.mxu1 }
 0x458   :  { %v7964_v32 = vpop.f32.mrf.mxu0  ;;  %v2414_v36 = vpop.f32.mrf.mxu1 }
 0x459   :  { %2756 = vrot.lane.b32.xlu1 %v2322_v10, %s6949_s0 }
 0x45a   :  { %v6291_v6 = vpop.f32.mrf.mxu0  ;;  %v6297_v55 = vpop.f32.mrf.mxu1 }
 0x45c   :  { %v2371_v57 = vpop.f32.mrf.mxu0  ;;  %v2417_v5 = vpop.f32.mrf.mxu1 }
 0x45e   :  { %v6292_v0 = vpop.f32.mrf.mxu0  ;;  %v6298_v41 = vpop.f32.mrf.mxu1 }
 0x460   :  { %v2460_v47 = vpop.f32.mrf.mxu0 }
 0x461   :  { %2734 = vrot.lane.b32.xlu0 %v2460_v47, %s6950_s22 }
 0x462   :  { %v6303_v12 = vpop.f32.mrf.mxu0 }
 0x464   :  { %v2463_v31 = vpop.f32.mrf.mxu0 }
 0x465   :  { %2710 = vrot.lane.b32.xlu0 %v2414_v36, %s6951_s23 }
 0x466   :  { %v6304_v60 = vpop.f32.mrf.mxu0 }
 0x468   :  { %v7969_v44 = vpop.f32.mrf.mxu0 }
 0x46a   :  { %v6315_v8 = vpop.f32.mrf.mxu0 }
 0x46c   :  { %v2555_v18 = vpop.f32.mrf.mxu0 }
 0x46e   :  { %v6316_v30 = vpop.f32.mrf.mxu0  ;;  %v2727_v34 = vpop.permute.xlu0 %2726 }
 0x470   :  { %v2644_v14 = vpop.f32.mrf.mxu0 }
 0x471   :  { %2736 = vrot.lane.b32.xlu1 %v2644_v14, %s6950_s22 }
 0x472   :  { %v6327_v22 = vpop.f32.mrf.mxu0  ;;  %v2703_v58 = vpop.permute.xlu0 %2702 }
 0x473   :  { %v2769_v39 = vsel %vm2768_vm11, %v7894_v63, %v2703_v58 }
 0x474   :  { %v2647_v45 = vpop.f32.mrf.mxu0  ;;  %v2776_v23 = vsel %vm2775_vm12, %v2769_v39, %v2727_v34 }
 0x476   :  { %v6328_v20 = vpop.f32.mrf.mxu0 }
 0x47a   :  { %v2751_v40 = vpop.permute.xlu0 %2750 }
 0x47b   :  { %v2783_v29 = vsel %vm2782_vm13, %v2776_v23, %v2751_v40 }
 0x47c   :  { %v2789_v11 = vadd.f32 %v2783_v29, %v7071_v37 }
 0x47e   :  { %v2729_v50 = vpop.permute.xlu1 %2728  ;;  %v2801_v19 = vadd.f32 %v7980_v13, %v2789_v11 }
 0x480   :  { %v2813_v16 = vmin.f32 %v2801_v19, 0.0  ;;  %vm2807_vm14 = vcmp.gt.f32.partialorder %v2801_v19, 0.0 }
 0x482   :  { %v2705_v2 = vpop.permute.xlu1 %2704  ;;  %v2819_v17 = vmul.f32 1.442695, %v2813_v16 }
 0x483   :  { %v2506_v21 = vpop.f32.mrf.mxu1  ;;  %v2770_v27 = vsel %vm2768_vm11, %v7900_v33, %v2705_v2 }
 0x484   :  { %2758 = vrot.lane.b32.xlu0 %v2506_v21, %s6949_s0  ;;  %v2777_v37 = vsel %vm2775_vm12, %v2770_v27, %v2729_v50  ;;  %6807 = vpow2.f32 %v2819_v17 }
 0x485   :  { %v6309_v63 = vpop.f32.mrf.mxu1 }
 0x487   :  { %v2509_v24 = vpop.f32.mrf.mxu1 }
 0x489   :  { %v6310_v10 = vpop.f32.mrf.mxu1 }
 0x48a   :  { %v2753_v53 = vpop.permute.xlu1 %2752 }
 0x48b   :  { %v2784_v48 = vsel %vm2782_vm13, %v2777_v37, %v2753_v53  ;;  %v2598_v25 = vpop.f32.mrf.mxu1 }
 0x48c   :  { %v2790_v35 = vadd.f32 %v2784_v48, %v7229_v61  ;;  %2712 = vrot.lane.b32.xlu1 %v2598_v25, %s6951_s23 }
 0x48d   :  { %v6321_v49 = vpop.f32.mrf.mxu1 }
 0x48e   :  { %v2802_v36 = vadd.f32 %v7980_v13, %v2790_v35 }
 0x48f   :  { %v2601_v6 = vpop.f32.mrf.mxu1 }
 0x490   :  { %v2814_v33 = vmin.f32 %v2802_v36, 0.0  ;;  %vm2808_vm15 = vcmp.gt.f32.partialorder %v2802_v36, 0.0 }
 0x491   :  { %v6322_v55 = vpop.f32.mrf.mxu1  ;;  %v6808_v12 = vpop.eup %6807 }
 0x492   :  { %v2821_v57 = vmul.f32 1.442695, %v2814_v33  ;;  %v5999_v31 = vadd.f32 -1.0, %v6808_v12 }
 0x493   :  { %v2690_v5 = vpop.f32.mrf.mxu1 }
 0x494   :  { %6809 = vpow2.f32 %v2821_v57  ;;  %2760 = vrot.lane.b32.xlu1 %v2690_v5, %s6949_s0  ;;  %v7992_v8 = vsel %vm2807_vm14, %v2801_v19, %v5999_v31 }
 0x495   :  { %v6333_v0 = vpop.f32.mrf.mxu1 }
 0x497   :  { %v2693_v41 = vpop.f32.mrf.mxu1 }
 0x499   :  { %v6334_v47 = vpop.f32.mrf.mxu1 }
 0x4a1   :  { %v6810_v61 = vpop.eup %6809 }
 0x4a2   :  { %v6000_v60 = vadd.f32 -1.0, %v6810_v61 }
 0x4a4   :  { %v7994_v18 = vsel %vm2808_vm15, %v2802_v36, %v6000_v60 }
 0x4a5   :  { %v2860_v30 = vpack.c.bf16 %v7994_v18, %v7992_v8 }
 0x4a7   :  { %2976 = vmatmul.mubr.bf16.vlgmr.msra.gmra.mxu0 %v2860_v30 }
 0x4a8   :  { %2985 = vmatprep.mubr.bf16.mxu0 %v9011_v4 }
 0x4b3   :  { %v2731_v34 = vpop.permute.xlu0 %2730 }
 0x4b7   :  { %v2707_v14 = vpop.permute.xlu0 %2706 }
 0x4b8   :  { %v2771_v22 = vsel %vm2768_vm11, %v7955_v9, %v2707_v14 }
 0x4b9   :  { %v2778_v58 = vsel %vm2775_vm12, %v2771_v22, %v2731_v34 }
 0x4bb   :  { %v2755_v45 = vpop.permute.xlu0 %2754 }
 0x4bc   :  { %v2785_v20 = vsel %vm2782_vm13, %v2778_v58, %v2755_v45 }
 0x4bd   :  { %v2791_v39 = vadd.f32 %v2785_v20, %v7237_v7 }
 0x4bf   :  { %v2803_v23 = vadd.f32 %v7980_v13, %v2791_v39 }
 0x4c1   :  { %v2815_v11 = vmin.f32 %v2803_v23, 0.0  ;;  %vm2809_vm1 = vcmp.gt.f32.partialorder %v2803_v23, 0.0 }
 0x4c3   :  { %v2733_v40 = vpop.permute.xlu1 %2732  ;;  %v2823_v2 = vmul.f32 1.442695, %v2815_v11 }
 0x4c5   :  { %6811 = vpow2.f32 %v2823_v2  ;;  %v9017_v2 = vmov 4  }
 0x4c7   :  { %v2709_v29 = vpop.permute.xlu1 %2708 }
 0x4c8   :  { %v2772_v50 = vsel %vm2768_vm11, %v7959_v43, %v2709_v29  ;;  %v9013_v29 = vmov 7  }
 0x4c9   :  { %v2779_v21 = vsel %vm2775_vm12, %v2772_v50, %v2733_v40  ;;  %v9014_v50 = vmov 1  }
 0x4cb   :  { %v2757_v19 = vpop.permute.xlu1 %2756 }
 0x4cc   :  { %v2786_v9 = vsel %vm2782_vm13, %v2779_v21, %v2757_v19  ;;  %v9015_v21 = vmov 3   ;;  %v9016_v19 = vmov 2  }
 0x4cd   :  { %v2792_v63 = vadd.f32 %v2786_v9, %v7703_v42 }
 0x4cf   :  { %v2804_v27 = vadd.f32 %v7980_v13, %v2792_v63 }
 0x4d1   :  { %v2816_v7 = vmin.f32 %v2804_v27, 0.0  ;;  %vm2810_vm6 = vcmp.gt.f32.partialorder %v2804_v27, 0.0 }
 0x4d2   :  { %v6812_v16 = vpop.eup %6811 }
 0x4d3   :  { %v2825_v24 = vmul.f32 1.442695, %v2816_v7  ;;  %v6001_v10 = vadd.f32 -1.0, %v6812_v16  ;;  %v2735_v42 = vpop.permute.xlu0 %2734 }
 0x4d5   :  { %6813 = vpow2.f32 %v2825_v24  ;;  %v8011_v43 = vsel %vm2809_vm1, %v2803_v23, %v6001_v10  ;;  %v9012_v23 = vmov 6  }
 0x4d7   :  { %v2711_v17 = vpop.permute.xlu0 %2710 }
 0x4d8   :  { %v2773_v35 = vsel %vm2768_vm11, %v7964_v32, %v2711_v17 }
 0x4d9   :  { %v2780_v36 = vsel %vm2775_vm12, %v2773_v35, %v2735_v42 }
 0x4e2   :  { %v6814_v37 = vpop.eup %6813 }
 0x4e3   :  { %v6002_v53 = vadd.f32 -1.0, %v6814_v37  ;;  %v2737_v33 = vpop.permute.xlu1 %2736 }
 0x4e5   :  { %v8013_v48 = vsel %vm2810_vm6, %v2804_v27, %v6002_v53  ;;  %v9018_v27 = vmov 5  }
 0x4e6   :  { %v2861_v25 = vpack.c.bf16 %v8013_v48, %v8011_v43 }
 0x4e8   :  { %2986 = vmatmul.mubr.bf16.gmra.mxu0 %v2861_v25 }
 0x4e9   :  { %2995 = vmatprep.mubr.bf16.mxu0 %v9011_v4 }
 0x4f6   :  { %v2759_v49 = vpop.permute.xlu0 %2758 }
 0x4f7   :  { %v2787_v6 = vsel %vm2782_vm13, %v2780_v36, %v2759_v49 }
 0x4f8   :  { %v2793_v55 = vadd.f32 %v2787_v6, %v7707_v38 }
 0x4fa   :  { %v2805_v57 = vadd.f32 %v7980_v13, %v2793_v55 }
 0x4fc   :  { %v2817_v41 = vmin.f32 %v2805_v57, 0.0  ;;  %vm2811_vm7 = vcmp.gt.f32.partialorder %v2805_v57, 0.0 }
 0x4fe   :  { %v2713_v5 = vpop.permute.xlu1 %2712  ;;  %v2827_v31 = vmul.f32 1.442695, %v2817_v41 }
 0x4ff   :  { %v2774_v0 = vsel %vm2768_vm11, %v7969_v44, %v2713_v5 }
 0x500   :  { %v2781_v47 = vsel %vm2775_vm12, %v2774_v0, %v2737_v33  ;;  %6815 = vpow2.f32 %v2827_v31 }
 0x506   :  { %v2761_v12 = vpop.permute.xlu1 %2760 }
 0x507   :  { %v2788_v32 = vsel %vm2782_vm13, %v2781_v47, %v2761_v12 }
 0x508   :  { %v2794_v61 = vadd.f32 %v2788_v32, %v7896_v51 }
 0x50a   :  { %v2806_v60 = vadd.f32 %v7980_v13, %v2794_v61 }
 0x50c   :  { %v2818_v30 = vmin.f32 %v2806_v60, 0.0  ;;  %vm2812_vm8 = vcmp.gt.f32.partialorder %v2806_v60, 0.0 }
 0x50d   :  { %v6816_v34 = vpop.eup %6815 }
 0x50e   :  { %v2829_v38 = vmul.f32 1.442695, %v2818_v30  ;;  %v6003_v14 = vadd.f32 -1.0, %v6816_v34 }
 0x510   :  { %6817 = vpow2.f32 %v2829_v38  ;;  %v8030_v44 = vsel %vm2811_vm7, %v2805_v57, %v6003_v14 }
 0x51d   :  { %v6818_v22 = vpop.eup %6817 }
 0x51e   :  { %v6004_v45 = vadd.f32 -1.0, %v6818_v22 }
 0x520   :  { %v8032_v58 = vsel %vm2812_vm8, %v2806_v60, %v6004_v45 }
 0x521   :  { %v2862_v20 = vpack.c.bf16 %v8032_v58, %v8030_v44 }
 0x523   :  { %2996 = vmatmul.mubr.bf16.gmra.mxu0 %v2862_v20 }
 0x524   :  { %6373 = vmatprep.mubr.msk.bf16.mxu0 %vm6940_vm0, %v9010_v3 }
 0x567   :  { %v2977_v51 = vpop.f32.mrf.mxu0 }
 0x568   :  { %v4362_v13 = vpack.c.bf16 %v2977_v51, %v2977_v51 }
 0x569   :  { %v2979_v39 = vpop.f32.mrf.mxu0 }
 0x56a   :  { %3271 = vperm.xlu1 %6604, %v2979_v39   ;;  %3223 = vperm.xlu0 %6603, %v2979_v39   ;;  %v4390_v40 = vsel %vm1594_vm2, %v4362_v13, 0 }
 0x56b   :  { %6336 = vmatpush3.bf16.msra.mxu1 %v4390_v40  ;;  %v8044_v11 = vpop.f32.mrf.mxu0 }
 0x56c   :  { %6341 = vmatprep.subr.bf16.mxu1 %v9010_v3  ;;  %v6616_v9 = vpack.i.bf16 %v8044_v11, %v2977_v51 }
 0x56d   :  { %v2983_v63 = vpop.f32.mrf.mxu0 }
 0x56e   :  { %6605 = vset.pattern.permute.xlu1 %v9012_v23  ;;  %6606 = vset.pattern.permute.xlu0 %v9013_v29 }
 0x56f   :  { %3319 = vperm.xlu1 %6605, %v2979_v39   ;;  %3367 = vperm.xlu0 %6606, %v2979_v39  }
 0x573   :  { %6607 = vset.pattern.permute.xlu1 %v9011_v4  ;;  %6608 = vset.pattern.permute.xlu0 %v9014_v50 }
 0x574   :  { %3013 = vperm.xlu1 %6607, %v2979_v39   ;;  %3061 = vperm.xlu0 %6608, %v2979_v39  }
 0x578   :  { %6610 = vset.pattern.permute.xlu1 %v9015_v21  ;;  %6609 = vset.pattern.permute.xlu0 %v9016_v19 }
 0x579   :  { %3157 = vperm.xlu1 %6610, %v2979_v39   ;;  %3109 = vperm.xlu0 %6609, %v2979_v39  }
 0x57d   :  { %6617 = vrot.lane.b32.xlu1 %v6616_v9, %s6950_s22  ;;  %6612 = vrot.lane.b32.xlu0 %v6616_v9, %s6949_s0 }
 0x57e   :  { %6626 = vset.pattern.permute.xlu1 %v9017_v2  ;;  %6628 = vset.pattern.permute.xlu0 %v9012_v23 }
 0x581   :  { %6622 = vrot.lane.b32.xlu0 %v6616_v9, %s6951_s23  ;;  %3226 = vperm.xlu1 %6626, %v2983_v63  }
 0x585   :  { %3322 = vperm.xlu0 %6628, %v2983_v63   ;;  %6627 = vset.pattern.permute.xlu1 %v9018_v27 }
 0x586   :  { %3274 = vperm.xlu1 %6627, %v2983_v63  }
 0x589   :  { %6630 = vset.pattern.permute.xlu0 %v9011_v4 }
 0x58a   :  { %3016 = vperm.xlu0 %6630, %v2983_v63   ;;  %6629 = vset.pattern.permute.xlu1 %v9013_v29 }
 0x58b   :  { %3370 = vperm.xlu1 %6629, %v2983_v63  }
 0x58e   :  { %6637 = vset.pattern.permute.xlu0 %v9013_v29 }
 0x58f   :  { %6631 = vset.pattern.permute.xlu1 %v9014_v50 }
 0x590   :  { %3064 = vperm.xlu1 %6631, %v2983_v63  }
 0x594   :  { %6632 = vset.pattern.permute.xlu1 %v9016_v19 }
 0x595   :  { %3112 = vperm.xlu1 %6632, %v2983_v63  }
 0x599   :  { %6633 = vset.pattern.permute.xlu1 %v9015_v21 }
 0x59a   :  { %3160 = vperm.xlu1 %6633, %v2983_v63  }
 0x59e   :  { %6634 = vset.pattern.permute.xlu1 %v9017_v2 }
 0x5a8   :  { %v8062_v7 = vpop.f32.mrf.mxu0 }
 0x5aa   :  { %v2989_v24 = vpop.f32.mrf.mxu0 }
 0x5ab   :  { %3373 = vperm.xlu0 %6637, %v2989_v24   ;;  %3229 = vperm.xlu1 %6634, %v2989_v24  }
 0x5ac   :  { %v8064_v16 = vpop.f32.mrf.mxu0 }
 0x5ad   :  { %9019 = vst [vmem:[#allocation6_spill] sm:$0xff] %v8064_v16  ;;  %v8068_v10 = vpack.i.bf16 %v8064_v16, %v8062_v7 }
 0x5ae   :  { %v2993_v37 = vpop.f32.mrf.mxu0 }
 0x5af   :  { %6640 = vset.pattern.permute.xlu0 %v9016_v19  ;;  %6635 = vset.pattern.permute.xlu1 %v9018_v27 }
 0x5b0   :  { %3115 = vperm.xlu0 %6640, %v2989_v24   ;;  %3277 = vperm.xlu1 %6635, %v2989_v24  }
 0x5b4   :  { %6645 = vset.pattern.permute.xlu0 %v9013_v29  ;;  %6636 = vset.pattern.permute.xlu1 %v9012_v23 }
 0x5b5   :  { %3325 = vperm.xlu1 %6636, %v2989_v24   ;;  %3376 = vperm.xlu0 %6645, %v2993_v37  }
 0x5b9   :  { %6638 = vset.pattern.permute.xlu1 %v9011_v4  ;;  %6646 = vset.pattern.permute.xlu0 %v9011_v4 }
 0x5ba   :  { %3019 = vperm.xlu1 %6638, %v2989_v24   ;;  %3022 = vperm.xlu0 %6646, %v2993_v37  }
 0x5be   :  { %6639 = vset.pattern.permute.xlu1 %v9014_v50  ;;  %6648 = vset.pattern.permute.xlu0 %v9016_v19 }
 0x5bf   :  { %3067 = vperm.xlu1 %6639, %v2989_v24   ;;  %3118 = vperm.xlu0 %6648, %v2993_v37  }
 0x5c3   :  { %6641 = vset.pattern.permute.xlu1 %v9015_v21  ;;  %6651 = vset.pattern.permute.xlu0 %v9018_v27 }
 0x5c4   :  { %3163 = vperm.xlu1 %6641, %v2989_v24  }
 0x5c8   :  { %6642 = vset.pattern.permute.xlu1 %v9017_v2 }
 0x5c9   :  { %3232 = vperm.xlu1 %6642, %v2993_v37  }
 0x5cd   :  { %6643 = vset.pattern.permute.xlu1 %v9018_v27 }
 0x5ce   :  { %3280 = vperm.xlu1 %6643, %v2993_v37  }
 0x5d2   :  { %6644 = vset.pattern.permute.xlu1 %v9012_v23 }
 0x5d3   :  { %3328 = vperm.xlu1 %6644, %v2993_v37  }
 0x5d7   :  { %6647 = vset.pattern.permute.xlu1 %v9014_v50 }
 0x5d8   :  { %3070 = vperm.xlu1 %6647, %v2993_v37  }
 0x5dc   :  { %6649 = vset.pattern.permute.xlu1 %v9015_v21 }
 0x5dd   :  { %3166 = vperm.xlu1 %6649, %v2993_v37  }
 0x5e1   :  { %6650 = vset.pattern.permute.xlu1 %v9017_v2 }
 0x5e3   :  { %v8086_v53 = vpop.f32.mrf.mxu0 }
 0x5e5   :  { %v3272_v25 = vpop.permute.xlu1 %3271  ;;  %v3224_v42 = vpop.permute.xlu0 %3223 }
 0x5e6   :  { %v2999_v17 = vpop.f32.mrf.mxu0  ;;  %v3291_v57 = vrot.slane %v3272_v25, %v7142_v46  ;;  %v3243_v5 = vrot.slane %v3224_v42, %v7142_v46 }
 0x5e7   :  { %3283 = vperm.xlu0 %6651, %v2999_v17   ;;  %3235 = vperm.xlu1 %6650, %v2999_v17  }
 0x5e8   :  { %v8090_v36 = vpop.f32.mrf.mxu0  ;;  %v3414_v12 = vsel %vm404_vm3, %v3243_v5, %v3291_v57 }
 0x5ea   :  { %v3320_v35 = vpop.permute.xlu1 %3319  ;;  %v3368_v49 = vpop.permute.xlu0 %3367 }
 0x5eb   :  { %6652 = vset.pattern.permute.xlu0 %v9012_v23  ;;  %6653 = vset.pattern.permute.xlu1 %v9013_v29  ;;  %v3003_v55 = vpop.f32.mrf.mxu0  ;;  %v3339_v0 = vrot.slane %v3320_v35, %v7142_v46  ;;  %v3387_v32 = vrot.slane %v3368_v49, %v7142_v46 }
 0x5ec   :  { %3331 = vperm.xlu0 %6652, %v2999_v17   ;;  %3379 = vperm.xlu1 %6653, %v2999_v17  }
 0x5ed   :  { %v3420_v31 = vsel %vm411_vm4, %v3414_v12, %v3339_v0 }
 0x5ee   :  { %v3426_v38 = vsel %vm418_vm5, %v3420_v31, %v3387_v32 }
 0x5ef   :  { %v8092_v6 = vpop.permute.xlu1 %3013  ;;  %v8094_v33 = vpop.permute.xlu0 %3061  ;;  %v3435_v20 = vrot.slane %v3426_v38, %v7150_v52  ;;  %v3459_v39 = vrot.slane %v3426_v38, %v7189_v15  ;;  %v3443_v42 = vrot.slane %v3426_v38, %v7162_v59 }
 0x5f0   :  { %6659 = vset.pattern.permute.xlu0 %v9018_v27  ;;  %6654 = vset.pattern.permute.xlu1 %v9011_v4 }
 0x5f1   :  { %3025 = vperm.xlu1 %6654, %v2999_v17   ;;  %3286 = vperm.xlu0 %6659, %v3003_v55  }
 0x5f4   :  { %v8101_v41 = vpop.permute.xlu1 %3157  ;;  %v8103_v47 = vpop.permute.xlu0 %3109 }
 0x5f5   :  { %6655 = vset.pattern.permute.xlu1 %v9014_v50  ;;  %6661 = vset.pattern.permute.xlu0 %v9013_v29 }
 0x5f6   :  { %3073 = vperm.xlu1 %6655, %v2999_v17   ;;  %3382 = vperm.xlu0 %6661, %v3003_v55  }
 0x5f8   :  { %v8110_v61 = vpop.permute.xlu1 %6617  ;;  %v8112_v60 = vpop.permute.xlu0 %6612 }
 0x5f9   :  { %v6620_v30 = vunpack.i.h.bf16 %v8110_v61 }
 0x5fa   :  { %6656 = vset.pattern.permute.xlu1 %v9016_v19  ;;  %6665 = vset.pattern.permute.xlu0 %v9015_v21 }
 0x5fb   :  { %v4368_v34 = vpack.c.bf16 %v6620_v30, %v6620_v30  ;;  %3121 = vperm.xlu1 %6656, %v2999_v17   ;;  %3172 = vperm.xlu0 %6665, %v3003_v55  }
 0x5fc   :  { %v3227_v14 = vpop.permute.xlu1 %3226  ;;  %v8118_v22 = vpop.permute.xlu0 %6622 }
 0x5fd   :  { %v4666_v45 = vsel %vm1594_vm2, %v4368_v34, 0  ;;  %v3247_v40 = vrot.slane %v3227_v14, %v7142_v46 }
 0x5fe   :  { %6372 = vmatpush3.bf16.msra.mxu0 %v4666_v45 }
 0x5ff   :  { %6657 = vset.pattern.permute.xlu1 %v9015_v21  ;;  %6383 = vmatprep.subr.bf16.mxu0 %v9010_v3 }
 0x600   :  { %3438 = vbcast.lane.b32.xlu0 %v3435_v20, 260  ;;  %3169 = vperm.xlu1 %6657, %v2999_v17   ;;  %v3323_v29 = vpop.permute.xlu0 %3322 }
 0x601   :  { %v3275_v51 = vpop.permute.xlu1 %3274  ;;  %6681 = vset.pattern.permute.xlu0 %v9011_v4  ;;  %v3343_v21 = vrot.slane %v3323_v29, %v7142_v46 }
 0x602   :  { %v3295_v13 = vrot.slane %v3275_v51, %v7142_v46 }
 0x604   :  { %3462 = vbcast.lane.b32.xlu0 %v3459_v39, 260  ;;  %6658 = vset.pattern.permute.xlu1 %v9017_v2  ;;  %v3415_v9 = vsel %vm404_vm3, %v3247_v40, %v3295_v13 }
 0x605   :  { %3238 = vperm.xlu1 %6658, %v3003_v55   ;;  %v3421_v24 = vsel %vm411_vm4, %v3415_v9, %v3343_v21 }
 0x606   :  { %v3371_v63 = vpop.permute.xlu1 %3370 }
 0x607   :  { %v3391_v27 = vrot.slane %v3371_v63, %v7142_v46 }
 0x609   :  { %v3427_v37 = vsel %vm418_vm5, %v3421_v24, %v3391_v27  ;;  %6660 = vset.pattern.permute.xlu1 %v9012_v23  ;;  %v3451_v23 = vrot.slane %v3426_v38, %v7170_v62 }
 0x60a   :  { %3334 = vperm.xlu1 %6660, %v3003_v55   ;;  %v3483_v25 = vrot.slane %v3427_v37, %v7170_v62  ;;  %v3475_v57 = vrot.slane %v3427_v37, %v7162_v59 }
 0x60b   :  { %v8138_v2 = vpop.permute.xlu1 %3064 }
 0x60c   :  { %3486 = vbcast.lane.b32.xlu0 %v3483_v25, 260 }
 0x60e   :  { %6662 = vset.pattern.permute.xlu1 %v9011_v4 }
 0x60f   :  { %3028 = vperm.xlu1 %6662, %v3003_v55  }
 0x610   :  { %v8142_v17 = vpop.permute.xlu1 %3112 }
 0x613   :  { %6663 = vset.pattern.permute.xlu1 %v9014_v50  ;;  %v3467_v50 = vrot.slane %v3427_v37, %v7150_v52 }
 0x614   :  { %3076 = vperm.xlu1 %6663, %v3003_v55  }
 0x615   :  { %v8146_v35 = vpop.permute.xlu1 %3160 }
 0x618   :  { %6664 = vset.pattern.permute.xlu1 %v9016_v19  ;;  %v3491_v19 = vrot.slane %v3427_v37, %v7189_v15 }
 0x619   :  { %3124 = vperm.xlu1 %6664, %v3003_v55   ;;  %v8151_v55 = vpop.permute.xlu0 %3016 }
 0x61d   :  { %3446 = vbcast.lane.b32.xlu1 %v3443_v42, 260 }
 0x61e   :  { %6682 = vset.pattern.permute.xlu1 %v9011_v4 }
 0x621   :  { %3454 = vbcast.lane.b32.xlu1 %v3451_v23, 260 }
 0x625   :  { %3470 = vbcast.lane.b32.xlu1 %v3467_v50, 260 }
 0x626   :  { %v3230_v49 = vpop.permute.xlu1 %3229  ;;  %v3374_v0 = vpop.permute.xlu0 %3373 }
 0x627   :  { %v3251_v12 = vrot.slane %v3230_v49, %v7142_v46  ;;  %v3395_v30 = vrot.slane %v3374_v0, %v7142_v46 }
 0x629   :  { %3478 = vbcast.lane.b32.xlu1 %v3475_v57, 260 }
 0x62b   :  { %v3278_v5 = vpop.permute.xlu1 %3277  ;;  %v8170_v21 = vpop.permute.xlu0 %3115 }
 0x62c   :  { %v3299_v4 = vrot.slane %v3278_v5, %v7142_v46 }
 0x62d   :  { %3494 = vbcast.lane.b32.xlu1 %v3491_v19, 260 }
 0x62e   :  { %v3416_v38 = vsel %vm404_vm3, %v3251_v12, %v3299_v4 }
 0x630   :  { %v3326_v32 = vpop.permute.xlu1 %3325  ;;  %v3377_v24 = vpop.permute.xlu0 %3376 }
 0x631   :  { %v3347_v31 = vrot.slane %v3326_v32, %v7142_v46  ;;  %v3399_v23 = vrot.slane %v3377_v24, %v7142_v46 }
 0x633   :  { %v3422_v34 = vsel %vm411_vm4, %v3416_v38, %v3347_v31 }
 0x634   :  { %v3428_v14 = vsel %vm418_vm5, %v3422_v34, %v3395_v30 }
 0x635   :  { %v8160_v45 = vpop.permute.xlu1 %3019  ;;  %v3515_v20 = vrot.slane %v3428_v14, %v7170_v62  ;;  %v3499_v51 = vrot.slane %v3428_v14, %v7150_v52  ;;  %v3507_v13 = vrot.slane %v3428_v14, %v7162_v59  ;;  %v3523_v40 = vrot.slane %v3428_v14, %v7189_v15  ;;  %v8181_v4 = vpop.permute.xlu0 %3022 }
 0x637   :  { %3518 = vbcast.lane.b32.xlu0 %v3515_v20, 260  ;;  %3502 = vbcast.lane.b32.xlu1 %v3499_v51, 260 }
 0x63a   :  { %v8165_v39 = vpop.permute.xlu1 %3067  ;;  %v8187_v31 = vpop.permute.xlu0 %3118 }
 0x63b   :  { %3510 = vbcast.lane.b32.xlu1 %v3507_v13, 260 }
 0x63f   :  { %v8168_v29 = vpop.permute.xlu1 %3163  ;;  %3526 = vbcast.lane.b32.xlu1 %v3523_v40, 260 }
 0x644   :  { %v3233_v9 = vpop.permute.xlu1 %3232 }
 0x645   :  { %v3255_v37 = vrot.slane %v3233_v9, %v7142_v46 }
 0x649   :  { %v3281_v63 = vpop.permute.xlu1 %3280 }
 0x64a   :  { %v3303_v27 = vrot.slane %v3281_v63, %v7142_v46 }
 0x64c   :  { %v3417_v50 = vsel %vm404_vm3, %v3255_v37, %v3303_v27 }
 0x64e   :  { %v3329_v25 = vpop.permute.xlu1 %3328 }
 0x64f   :  { %v3351_v42 = vrot.slane %v3329_v25, %v7142_v46 }
 0x651   :  { %v3423_v49 = vsel %vm411_vm4, %v3417_v50, %v3351_v42 }
 0x652   :  { %v3429_v57 = vsel %vm418_vm5, %v3423_v49, %v3399_v23 }
 0x653   :  { %v3547_v19 = vrot.slane %v3429_v57, %v7170_v62  ;;  %v3531_v5 = vrot.slane %v3429_v57, %v7150_v52  ;;  %v8183_v0 = vpop.permute.xlu1 %3070  ;;  %v3555_v12 = vrot.slane %v3429_v57, %v7189_v15  ;;  %v3539_v32 = vrot.slane %v3429_v57, %v7162_v59 }
 0x655   :  { %3550 = vbcast.lane.b32.xlu0 %v3547_v19, 260  ;;  %3534 = vbcast.lane.b32.xlu1 %v3531_v5, 260 }
 0x658   :  { %v8189_v30 = vpop.permute.xlu1 %3166 }
 0x659   :  { %3558 = vbcast.lane.b32.xlu0 %v3555_v12, 260  ;;  %3542 = vbcast.lane.b32.xlu1 %v3539_v32, 260 }
 0x662   :  { %v3284_v38 = vpop.permute.xlu0 %3283  ;;  %v3236_v34 = vpop.permute.xlu1 %3235 }
 0x663   :  { %v3307_v14 = vrot.slane %v3284_v38, %v7142_v46  ;;  %v3259_v20 = vrot.slane %v3236_v34, %v7142_v46 }
 0x665   :  { %v3418_v63 = vsel %vm404_vm3, %v3259_v20, %v3307_v14 }
 0x667   :  { %v3332_v51 = vpop.permute.xlu0 %3331  ;;  %v3380_v13 = vpop.permute.xlu1 %3379 }
 0x668   :  { %v3355_v40 = vrot.slane %v3332_v51, %v7142_v46  ;;  %v3403_v9 = vrot.slane %v3380_v13, %v7142_v46 }
 0x66a   :  { %v3424_v27 = vsel %vm411_vm4, %v3418_v63, %v3355_v40  ;;  %v3033_v63 = vrot.slane %v8092_v6, %v7057_v26 }
 0x66b   :  { %v3430_v24 = vsel %vm418_vm5, %v3424_v27, %v3403_v9  ;;  %v3081_v27 = vrot.slane %v8094_v33, %v7057_v26 }
 0x66c   :  { %v8198_v37 = vpop.permute.xlu1 %3025  ;;  %v3587_v25 = vrot.slane %v3430_v24, %v7189_v15  ;;  %v3563_v42 = vrot.slane %v3430_v24, %v7150_v52  ;;  %v3571_v23 = vrot.slane %v3430_v24, %v7162_v59  ;;  %v3579_v49 = vrot.slane %v3430_v24, %v7170_v62  ;;  %v3287_v5 = vpop.permute.xlu0 %3286 }
 0x66d   :  { %v3311_v34 = vrot.slane %v3287_v5, %v7142_v46 }
 0x66e   :  { %3590 = vbcast.lane.b32.xlu0 %v3587_v25, 260  ;;  %3566 = vbcast.lane.b32.xlu1 %v3563_v42, 260 }
 0x671   :  { %v8203_v50 = vpop.permute.xlu1 %3073  ;;  %v3383_v38 = vpop.permute.xlu0 %3382 }
 0x672   :  { %3574 = vbcast.lane.b32.xlu1 %v3571_v23, 260  ;;  %v3407_v51 = vrot.slane %v3383_v38, %v7142_v46  ;;  %v3204_v23 = vsel %vm404_vm3, %v3033_v63, %v3081_v27 }
 0x676   :  { %v8206_v57 = vpop.permute.xlu1 %3121  ;;  %3582 = vbcast.lane.b32.xlu1 %v3579_v49, 260  ;;  %v3177_v49 = vrot.slane %v8101_v41, %v7057_v26  ;;  %v8239_v38 = vpop.permute.xlu0 %3172 }
 0x67b   :  { %v8208_v19 = vpop.permute.xlu1 %3169 }
 0x680   :  { %v3239_v12 = vpop.permute.xlu1 %3238 }
 0x681   :  { %v3263_v32 = vrot.slane %v3239_v12, %v7142_v46 }
 0x683   :  { %v3419_v13 = vsel %vm404_vm3, %v3263_v32, %v3311_v34 }
 0x685   :  { %v3335_v14 = vpop.permute.xlu1 %3334 }
 0x686   :  { %v3359_v20 = vrot.slane %v3335_v14, %v7142_v46  ;;  %v3129_v46 = vrot.slane %v8103_v47, %v7057_v26  ;;  %v3439_v14 = vpop.permute.xlu0 %3438 }
 0x688   :  { %v3425_v40 = vsel %vm411_vm4, %v3419_v13, %v3359_v20  ;;  %v3210_v5 = vsel %vm411_vm4, %v3204_v23, %v3129_v46 }
 0x689   :  { %v3431_v9 = vsel %vm418_vm5, %v3425_v40, %v3407_v51 }
 0x68a   :  { %v8221_v24 = vpop.permute.xlu1 %3028  ;;  %v3611_v25 = vrot.slane %v3431_v9, %v7170_v62  ;;  %v3595_v42 = vrot.slane %v3431_v9, %v7150_v52  ;;  %v3619_v6 = vrot.slane %v3431_v9, %v7189_v15  ;;  %v3603_v33 = vrot.slane %v3431_v9, %v7162_v59 }
 0x68b   :  { %v3216_v62 = vsel %vm418_vm5, %v3210_v5, %v3177_v49 }
 0x68c   :  { %3614 = vbcast.lane.b32.xlu0 %v3611_v25, 260  ;;  %3598 = vbcast.lane.b32.xlu1 %v3595_v42, 260  ;;  %v3636_v32 = vrot.slane %v3216_v62, %v7308_v56 }
 0x68e   :  { %v3644_v41 = vrot.slane %v3636_v32, %v7308_v56  ;;  %v3637_v34 = vcombine.high %v3636_v32, %v3636_v32 }
 0x68f   :  { %v8233_v12 = vpop.permute.xlu1 %3076 }
 0x690   :  { %3622 = vbcast.lane.b32.xlu0 %v3619_v6, 260  ;;  %3606 = vbcast.lane.b32.xlu1 %v3603_v33, 260  ;;  %v3777_v59 = vrot.slane %v3644_v41, %v7150_v52  ;;  %v3652_v20 = vcombine.high %v3644_v41, %v3644_v41  ;;  %v8244_v51 = vrot.slane %v3637_v34, %v7308_v56 }
 0x692   :  { %v3894_v13 = vadd.f32 %v3777_v59, %v3439_v14  ;;  %v3785_v9 = vrot.slane %v3652_v20, %v7150_v52  ;;  %v3781_v63 = vrot.slane %v8244_v51, %v7150_v52 }
 0x694   :  { %v8236_v47 = vpop.permute.xlu1 %3124  ;;  %v3942_v27 = vmul.f32 0.2, %v3894_v13  ;;  %vm3918_vm9 = vcmp.gt.f32.partialorder %v3894_v13, 0.0 }
 0x696   :  { %v3966_v23 = vsel %vm3918_vm9, %v3894_v13, %v3942_v27  ;;  %v3085_v13 = vrot.slane %v8138_v2, %v7057_v26  ;;  %v3093_v27 = vrot.slane %v8183_v0, %v7057_v26  ;;  %v3141_v0 = vrot.slane %v8187_v31, %v7057_v26 }
 0x697   :  { %v8250_v6 = vadd.f32 %v7357_v1, %v3966_v23  ;;  %v3463_v23 = vpop.permute.xlu0 %3462  ;;  %v3089_v31 = vrot.slane %v8165_v39, %v7057_v26 }
 0x698   :  { %v3447_v15 = vpop.permute.xlu1 %3446 }
 0x699   :  { %v3895_v42 = vadd.f32 %v3781_v63, %v3447_v15  ;;  %v4014_v62 = vsel %vm1218_vm10, %v8250_v6, -inf  ;;  %v3181_v63 = vrot.slane %v8146_v35, %v7057_v26  ;;  %v3189_v35 = vrot.slane %v8189_v30, %v7057_v26 }
 0x69a   :  { %v3097_v30 = vrot.slane %v8203_v50, %v7057_v26  ;;  %v3653_v50 = vcombine.high %v8244_v51, %v8244_v51  ;;  %v3137_v51 = vrot.slane %v8170_v21, %v7057_v26 }
 0x69b   :  { %v3943_v49 = vmul.f32 0.2, %v3895_v42  ;;  %vm3919_vm13 = vcmp.gt.f32.partialorder %v3895_v42, 0.0 }
 0x69c   :  { %v3455_v40 = vpop.permute.xlu1 %3454 }
 0x69d   :  { %v3896_v25 = vadd.f32 %v3785_v9, %v3455_v40  ;;  %v3967_v5 = vsel %vm3919_vm13, %v3895_v42, %v3943_v49  ;;  %v3133_v40 = vrot.slane %v8142_v17, %v7057_v26  ;;  %v3037_v9 = vrot.slane %v8151_v55, %v7057_v26 }
 0x69e   :  { %v8258_v41 = vadd.f32 %v7357_v1, %v3967_v5  ;;  %v3045_v42 = vrot.slane %v8181_v4, %v7057_v26 }
 0x69f   :  { %v3944_v46 = vmul.f32 0.2, %v3896_v25  ;;  %vm3920_vm12 = vcmp.gt.f32.partialorder %v3896_v25, 0.0 }
 0x6a0   :  { %v4017_v15 = vsel %vm1218_vm10, %v8258_v41, -inf  ;;  %v3471_v14 = vpop.permute.xlu1 %3470 }
 0x6a1   :  { %v3968_v33 = vsel %vm3920_vm12, %v3896_v25, %v3944_v46  ;;  %v3205_v25 = vsel %vm404_vm3, %v3037_v9, %v3085_v13  ;;  %v3207_v46 = vsel %vm404_vm3, %v3045_v42, %v3093_v27  ;;  %v3487_v13 = vpop.permute.xlu0 %3486  ;;  %v3193_v9 = vrot.slane %v8208_v19, %v7057_v26 }
 0x6a2   :  { %v8255_v32 = vadd.f32 %v7357_v1, %v3968_v33  ;;  %v3211_v2 = vsel %vm411_vm4, %v3205_v25, %v3133_v40  ;;  %v3213_v49 = vsel %vm411_vm4, %v3207_v46, %v3141_v0  ;;  %v3049_v40 = vrot.slane %v8198_v37, %v7057_v26 }
 0x6a3   :  { %v3217_v55 = vsel %vm418_vm5, %v3211_v2, %v3181_v63  ;;  %v3219_v33 = vsel %vm418_vm5, %v3213_v49, %v3189_v35  ;;  %v3041_v63 = vrot.slane %v8160_v45, %v7057_v26  ;;  %v3185_v19 = vrot.slane %v8168_v29, %v7057_v26 }
 0x6a4   :  { %v4020_v34 = vsel %vm1218_vm10, %v8255_v32, -inf  ;;  %v8264_v59 = vpop.permute.xlu1 %3478  ;;  %v3660_v4 = vrot.slane %v3217_v55, %v7308_v56  ;;  %v3208_v27 = vsel %vm404_vm3, %v3049_v40, %v3097_v30  ;;  %v3789_v46 = vrot.slane %v3653_v50, %v7150_v52 }
 0x6a5   :  { %v3206_v42 = vsel %vm404_vm3, %v3041_v63, %v3089_v31 }
 0x6a6   :  { %v3668_v39 = vrot.slane %v3660_v4, %v7308_v56  ;;  %v3212_v35 = vsel %vm411_vm4, %v3206_v42, %v3137_v51 }
 0x6a8   :  { %v3495_v20 = vpop.permute.xlu1 %3494  ;;  %v3793_v0 = vrot.slane %v3668_v39, %v7150_v52 }
 0x6a9   :  { %v8325_v2 = vpop.permute.xlu0 %3518 }
 0x6aa   :  { %v3898_v31 = vadd.f32 %v3793_v0, %v3471_v14 }
 0x6ac   :  { %v8282_v17 = vpop.permute.xlu1 %3502  ;;  %v3946_v42 = vmul.f32 0.2, %v3898_v31  ;;  %vm3922_vm15 = vcmp.gt.f32.partialorder %v3898_v31, 0.0 }
 0x6af   :  { %4015 = vmax.xlane.f32.xlu0 %v4014_v62  ;;  %v8298_v62 = vrot.slane %v3219_v33, %v7308_v56  ;;  %v3218_v33 = vsel %vm418_vm5, %v3212_v35, %v3185_v19 }
 0x6b0   :  { %v8295_v5 = vpop.permute.xlu1 %3510  ;;  %v3684_v40 = vrot.slane %v3218_v33, %v7308_v56 }
 0x6b1   :  { %v3709_v37 = vcombine.high %v8298_v62, %v8298_v62 }
 0x6b2   :  { %v3685_v51 = vcombine.high %v3684_v40, %v3684_v40 }
 0x6b3   :  { %4021 = vmax.xlane.f32.xlu0 %v4020_v34  ;;  %v3661_v34 = vcombine.high %v3660_v4, %v3660_v4  ;;  %v8336_v29 = vrot.slane %v3709_v37, %v7308_v56 }
 0x6b4   :  { %4018 = vmax.xlane.f32.xlu1 %v4017_v15  ;;  %v3145_v15 = vrot.slane %v8206_v57, %v7057_v26  ;;  %v8317_v57 = vpop.permute.xlu1 %3526 }
 0x6b5   :  { %v3675_v25 = vrot.slane %v3661_v34, %v7308_v56  ;;  %v3897_v34 = vadd.f32 %v3789_v46, %v3463_v23  ;;  %v3725_v63 = vcombine.high %v8336_v29, %v8336_v29 }
 0x6b6   :  { %v3214_v45 = vsel %vm411_vm4, %v3208_v27, %v3145_v15  ;;  %v3676_v15 = vcombine.high %v3668_v39, %v3668_v39 }
 0x6b7   :  { %v3220_v55 = vsel %vm418_vm5, %v3214_v45, %v3193_v9  ;;  %v3677_v4 = vcombine.high %v3675_v25, %v3675_v25  ;;  %v3945_v50 = vmul.f32 0.2, %v3897_v34  ;;  %v3797_v27 = vrot.slane %v3675_v25, %v7150_v52 }
 0x6b8   :  { %v3732_v30 = vrot.slane %v3220_v55, %v7308_v56  ;;  %vm3921_vm14 = vcmp.gt.f32.partialorder %v3897_v34, 0.0  ;;  %v3801_v23 = vrot.slane %v3676_v15, %v7150_v52  ;;  %v3837_v55 = vrot.slane %v3725_v63, %v7150_v52 }
 0x6b9   :  { %v3805_v9 = vrot.slane %v3677_v4, %v7150_v52  ;;  %v3899_v14 = vadd.f32 %v3797_v27, %v8264_v59  ;;  %v3692_v25 = vrot.slane %v3684_v40, %v7308_v56  ;;  %v3699_v63 = vrot.slane %v3685_v51, %v7308_v56 }
 0x6ba   :  { %v3733_v37 = vcombine.high %v3732_v30, %v3732_v30  ;;  %v8353_v46 = vrot.slane %v3732_v30, %v7308_v56  ;;  %v3900_v35 = vadd.f32 %v3801_v23, %v3487_v13 }
 0x6bb   :  { %v3901_v19 = vadd.f32 %v3805_v9, %v3495_v20  ;;  %v3969_v20 = vsel %vm3921_vm14, %v3897_v34, %v3945_v50  ;;  %v3970_v9 = vsel %vm3922_vm15, %v3898_v31, %v3946_v42  ;;  %v3947_v59 = vmul.f32 0.2, %v3899_v14 }
 0x6bc   :  { %v8357_v0 = vrot.slane %v3733_v37, %v7308_v56  ;;  %vm3923_vm6 = vcmp.gt.f32.partialorder %v3899_v14, 0.0  ;;  %v3748_v30 = vcombine.high %v8353_v46, %v8353_v46  ;;  %v8365_v13 = vadd.f32 %v7357_v1, %v3969_v20 }
 0x6bd   :  { %v3949_v4 = vmul.f32 0.2, %v3901_v19  ;;  %vm3925_vm1 = vcmp.gt.f32.partialorder %v3901_v19, 0.0  ;;  %v3948_v40 = vmul.f32 0.2, %v3900_v35  ;;  %v3809_v27 = vrot.slane %v3692_v25, %v7150_v52 }
 0x6be   :  { %v3845_v34 = vrot.slane %v8357_v0, %v7150_v52  ;;  %v8371_v50 = vadd.f32 %v7378_v28, %v3970_v9  ;;  %vm3924_vm7 = vcmp.gt.f32.partialorder %v3900_v35, 0.0  ;;  %v3700_v31 = vcombine.high %v3692_v25, %v3692_v25 }
 0x6bf   :  { %v3973_v23 = vsel %vm3925_vm1, %v3901_v19, %v3949_v4  ;;  %v3971_v1 = vsel %vm3923_vm6, %v3899_v14, %v3947_v59  ;;  %v3813_v20 = vrot.slane %v3699_v63, %v7150_v52  ;;  %v3849_v16 = vrot.slane %v3748_v30, %v7150_v52 }
 0x6c0   :  { %v4023_v9 = vsel %vm1218_vm10, %v8365_v13, -inf  ;;  %v3149_v25 = vrot.slane %v8236_v47, %v7057_v26  ;;  %v8386_v19 = vadd.f32 %v7378_v28, %v3973_v23  ;;  %v3972_v14 = vsel %vm3924_vm7, %v3900_v35, %v3948_v40 }
 0x6c1   :  { %v8392_v30 = vadd.f32 %v7378_v28, %v3971_v1  ;;  %v3817_v35 = vrot.slane %v3700_v31, %v7150_v52  ;;  %v3197_v40 = vrot.slane %v8239_v38, %v7057_v26  ;;  %v8409_v31 = vadd.f32 %v7378_v28, %v3972_v14  ;;  %v9020_v28 = vld [vmem:[#allocation4_spill] sm:$0xff] }
 0x6c5   :  { %6667 = vrot.lane.b32.xlu1 %v8068_v10, %s6949_s0 }
 0x6c7   :  { %v8333_v49 = vpop.permute.xlu1 %3534  ;;  %v8340_v21 = vpop.permute.xlu0 %3550 }
 0x6c9   :  { %6672 = vrot.lane.b32.xlu0 %v8068_v10, %s6950_s22 }
 0x6cb   :  { %v8347_v45 = vpop.permute.xlu1 %3542  ;;  %v3559_v39 = vpop.permute.xlu0 %3558 }
 0x6cc   :  { %v3909_v33 = vadd.f32 %v3837_v55, %v3559_v39  ;;  %v3902_v39 = vadd.f32 %v3809_v27, %v8282_v17  ;;  %v3101_v55 = vrot.slane %v8233_v12, %v7057_v26  ;;  %v4026_v17 = vsel %vm1218_vm10, %v8371_v50, -inf }
 0x6cd   :  { %v3053_v12 = vrot.slane %v8221_v24, %v7057_v26  ;;  %v3701_v24 = vcombine.high %v3699_v63, %v3699_v63 }
 0x6ce   :  { %v3957_v37 = vmul.f32 0.2, %v3909_v33  ;;  %vm3933_vm8 = vcmp.gt.f32.partialorder %v3909_v33, 0.0  ;;  %v3950_v47 = vmul.f32 0.2, %v3902_v39  ;;  %vm3926_vm12 = vcmp.gt.f32.partialorder %v3902_v39, 0.0 }
 0x6cf   :  { %v3209_v23 = vsel %vm404_vm3, %v3053_v12, %v3101_v55  ;;  %v3904_v55 = vadd.f32 %v3817_v35, %v8325_v2  ;;  %v4032_v2 = vsel %vm1218_vm10, %v8409_v31, -inf }
 0x6d0   :  { %v3981_v27 = vsel %vm3933_vm8, %v3909_v33, %v3957_v37  ;;  %v3215_v1 = vsel %vm411_vm4, %v3209_v23, %v3149_v25  ;;  %v4035_v33 = vsel %vm1218_vm10, %v8386_v19, -inf  ;;  %v3974_v38 = vsel %vm3926_vm12, %v3902_v39, %v3950_v47 }
 0x6d1   :  { %v8404_v37 = vadd.f32 %v7457_v54, %v3981_v27  ;;  %v3716_v25 = vrot.slane %v8298_v62, %v7308_v56 }
 0x6d3   :  { %v3825_v47 = vrot.slane %v3716_v25, %v7150_v52 }
 0x6e0   :  { %v8359_v15 = vpop.permute.xlu1 %3566 }
 0x6e4   :  { %v3575_v42 = vpop.permute.xlu1 %3574 }
 0x6e5   :  { %v3911_v51 = vadd.f32 %v3845_v34, %v3575_v42  ;;  %v3903_v34 = vadd.f32 %v3813_v20, %v8295_v5  ;;  %v3221_v20 = vsel %vm418_vm5, %v3215_v1, %v3197_v40  ;;  %vm3928_vm5 = vcmp.gt.f32.partialorder %v3904_v55, 0.0 }
 0x6e6   :  { %v3756_v62 = vrot.slane %v3221_v20, %v7308_v56 }
 0x6e7   :  { %v3959_v4 = vmul.f32 0.2, %v3911_v51  ;;  %vm3935_vm9 = vcmp.gt.f32.partialorder %v3911_v51, 0.0  ;;  %v3951_v26 = vmul.f32 0.2, %v3903_v34  ;;  %vm3927_vm4 = vcmp.gt.f32.partialorder %v3903_v34, 0.0 }
 0x6e8   :  { %4027 = vmax.xlane.f32.xlu0 %v4026_v17  ;;  %v3583_v59 = vpop.permute.xlu1 %3582  ;;  %v4059_v17 = vsel %vm1218_vm10, %v8404_v37, -inf  ;;  %v3764_v1 = vrot.slane %v3756_v62, %v7308_v56 }
 0x6e9   :  { %v3912_v42 = vadd.f32 %v3849_v16, %v3583_v59  ;;  %4024 = vmax.xlane.f32.xlu1 %v4023_v9  ;;  %v4029_v16 = vsel %vm1218_vm10, %v8392_v30, -inf  ;;  %v3983_v63 = vsel %vm3935_vm9, %v3911_v51, %v3959_v4  ;;  %v3821_v9 = vrot.slane %v3701_v24, %v7150_v52  ;;  %v9021_v51 = vld [vmem:[#allocation3_spill] sm:$0xff] }
 0x6ea   :  { %v8419_v14 = vadd.f32 %v9020_v28, %v3983_v63  ;;  %v8424_v39 = vadd.f32 %v9021_v51, %v3974_v38  ;;  %v3952_v4 = vmul.f32 0.2, %v3904_v55  ;;  %v3975_v27 = vsel %vm3927_vm4, %v3903_v34, %v3951_v26 }
 0x6eb   :  { %v3960_v5 = vmul.f32 0.2, %v3912_v42  ;;  %vm3936_vm3 = vcmp.gt.f32.partialorder %v3912_v42, 0.0  ;;  %v3905_v59 = vadd.f32 %v3821_v9, %v8317_v57  ;;  %v8437_v24 = vadd.f32 %v9021_v51, %v3975_v27 }
 0x6ec   :  { %4036 = vmax.xlane.f32.xlu0 %v4035_v33  ;;  %v4065_v23 = vsel %vm1218_vm10, %v8419_v14, -inf  ;;  %v3906_v34 = vadd.f32 %v3825_v47, %v8333_v49  ;;  %v3976_v40 = vsel %vm3928_vm5, %v3904_v55, %v3952_v4  ;;  %v3724_v33 = vcombine.high %v3716_v25, %v3716_v25 }
 0x6ed   :  { %4030 = vmax.xlane.f32.xlu1 %v4029_v16  ;;  %v3984_v12 = vsel %vm3936_vm3, %v3912_v42, %v3960_v5  ;;  %v4038_v42 = vsel %vm1218_vm10, %v8424_v39, -inf  ;;  %v3953_v57 = vmul.f32 0.2, %v3905_v59  ;;  %vm3929_vm13 = vcmp.gt.f32.partialorder %v3905_v59, 0.0 }
 0x6ee   :  { %v8432_v35 = vadd.f32 %v9020_v28, %v3984_v12  ;;  %v3829_v5 = vrot.slane %v8336_v29, %v7150_v52  ;;  %v4041_v63 = vsel %vm1218_vm10, %v8437_v24, -inf  ;;  %v8448_v26 = vadd.f32 %v9021_v51, %v3976_v40  ;;  %v3591_v29 = vpop.permute.xlu0 %3590 }
 0x6ef   :  { %v3757_v49 = vcombine.high %v3756_v62, %v3756_v62  ;;  %v3954_v38 = vmul.f32 0.2, %v3906_v34  ;;  %v3772_v20 = vcombine.high %v3764_v1, %v3764_v1  ;;  %v3977_v9 = vsel %vm3929_vm13, %v3905_v59, %v3953_v57 }
 0x6f0   :  { %4060 = vmax.xlane.f32.xlu0 %v4059_v17  ;;  %v4068_v16 = vsel %vm1218_vm10, %v8432_v35, -inf  ;;  %v3907_v55 = vadd.f32 %v3829_v5, %v8347_v45  ;;  %v3833_v25 = vrot.slane %v3724_v33, %v7150_v52  ;;  %vm3930_vm14 = vcmp.gt.f32.partialorder %v3906_v34, 0.0 }
 0x6f1   :  { %4033 = vmax.xlane.f32.xlu1 %v4032_v2  ;;  %v4044_v2 = vsel %vm1218_vm10, %v8448_v26, -inf  ;;  %v8456_v12 = vadd.f32 %v9021_v51, %v3977_v9  ;;  %v3865_v27 = vrot.slane %v3772_v20, %v7150_v52  ;;  %v3771_v45 = vrot.slane %v3757_v49, %v7308_v56 }
 0x6f2   :  { %v3908_v17 = vadd.f32 %v3833_v25, %v8340_v21  ;;  %v3955_v4 = vmul.f32 0.2, %v3907_v55  ;;  %v3978_v62 = vsel %vm3930_vm14, %v3906_v34, %v3954_v38  ;;  %vm3931_vm15 = vcmp.gt.f32.partialorder %v3907_v55, 0.0 }
 0x6f3   :  { %v3841_v21 = vrot.slane %v8353_v46, %v7150_v52  ;;  %v4047_v51 = vsel %vm1218_vm10, %v8456_v12, -inf  ;;  %v8467_v40 = vadd.f32 %v7457_v54, %v3978_v62  ;;  %v3861_v34 = vrot.slane %v3771_v45, %v7150_v52  ;;  %v9022_v62 = vld [vmem:[#allocation5_spill] sm:$0xff] }
 0x6f4   :  { %4066 = vmax.xlane.f32.xlu0 %v4065_v23  ;;  %v3749_v23 = vcombine.high %v8357_v0, %v8357_v0  ;;  %v3956_v57 = vmul.f32 0.2, %v3908_v17  ;;  %vm3932_vm1 = vcmp.gt.f32.partialorder %v3908_v17, 0.0  ;;  %v3979_v33 = vsel %vm3931_vm15, %v3907_v55, %v3955_v4 }
 0x6f5   :  { %4039 = vmax.xlane.f32.xlu1 %v4038_v42  ;;  %v3910_v56 = vadd.f32 %v3841_v21, %v8359_v15  ;;  %v8475_v49 = vadd.f32 %v7457_v54, %v3979_v33  ;;  %v3857_v55 = vrot.slane %v3764_v1, %v7150_v52  ;;  %v3773_v25 = vcombine.high %v3771_v45, %v3771_v45 }
 0x6f6   :  { %v3853_v0 = vrot.slane %v3749_v23, %v7150_v52  ;;  %v3980_v38 = vsel %vm3932_vm1, %v3908_v17, %v3956_v57  ;;  %vm5939_vm4 = vcmask 1044484   ;;  %vm5941_vm5 = vcmask 1045509  }
 0x6f7   :  { %v3958_v9 = vmul.f32 0.2, %v3910_v56  ;;  %vm3934_vm8 = vcmp.gt.f32.partialorder %v3910_v56, 0.0  ;;  %v8484_v23 = vadd.f32 %v7457_v54, %v3980_v38  ;;  %vm5959_vm13 = vcmask 521216  }
 0x6f8   :  { %4069 = vmax.xlane.f32.xlu0 %v4068_v16  ;;  %v3913_v20 = vadd.f32 %v3853_v0, %v3591_v29 }
 0x6f9   :  { %4042 = vmax.xlane.f32.xlu1 %v4041_v63  ;;  %v4050_v63 = vsel %vm1218_vm10, %v8467_v40, -inf  ;;  %v3982_v21 = vsel %vm3934_vm8, %v3910_v56, %v3958_v9 }
 0x6fa   :  { %v3961_v29 = vmul.f32 0.2, %v3913_v20  ;;  %vm3937_vm9 = vcmp.gt.f32.partialorder %v3913_v20, 0.0  ;;  %v8495_v54 = vadd.f32 %v9020_v28, %v3982_v21 }
 0x6fc   :  { %v3985_v56 = vsel %vm3937_vm9, %v3913_v20, %v3961_v29 }
 0x6fd   :  { %4045 = vmax.xlane.f32.xlu1 %v4044_v2 }
 0x6fe   :  { %v3615_v59 = vpop.permute.xlu0 %3614  ;;  %v3599_v47 = vpop.permute.xlu1 %3598 }
 0x6ff   :  { %v3916_v42 = vadd.f32 %v3865_v27, %v3615_v59  ;;  %v4053_v27 = vsel %vm1218_vm10, %v8475_v49, -inf  ;;  %v3914_v17 = vadd.f32 %v3857_v55, %v3599_v47 }
 0x701   :  { %4048 = vmax.xlane.f32.xlu1 %v4047_v51  ;;  %v3964_v16 = vmul.f32 0.2, %v3916_v42  ;;  %vm3940_vm6 = vcmp.gt.f32.partialorder %v3916_v42, 0.0  ;;  %v4056_v51 = vsel %vm1218_vm10, %v8484_v23, -inf  ;;  %v3962_v47 = vmul.f32 0.2, %v3914_v17 }
 0x702   :  { %v3607_v5 = vpop.permute.xlu1 %3606  ;;  %v3623_v57 = vpop.permute.xlu0 %3622  ;;  %vm3938_vm12 = vcmp.gt.f32.partialorder %v3914_v17, 0.0 }
 0x703   :  { %v3915_v46 = vadd.f32 %v3861_v34, %v3607_v5  ;;  %v3988_v4 = vsel %vm3940_vm6, %v3916_v42, %v3964_v16  ;;  %v3869_v42 = vrot.slane %v3773_v25, %v7150_v52  ;;  %v4062_v5 = vsel %vm1218_vm10, %v8495_v54, -inf }
 0x704   :  { %v8489_v45 = vadd.f32 %v9022_v62, %v3988_v4  ;;  %v8502_v52 = vadd.f32 %v9020_v28, %v3985_v56  ;;  %v3986_v16 = vsel %vm3938_vm12, %v3914_v17, %v3962_v47 }
 0x705   :  { %vm3939_vm7 = vcmp.gt.f32.partialorder %v3915_v46, 0.0  ;;  %v3963_v15 = vmul.f32 0.2, %v3915_v46  ;;  %4051 = vmax.xlane.f32.xlu1 %v4050_v63  ;;  %v3917_v34 = vadd.f32 %v3869_v42, %v3623_v57  ;;  %v8507_v63 = vadd.f32 %v9022_v62, %v3986_v16 }
 0x706   :  { %v4080_v33 = vsel %vm1218_vm10, %v8489_v45, -inf }
 0x707   :  { %v3987_v2 = vsel %vm3939_vm7, %v3915_v46, %v3963_v15  ;;  %v3965_v0 = vmul.f32 0.2, %v3917_v34  ;;  %vm3941_vm3 = vcmp.gt.f32.partialorder %v3917_v34, 0.0  ;;  %v4071_v46 = vsel %vm1218_vm10, %v8502_v52, -inf }
 0x708   :  { %v8481_v59 = vadd.f32 %v9022_v62, %v3987_v2  ;;  %v4074_v20 = vsel %vm1218_vm10, %v8507_v63, -inf }
 0x709   :  { %4054 = vmax.xlane.f32.xlu1 %v4053_v27  ;;  %v3989_v38 = vsel %vm3941_vm3, %v3917_v34, %v3965_v0 }
 0x70a   :  { %v4077_v1 = vsel %vm1218_vm10, %v8481_v59, -inf  ;;  %v8512_v9 = vadd.f32 %v9022_v62, %v3989_v38 }
 0x70b   :  { %4078 = vmax.xlane.f32.xlu0 %v4077_v1 }
 0x70c   :  { %v4083_v28 = vsel %vm1218_vm10, %v8512_v9, -inf }
 0x70d   :  { %4057 = vmax.xlane.f32.xlu1 %v4056_v51 }
 0x70f   :  { %4081 = vmax.xlane.f32.xlu0 %v4080_v33 }
 0x711   :  { %4063 = vmax.xlane.f32.xlu1 %v4062_v5 }
 0x715   :  { %4072 = vmax.xlane.f32.xlu1 %v4071_v46 }
 0x719   :  { %4075 = vmax.xlane.f32.xlu1 %v4074_v20 }
 0x71d   :  { %4084 = vmax.xlane.f32.xlu1 %v4083_v28 }
 0x738   :  { %v4016_v15 = vpop.xlane.xlu0 %4015 }
 0x739   :  { %v4086_v55 = vsub.f32 %v8250_v6, %v4016_v15 }
 0x73b   :  { %v4110_v25 = vmul.f32 1.442695, %v4086_v55 }
 0x73c   :  { %v4022_v2 = vpop.xlane.xlu0 %4021 }
 0x73d   :  { %6819 = vpow2.f32 %v4110_v25  ;;  %v4088_v4 = vsub.f32 %v8255_v32, %v4022_v2  ;;  %v4019_v27 = vpop.xlane.xlu1 %4018 }
 0x73e   :  { %v4087_v29 = vsub.f32 %v8258_v41, %v4019_v27 }
 0x73f   :  { %v4114_v17 = vmul.f32 1.442695, %v4088_v4 }
 0x740   :  { %v4112_v21 = vmul.f32 1.442695, %v4087_v29  ;;  %v8531_v42 = vpop.permute.xlu0 %6672 }
 0x741   :  { %6821 = vpow2.f32 %v4114_v17  ;;  %v8533_v51 = vpop.permute.xlu1 %6667 }
 0x742   :  { %6823 = vpow2.f32 %v4112_v21 }
 0x74a   :  { %v8519_v62 = vpop.eup %6819 }
 0x74b   :  { %v4158_v57 = vsel %vm1218_vm10, %v8519_v62, 0.0 }
 0x74c   :  { %4159 = vadd.xlane.f32.xlu1 %v4158_v57 }
 0x74e   :  { %v8523_v1 = vpop.eup %6821 }
 0x74f   :  { %v8525_v6 = vpop.eup %6823  ;;  %v4164_v32 = vsel %vm1218_vm10, %v8523_v1, 0.0 }
 0x750   :  { %4165 = vadd.xlane.f32.xlu1 %v4164_v32  ;;  %v4161_v41 = vsel %vm1218_vm10, %v8525_v6, 0.0 }
 0x751   :  { %4162 = vadd.xlane.f32.xlu0 %v4161_v41 }
 0x771   :  { %v4028_v47 = vpop.xlane.xlu0 %4027 }
 0x772   :  { %v4090_v34 = vsub.f32 %v8371_v50, %v4028_v47  ;;  %v4025_v56 = vpop.xlane.xlu1 %4024 }
 0x773   :  { %v4089_v33 = vsub.f32 %v8365_v13, %v4025_v56 }
 0x774   :  { %v4118_v5 = vmul.f32 1.442695, %v4090_v34 }
 0x775   :  { %v4116_v0 = vmul.f32 1.442695, %v4089_v33  ;;  %v4037_v29 = vpop.xlane.xlu0 %4036 }
 0x776   :  { %6825 = vpow2.f32 %v4118_v5  ;;  %v4031_v16 = vpop.xlane.xlu1 %4030  ;;  %v4093_v57 = vsub.f32 %v8386_v19, %v4037_v29 }
 0x777   :  { %6827 = vpow2.f32 %v4116_v0  ;;  %v4091_v46 = vsub.f32 %v8392_v30, %v4031_v16 }
 0x778   :  { %v4124_v47 = vmul.f32 1.442695, %v4093_v57 }
 0x779   :  { %v4120_v38 = vmul.f32 1.442695, %v4091_v46  ;;  %v4061_v21 = vpop.xlane.xlu0 %4060 }
 0x77a   :  { %v4034_v20 = vpop.xlane.xlu1 %4033 }
 0x77b   :  { %6829 = vpow2.f32 %v4120_v38  ;;  %v4092_v41 = vsub.f32 %v8409_v31, %v4034_v20 }
 0x77c   :  { %6831 = vpow2.f32 %v4124_v47 }
 0x77d   :  { %v4067_v34 = vpop.xlane.xlu0 %4066  ;;  %v4122_v33 = vmul.f32 1.442695, %v4092_v41 }
 0x77e   :  { %v4040_v55 = vpop.xlane.xlu1 %4039  ;;  %v4103_v5 = vsub.f32 %v8419_v14, %v4067_v34 }
 0x77f   :  { %6833 = vpow2.f32 %v4122_v33 }
 0x780   :  { %v4144_v16 = vmul.f32 1.442695, %v4103_v5 }
 0x781   :  { %v4070_v33 = vpop.xlane.xlu0 %4069 }
 0x782   :  { %v4043_v2 = vpop.xlane.xlu1 %4042  ;;  %v4104_v5 = vsub.f32 %v8432_v35, %v4070_v33 }
 0x783   :  { %v8538_v28 = vpop.eup %6825  ;;  %v4095_v38 = vsub.f32 %v8437_v24, %v4043_v2 }
 0x784   :  { %v8540_v15 = vpop.eup %6827  ;;  %v4170_v50 = vsel %vm1218_vm10, %v8538_v28, 0.0 }
 0x785   :  { %4171 = vadd.xlane.f32.xlu1 %v4170_v50  ;;  %v4167_v13 = vsel %vm1218_vm10, %v8540_v15, 0.0  ;;  %v4128_v19 = vmul.f32 1.442695, %v4095_v38  ;;  %v4146_v38 = vmul.f32 1.442695, %v4104_v5 }
 0x786   :  { %4168 = vadd.xlane.f32.xlu0 %v4167_v13  ;;  %v4046_v4 = vpop.xlane.xlu1 %4045 }
 0x787   :  { %v4096_v31 = vsub.f32 %v8448_v26, %v4046_v4 }
 0x788   :  { %v8546_v25 = vpop.eup %6829 }
 0x789   :  { %v4173_v30 = vsel %vm1218_vm10, %v8546_v25, 0.0  ;;  %v8562_v14 = vpop.eup %6831 }
 0x78a   :  { %4174 = vadd.xlane.f32.xlu1 %v4173_v30  ;;  %v4049_v27 = vpop.xlane.xlu1 %4048  ;;  %v4179_v24 = vsel %vm1218_vm10, %v8562_v14, 0.0 }
 0x78b   :  { %v4097_v20 = vsub.f32 %v8456_v12, %v4049_v27 }
 0x78e   :  { %v4052_v17 = vpop.xlane.xlu1 %4051 }
 0x78f   :  { %v4098_v13 = vsub.f32 %v8467_v40, %v4052_v17  ;;  %v4101_v17 = vsub.f32 %v8404_v37, %v4061_v21 }
 0x791   :  { %v4134_v12 = vmul.f32 1.442695, %v4098_v13  ;;  %v4140_v34 = vmul.f32 1.442695, %v4101_v17 }
 0x792   :  { %v4055_v32 = vpop.xlane.xlu1 %4054 }
 0x793   :  { %v4099_v56 = vsub.f32 %v8475_v49, %v4055_v32  ;;  %v4130_v49 = vmul.f32 1.442695, %v4096_v31 }
 0x794   :  { %v4079_v31 = vpop.xlane.xlu0 %4078 }
 0x795   :  { %v4136_v0 = vmul.f32 1.442695, %v4099_v56 }
 0x796   :  { %v4058_v50 = vpop.xlane.xlu1 %4057 }
 0x797   :  { %6835 = vpow2.f32 %v4136_v0  ;;  %v4100_v4 = vsub.f32 %v8484_v23, %v4058_v50 }
 0x798   :  { %6837 = vpow2.f32 %v4144_v16 }
 0x799   :  { %v4138_v57 = vmul.f32 1.442695, %v4100_v4 }
 0x79a   :  { %v4064_v40 = vpop.xlane.xlu1 %4063 }
 0x79b   :  { %6677 = vrot.lane.b32.xlu1 %v8068_v10, %s6951_s23  ;;  %v4094_v10 = vsub.f32 %v8424_v39, %v4040_v55  ;;  %v8564_v39 = vpop.eup %6833  ;;  %v4132_v55 = vmul.f32 1.442695, %v4097_v20  ;;  %v4102_v56 = vsub.f32 %v8495_v54, %v4064_v40 }
 0x79c   :  { %4292 = vrot.lane.b32.xlu0 %v8086_v53, %s6949_s0  ;;  %v4176_v26 = vsel %vm1218_vm10, %v8564_v39, 0.0 }
 0x79d   :  { %v4126_v46 = vmul.f32 1.442695, %v4094_v10  ;;  %v4142_v10 = vmul.f32 1.442695, %v4102_v56 }
 0x79e   :  { %v4073_v23 = vpop.xlane.xlu1 %4072 }
 0x79f   :  { %6839 = vpow2.f32 %v4126_v46 }
 0x7a0   :  { %6841 = vpow2.f32 %v4128_v19 }
 0x7a1   :  { %6843 = vpow2.f32 %v4130_v49 }
 0x7a2   :  { %6845 = vpow2.f32 %v4132_v55  ;;  %v4076_v46 = vpop.xlane.xlu1 %4075  ;;  %v4082_v55 = vpop.xlane.xlu0 %4081 }
 0x7a3   :  { %6847 = vpow2.f32 %v4134_v12 }
 0x7a4   :  { %v8569_v30 = vpop.eup %6835  ;;  %6849 = vpow2.f32 %v4138_v57  ;;  %v6614_v57 = vunpack.i.l.bf16 %v8112_v60 }
 0x7a5   :  { %v8573_v2 = vpop.eup %6837  ;;  %v4197_v27 = vsel %vm1218_vm10, %v8569_v30, 0.0  ;;  %6851 = vpow2.f32 %v4140_v34  ;;  %v4105_v34 = vsub.f32 %v8502_v52, %v4073_v23 }
 0x7a6   :  { %v4209_v41 = vsel %vm1218_vm10, %v8573_v2, 0.0  ;;  %6853 = vpow2.f32 %v4142_v10  ;;  %v8601_v49 = vpop.xlane.xlu1 %4084  ;;  %v4363_v56 = vpack.c.bf16 %v6614_v57, %v6614_v57  ;;  %v4106_v10 = vsub.f32 %v8507_v63, %v4076_v46 }
 0x7a7   :  { %6855 = vpow2.f32 %v4146_v38  ;;  %v4148_v5 = vmul.f32 1.442695, %v4105_v34  ;;  %v6619_v38 = vunpack.i.l.bf16 %v8110_v61 }
 0x7a8   :  { %v4150_v23 = vmul.f32 1.442695, %v4106_v10 }
 0x7a9   :  { %v4364_v63 = vpack.c.bf16 %v6619_v38, %v6619_v38 }
 0x7ac   :  { %v8578_v29 = vpop.eup %6839 }
 0x7ad   :  { %v4182_v32 = vsel %vm1218_vm10, %v8578_v29, 0.0  ;;  %v8585_v47 = vpop.eup %6841 }
 0x7ae   :  { %v4185_v37 = vsel %vm1218_vm10, %v8585_v47, 0.0  ;;  %v8590_v21 = vpop.eup %6843 }
 0x7af   :  { %v4188_v0 = vsel %vm1218_vm10, %v8590_v21, 0.0  ;;  %v8595_v16 = vpop.eup %6845 }
 0x7b0   :  { %v4191_v54 = vsel %vm1218_vm10, %v8595_v16, 0.0  ;;  %v8599_v19 = vpop.eup %6847 }
 0x7b1   :  { %v4194_v35 = vsel %vm1218_vm10, %v8599_v19, 0.0  ;;  %v8605_v20 = vpop.eup %6849 }
 0x7b2   :  { %v4200_v13 = vsel %vm1218_vm10, %v8605_v20, 0.0 }
 0x7bb   :  { %4180 = vadd.xlane.f32.xlu0 %v4179_v24  ;;  %v8609_v24 = vpop.eup %6851 }
 0x7bc   :  { %v4203_v12 = vsel %vm1218_vm10, %v8609_v24, 0.0  ;;  %v8615_v4 = vpop.eup %6853 }
 0x7bd   :  { %v8621_v40 = vpop.eup %6855 }
 0x7bf   :  { %4177 = vadd.xlane.f32.xlu1 %v4176_v26  ;;  %4198 = vadd.xlane.f32.xlu0 %v4197_v27  ;;  %v4206_v27 = vsel %vm1218_vm10, %v8615_v4, 0.0 }
 0x7c3   :  { %4183 = vadd.xlane.f32.xlu1 %v4182_v32  ;;  %4210 = vadd.xlane.f32.xlu0 %v4209_v41  ;;  %v4212_v32 = vsel %vm1218_vm10, %v8621_v40, 0.0 }
 0x7c7   :  { %4186 = vadd.xlane.f32.xlu1 %v4185_v37 }
 0x7cb   :  { %4189 = vadd.xlane.f32.xlu1 %v4188_v0 }
 0x7cf   :  { %4192 = vadd.xlane.f32.xlu1 %v4191_v54  ;;  %v4436_v54 = vsel %vm1594_vm2, %v4363_v56, 0 }
 0x7d3   :  { %4195 = vadd.xlane.f32.xlu1 %v4194_v35 }
 0x7d5   :  { %v4160_v50 = vpop.xlane.xlu1 %4159 }
 0x7d6   :  { %6857 = vrcp.f32 %v4160_v50  ;;  %v4108_v50 = vsub.f32 %v8489_v45, %v4082_v55  ;;  %v4109_v45 = vsub.f32 %v8512_v9, %v8601_v49 }
 0x7d7   :  { %4201 = vadd.xlane.f32.xlu1 %v4200_v13  ;;  %v6624_v13 = vunpack.i.l.bf16 %v8118_v22 }
 0x7d9   :  { %4328 = vrot.lane.b32.xlu0 %v8086_v53, %s6951_s23  ;;  %v4166_v17 = vpop.xlane.xlu1 %4165 }
 0x7da   :  { %v4163_v26 = vpop.xlane.xlu0 %4162 }
 0x7db   :  { %6859 = vrcp.f32 %v4163_v26  ;;  %4204 = vadd.xlane.f32.xlu1 %v4203_v12  ;;  %v4482_v26 = vsel %vm1594_vm2, %v4364_v63, 0  ;;  %v4156_v12 = vmul.f32 1.442695, %v4109_v45 }
 0x7dc   :  { %6861 = vrcp.f32 %v4166_v17 }
 0x7dd   :  { %4294 = vrot.lane.b32.xlu0 %v8090_v36, %s6949_s0  ;;  %6863 = vpow2.f32 %v4148_v5 }
 0x7de   :  { %6865 = vpow2.f32 %v4150_v23  ;;  %v6615_v23 = vunpack.i.h.bf16 %v8112_v60 }
 0x7df   :  { %4207 = vadd.xlane.f32.xlu1 %v4206_v27 }
 0x7e3   :  { %v6858_v41 = vpop.eup %6857  ;;  %4213 = vadd.xlane.f32.xlu1 %v4212_v32 }
 0x7e4   :  { %v4231_v37 = vmul.f32 %v6858_v41, %v8519_v62  ;;  %v4107_v62 = vsub.f32 %v8481_v59, %v4079_v31  ;;  %v4365_v31 = vpack.c.bf16 %v6624_v13, %v6624_v13 }
 0x7e6   :  { %v4338_v33 = vpack.c.bf16 %v4231_v37, %v4231_v37  ;;  %v4152_v61 = vmul.f32 1.442695, %v4107_v62 }
 0x7e8   :  { %v6860_v0 = vpop.eup %6859  ;;  %6338 = vmatmul.mubr.msk.bf16.vlgmr.msra.gmra.mxu1 %vm1218_vm10, %v4338_v33  ;;  %6867 = vpow2.f32 %v4152_v61 }
 0x7e9   :  { %6342 = vmatpush3.bf16.msra.mxu1 %v4436_v54  ;;  %6343 = vmatprep.mubr.msk.bf16.mxu1 %vm6940_vm0, %v9010_v3  ;;  %v4233_v52 = vmul.f32 %v6860_v0, %v8525_v6  ;;  %v6862_v35 = vpop.eup %6861  ;;  %v4154_v6 = vmul.f32 1.442695, %v4108_v50  ;;  %v4366_v54 = vpack.c.bf16 %v8044_v11, %v8044_v11  ;;  %v4367_v11 = vpack.c.bf16 %v6615_v23, %v6615_v23 }
 0x7ea   :  { %6347 = vmatprep.subr.bf16.mxu1 %v9010_v3  ;;  %v4235_v59 = vmul.f32 %v6862_v35, %v8523_v1  ;;  %v8649_v27 = vpop.eup %6863  ;;  %v4528_v1 = vsel %vm1594_vm2, %v4365_v31, 0  ;;  %v6625_v35 = vunpack.i.h.bf16 %v8118_v22  ;;  %v6669_v31 = vunpack.i.l.bf16 %v8533_v51 }
 0x7eb   :  { %v4339_v46 = vpack.c.bf16 %v4233_v52, %v4233_v52  ;;  %6869 = vpow2.f32 %v4154_v6  ;;  %v4215_v9 = vsel %vm1218_vm10, %v8649_v27, 0.0  ;;  %v8660_v49 = vpop.eup %6865  ;;  %v4574_v63 = vsel %vm1594_vm2, %v4366_v54, 0 }
 0x7ec   :  { %v4340_v55 = vpack.c.bf16 %v4235_v59, %v4235_v59  ;;  %6871 = vpow2.f32 %v4156_v12  ;;  %v4218_v17 = vsel %vm1218_vm10, %v8660_v49, 0.0  ;;  %v4620_v61 = vsel %vm1594_vm2, %v4367_v11, 0 }
 0x7ed   :  { %v4369_v50 = vpack.c.bf16 %v6625_v35, %v6625_v35 }
 0x7ef   :  { %v4712_v13 = vsel %vm1594_vm2, %v4369_v50, 0 }
 0x7f0   :  { %6344 = vmatmul.mubr.msk.bf16.vlgmr.msra.gmra.mxu1 %vm1218_vm10, %v4339_v46 }
 0x7f1   :  { %6348 = vmatpush3.bf16.msra.mxu1 %v4482_v26  ;;  %6349 = vmatprep.mubr.msk.bf16.mxu1 %vm6940_vm0, %v9010_v3 }
 0x7f2   :  { %6353 = vmatprep.subr.bf16.mxu1 %v9010_v3 }
 0x7f4   :  { %4310 = vrot.lane.b32.xlu1 %v8086_v53, %s6950_s22 }
 0x7f5   :  { %v8666_v57 = vpop.eup %6867 }
 0x7f6   :  { %v4221_v32 = vsel %vm1218_vm10, %v8666_v57, 0.0 }
 0x7f8   :  { %4312 = vrot.lane.b32.xlu1 %v8090_v36, %s6950_s22  ;;  %6350 = vmatmul.mubr.msk.bf16.vlgmr.msra.gmra.mxu1 %vm1218_vm10, %v4340_v55  ;;  %v8672_v41 = vpop.eup %6869 }
 0x7f9   :  { %6354 = vmatpush3.bf16.msra.mxu1 %v4528_v1  ;;  %6355 = vmatprep.mubr.msk.bf16.mxu1 %vm6940_vm0, %v9010_v3  ;;  %v4224_v34 = vsel %vm1218_vm10, %v8672_v41, 0.0  ;;  %v8678_v56 = vpop.eup %6871  ;;  %v4371_v1 = vpack.c.bf16 %v6669_v31, %v6669_v31 }
 0x7fa   :  { %6359 = vmatprep.subr.bf16.mxu1 %v9010_v3  ;;  %v4227_v37 = vsel %vm1218_vm10, %v8678_v56, 0.0 }
 0x7fc   :  { %5551 = vrot.lane.b32.xlu1 %v7992_v8, %s6949_s0  ;;  %4216 = vadd.xlane.f32.xlu0 %v4215_v9 }
 0x800   :  { %5575 = vrot.lane.b32.xlu1 %v7992_v8, %s6950_s22  ;;  %4219 = vadd.xlane.f32.xlu0 %v4218_v17 }
 0x804   :  { %5555 = vrot.lane.b32.xlu1 %v8011_v43, %s6949_s0  ;;  %4222 = vadd.xlane.f32.xlu0 %v4221_v32 }
 0x808   :  { %5557 = vrot.lane.b32.xlu1 %v8013_v48, %s6949_s0  ;;  %4225 = vadd.xlane.f32.xlu0 %v4224_v34 }
 0x80c   :  { %5579 = vrot.lane.b32.xlu1 %v8011_v43, %s6950_s22  ;;  %4228 = vadd.xlane.f32.xlu0 %v4227_v37  ;;  %v4804_v37 = vsel %vm1594_vm2, %v4371_v1, 0 }
 0x80e   :  { %v4172_v5 = vpop.xlane.xlu1 %4171 }
 0x80f   :  { %v4169_v33 = vpop.xlane.xlu0 %4168 }
 0x810   :  { %6873 = vrcp.f32 %v4169_v33  ;;  %5559 = vrot.lane.b32.xlu1 %v8030_v44, %s6949_s0 }
 0x811   :  { %6875 = vrcp.f32 %v4172_v5 }
 0x813   :  { %v4175_v10 = vpop.xlane.xlu1 %4174 }
 0x814   :  { %5561 = vrot.lane.b32.xlu1 %v8032_v58, %s6949_s0  ;;  %6877 = vrcp.f32 %v4175_v10  ;;  %v4370_v10 = vpack.c.bf16 %v8062_v7, %v8062_v7 }
 0x817   :  { %v8736_v26 = vpop.permute.xlu1 %6677 }
 0x818   :  { %5583 = vrot.lane.b32.xlu1 %v8030_v44, %s6950_s22  ;;  %v6679_v54 = vunpack.i.l.bf16 %v8736_v26 }
 0x81c   :  { %5607 = vrot.lane.b32.xlu1 %v8030_v44, %s6951_s23 }
 0x81d   :  { %v6874_v0 = vpop.eup %6873 }
 0x81e   :  { %v4237_v38 = vmul.f32 %v6874_v0, %v8540_v15  ;;  %v6876_v62 = vpop.eup %6875 }
 0x81f   :  { %v4239_v15 = vmul.f32 %v6876_v62, %v8538_v28 }
 0x820   :  { %v4341_v52 = vpack.c.bf16 %v4237_v38, %v4237_v38 }
 0x821   :  { %v4342_v60 = vpack.c.bf16 %v4239_v15, %v4239_v15  ;;  %v6878_v46 = vpop.eup %6877 }
 0x822   :  { %4330 = vrot.lane.b32.xlu0 %v8090_v36, %s6951_s23  ;;  %6356 = vmatmul.mubr.msk.bf16.vlgmr.msra.gmra.mxu1 %vm1218_vm10, %v4341_v52  ;;  %v4241_v28 = vmul.f32 %v6878_v46, %v8546_v25  ;;  %v8732_v25 = vpop.permute.xlu0 %4292  ;;  %v6674_v52 = vunpack.i.l.bf16 %v8531_v42 }
 0x823   :  { %6360 = vmatpush3.bf16.msra.mxu1 %v4574_v63  ;;  %6361 = vmatprep.mubr.msk.bf16.mxu1 %vm6940_vm0, %v9010_v3  ;;  %v4373_v63 = vpack.c.bf16 %v6679_v54, %v6679_v54 }
 0x824   :  { %6365 = vmatprep.subr.bf16.mxu1 %v9010_v3  ;;  %v4343_v22 = vpack.c.bf16 %v4241_v28, %v4241_v28  ;;  %v4372_v11 = vpack.c.bf16 %v6674_v52, %v6674_v52  ;;  %v6670_v28 = vunpack.i.h.bf16 %v8533_v51 }
 0x825   :  { %v4896_v50 = vsel %vm1594_vm2, %v4373_v63, 0 }
 0x826   :  { %5553 = vrot.lane.b32.xlu0 %v7994_v18, %s6949_s0 }
 0x82a   :  { %5577 = vrot.lane.b32.xlu0 %v7994_v18, %s6950_s22  ;;  %6362 = vmatmul.mubr.msk.bf16.vlgmr.msra.gmra.mxu1 %vm1218_vm10, %v4342_v60 }
 0x82b   :  { %6366 = vmatpush3.bf16.msra.mxu1 %v4620_v61  ;;  %6367 = vmatprep.mubr.msk.bf16.mxu1 %vm6940_vm0, %v9010_v3 }
 0x82c   :  { %6377 = vmatprep.subr.bf16.mxu1 %v9010_v3 }
 0x82e   :  { %5599 = vrot.lane.b32.xlu0 %v7992_v8, %s6951_s23 }
 0x832   :  { %5601 = vrot.lane.b32.xlu0 %v7994_v18, %s6951_s23  ;;  %6368 = vmatmul.mubr.msk.bf16.vlgmr.msra.gmra.mxu1 %vm1218_vm10, %v4343_v22  ;;  %v4850_v22 = vsel %vm1594_vm2, %v4372_v11, 0 }
 0x833   :  { %6378 = vmatpush3.bf16.msra.mxu1 %v4712_v13  ;;  %6379 = vmatprep.mubr.msk.bf16.mxu1 %vm6940_vm0, %v9010_v3  ;;  %v4375_v13 = vpack.c.bf16 %v6670_v28, %v6670_v28 }
 0x834   :  { %6389 = vmatprep.subr.bf16.mxu1 %v9010_v3 }
 0x836   :  { %5581 = vrot.lane.b32.xlu0 %v8013_v48, %s6950_s22 }
 0x83a   :  { %5603 = vrot.lane.b32.xlu0 %v8011_v43, %s6951_s23 }
 0x83e   :  { %5605 = vrot.lane.b32.xlu0 %v8013_v48, %s6951_s23 }
 0x842   :  { %5585 = vrot.lane.b32.xlu0 %v8032_v58, %s6950_s22 }
 0x844   :  { %v4181_v59 = vpop.xlane.xlu0 %4180 }
 0x845   :  { %6879 = vrcp.f32 %v4181_v59 }
 0x846   :  { %5609 = vrot.lane.b32.xlu0 %v8032_v58, %s6951_s23 }
 0x848   :  { %v4178_v6 = vpop.xlane.xlu1 %4177 }
 0x849   :  { %6881 = vrcp.f32 %v4178_v6  ;;  %v9023_v6 = vld [vmem:[#allocation6_spill] sm:$0xff] }
 0x84c   :  { %v4184_v45 = vpop.xlane.xlu1 %4183 }
 0x84d   :  { %6883 = vrcp.f32 %v4184_v45  ;;  %v4374_v45 = vpack.c.bf16 %v9023_v6, %v9023_v6 }
 0x850   :  { %v4187_v55 = vpop.xlane.xlu1 %4186 }
 0x851   :  { %6885 = vrcp.f32 %v4187_v55 }
 0x852   :  { %v6880_v12 = vpop.eup %6879 }
 0x853   :  { %v4245_v9 = vmul.f32 %v6880_v12, %v8562_v14  ;;  %v4199_v14 = vpop.xlane.xlu0 %4198 }
 0x854   :  { %v4190_v17 = vpop.xlane.xlu1 %4189 }
 0x855   :  { %v4345_v32 = vpack.c.bf16 %v4245_v9, %v4245_v9  ;;  %6887 = vrcp.f32 %v4190_v17  ;;  %v6680_v17 = vunpack.i.h.bf16 %v8736_v26 }
 0x856   :  { %v6882_v34 = vpop.eup %6881 }
 0x857   :  { %6380 = vmatmul.mubr.msk.bf16.vlgmr.msra.gmra.mxu1 %vm1218_vm10, %v4345_v32  ;;  %v4243_v33 = vmul.f32 %v6882_v34, %v8564_v39  ;;  %v4758_v39 = vsel %vm1594_vm2, %v4370_v10, 0  ;;  %v4211_v12 = vpop.xlane.xlu0 %4210  ;;  %v6675_v34 = vunpack.i.h.bf16 %v8531_v42  ;;  %v4377_v26 = vpack.c.bf16 %v6680_v17, %v6680_v17 }
 0x858   :  { %6390 = vmatpush3.bf16.msra.mxu1 %v4804_v37  ;;  %v4193_v5 = vpop.xlane.xlu1 %4192  ;;  %6391 = vmatprep.mubr.msk.bf16.mxu1 %vm6940_vm0, %v9010_v3 }
 0x859   :  { %6889 = vrcp.f32 %v4193_v5  ;;  %6401 = vmatprep.subr.bf16.mxu1 %v9010_v3  ;;  %v4344_v0 = vpack.c.bf16 %v4243_v33, %v4243_v33  ;;  %v4376_v33 = vpack.c.bf16 %v6675_v34, %v6675_v34 }
 0x85a   :  { %v6884_v38 = vpop.eup %6883  ;;  %6891 = vrcp.f32 %v4199_v14 }
 0x85b   :  { %6374 = vmatmul.mubr.msk.bf16.vlgmr.msra.gmra.mxu0 %vm1218_vm10, %v4344_v0  ;;  %v4247_v23 = vmul.f32 %v6884_v38, %v8578_v29  ;;  %v5034_v54 = vsel %vm1594_vm2, %v4376_v33, 0  ;;  %v4329_v11 = vpop.permute.xlu0 %4328 }
 0x85c   :  { %v4196_v62 = vpop.xlane.xlu1 %4195  ;;  %6384 = vmatpush3.bf16.msra.mxu0 %v4758_v39  ;;  %6385 = vmatprep.mubr.msk.bf16.mxu0 %vm6940_vm0, %v9010_v3  ;;  %v4379_v39 = vpack.c.bf16 %v8732_v25, %v8732_v25 }
 0x85d   :  { %6893 = vrcp.f32 %v4196_v62  ;;  %6395 = vmatprep.subr.bf16.mxu0 %v9010_v3  ;;  %v4346_v35 = vpack.c.bf16 %v4247_v23, %v4247_v23  ;;  %v4378_v62 = vpack.c.bf16 %v8086_v53, %v8086_v53 }
 0x85e   :  { %v6886_v7 = vpop.eup %6885 }
 0x85f   :  { %v4249_v15 = vmul.f32 %v6886_v7, %v8585_v47 }
 0x860   :  { %v4202_v60 = vpop.xlane.xlu1 %4201 }
 0x861   :  { %v4347_v46 = vpack.c.bf16 %v4249_v15, %v4249_v15  ;;  %v5172_v15 = vsel %vm1594_vm2, %v4379_v39, 0 }
 0x862   :  { %v6888_v61 = vpop.eup %6887 }
 0x863   :  { %6392 = vmatmul.mubr.msk.bf16.vlgmr.msra.gmra.mxu1 %vm1218_vm10, %v4347_v46  ;;  %6386 = vmatmul.mubr.msk.bf16.vlgmr.msra.gmra.mxu0 %vm1218_vm10, %v4346_v35  ;;  %v4251_v51 = vmul.f32 %v6888_v61, %v8590_v21  ;;  %v4988_v21 = vsel %vm1594_vm2, %v4375_v13, 0  ;;  %v4381_v46 = vpack.c.bf16 %v4329_v11, %v4329_v11  ;;  %v4295_v61 = vpop.permute.xlu0 %4294 }
 0x864   :  { %6402 = vmatpush3.bf16.msra.mxu1 %v4896_v50  ;;  %v4205_v29 = vpop.xlane.xlu1 %4204  ;;  %6396 = vmatpush3.bf16.msra.mxu0 %v4850_v22 }
 0x865   :  { %6895 = vrcp.f32 %v4205_v29  ;;  %6397 = vmatprep.mubr.msk.bf16.mxu0 %vm6940_vm0, %v9010_v3  ;;  %6403 = vmatprep.mubr.msk.bf16.mxu1 %vm6940_vm0, %v9010_v3  ;;  %v4348_v1 = vpack.c.bf16 %v4251_v51, %v4251_v51  ;;  %v5264_v29 = vsel %vm1594_vm2, %v4381_v46, 0  ;;  %v4382_v51 = vpack.c.bf16 %v8090_v36, %v8090_v36 }
 0x866   :  { %v6890_v47 = vpop.eup %6889  ;;  %6897 = vrcp.f32 %v4202_v60  ;;  %6407 = vmatprep.subr.bf16.mxu0 %v9010_v3  ;;  %6413 = vmatprep.subr.bf16.mxu1 %v9010_v3 }
 0x867   :  { %v4253_v59 = vmul.f32 %v6890_v47, %v8595_v16  ;;  %v6892_v55 = vpop.eup %6891  ;;  %v4942_v16 = vsel %vm1594_vm2, %v4374_v45, 0  ;;  %6899 = vrcp.f32 %v4211_v12  ;;  %v5310_v6 = vsel %vm1594_vm2, %v4382_v51, 0 }
 0x868   :  { %v4208_v32 = vpop.xlane.xlu1 %4207  ;;  %v4257_v37 = vmul.f32 %v6892_v55, %v8569_v30  ;;  %v5080_v30 = vsel %vm1594_vm2, %v4377_v26, 0  ;;  %v4383_v55 = vpack.c.bf16 %v4295_v61, %v4295_v61 }
 0x869   :  { %v4349_v31 = vpack.c.bf16 %v4253_v59, %v4253_v59  ;;  %6901 = vrcp.f32 %v4208_v32 }
 0x86a   :  { %v6894_v9 = vpop.eup %6893  ;;  %v4351_v5 = vpack.c.bf16 %v4257_v37, %v4257_v37  ;;  %v5356_v32 = vsel %vm1594_vm2, %v4383_v55, 0 }
 0x86b   :  { %6404 = vmatmul.mubr.msk.bf16.vlgmr.msra.gmra.mxu1 %vm1218_vm10, %v4349_v31  ;;  %6398 = vmatmul.mubr.msk.bf16.vlgmr.msra.gmra.mxu0 %vm1218_vm10, %v4348_v1  ;;  %v4255_v42 = vmul.f32 %v6894_v9, %v8599_v19 }
 0x86c   :  { %6414 = vmatpush3.bf16.msra.mxu1 %v4988_v21  ;;  %6408 = vmatpush3.bf16.msra.mxu0 %v4942_v16  ;;  %v4214_v38 = vpop.xlane.xlu1 %4213 }
 0x86d   :  { %6409 = vmatprep.mubr.msk.bf16.mxu0 %vm6940_vm0, %v9010_v3  ;;  %6415 = vmatprep.mubr.msk.bf16.mxu1 %vm6940_vm0, %v9010_v3  ;;  %v4350_v14 = vpack.c.bf16 %v4255_v42, %v4255_v42  ;;  %6903 = vrcp.f32 %v4214_v38 }
 0x86e   :  { %6419 = vmatprep.subr.bf16.mxu0 %v9010_v3  ;;  %6425 = vmatprep.subr.bf16.mxu1 %v9010_v3 }
 0x870   :  { %v4311_v25 = vpop.permute.xlu1 %4310 }
 0x871   :  { %v4380_v35 = vpack.c.bf16 %v4311_v25, %v4311_v25 }
 0x872   :  { %v6896_v10 = vpop.eup %6895 }
 0x873   :  { %v6898_v0 = vpop.eup %6897  ;;  %6416 = vmatmul.mubr.msk.bf16.vlgmr.msra.gmra.mxu1 %vm1218_vm10, %v4351_v5  ;;  %6410 = vmatmul.mubr.msk.bf16.vlgmr.msra.gmra.mxu0 %vm1218_vm10, %v4350_v14  ;;  %v4261_v19 = vmul.f32 %v6896_v10, %v8609_v24 }
 0x874   :  { %6426 = vmatpush3.bf16.msra.mxu1 %v5080_v30  ;;  %6420 = vmatpush3.bf16.msra.mxu0 %v5034_v54  ;;  %v4259_v52 = vmul.f32 %v6898_v0, %v8605_v20  ;;  %v6900_v23 = vpop.eup %6899  ;;  %v5126_v20 = vsel %vm1594_vm2, %v4378_v62, 0  ;;  %v4313_v12 = vpop.permute.xlu1 %4312  ;;  %v5650_v0 = vld [vmem:[%s8978_s6 + $0x18] sm:$0xff]  ;;  %v5649_v30 = vld [vmem:[%s8978_s6 + $0x10] sm:$0xff] }
 0x875   :  { %6421 = vmatprep.mubr.msk.bf16.mxu0 %vm6940_vm0, %v9010_v3  ;;  %6427 = vmatprep.mubr.msk.bf16.mxu1 %vm6940_vm0, %v9010_v3  ;;  %v4353_v7 = vpack.c.bf16 %v4261_v19, %v4261_v19  ;;  %v4265_v53 = vmul.f32 %v6900_v23, %v8573_v2  ;;  %v5218_v2 = vsel %vm1594_vm2, %v4380_v35, 0  ;;  %v4384_v21 = vpack.c.bf16 %v4313_v12, %v4313_v12 }
 0x876   :  { %6431 = vmatprep.subr.bf16.mxu0 %v9010_v3  ;;  %6437 = vmatprep.subr.bf16.mxu1 %v9010_v3  ;;  %v4352_v63 = vpack.c.bf16 %v4259_v52, %v4259_v52  ;;  %v6902_v24 = vpop.eup %6901 }
 0x877   :  { %v4263_v60 = vmul.f32 %v6902_v24, %v8615_v4  ;;  %v4355_v28 = vpack.c.bf16 %v4265_v53, %v4265_v53  ;;  %v5402_v42 = vsel %vm1594_vm2, %v4384_v21, 0 }
 0x879   :  { %v4354_v50 = vpack.c.bf16 %v4263_v60, %v4263_v60  ;;  %v5552_v60 = vpop.permute.xlu1 %5551 }
 0x87a   :  { %v6904_v22 = vpop.eup %6903 }
 0x87b   :  { %6428 = vmatmul.mubr.msk.bf16.vlgmr.msra.gmra.mxu1 %vm1218_vm10, %v4353_v7  ;;  %6422 = vmatmul.mubr.msk.bf16.vlgmr.msra.gmra.mxu0 %vm1218_vm10, %v4352_v63  ;;  %v4267_v4 = vmul.f32 %v6904_v22, %v8621_v40 }
 0x87c   :  { %6438 = vmatpush3.bf16.msra.mxu1 %v5172_v15  ;;  %6432 = vmatpush3.bf16.msra.mxu0 %v5126_v20 }
 0x87d   :  { %6433 = vmatprep.mubr.msk.bf16.mxu0 %vm6940_vm0, %v9010_v3  ;;  %6439 = vmatprep.mubr.msk.bf16.mxu1 %vm6940_vm0, %v9010_v3  ;;  %v4356_v59 = vpack.c.bf16 %v4267_v4, %v4267_v4  ;;  %v5576_v35 = vpop.permute.xlu1 %5575 }
 0x87e   :  { %6443 = vmatprep.subr.bf16.mxu0 %v9010_v3  ;;  %6449 = vmatprep.subr.bf16.mxu1 %v9010_v3 }
 0x883   :  { %6440 = vmatmul.mubr.msk.bf16.vlgmr.msra.gmra.mxu1 %vm1218_vm10, %v4355_v28  ;;  %6434 = vmatmul.mubr.msk.bf16.vlgmr.msra.gmra.mxu0 %vm1218_vm10, %v4354_v50  ;;  %v5569_v28 = vadd.f32 %v5552_v60, %v7992_v8  ;;  %v8874_v8 = vld [vmem:[%s8979_s5] ss:$0 sm:$0xff] }
 0x884   :  { %6450 = vmatpush3.bf16.msra.mxu1 %v5264_v29  ;;  %6444 = vmatpush3.bf16.msra.mxu0 %v5218_v2 }
 0x885   :  { %v4217_v47 = vpop.xlane.xlu0 %4216  ;;  %6445 = vmatprep.mubr.msk.bf16.mxu0 %vm6940_vm0, %v9010_v3  ;;  %6455 = vmatprep.subr.bf16.mxu0 %v9010_v3  ;;  %v5593_v2 = vadd.f32 %v5576_v35, %v5569_v28 }
 0x886   :  { %6905 = vrcp.f32 %v4217_v47  ;;  %6451 = vmatprep.mubr.msk.bf16.mxu1 %vm6940_vm0, %v9010_v3  ;;  %6461 = vmatprep.subr.bf16.mxu1 %v9010_v3 }
 0x889   :  { %v4220_v13 = vpop.xlane.xlu0 %4219 }
 0x88a   :  { %6907 = vrcp.f32 %v4220_v13 }
 0x88b   :  { %6446 = vmatmul.mubr.msk.bf16.vlgmr.msra.gmra.mxu0 %vm1218_vm10, %v4356_v59 }
 0x88c   :  { %6456 = vmatpush3.bf16.msra.mxu0 %v5310_v6  ;;  %6457 = vmatprep.mubr.msk.bf16.mxu0 %vm6940_vm0, %v9010_v3 }
 0x88d   :  { %v4223_v45 = vpop.xlane.xlu0 %4222  ;;  %6467 = vmatprep.subr.bf16.mxu0 %v9010_v3 }
 0x88e   :  { %6909 = vrcp.f32 %v4223_v45 }
 0x891   :  { %v4226_v40 = vpop.xlane.xlu0 %4225 }
 0x892   :  { %6911 = vrcp.f32 %v4226_v40 }
 0x893   :  { %v6906_v31 = vpop.eup %6905 }
 0x894   :  { %v4269_v36 = vmul.f32 %v6906_v31, %v8649_v27 }
 0x895   :  { %v4229_v1 = vpop.xlane.xlu0 %4228 }
 0x896   :  { %v4357_v9 = vpack.c.bf16 %v4269_v36, %v4269_v36  ;;  %6913 = vrcp.f32 %v4229_v1 }
 0x897   :  { %v6908_v17 = vpop.eup %6907 }
 0x898   :  { %6452 = vmatmul.mubr.msk.bf16.vlgmr.msra.gmra.mxu1 %vm1218_vm10, %v4357_v9  ;;  %v4271_v34 = vmul.f32 %v6908_v17, %v8660_v49 }
 0x899   :  { %6462 = vmatpush3.bf16.msra.mxu1 %v5356_v32  ;;  %v4331_v16 = vpop.permute.xlu0 %4330  ;;  %6463 = vmatprep.mubr.msk.bf16.mxu1 %vm6940_vm0, %v9010_v3 }
 0x89a   :  { %v4358_v37 = vpack.c.bf16 %v4271_v34, %v4271_v34  ;;  %6473 = vmatprep.subr.bf16.mxu1 %v9010_v3  ;;  %v4385_v33 = vpack.c.bf16 %v4331_v16, %v4331_v16 }
 0x89b   :  { %v6910_v27 = vpop.eup %6909 }
 0x89c   :  { %v4273_v26 = vmul.f32 %v6910_v27, %v8666_v57  ;;  %6458 = vmatmul.mubr.msk.bf16.vlgmr.msra.gmra.mxu0 %vm1218_vm10, %v4358_v37  ;;  %v5448_v10 = vsel %vm1594_vm2, %v4385_v33, 0  ;;  %v13_v27 = vstv %s8980_s7  ;;  %vm5935_vm2 = vcmask 1042434  }
 0x89d   :  { %6468 = vmatpush3.bf16.msra.mxu0 %v5402_v42  ;;  %6469 = vmatprep.mubr.msk.bf16.mxu0 %vm6940_vm0, %v9010_v3  ;;  %v5554_v53 = vpop.permute.xlu0 %5553  ;;  %14 = vst [vmem:[#allocation2] sm:$0x1] %v13_v27 }
 0x89e   :  { %v4359_v49 = vpack.c.bf16 %v4273_v26, %v4273_v26  ;;  %6479 = vmatprep.subr.mxu0 %v5650_v0 }
 0x89f   :  { %v6912_v5 = vpop.eup %6911 }
 0x8a0   :  { %6464 = vmatmul.mubr.msk.bf16.vlgmr.msra.gmra.mxu1 %vm1218_vm10, %v4359_v49  ;;  %v4275_v14 = vmul.f32 %v6912_v5, %v8672_v41  ;;  %v5648_v41 = vld [vmem:[%s8978_s6 + $0x8] sm:$0xff]  ;;  %v5570_v5 = vadd.f32 %v5554_v53, %v7994_v18 }
 0x8a1   :  { %6474 = vmatpush3.bf16.msra.mxu1 %v5448_v10  ;;  %6475 = vmatprep.mubr.msk.bf16.mxu1 %vm6940_vm0, %v9010_v3  ;;  %v5647_v3 = vld [vmem:[%s8978_s6] sm:$0xff]  ;;  %v5578_v46 = vpop.permute.xlu0 %5577  ;;  %vm5933_vm0 = vcmask 1041409  }
 0x8a2   :  { %v4360_v57 = vpack.c.bf16 %v4275_v14, %v4275_v14 }
 0x8a3   :  { %v6914_v38 = vpop.eup %6913 }
 0x8a4   :  { %v4277_v54 = vmul.f32 %v6914_v38, %v8678_v56  ;;  %6470 = vmatmul.mubr.msk.bf16.vlgmr.msra.gmra.mxu0 %vm1218_vm10, %v4360_v57  ;;  %v5594_v57 = vadd.f32 %v5578_v46, %v5570_v5 }
 0x8a5   :  { %6480 = vmatpush3.msra.mxu0 %v5650_v0  ;;  %v5600_v50 = vpop.permute.xlu0 %5599 }
 0x8a6   :  { %v4361_v19 = vpack.c.bf16 %v4277_v54, %v4277_v54  ;;  %6481 = vmatprep.subr.mxu0 %v5649_v30  ;;  %v5617_v4 = vadd.f32 %v5600_v50, %v5593_v2  ;;  %v5556_v54 = vpop.permute.xlu1 %5555 }
 0x8a7   :  { %6482 = vmatpush3.msra.mxu0 %v5649_v30  ;;  %v5571_v2 = vadd.f32 %v5556_v54, %v8011_v43 }
 0x8a8   :  { %v4426_v52 = vpop.f32.mrf.mxu1  ;;  %6476 = vmatmul.mubr.msk.bf16.vlgmr.msra.gmra.mxu1 %vm1218_vm10, %v4361_v19  ;;  %6483 = vmatprep.subr.mxu0 %v5648_v41  ;;  %v5623_v40 = vmul.f32 0.25, %v5617_v4  ;;  %vm5937_vm10 = vcmask 1043459  }
 0x8a9   :  { %6484 = vmatpush3.msra.mxu0 %v5648_v41  ;;  %v5490_v22 = vsel %vm2768_vm11, %v4426_v52, 0.0  ;;  %v5602_v10 = vpop.permute.xlu0 %5601 }
 0x8aa   :  { %v6339_v56 = vpop.f32.mrf.mxu1  ;;  %6485 = vmatprep.subr.mxu0 %v5647_v3 }
 0x8ab   :  { %6486 = vmatpush3.msra.mxu0 %v5647_v3  ;;  %v5618_v3 = vadd.f32 %v5602_v10, %v5594_v57 }
 0x8ac   :  { %v4429_v39 = vpop.f32.mrf.mxu1 }
 0x8ae   :  { %v6340_v62 = vpop.f32.mrf.mxu1 }
 0x8b0   :  { %v4472_v7 = vpop.f32.mrf.mxu1 }
 0x8b1   :  { %v5491_v61 = vsel %vm2768_vm11, %v4472_v7, 0.0 }
 0x8b2   :  { %v6345_v23 = vpop.f32.mrf.mxu1  ;;  %v5492_v47 = vadd.f32 %v5491_v61, %v5490_v22 }
 0x8b3   :  { %v5624_v23 = vmul.f32 0.25, %v5618_v3 }
 0x8b4   :  { %v4475_v63 = vpop.f32.mrf.mxu1 }
 0x8b6   :  { %v6346_v24 = vpop.f32.mrf.mxu1 }
 0x8b7   :  { %v5558_v24 = vpop.permute.xlu1 %5557 }
 0x8b8   :  { %v4518_v15 = vpop.f32.mrf.mxu1 }
 0x8b9   :  { %v5493_v29 = vsel %vm2768_vm11, %v4518_v15, 0.0 }
 0x8ba   :  { %v6351_v11 = vpop.f32.mrf.mxu1  ;;  %v5494_v51 = vadd.f32 %v5493_v29, %v5492_v47 }
 0x8bb   :  { %v5580_v28 = vpop.permute.xlu1 %5579 }
 0x8bc   :  { %v4521_v20 = vpop.f32.mrf.mxu1 }
 0x8be   :  { %v6352_v25 = vpop.f32.mrf.mxu1 }
 0x8bf   :  { %v5582_v25 = vpop.permute.xlu0 %5581 }
 0x8c3   :  { %v5604_v4 = vpop.permute.xlu0 %5603 }
 0x8c7   :  { %v5606_v54 = vpop.permute.xlu0 %5605 }
 0x8e2   :  { %v4564_v13 = vpop.f32.mrf.mxu1 }
 0x8e3   :  { %v5495_v59 = vsel %vm2768_vm11, %v4564_v13, 0.0  ;;  %v5595_v13 = vadd.f32 %v5580_v28, %v5571_v2 }
 0x8e4   :  { %v5496_v6 = vadd.f32 %v5495_v59, %v5494_v51  ;;  %v6357_v45 = vpop.f32.mrf.mxu1 }
 0x8e6   :  { %v5533_v31 = vmul.f32 0.25, %v5496_v6  ;;  %v4567_v55 = vpop.f32.mrf.mxu1 }
 0x8e8   :  { %v5629_v36 = vadd.f32 %v5623_v40, %v5533_v31  ;;  %v6358_v12 = vpop.f32.mrf.mxu1  ;;  %v5619_v31 = vadd.f32 %v5604_v4, %v5595_v13 }
 0x8ea   :  { %v8877_v1 = vadd.f32 %v8874_v8, %v5629_v36  ;;  %v4610_v9 = vpop.f32.mrf.mxu1 }
 0x8eb   :  { %v5497_v14 = vsel %vm2768_vm11, %v4610_v9, 0.0 }
 0x8ec   :  { %v6363_v17 = vpop.f32.mrf.mxu1  ;;  %6487 = vmatprep.mubr.msk.f32.mxu0 %vm2768_vm11, %v8877_v1 }
 0x8ee   :  { %v4613_v32 = vpop.f32.mrf.mxu1 }
 0x8f0   :  { %v6364_v21 = vpop.f32.mrf.mxu1 }
 0x8f2   :  { %v4656_v34 = vpop.f32.mrf.mxu1 }
 0x8f3   :  { %v5498_v33 = vsel %vm2768_vm11, %v4656_v34, 0.0  ;;  %v5625_v34 = vmul.f32 0.25, %v5619_v31 }
 0x8f4   :  { %v6369_v16 = vpop.f32.mrf.mxu1  ;;  %v5499_v38 = vadd.f32 %v5498_v33, %v5497_v14 }
 0x8f6   :  { %v4659_v37 = vpop.f32.mrf.mxu1 }
 0x8f8   :  { %v6370_v42 = vpop.f32.mrf.mxu1 }
 0x917   :  { %v4748_v26 = vpop.f32.mrf.mxu1 }
 0x918   :  { %v5502_v39 = vsel %vm2768_vm11, %v4748_v26, 0.0 }
 0x919   :  { %v6381_v49 = vpop.f32.mrf.mxu1 }
 0x91b   :  { %v4751_v0 = vpop.f32.mrf.mxu1  ;;  %v4702_v30 = vpop.f32.mrf.mxu0 }
 0x91c   :  { %v5500_v41 = vsel %vm2768_vm11, %v4702_v30, 0.0 }
 0x91d   :  { %v6382_v19 = vpop.f32.mrf.mxu1  ;;  %v5501_v52 = vadd.f32 %v5500_v41, %v5499_v38  ;;  %v6375_v56 = vpop.f32.mrf.mxu0  ;;  %v5572_v38 = vadd.f32 %v5558_v24, %v8013_v48 }
 0x91f   :  { %v5503_v62 = vadd.f32 %v5502_v39, %v5501_v52  ;;  %v4705_v7 = vpop.f32.mrf.mxu0  ;;  %v5596_v19 = vadd.f32 %v5582_v25, %v5572_v38 }
 0x921   :  { %v5534_v18 = vmul.f32 0.25, %v5503_v62  ;;  %v6376_v63 = vpop.f32.mrf.mxu0  ;;  %v5620_v62 = vadd.f32 %v5606_v54, %v5596_v19 }
 0x923   :  { %v4840_v15 = vpop.f32.mrf.mxu1  ;;  %v5630_v11 = vadd.f32 %v5624_v23, %v5534_v18  ;;  %v4794_v20 = vpop.f32.mrf.mxu0 }
 0x924   :  { %v5504_v50 = vsel %vm2768_vm11, %v4794_v20, 0.0  ;;  %v5505_v22 = vsel %vm2768_vm11, %v4840_v15, 0.0 }
 0x925   :  { %v6393_v53 = vpop.f32.mrf.mxu1  ;;  %v8890_v60 = vadd.f32 %v8874_v8, %v5630_v11  ;;  %v6387_v46 = vpop.f32.mrf.mxu0  ;;  %v5506_v59 = vadd.f32 %v5505_v22, %v5504_v50 }
 0x926   :  { %v5626_v53 = vmul.f32 0.25, %v5620_v62  ;;  %v5560_v46 = vpop.permute.xlu1 %5559 }
 0x927   :  { %v4843_v35 = vpop.f32.mrf.mxu1  ;;  %v4797_v61 = vpop.f32.mrf.mxu0  ;;  %6488 = vmatmul.mubr.msk.f32.vlgmr.msra.gmra.mxu0 %vm2768_vm11, %v8890_v60 }
 0x929   :  { %v6394_v29 = vpop.f32.mrf.mxu1  ;;  %v6388_v47 = vpop.f32.mrf.mxu0 }
 0x92a   :  { %v5562_v47 = vpop.permute.xlu1 %5561 }
 0x92b   :  { %v4932_v51 = vpop.f32.mrf.mxu1  ;;  %v4886_v6 = vpop.f32.mrf.mxu0 }
 0x92c   :  { %v5507_v45 = vsel %vm2768_vm11, %v4886_v6, 0.0  ;;  %v5509_v12 = vsel %vm2768_vm11, %v4932_v51, 0.0 }
 0x92d   :  { %v6405_v40 = vpop.f32.mrf.mxu1  ;;  %v5508_v55 = vadd.f32 %v5507_v45, %v5506_v59  ;;  %v6399_v36 = vpop.f32.mrf.mxu0 }
 0x92e   :  { %v5584_v6 = vpop.permute.xlu1 %5583  ;;  %v5573_v36 = vadd.f32 %v5560_v46, %v8030_v44  ;;  %v5586_v44 = vpop.permute.xlu0 %5585 }
 0x92f   :  { %v4935_v9 = vpop.f32.mrf.mxu1  ;;  %v5510_v17 = vadd.f32 %v5509_v12, %v5508_v55  ;;  %v4889_v32 = vpop.f32.mrf.mxu0 }
 0x931   :  { %v6406_v21 = vpop.f32.mrf.mxu1  ;;  %v5535_v43 = vmul.f32 0.25, %v5510_v17  ;;  %v6400_v16 = vpop.f32.mrf.mxu0  ;;  %v5597_v17 = vadd.f32 %v5584_v6, %v5573_v36 }
 0x932   :  { %v5608_v12 = vpop.permute.xlu1 %5607 }
 0x933   :  { %v5024_v37 = vpop.f32.mrf.mxu1  ;;  %v5631_v27 = vadd.f32 %v5625_v34, %v5535_v43  ;;  %v4978_v42 = vpop.f32.mrf.mxu0  ;;  %v5621_v21 = vadd.f32 %v5608_v12, %v5597_v17 }
 0x934   :  { %v5511_v14 = vsel %vm2768_vm11, %v4978_v42, 0.0  ;;  %v5512_v0 = vsel %vm2768_vm11, %v5024_v37, 0.0 }
 0x935   :  { %v6417_v26 = vpop.f32.mrf.mxu1  ;;  %v8900_v33 = vadd.f32 %v8874_v8, %v5631_v27  ;;  %v6411_v49 = vpop.f32.mrf.mxu0  ;;  %v5513_v3 = vadd.f32 %v5512_v0, %v5511_v14  ;;  %v5627_v42 = vmul.f32 0.25, %v5621_v21 }
 0x937   :  { %v5027_v5 = vpop.f32.mrf.mxu1  ;;  %v4981_v10 = vpop.f32.mrf.mxu0  ;;  %6490 = vmatprep.mubr.msk.f32.mxu0 %vm2768_vm11, %v8900_v33 }
 0x939   :  { %v6418_v57 = vpop.f32.mrf.mxu1  ;;  %v6412_v30 = vpop.f32.mrf.mxu0 }
 0x93b   :  { %v5116_v41 = vpop.f32.mrf.mxu1  ;;  %v5070_v52 = vpop.f32.mrf.mxu0 }
 0x93c   :  { %v5514_v56 = vsel %vm2768_vm11, %v5070_v52, 0.0  ;;  %v5516_v18 = vsel %vm2768_vm11, %v5116_v41, 0.0 }
 0x93d   :  { %v6429_v39 = vpop.f32.mrf.mxu1  ;;  %v5515_v7 = vadd.f32 %v5514_v56, %v5513_v3  ;;  %v6423_v23 = vpop.f32.mrf.mxu0  ;;  %v5574_v3 = vadd.f32 %v5562_v47, %v8032_v58  ;;  %v6046_v47 = vld [vmem:[#allocation2] ss:$0 sm:$0xff] }
 0x93e   :  { %v5610_v39 = vpop.permute.xlu0 %5609 }
 0x93f   :  { %v5119_v63 = vpop.f32.mrf.mxu1  ;;  %v5517_v15 = vadd.f32 %v5516_v18, %v5515_v7  ;;  %v5073_v11 = vpop.f32.mrf.mxu0  ;;  %v5598_v23 = vadd.f32 %v5586_v44, %v5574_v3 }
 0x941   :  { %v6430_v20 = vpop.f32.mrf.mxu1  ;;  %v5536_v48 = vmul.f32 0.25, %v5517_v15  ;;  %v6424_v24 = vpop.f32.mrf.mxu0  ;;  %v5622_v11 = vadd.f32 %v5610_v39, %v5598_v23  ;;  %v5899_v39 = vsel %vm2768_vm11, %v8900_v33, -inf }
 0x943   :  { %v5208_v35 = vpop.f32.mrf.mxu1  ;;  %v5632_v25 = vadd.f32 %v5626_v53, %v5536_v48  ;;  %v5162_v61 = vpop.f32.mrf.mxu0 }
 0x944   :  { %v5518_v31 = vsel %vm2768_vm11, %v5162_v61, 0.0  ;;  %v5519_v55 = vsel %vm2768_vm11, %v5208_v35, 0.0 }
 0x945   :  { %v6441_v28 = vpop.f32.mrf.mxu1  ;;  %v8910_v50 = vadd.f32 %v8874_v8, %v5632_v25  ;;  %v6435_v22 = vpop.f32.mrf.mxu0  ;;  %v5520_v32 = vadd.f32 %v5519_v55, %v5518_v31  ;;  %v5628_v25 = vmul.f32 0.25, %v5622_v11 }
 0x947   :  { %v5211_v29 = vpop.f32.mrf.mxu1  ;;  %v5165_v2 = vpop.f32.mrf.mxu0  ;;  %6491 = vmatmul.mubr.msk.f32.gmra.mxu0 %vm2768_vm11, %v8910_v50 }
 0x949   :  { %v6442_v4 = vpop.f32.mrf.mxu1  ;;  %v6436_v51 = vpop.f32.mrf.mxu0 }
 0x94b   :  { %v5254_v13 = vpop.f32.mrf.mxu0 }
 0x94c   :  { %v5521_v9 = vsel %vm2768_vm11, %v5254_v13, 0.0 }
 0x94d   :  { %v6447_v59 = vpop.f32.mrf.mxu0  ;;  %v5522_v34 = vadd.f32 %v5521_v9, %v5520_v32 }
 0x94f   :  { %v5257_v45 = vpop.f32.mrf.mxu0 }
 0x951   :  { %v6448_v40 = vpop.f32.mrf.mxu0 }
 0x958   :  { %v5300_v43 = vpop.f32.mrf.mxu1 }
 0x959   :  { %v5523_v16 = vsel %vm2768_vm11, %v5300_v43, 0.0 }
 0x95a   :  { %v5524_v37 = vadd.f32 %v5523_v16, %v5522_v34  ;;  %v6453_v27 = vpop.f32.mrf.mxu1 }
 0x95c   :  { %v5537_v26 = vmul.f32 0.25, %v5524_v37  ;;  %v5303_v49 = vpop.f32.mrf.mxu1  ;;  %v5346_v5 = vpop.f32.mrf.mxu0 }
 0x95d   :  { %v5525_v62 = vsel %vm2768_vm11, %v5346_v5, 0.0 }
 0x95e   :  { %v5633_v10 = vadd.f32 %v5627_v42, %v5537_v26  ;;  %v6454_v14 = vpop.f32.mrf.mxu1  ;;  %v6459_v0 = vpop.f32.mrf.mxu0 }
 0x960   :  { %v8920_v57 = vadd.f32 %v8874_v8, %v5633_v10  ;;  %v5349_v38 = vpop.f32.mrf.mxu0  ;;  %v5392_v30 = vpop.f32.mrf.mxu1 }
 0x961   :  { %v5526_v19 = vsel %vm2768_vm11, %v5392_v30, 0.0 }
 0x962   :  { %v6460_v54 = vpop.f32.mrf.mxu0  ;;  %v6465_v41 = vpop.f32.mrf.mxu1  ;;  %6493 = vmatprep.mubr.msk.f32.mxu0 %vm2768_vm11, %v8920_v57  ;;  %v5527_v18 = vadd.f32 %v5526_v19, %v5525_v62  ;;  %v5885_v62 = vsel %vm2768_vm11, %v8877_v1, -inf }
 0x963   :  { %v5886_v11 = vrot.slane %v5885_v62, 4 }
 0x964   :  { %v5395_v52 = vpop.f32.mrf.mxu1  ;;  %v5438_v56 = vpop.f32.mrf.mxu0 }
 0x965   :  { %v5528_v7 = vsel %vm2768_vm11, %v5438_v56, 0.0  ;;  %v5892_v56 = vsel %vm2768_vm11, %v8890_v60, -inf }
 0x966   :  { %v6466_v63 = vpop.f32.mrf.mxu1  ;;  %v6471_v15 = vpop.f32.mrf.mxu0  ;;  %v5529_v20 = vadd.f32 %v5528_v7, %v5527_v18  ;;  %v5906_v7 = vsel %vm2768_vm11, %v8910_v50, -inf  ;;  %v5893_v23 = vrot.slane %v5892_v56, 4  ;;  %v5913_v18 = vsel %vm2768_vm11, %v8920_v57, -inf }
 0x967   :  { %v5900_v63 = vrot.slane %v5899_v39, 4 }
 0x968   :  { %v5441_v53 = vpop.f32.mrf.mxu0  ;;  %v5484_v48 = vpop.f32.mrf.mxu1 }
 0x969   :  { %v5530_v24 = vsel %vm2768_vm11, %v5484_v48, 0.0  ;;  %v5914_v53 = vrot.slane %v5913_v18, 4  ;;  %v5894_v48 = vmax.f32 %v5892_v56, %v5893_v23 }
 0x96a   :  { %v5531_v46 = vadd.f32 %v5530_v24, %v5529_v20  ;;  %v6472_v35 = vpop.f32.mrf.mxu0  ;;  %v6477_v58 = vpop.f32.mrf.mxu1  ;;  %v5907_v20 = vrot.slane %v5906_v7, 4 }
 0x96b   :  { %v5887_v58 = vmax.f32 %v5885_v62, %v5886_v11 }
 0x96c   :  { %v5538_v61 = vmul.f32 0.25, %v5531_v46  ;;  %v5487_v28 = vpop.f32.mrf.mxu1  ;;  %v5901_v46 = vmax.f32 %v5899_v39, %v5900_v63 }
 0x96e   :  { %v5634_v22 = vadd.f32 %v5628_v25, %v5538_v61  ;;  %v6478_v29 = vpop.f32.mrf.mxu1  ;;  %v5908_v25 = vmax.f32 %v5906_v7, %v5907_v20  ;;  %v5915_v61 = vmax.f32 %v5913_v18, %v5914_v53 }
 0x96f   :  { %v5895_v29 = vrot.slane %v5894_v48, 2 }
 0x970   :  { %v8930_v2 = vadd.f32 %v8874_v8, %v5634_v22 }
 0x972   :  { %6494 = vmatmul.mubr.msk.f32.gmra.mxu0 %vm2768_vm11, %v8930_v2  ;;  %v5920_v15 = vsel %vm2768_vm11, %v8930_v2, -inf }
 0x973   :  { %v5921_v24 = vrot.slane %v5920_v15, 4 }
 0x9e7   :  { %v6489_v4 = vpop.f32.mrf.mxu0 }
 0x9e8   :  { %v5748_v51 = vadd.f32 %v6489_v4, %v6046_v47  ;;  %v5902_v4 = vrot.slane %v5901_v46, 2 }
 0x9e9   :  { %v5742_v13 = vpop.f32.mrf.mxu0 }
 0x9ea   :  { %v5772_v59 = vsub.f32 0.0, %v5748_v51  ;;  %v5743_v6 = vadd.f32 %v6046_v47, %v5742_v13  ;;  %v5888_v13 = vrot.slane %v5887_v58, 2 }
 0x9ec   :  { %v5779_v45 = vmul.f32 1.442695, %v5772_v59  ;;  %v5771_v40 = vsub.f32 0.0, %v5743_v6  ;;  %v5909_v59 = vrot.slane %v5908_v25, 2  ;;  %v5916_v6 = vrot.slane %v5915_v61, 2 }
 0x9ee   :  { %6915 = vpow2.f32 %v5779_v45  ;;  %v5777_v31 = vmul.f32 1.442695, %v5771_v40  ;;  %v5896_v45 = vmax.f32 %v5894_v48, %v5895_v29 }
 0x9f0   :  { %6917 = vpow2.f32 %v5777_v31  ;;  %v5903_v31 = vmax.f32 %v5901_v46, %v5902_v4 }
 0x9fb   :  { %v6916_v55 = vpop.eup %6915 }
 0x9fc   :  { %v5790_v36 = vadd.f32 1.0, %v6916_v55  ;;  %v5889_v55 = vmax.f32 %v5887_v58, %v5888_v13 }
 0x9fd   :  { %v6918_v12 = vpop.eup %6917 }
 0x9fe   :  { %6919 = vrcp.f32 %v5790_v36  ;;  %v5789_v8 = vadd.f32 1.0, %v6918_v12  ;;  %v5910_v36 = vmax.f32 %v5908_v25, %v5909_v59  ;;  %v5917_v12 = vmax.f32 %v5915_v61, %v5916_v6 }
 0xa00   :  { %6921 = vrcp.f32 %v5789_v8  ;;  %v5897_v8 = vrot.slane %v5896_v45, 1 }
 0xa07   :  { %v6492_v9 = vpop.f32.mrf.mxu0 }
 0xa08   :  { %v5758_v17 = vadd.f32 %v6492_v9, %v6046_v47 }
 0xa09   :  { %v5752_v32 = vpop.f32.mrf.mxu0 }
 0xa0a   :  { %v5774_v21 = vsub.f32 0.0, %v5758_v17  ;;  %v5753_v34 = vadd.f32 %v6046_v47, %v5752_v32  ;;  %v5904_v17 = vrot.slane %v5903_v31, 1  ;;  %v5890_v32 = vrot.slane %v5889_v55, 1 }
 0xa0b   :  { %v6920_v43 = vpop.eup %6919 }
 0xa0c   :  { %v5783_v16 = vmul.f32 1.442695, %v5774_v21  ;;  %v5773_v37 = vsub.f32 0.0, %v5753_v34  ;;  %5814 = vperm.xlu0 %6681, %v6920_v43   ;;  %v5911_v21 = vrot.slane %v5910_v36, 1  ;;  %v5918_v34 = vrot.slane %v5917_v12, 1 }
 0xa0d   :  { %v6922_v27 = vpop.eup %6921  ;;  %v5898_v43 = vmax.f32 %v5896_v45, %v5897_v8 }
 0xa0e   :  { %6923 = vpow2.f32 %v5783_v16  ;;  %v5781_v42 = vmul.f32 1.442695, %v5773_v37  ;;  %5809 = vperm.xlu1 %6682, %v6922_v27   ;;  %v5905_v37 = vmax.f32 %v5903_v31, %v5904_v17 }
 0xa10   :  { %6925 = vpow2.f32 %v5781_v42  ;;  %v5891_v42 = vmax.f32 %v5889_v55, %v5890_v32 }
 0xa1b   :  { %v6924_v26 = vpop.eup %6923 }
 0xa1c   :  { %v5792_v49 = vadd.f32 1.0, %v6924_v26  ;;  %v5912_v26 = vmax.f32 %v5910_v36, %v5911_v21 }
 0xa1d   :  { %v6926_v5 = vpop.eup %6925 }
 0xa1e   :  { %6927 = vrcp.f32 %v5792_v49  ;;  %v5791_v10 = vadd.f32 1.0, %v6926_v5  ;;  %v5919_v49 = vmax.f32 %v5917_v12, %v5918_v34 }
 0xa20   :  { %6929 = vrcp.f32 %v5791_v10 }
 0xa2b   :  { %v6928_v14 = vpop.eup %6927 }
 0xa2c   :  { %5824 = vperm.xlu1 %6682, %v6928_v14   ;;  %v5950_v14 = vsel %vm5933_vm0, %v5898_v43, %v5891_v42 }
 0xa2d   :  { %v6930_v0 = vpop.eup %6929 }
 0xa30   :  { %5819 = vperm.xlu1 %6682, %v6930_v0   ;;  %v5951_v0 = vsel %vm5935_vm2, %v5905_v37, %v5950_v14 }
 0xa32   :  { %v6495_v44 = vpop.f32.mrf.mxu0 }
 0xa33   :  { %v5768_v38 = vadd.f32 %v6495_v44, %v6046_v47  ;;  %v5952_v44 = vsel %vm5937_vm10, %v5912_v26, %v5951_v0 }
 0xa34   :  { %v5762_v30 = vpop.f32.mrf.mxu0 }
 0xa35   :  { %v5776_v54 = vsub.f32 0.0, %v5768_v38  ;;  %v5763_v41 = vadd.f32 %v6046_v47, %v5762_v30  ;;  %v5922_v47 = vmax.f32 %v5920_v15, %v5921_v24  ;;  %v5953_v38 = vsel %vm5939_vm4, %v5919_v49, %v5952_v44 }
 0xa37   :  { %v5787_v19 = vmul.f32 1.442695, %v5776_v54  ;;  %v5775_v3 = vsub.f32 0.0, %v5763_v41  ;;  %v5923_v40 = vrot.slane %v5922_v47, 2 }
 0xa39   :  { %6931 = vpow2.f32 %v5787_v19  ;;  %v5785_v52 = vmul.f32 1.442695, %v5775_v3  ;;  %v5924_v9 = vmax.f32 %v5922_v47, %v5923_v40 }
 0xa3b   :  { %6933 = vpow2.f32 %v5785_v52  ;;  %v5925_v16 = vrot.slane %v5924_v9, 1 }
 0xa3d   :  { %v5926_v10 = vmax.f32 %v5924_v9, %v5925_v16 }
 0xa3f   :  { %v5954_v30 = vsel %vm5941_vm5, %v5926_v10, %v5953_v38 }
 0xa46   :  { %v6932_v35 = vpop.eup %6931 }
 0xa47   :  { %v5794_v28 = vadd.f32 1.0, %v6932_v35 }
 0xa48   :  { %v6934_v22 = vpop.eup %6933 }
 0xa49   :  { %6935 = vrcp.f32 %v5794_v28  ;;  %v5793_v51 = vadd.f32 1.0, %v6934_v22 }
 0xa4b   :  { %6937 = vrcp.f32 %v5793_v51 }
 0xa56   :  { %v6936_v27 = vpop.eup %6935 }
 0xa57   :  { %5834 = vperm.xlu1 %6682, %v6936_v27  }
 0xa58   :  { %v6938_v5 = vpop.eup %6937 }
 0xa59   :  { %5829 = vperm.xlu0 %6681, %v6938_v5  }
 0xa5d   :  { %5955 = vrot.lane.b32.xlu0 %v5954_v30, %s6951_s23 }
 0xa87   :  { %v5815_v3 = vpop.permute.xlu0 %5814 }
 0xa88   :  { %v5838_v39 = vmul.f32 %v5815_v3, %v8890_v60 }
 0xa89   :  { %v5810_v54 = vpop.permute.xlu1 %5809 }
 0xa8a   :  { %v5837_v52 = vmul.f32 %v5810_v54, %v8877_v1  ;;  %v5850_v23 = vsel %vm2768_vm11, %v5838_v39, 0.0 }
 0xa8b   :  { %v5851_v11 = vrot.slane %v5850_v23, 4 }
 0xa8c   :  { %v5843_v62 = vsel %vm2768_vm11, %v5837_v52, 0.0 }
 0xa8d   :  { %v5844_v63 = vrot.slane %v5843_v62, 4  ;;  %v5852_v1 = vadd.f32 %v5851_v11, %v5850_v23 }
 0xa8f   :  { %v5845_v53 = vadd.f32 %v5844_v63, %v5843_v62  ;;  %v5853_v60 = vrot.slane %v5852_v1, 2 }
 0xaa7   :  { %v5825_v41 = vpop.permute.xlu1 %5824 }
 0xaa8   :  { %v5840_v18 = vmul.f32 %v5825_v41, %v8910_v50  ;;  %v5854_v50 = vadd.f32 %v5853_v60, %v5852_v1 }
 0xaaa   :  { %v5864_v20 = vsel %vm2768_vm11, %v5840_v18, 0.0  ;;  %v5855_v31 = vrot.slane %v5854_v50, 1 }
 0xaab   :  { %v5820_v19 = vpop.permute.xlu1 %5819  ;;  %v5865_v24 = vrot.slane %v5864_v20, 4 }
 0xaac   :  { %v5839_v56 = vmul.f32 %v5820_v19, %v8900_v33  ;;  %v5846_v33 = vrot.slane %v5845_v53, 2  ;;  %v5856_v32 = vadd.f32 %v5855_v31, %v5854_v50 }
 0xaad   :  { %v5866_v35 = vadd.f32 %v5865_v24, %v5864_v20 }
 0xaae   :  { %v5857_v7 = vsel %vm2768_vm11, %v5839_v56, 0.0  ;;  %v5847_v25 = vadd.f32 %v5846_v33, %v5845_v53 }
 0xaaf   :  { %v5858_v15 = vrot.slane %v5857_v7, 4  ;;  %v5867_v29 = vrot.slane %v5866_v35, 2 }
 0xab0   :  { %v5848_v13 = vrot.slane %v5847_v25, 1 }
 0xab1   :  { %v5859_v48 = vadd.f32 %v5858_v15, %v5857_v7  ;;  %v5868_v55 = vadd.f32 %v5867_v29, %v5866_v35 }
 0xab3   :  { %v5860_v46 = vrot.slane %v5859_v48, 2  ;;  %v5869_v21 = vrot.slane %v5868_v55, 1 }
 0xab5   :  { %v5861_v28 = vadd.f32 %v5860_v46, %v5859_v48  ;;  %v5870_v27 = vadd.f32 %v5869_v21, %v5868_v55 }
 0xab7   :  { %v5862_v6 = vrot.slane %v5861_v28, 1 }
 0xab9   :  { %v5863_v8 = vadd.f32 %v5862_v6, %v5861_v28 }
 0xad2   :  { %v5835_v58 = vpop.permute.xlu1 %5834 }
 0xad3   :  { %v5842_v61 = vmul.f32 %v5835_v58, %v8930_v2  ;;  %v5849_v2 = vadd.f32 %v5848_v13, %v5847_v25 }
 0xad4   :  { %v5830_v22 = vpop.permute.xlu0 %5829 }
 0xad5   :  { %v5878_v47 = vsel %vm2768_vm11, %v5842_v61, 0.0  ;;  %v5841_v4 = vmul.f32 %v5830_v22, %v8920_v57  ;;  %v5934_v57 = vsel %vm5933_vm0, %v5856_v32, %v5849_v2 }
 0xad6   :  { %v5879_v51 = vrot.slane %v5878_v47, 4  ;;  %v5936_v37 = vsel %vm5935_vm2, %v5863_v8, %v5934_v57 }
 0xad7   :  { %v5871_v59 = vsel %vm2768_vm11, %v5841_v4, 0.0  ;;  %v5938_v49 = vsel %vm5937_vm10, %v5870_v27, %v5936_v37 }
 0xad8   :  { %v5880_v45 = vadd.f32 %v5879_v51, %v5878_v47  ;;  %v5872_v40 = vrot.slane %v5871_v59, 4  ;;  %v5956_v14 = vpop.permute.xlu0 %5955 }
 0xada   :  { %v5881_v36 = vrot.slane %v5880_v45, 2  ;;  %v5873_v12 = vadd.f32 %v5872_v40, %v5871_v59 }
 0xadc   :  { %v5882_v9 = vadd.f32 %v5881_v36, %v5880_v45  ;;  %v5874_v17 = vrot.slane %v5873_v12, 2 }
 0xade   :  { %v5875_v34 = vadd.f32 %v5874_v17, %v5873_v12  ;;  %v5883_v43 = vrot.slane %v5882_v9, 1 }
 0xae0   :  { %v5876_v16 = vrot.slane %v5875_v34, 1  ;;  %v5884_v26 = vadd.f32 %v5883_v43, %v5882_v9 }
 0xae2   :  { %v5877_v42 = vadd.f32 %v5876_v16, %v5875_v34 }
 0xae4   :  { %v5940_v5 = vsel %vm5939_vm4, %v5877_v42, %v5938_v49 }
 0xae5   :  { %v5942_v10 = vsel %vm5941_vm5, %v5884_v26, %v5940_v5 }
 0xae6   :  { %v5958_v0 = vsel %vm2768_vm11, %v5942_v10, %v5956_v14 }
 0xae7   :  { %5960 = vst.msk [vmem:[%s8981_s8] sm:$0x3f] %vm5959_vm13, %v5958_v0 }

</bundles_post_ra>
